<compile_context>
chip_gen: v6e
topology: v6e:2x2x1
jax: 0.10.0
libtpu: 0.0.40
codegen_flags: <defaults>
</compile_context>

<pallas_src>
import jax
import jax.numpy as jnp
from jax.experimental import pallas as pl
from jax.experimental.pallas import tpu as pltpu


def value_classifier_kernel(
    state_ref, goal_ref,                  # activations
    w_ih_ref, w_hh_ref, b_rnn_ref,        # RNN (f32, tiny)
    w1_ref, w0_ref, aux1024_ref,          # fc1/fc0 folded weights + packed biases
    w2a_hbm_ref, w2b_hbm_ref,             # fc2 halves, bf16, left in HBM (manual DMA)
    w3_ref, aux512_ref, b4_ref,           # fc3 folded weight (bf16), packed c3/w4 row, b4
    y_ref,                                # output (B, 1)
    w2a_vmem, w2b_vmem, dma_sem,          # scratch: fc2 VMEM buffers + DMA semaphores
):
    f32 = jnp.float32
    bf16 = jnp.bfloat16

    # Kick off the dominant weight fetch (fc2, 2x2 MiB bf16) immediately so the
    # HBM->VMEM DMA overlaps the RNN / fc1 / fc0 compute below.
    cp_a = pltpu.make_async_copy(w2a_hbm_ref, w2a_vmem, dma_sem.at[0])
    cp_b = pltpu.make_async_copy(w2b_hbm_ref, w2b_vmem, dma_sem.at[1])
    cp_a.start()
    cp_b.start()

    TB = state_ref.shape[0]
    B = goal_ref.shape[0]
    H = w_hh_ref.shape[0]
    T = TB // B

    # --- ReLU Elman RNN, h0 = 0 (matches nn.RNN defaults). The input
    # projection is hoisted out of the serial recurrence and the T-step loop is
    # statically unrolled (T is compile-time), so the recurrence only carries
    # the small (B,H)x(H,H) matmul.
    x_proj = (jnp.dot(state_ref[...], w_ih_ref[...], preferred_element_type=f32)
              + b_rnn_ref[...])                                  # (T*B, H)
    w_hh = w_hh_ref[...]
    h = jnp.zeros((B, H), f32)
    for t in range(T):                                           # static unroll
        pre = x_proj[t * B:(t + 1) * B] + jnp.dot(h, w_hh, preferred_element_type=f32)
        h = jnp.maximum(pre, 0.0)

    aux1024 = aux1024_ref[...]
    c1 = aux1024[0:1]        # fc1 bias with bn1 folded in
    c0 = aux1024[1:2]        # fc0 bias with bn0 folded in
    c2 = aux1024[2:3]        # fc2 bias with bn2 folded in

    # fc1 (+bn1) + relu on the RNN final state; fc0 (+bn0) + relu on the goal.
    # (Dropout is identity in eval mode.)
    x = jnp.maximum(jnp.dot(h, w1_ref[...], preferred_element_type=f32) + c1, 0.0)
    g = jnp.maximum(jnp.dot(goal_ref[...], w0_ref[...], preferred_element_type=f32) + c0, 0.0)

    # fc2 (+bn2) + relu on cat(x, g):  cat(x,g) @ W2^T == x @ W2a + g @ W2b.
    # bf16 MXU inputs, f32 accumulation. Block on the prefetched weights first.
    cp_a.wait()
    cp_b.wait()
    z = jnp.maximum(
        jnp.dot(x.astype(bf16), w2a_vmem[...], preferred_element_type=f32)
        + jnp.dot(g.astype(bf16), w2b_vmem[...], preferred_element_type=f32)
        + c2, 0.0)

    # fc3 (+bn3) + relu.
    aux512 = aux512_ref[...]
    c3 = aux512[0:1]         # fc3 bias with bn3 folded in
    w4_row = aux512[1:2]     # fc4 weight as a (1, 512) row (kept f32)
    z = jnp.maximum(
        jnp.dot(z.astype(bf16), w3_ref[...], preferred_element_type=f32) + c3, 0.0)

    # fc4 (out_features = 1): VPU multiply + lane reduction instead of an N=1
    # MXU matmul — removes the last MXU round-trip from the kernel tail.
    y_ref[...] = jnp.sum(z * w4_row, axis=-1, keepdims=True) + b4_ref[...]


def _fold_bn(gamma, beta, mean, var, eps=1e-5):
    scale = gamma / jnp.sqrt(var + eps)
    shift = beta - mean * scale
    return scale, shift


def value_classifier_forward(state, goal, p):
    """state: (B, T, input_size) float32 (batch_first, as in PyTorch); goal: (B, goal_size)."""
    B, T, I = state.shape
    f32, bf16 = jnp.float32, jnp.bfloat16

    # Time-major then flattened so rows [t*B:(t+1)*B] are timestep t.
    state_flat = jnp.transpose(state, (1, 0, 2)).reshape(T * B, I).astype(f32)
    goal = goal.astype(f32)

    s0, t0 = _fold_bn(p["bn0_gamma"], p["bn0_beta"], p["bn0_mean"], p["bn0_var"])
    s1, t1 = _fold_bn(p["bn1_gamma"], p["bn1_beta"], p["bn1_mean"], p["bn1_var"])
    s2, t2 = _fold_bn(p["bn2_gamma"], p["bn2_beta"], p["bn2_mean"], p["bn2_var"])
    s3, t3 = _fold_bn(p["bn3_gamma"], p["bn3_beta"], p["bn3_mean"], p["bn3_var"])

    # Fold each BatchNorm affine (running stats) into its Linear:
    #   bn(x @ W.T + b) == x @ (W.T * s) + (b * s + t)
    w1_eff = (p["fc1_w"].T * s1[None, :]).astype(f32)
    c1 = (p["fc1_b"] * s1 + t1).reshape(1, -1).astype(f32)
    w0_eff = (p["fc0_w"].T * s0[None, :]).astype(f32)
    c0 = (p["fc0_b"] * s0 + t0).reshape(1, -1).astype(f32)

    w2_eff = p["fc2_w"].T * s2[None, :]                  # (2048, 1024), f32
    w2a_eff = w2_eff[:1024].astype(bf16)                 # multiplies x
    w2b_eff = w2_eff[1024:].astype(bf16)                 # multiplies g
    c2 = (p["fc2_b"] * s2 + t2).reshape(1, -1).astype(f32)

    w3_eff = (p["fc3_w"].T * s3[None, :]).astype(bf16)   # (1024, 512)
    c3 = (p["fc3_b"] * s3 + t3).reshape(1, -1).astype(f32)

    # Pack the small per-feature rows to cut DMA descriptor count.
    aux1024 = jnp.concatenate([c1, c0, c2], axis=0)                  # (3, 1024) f32
    aux512 = jnp.concatenate([c3, p["fc4_w"].astype(f32)], axis=0)   # (2, 512)  f32

    args = (
        state_flat, goal,
        p["w_ih"].T.astype(f32), p["w_hh"].T.astype(f32),
        (p["b_ih"] + p["b_hh"]).reshape(1, -1).astype(f32),
        w1_eff, w0_eff, aux1024,
        w2a_eff, w2b_eff,
        w3_eff, aux512, p["fc4_b"].reshape(1, 1).astype(f32),
    )

    vmem = pl.BlockSpec(memory_space=pltpu.MemorySpace.VMEM)
    hbm = pl.BlockSpec(memory_space=pl.ANY)
    in_specs = [
        vmem, vmem,              # state_flat, goal
        vmem, vmem, vmem,        # w_ih, w_hh, b_rnn
        vmem, vmem, vmem,        # w1_eff, w0_eff, aux1024
        hbm, hbm,                # w2a_eff, w2b_eff stay in HBM; fetched in-kernel
        vmem, vmem, vmem,        # w3_eff, aux512, b4
    ]

    return pl.pallas_call(
        value_classifier_kernel,
        out_shape=jax.ShapeDtypeStruct((B, 1), jnp.float32),
        in_specs=in_specs,
        out_specs=vmem,
        scratch_shapes=[
            pltpu.VMEM((1024, 1024), bf16),      # fc2 x-half landing buffer
            pltpu.VMEM((1024, 1024), bf16),      # fc2 g-half landing buffer
            pltpu.SemaphoreType.DMA((2,)),
        ],
        compiler_params=pltpu.CompilerParams(vmem_limit_bytes=32 * 1024 * 1024),
    )(*args)


# ----------------------------- test scaffolding ------------------------------

def _uniform(key, shape, bound):
    return jax.random.uniform(key, shape, jnp.float32, minval=-bound, maxval=bound)


def init_params(key, input_size=2, goal_size=12, hidden_size=10):
    """Deterministic synthetic parameters matching the PyTorch module's shapes,
    with non-trivial BatchNorm running stats so the BN fold is exercised."""
    keys = iter(jax.random.split(key, 40))
    p = {}
    rb = hidden_size ** -0.5
    p["w_ih"] = _uniform(next(keys), (hidden_size, input_size), rb)
    p["w_hh"] = _uniform(next(keys), (hidden_size, hidden_size), rb)
    p["b_ih"] = _uniform(next(keys), (hidden_size,), rb)
    p["b_hh"] = _uniform(next(keys), (hidden_size,), rb)

    def linear(fan_in, fan_out):
        b = fan_in ** -0.5
        return (_uniform(next(keys), (fan_out, fan_in), b),
                _uniform(next(keys), (fan_out,), b))

    p["fc0_w"], p["fc0_b"] = linear(goal_size, 1024)
    p["fc1_w"], p["fc1_b"] = linear(hidden_size, 1024)
    p["fc2_w"], p["fc2_b"] = linear(2048, 1024)
    p["fc3_w"], p["fc3_b"] = linear(1024, 512)
    p["fc4_w"], p["fc4_b"] = linear(512, 1)

    for name, n in (("bn0", 1024), ("bn1", 1024), ("bn2", 1024), ("bn3", 512)):
        p[f"{name}_gamma"] = jax.random.uniform(next(keys), (n,), jnp.float32, 0.7, 1.3)
        p[f"{name}_beta"] = 0.1 * jax.random.normal(next(keys), (n,), jnp.float32)
        p[f"{name}_mean"] = 0.1 * jax.random.normal(next(keys), (n,), jnp.float32)
        p[f"{name}_var"] = jax.random.uniform(next(keys), (n,), jnp.float32, 0.5, 1.5)
    return p


def reference_forward_exact(state, goal, p):
    """Pure-JAX, full-f32 reference of the PyTorch forward (eval mode)."""
    B, T, _ = state.shape
    h = jnp.zeros((B, p["w_hh"].shape[0]), jnp.float32)
    for t in range(T):
        h = jnp.maximum(
            state[:, t, :] @ p["w_ih"].T + p["b_ih"] + h @ p["w_hh"].T + p["b_hh"], 0.0)

    def bn(v, name):
        eps = 1e-5
        return ((v - p[f"{name}_mean"]) / jnp.sqrt(p[f"{name}_var"] + eps)
                * p[f"{name}_gamma"] + p[f"{name}_beta"])

    x = jnp.maximum(bn(h @ p["fc1_w"].T + p["fc1_b"], "bn1"), 0.0)
    g = jnp.maximum(bn(goal @ p["fc0_w"].T + p["fc0_b"], "bn0"), 0.0)
    z = jnp.concatenate([x, g], axis=1)
    z = jnp.maximum(bn(z @ p["fc2_w"].T + p["fc2_b"], "bn2"), 0.0)
    z = jnp.maximum(bn(z @ p["fc3_w"].T + p["fc3_b"], "bn3"), 0.0)
    return z @ p["fc4_w"].T + p["fc4_b"]


def reference_forward_kernel_math(state, goal, p):
    """Pure-JAX mirror of the kernel's exact math: BN folded into W/b, fc2/fc3
    weights and their matmul inputs in bf16 with f32 accumulation."""
    f32, bf16 = jnp.float32, jnp.bfloat16
    B, T, _ = state.shape
    eps = 1e-5

    def fold(name, w, b):
        s = p[f"{name}_gamma"] / jnp.sqrt(p[f"{name}_var"] + eps)
        t = p[f"{name}_beta"] - p[f"{name}_mean"] * s
        return w.T * s[None, :], b * s + t

    b_rnn = p["b_ih"] + p["b_hh"]
    h = jnp.zeros((B, p["w_hh"].shape[0]), f32)
    for t in range(T):
        pre = (state[:, t, :] @ p["w_ih"].T + b_rnn) + h @ p["w_hh"].T
        h = jnp.maximum(pre, 0.0)

    w1, c1 = fold("bn1", p["fc1_w"], p["fc1_b"])
    w0, c0 = fold("bn0", p["fc0_w"], p["fc0_b"])
    w2, c2 = fold("bn2", p["fc2_w"], p["fc2_b"])
    w3, c3 = fold("bn3", p["fc3_w"], p["fc3_b"])

    x = jnp.maximum(h @ w1 + c1, 0.0)
    g = jnp.maximum(goal @ w0 + c0, 0.0)
    z = jnp.maximum(
        jnp.dot(x.astype(bf16), w2[:1024].astype(bf16), preferred_element_type=f32)
        + jnp.dot(g.astype(bf16), w2[1024:].astype(bf16), preferred_element_type=f32)
        + c2, 0.0)
    z = jnp.maximum(
        jnp.dot(z.astype(bf16), w3.astype(bf16), preferred_element_type=f32) + c3, 0.0)
    return jnp.sum(z * p["fc4_w"], axis=-1, keepdims=True) + p["fc4_b"]


if __name__ == "__main__":
    key = jax.random.PRNGKey(0)
    k_param, k_state, k_goal = jax.random.split(key, 3)

    B, T, INPUT, GOAL, HIDDEN = 8, 8, 2, 12, 10
    params = init_params(k_param, input_size=INPUT, goal_size=GOAL, hidden_size=HIDDEN)
    state = jax.random.normal(k_state, (B, T, INPUT), jnp.float32)
    goal = jax.random.normal(k_goal, (B, GOAL), jnp.float32)

    y = value_classifier_forward(state, goal, params)
    y = jax.block_until_ready(y)
    assert y.shape == (B, 1)

    # Tight check: kernel reproduces its intended (BN-folded, fc2/fc3-in-bf16) math.
    y_mirror = reference_forward_kernel_math(state, goal, params)
    assert jnp.allclose(y, y_mirror, atol=2e-3, rtol=2e-3), "mismatch vs kernel-math reference"

    # Loose check: bf16 weight quantization stays close to exact f32 PyTorch-eval semantics.
    y_exact = reference_forward_exact(state, goal, params)
    assert jnp.allclose(y, y_exact, atol=5e-2, rtol=5e-2), "mismatch vs exact f32 reference"

    print("KERNEL_OK")
</pallas_src>

<mosaic_0001>
module attributes {stable_mosaic.version = 11 : i64} {
  func.func @value_classifier_kernel(%arg0: memref<64x2xf32, #tpu.memory_space<vmem>>, %arg1: memref<8x12xf32, #tpu.memory_space<vmem>>, %arg2: memref<2x10xf32, #tpu.memory_space<vmem>>, %arg3: memref<10x10xf32, #tpu.memory_space<vmem>>, %arg4: memref<1x10xf32, #tpu.memory_space<vmem>>, %arg5: memref<10x1024xf32, #tpu.memory_space<vmem>>, %arg6: memref<12x1024xf32, #tpu.memory_space<vmem>>, %arg7: memref<3x1024xf32, #tpu.memory_space<vmem>>, %arg8: memref<1024x1024xbf16, #tpu.memory_space<any>>, %arg9: memref<1024x1024xbf16, #tpu.memory_space<any>>, %arg10: memref<1024x512xbf16, #tpu.memory_space<vmem>>, %arg11: memref<2x512xf32, #tpu.memory_space<vmem>>, %arg12: memref<1x1xf32, #tpu.memory_space<vmem>>, %arg13: memref<8x1xf32, #tpu.memory_space<vmem>>, %arg14: memref<1024x1024xbf16, #tpu.memory_space<vmem>>, %arg15: memref<1024x1024xbf16, #tpu.memory_space<vmem>>, %arg16: memref<2x!tpu.dma_semaphore, #tpu.memory_space<semaphore_mem>>) attributes {dimension_semantics = [], scalar_prefetch = 0 : i64, scratch_operands = 3 : i64, tpu.core_type = #tpu.core_type<tc>} {
    %c0_i32 = arith.constant 0 : i32
    %0 = tpu.memref_slice %arg16[%c0_i32] : memref<2x!tpu.dma_semaphore, #tpu.memory_space<semaphore_mem>> -> memref<1x!tpu.dma_semaphore, #tpu.memory_space<semaphore_mem>>
    %1 = tpu.memref_squeeze %0 : memref<1x!tpu.dma_semaphore, #tpu.memory_space<semaphore_mem>> -> memref<!tpu.dma_semaphore, #tpu.memory_space<semaphore_mem>>
    tpu.enqueue_dma source(%arg8 : memref<1024x1024xbf16, #tpu.memory_space<any>>) target(%arg14 : memref<1024x1024xbf16, #tpu.memory_space<vmem>>) target_semaphore(%1 : memref<!tpu.dma_semaphore, #tpu.memory_space<semaphore_mem>>)
    %c1_i32 = arith.constant 1 : i32
    %2 = tpu.memref_slice %arg16[%c1_i32] : memref<2x!tpu.dma_semaphore, #tpu.memory_space<semaphore_mem>> -> memref<1x!tpu.dma_semaphore, #tpu.memory_space<semaphore_mem>>
    %3 = tpu.memref_squeeze %2 : memref<1x!tpu.dma_semaphore, #tpu.memory_space<semaphore_mem>> -> memref<!tpu.dma_semaphore, #tpu.memory_space<semaphore_mem>>
    tpu.enqueue_dma source(%arg9 : memref<1024x1024xbf16, #tpu.memory_space<any>>) target(%arg15 : memref<1024x1024xbf16, #tpu.memory_space<vmem>>) target_semaphore(%3 : memref<!tpu.dma_semaphore, #tpu.memory_space<semaphore_mem>>)
    %c0 = arith.constant 0 : index
    %c0_0 = arith.constant 0 : index
    %4 = vector.load %arg0[%c0, %c0_0] : memref<64x2xf32, #tpu.memory_space<vmem>>, vector<64x2xf32>
    %c0_1 = arith.constant 0 : index
    %c0_2 = arith.constant 0 : index
    %5 = vector.load %arg2[%c0_1, %c0_2] : memref<2x10xf32, #tpu.memory_space<vmem>>, vector<2x10xf32>
    %cst = arith.constant dense<0.000000e+00> : vector<64x10xf32>
    %6 = tpu.matmul %4, %5, %cst {dimension_numbers = #tpu.dot_dimension_numbers<[1], [0], [0], [1], [0, 0, 1, 1], [], []>} : vector<64x2xf32>, vector<2x10xf32>, vector<64x10xf32> -> vector<64x10xf32>
    %c0_3 = arith.constant 0 : index
    %c0_4 = arith.constant 0 : index
    %7 = vector.load %arg4[%c0_3, %c0_4] : memref<1x10xf32, #tpu.memory_space<vmem>>, vector<1x10xf32>
    %8 = vector.broadcast %7 : vector<1x10xf32> to vector<64x10xf32>
    %9 = arith.addf %6, %8 : vector<64x10xf32>
    %c0_5 = arith.constant 0 : index
    %c0_6 = arith.constant 0 : index
    %10 = vector.load %arg3[%c0_5, %c0_6] : memref<10x10xf32, #tpu.memory_space<vmem>>, vector<10x10xf32>
    %cst_7 = arith.constant 0.000000e+00 : f32
    %11 = vector.broadcast %cst_7 : f32 to vector<8x10xf32>
    %12 = vector.extract_strided_slice %9 {offsets = [0, 0], sizes = [8, 10], strides = [1, 1]} : vector<64x10xf32> to vector<8x10xf32>
    %cst_8 = arith.constant dense<0.000000e+00> : vector<8x10xf32>
    %13 = tpu.matmul %11, %10, %cst_8 {dimension_numbers = #tpu.dot_dimension_numbers<[1], [0], [0], [1], [0, 0, 1, 1], [], []>} : vector<8x10xf32>, vector<10x10xf32>, vector<8x10xf32> -> vector<8x10xf32>
    %14 = arith.addf %12, %13 : vector<8x10xf32>
    %cst_9 = arith.constant 0.000000e+00 : f32
    %15 = vector.broadcast %cst_9 : f32 to vector<8x10xf32>
    %16 = arith.maximumf %14, %15 : vector<8x10xf32>
    %17 = vector.extract_strided_slice %9 {offsets = [8, 0], sizes = [8, 10], strides = [1, 1]} : vector<64x10xf32> to vector<8x10xf32>
    %cst_10 = arith.constant dense<0.000000e+00> : vector<8x10xf32>
    %18 = tpu.matmul %16, %10, %cst_10 {dimension_numbers = #tpu.dot_dimension_numbers<[1], [0], [0], [1], [0, 0, 1, 1], [], []>} : vector<8x10xf32>, vector<10x10xf32>, vector<8x10xf32> -> vector<8x10xf32>
    %19 = arith.addf %17, %18 : vector<8x10xf32>
    %cst_11 = arith.constant 0.000000e+00 : f32
    %20 = vector.broadcast %cst_11 : f32 to vector<8x10xf32>
    %21 = arith.maximumf %19, %20 : vector<8x10xf32>
    %22 = vector.extract_strided_slice %9 {offsets = [16, 0], sizes = [8, 10], strides = [1, 1]} : vector<64x10xf32> to vector<8x10xf32>
    %cst_12 = arith.constant dense<0.000000e+00> : vector<8x10xf32>
    %23 = tpu.matmul %21, %10, %cst_12 {dimension_numbers = #tpu.dot_dimension_numbers<[1], [0], [0], [1], [0, 0, 1, 1], [], []>} : vector<8x10xf32>, vector<10x10xf32>, vector<8x10xf32> -> vector<8x10xf32>
    %24 = arith.addf %22, %23 : vector<8x10xf32>
    %cst_13 = arith.constant 0.000000e+00 : f32
    %25 = vector.broadcast %cst_13 : f32 to vector<8x10xf32>
    %26 = arith.maximumf %24, %25 : vector<8x10xf32>
    %27 = vector.extract_strided_slice %9 {offsets = [24, 0], sizes = [8, 10], strides = [1, 1]} : vector<64x10xf32> to vector<8x10xf32>
    %cst_14 = arith.constant dense<0.000000e+00> : vector<8x10xf32>
    %28 = tpu.matmul %26, %10, %cst_14 {dimension_numbers = #tpu.dot_dimension_numbers<[1], [0], [0], [1], [0, 0, 1, 1], [], []>} : vector<8x10xf32>, vector<10x10xf32>, vector<8x10xf32> -> vector<8x10xf32>
    %29 = arith.addf %27, %28 : vector<8x10xf32>
    %cst_15 = arith.constant 0.000000e+00 : f32
    %30 = vector.broadcast %cst_15 : f32 to vector<8x10xf32>
    %31 = arith.maximumf %29, %30 : vector<8x10xf32>
    %32 = vector.extract_strided_slice %9 {offsets = [32, 0], sizes = [8, 10], strides = [1, 1]} : vector<64x10xf32> to vector<8x10xf32>
    %cst_16 = arith.constant dense<0.000000e+00> : vector<8x10xf32>
    %33 = tpu.matmul %31, %10, %cst_16 {dimension_numbers = #tpu.dot_dimension_numbers<[1], [0], [0], [1], [0, 0, 1, 1], [], []>} : vector<8x10xf32>, vector<10x10xf32>, vector<8x10xf32> -> vector<8x10xf32>
    %34 = arith.addf %32, %33 : vector<8x10xf32>
    %cst_17 = arith.constant 0.000000e+00 : f32
    %35 = vector.broadcast %cst_17 : f32 to vector<8x10xf32>
    %36 = arith.maximumf %34, %35 : vector<8x10xf32>
    %37 = vector.extract_strided_slice %9 {offsets = [40, 0], sizes = [8, 10], strides = [1, 1]} : vector<64x10xf32> to vector<8x10xf32>
    %cst_18 = arith.constant dense<0.000000e+00> : vector<8x10xf32>
    %38 = tpu.matmul %36, %10, %cst_18 {dimension_numbers = #tpu.dot_dimension_numbers<[1], [0], [0], [1], [0, 0, 1, 1], [], []>} : vector<8x10xf32>, vector<10x10xf32>, vector<8x10xf32> -> vector<8x10xf32>
    %39 = arith.addf %37, %38 : vector<8x10xf32>
    %cst_19 = arith.constant 0.000000e+00 : f32
    %40 = vector.broadcast %cst_19 : f32 to vector<8x10xf32>
    %41 = arith.maximumf %39, %40 : vector<8x10xf32>
    %42 = vector.extract_strided_slice %9 {offsets = [48, 0], sizes = [8, 10], strides = [1, 1]} : vector<64x10xf32> to vector<8x10xf32>
    %cst_20 = arith.constant dense<0.000000e+00> : vector<8x10xf32>
    %43 = tpu.matmul %41, %10, %cst_20 {dimension_numbers = #tpu.dot_dimension_numbers<[1], [0], [0], [1], [0, 0, 1, 1], [], []>} : vector<8x10xf32>, vector<10x10xf32>, vector<8x10xf32> -> vector<8x10xf32>
    %44 = arith.addf %42, %43 : vector<8x10xf32>
    %cst_21 = arith.constant 0.000000e+00 : f32
    %45 = vector.broadcast %cst_21 : f32 to vector<8x10xf32>
    %46 = arith.maximumf %44, %45 : vector<8x10xf32>
    %47 = vector.extract_strided_slice %9 {offsets = [56, 0], sizes = [8, 10], strides = [1, 1]} : vector<64x10xf32> to vector<8x10xf32>
    %cst_22 = arith.constant dense<0.000000e+00> : vector<8x10xf32>
    %48 = tpu.matmul %46, %10, %cst_22 {dimension_numbers = #tpu.dot_dimension_numbers<[1], [0], [0], [1], [0, 0, 1, 1], [], []>} : vector<8x10xf32>, vector<10x10xf32>, vector<8x10xf32> -> vector<8x10xf32>
    %49 = arith.addf %47, %48 : vector<8x10xf32>
    %cst_23 = arith.constant 0.000000e+00 : f32
    %50 = vector.broadcast %cst_23 : f32 to vector<8x10xf32>
    %51 = arith.maximumf %49, %50 : vector<8x10xf32>
    %c0_24 = arith.constant 0 : index
    %c0_25 = arith.constant 0 : index
    %52 = vector.load %arg7[%c0_24, %c0_25] : memref<3x1024xf32, #tpu.memory_space<vmem>>, vector<3x1024xf32>
    %53 = vector.extract_strided_slice %52 {offsets = [0, 0], sizes = [1, 1024], strides = [1, 1]} : vector<3x1024xf32> to vector<1x1024xf32>
    %54 = vector.extract_strided_slice %52 {offsets = [1, 0], sizes = [1, 1024], strides = [1, 1]} : vector<3x1024xf32> to vector<1x1024xf32>
    %55 = vector.extract_strided_slice %52 {offsets = [2, 0], sizes = [1, 1024], strides = [1, 1]} : vector<3x1024xf32> to vector<1x1024xf32>
    %c0_26 = arith.constant 0 : index
    %c0_27 = arith.constant 0 : index
    %56 = vector.load %arg5[%c0_26, %c0_27] : memref<10x1024xf32, #tpu.memory_space<vmem>>, vector<10x1024xf32>
    %cst_28 = arith.constant dense<0.000000e+00> : vector<8x1024xf32>
    %57 = tpu.matmul %51, %56, %cst_28 {dimension_numbers = #tpu.dot_dimension_numbers<[1], [0], [0], [1], [0, 0, 1, 1], [], []>} : vector<8x10xf32>, vector<10x1024xf32>, vector<8x1024xf32> -> vector<8x1024xf32>
    %58 = vector.broadcast %53 : vector<1x1024xf32> to vector<8x1024xf32>
    %59 = arith.addf %57, %58 : vector<8x1024xf32>
    %cst_29 = arith.constant 0.000000e+00 : f32
    %60 = vector.broadcast %cst_29 : f32 to vector<8x1024xf32>
    %61 = arith.maximumf %59, %60 : vector<8x1024xf32>
    %c0_30 = arith.constant 0 : index
    %c0_31 = arith.constant 0 : index
    %62 = vector.load %arg1[%c0_30, %c0_31] : memref<8x12xf32, #tpu.memory_space<vmem>>, vector<8x12xf32>
    %c0_32 = arith.constant 0 : index
    %c0_33 = arith.constant 0 : index
    %63 = vector.load %arg6[%c0_32, %c0_33] : memref<12x1024xf32, #tpu.memory_space<vmem>>, vector<12x1024xf32>
    %cst_34 = arith.constant dense<0.000000e+00> : vector<8x1024xf32>
    %64 = tpu.matmul %62, %63, %cst_34 {dimension_numbers = #tpu.dot_dimension_numbers<[1], [0], [0], [1], [0, 0, 1, 1], [], []>} : vector<8x12xf32>, vector<12x1024xf32>, vector<8x1024xf32> -> vector<8x1024xf32>
    %65 = vector.broadcast %54 : vector<1x1024xf32> to vector<8x1024xf32>
    %66 = arith.addf %64, %65 : vector<8x1024xf32>
    %cst_35 = arith.constant 0.000000e+00 : f32
    %67 = vector.broadcast %cst_35 : f32 to vector<8x1024xf32>
    %68 = arith.maximumf %66, %67 : vector<8x1024xf32>
    %c0_i32_36 = arith.constant 0 : i32
    %69 = tpu.memref_slice %arg16[%c0_i32_36] : memref<2x!tpu.dma_semaphore, #tpu.memory_space<semaphore_mem>> -> memref<1x!tpu.dma_semaphore, #tpu.memory_space<semaphore_mem>>
    %70 = tpu.memref_squeeze %69 : memref<1x!tpu.dma_semaphore, #tpu.memory_space<semaphore_mem>> -> memref<!tpu.dma_semaphore, #tpu.memory_space<semaphore_mem>>
    tpu.wait_dma2 semaphore(%70 : memref<!tpu.dma_semaphore, #tpu.memory_space<semaphore_mem>>) src(%arg8 : memref<1024x1024xbf16, #tpu.memory_space<any>>) dst(%arg14 : memref<1024x1024xbf16, #tpu.memory_space<vmem>>)
    %c1_i32_37 = arith.constant 1 : i32
    %71 = tpu.memref_slice %arg16[%c1_i32_37] : memref<2x!tpu.dma_semaphore, #tpu.memory_space<semaphore_mem>> -> memref<1x!tpu.dma_semaphore, #tpu.memory_space<semaphore_mem>>
    %72 = tpu.memref_squeeze %71 : memref<1x!tpu.dma_semaphore, #tpu.memory_space<semaphore_mem>> -> memref<!tpu.dma_semaphore, #tpu.memory_space<semaphore_mem>>
    tpu.wait_dma2 semaphore(%72 : memref<!tpu.dma_semaphore, #tpu.memory_space<semaphore_mem>>) src(%arg9 : memref<1024x1024xbf16, #tpu.memory_space<any>>) dst(%arg15 : memref<1024x1024xbf16, #tpu.memory_space<vmem>>)
    %73 = arith.truncf %61 : vector<8x1024xf32> to vector<8x1024xbf16>
    %c0_38 = arith.constant 0 : index
    %c0_39 = arith.constant 0 : index
    %74 = vector.load %arg14[%c0_38, %c0_39] : memref<1024x1024xbf16, #tpu.memory_space<vmem>>, vector<1024x1024xbf16>
    %cst_40 = arith.constant dense<0.000000e+00> : vector<8x1024xf32>
    %75 = tpu.matmul %73, %74, %cst_40 {dimension_numbers = #tpu.dot_dimension_numbers<[1], [0], [0], [1], [0, 0, 1, 1], [], []>} : vector<8x1024xbf16>, vector<1024x1024xbf16>, vector<8x1024xf32> -> vector<8x1024xf32>
    %76 = arith.truncf %68 : vector<8x1024xf32> to vector<8x1024xbf16>
    %c0_41 = arith.constant 0 : index
    %c0_42 = arith.constant 0 : index
    %77 = vector.load %arg15[%c0_41, %c0_42] : memref<1024x1024xbf16, #tpu.memory_space<vmem>>, vector<1024x1024xbf16>
    %cst_43 = arith.constant dense<0.000000e+00> : vector<8x1024xf32>
    %78 = tpu.matmul %76, %77, %cst_43 {dimension_numbers = #tpu.dot_dimension_numbers<[1], [0], [0], [1], [0, 0, 1, 1], [], []>} : vector<8x1024xbf16>, vector<1024x1024xbf16>, vector<8x1024xf32> -> vector<8x1024xf32>
    %79 = arith.addf %75, %78 : vector<8x1024xf32>
    %80 = vector.broadcast %55 : vector<1x1024xf32> to vector<8x1024xf32>
    %81 = arith.addf %79, %80 : vector<8x1024xf32>
    %cst_44 = arith.constant 0.000000e+00 : f32
    %82 = vector.broadcast %cst_44 : f32 to vector<8x1024xf32>
    %83 = arith.maximumf %81, %82 : vector<8x1024xf32>
    %c0_45 = arith.constant 0 : index
    %c0_46 = arith.constant 0 : index
    %84 = vector.load %arg11[%c0_45, %c0_46] : memref<2x512xf32, #tpu.memory_space<vmem>>, vector<2x512xf32>
    %85 = vector.extract_strided_slice %84 {offsets = [0, 0], sizes = [1, 512], strides = [1, 1]} : vector<2x512xf32> to vector<1x512xf32>
    %86 = vector.extract_strided_slice %84 {offsets = [1, 0], sizes = [1, 512], strides = [1, 1]} : vector<2x512xf32> to vector<1x512xf32>
    %87 = arith.truncf %83 : vector<8x1024xf32> to vector<8x1024xbf16>
    %c0_47 = arith.constant 0 : index
    %c0_48 = arith.constant 0 : index
    %88 = vector.load %arg10[%c0_47, %c0_48] : memref<1024x512xbf16, #tpu.memory_space<vmem>>, vector<1024x512xbf16>
    %cst_49 = arith.constant dense<0.000000e+00> : vector<8x512xf32>
    %89 = tpu.matmul %87, %88, %cst_49 {dimension_numbers = #tpu.dot_dimension_numbers<[1], [0], [0], [1], [0, 0, 1, 1], [], []>} : vector<8x1024xbf16>, vector<1024x512xbf16>, vector<8x512xf32> -> vector<8x512xf32>
    %90 = vector.broadcast %85 : vector<1x512xf32> to vector<8x512xf32>
    %91 = arith.addf %89, %90 : vector<8x512xf32>
    %cst_50 = arith.constant 0.000000e+00 : f32
    %92 = vector.broadcast %cst_50 : f32 to vector<8x512xf32>
    %93 = arith.maximumf %91, %92 : vector<8x512xf32>
    %94 = vector.broadcast %86 : vector<1x512xf32> to vector<8x512xf32>
    %95 = arith.mulf %93, %94 : vector<8x512xf32>
    %cst_51 = arith.constant dense<0.000000e+00> : vector<8xf32>
    %96 = vector.multi_reduction <add>, %95, %cst_51 [1] : vector<8x512xf32> to vector<8xf32>
    %97 = vector.shape_cast %96 : vector<8xf32> to vector<8x1xf32>
    %c0_52 = arith.constant 0 : index
    %c0_53 = arith.constant 0 : index
    %98 = vector.load %arg12[%c0_52, %c0_53] : memref<1x1xf32, #tpu.memory_space<vmem>>, vector<1x1xf32>
    %99 = vector.broadcast %98 : vector<1x1xf32> to vector<8x1xf32>
    %100 = arith.addf %97, %99 : vector<8x1xf32>
    %c0_54 = arith.constant 0 : index
    %c0_55 = arith.constant 0 : index
    %101 = vector.load %arg13[%c0_54, %c0_55] : memref<8x1xf32, #tpu.memory_space<vmem>>, vector<8x1xf32>
    tpu.vector_store %arg13[%c0_54, %c0_55], %100 {strides = array<i32>} : memref<8x1xf32, #tpu.memory_space<vmem>>, vector<8x1xf32>,
    return
  }
}

</mosaic_0001>

<bundles_post_ra>
// kernel: tpu_custom_call.1
= control target key start
LH: loop header
LB: loop body
LE: loop exit
PB: predicated region body
PF: predicated region fallthrough
CT: control target
= control target key end

     0   :  { %s14108_s0 = inlined_call_operand.vmem [shape: f32[64,2], index: 0, kind: input, shape index: {}]   ;;  %s14109_s1 = inlined_call_operand.hbm [shape: f32[8,12], index: 1, kind: input, shape index: {}]   ;;  %s14110_s2 = inlined_call_operand.hbm [shape: f32[2,10], index: 2, kind: input, shape index: {}]   ;;  %s14111_s3 = inlined_call_operand.hbm [shape: f32[10,10], index: 3, kind: input, shape index: {}]   ;;  %s14112_s4 = inlined_call_operand.hbm [shape: f32[1,10], index: 4, kind: input, shape index: {}]   ;;  %s14113_s5 = inlined_call_operand.hbm [shape: f32[10,1024], index: 5, kind: input, shape index: {}]   ;;  %s14114_s6 = inlined_call_operand.hbm [shape: f32[12,1024], index: 6, kind: input, shape index: {}]   ;;  %s14115_s7 = inlined_call_operand.hbm [shape: f32[3,1024], index: 7, kind: input, shape index: {}]   ;;  %s14116_s8 = inlined_call_operand.hbm [shape: bf16[1024,1024], index: 8, kind: input, shape index: {}]   ;;  %s14117_s9 = inlined_call_operand.hbm [shape: bf16[1024,1024], index: 9, kind: input, shape index: {}]   ;;  %s14118_s10 = inlined_call_operand.hbm [shape: bf16[1024,512], index: 10, kind: input, shape index: {}]   ;;  %s14119_s11 = inlined_call_operand.hbm [shape: f32[2,512], index: 11, kind: input, shape index: {}]   ;;  %s14120_s12 = inlined_call_operand.<no memory space> [shape: f32[1,1], index: 12, kind: input, shape index: {}]   ;;  %s14121_s13 = inlined_call_operand.vmem [shape: f32[8,1], index: 13, kind: output, shape index: {}]  }
   0x1   :  { %v18_v0 = vstv %s14120_s12 }
   0x2   :  { %19 = vst [vmem:[#allocation5] sm:$0x1] %v18_v0 }
   0x3   :  { %20 = vsyncpa [#allocation7], 0 }
   0x4   :  { %21 = vsyncpa [#allocation9], 0 }
   0x5   :  { %22 = vsyncpa [#allocation12], 0 }
   0x6   :  { %23 = vsyncpa [#allocation15], 0 }
   0x7   :  { %24 = vsyncpa [#allocation18], 0  ;;  %s13387_s27 = smov [#allocation8]   ;;  %s13388_s29 = smov [#allocation11]  }
   0x8   :  { %s43_s28 = sshll.u32 %s13387_s27, 4  ;;  %s65_s30 = sshll.u32 %s13388_s29, 4  ;;  %s44_s28 = int_to_ptr.vmem [resolvable:$true] %s43_s28  ;;  %s66_s30 = int_to_ptr.vmem [resolvable:$true] %s65_s30 }
   0x9   :  { %s13161_s14 = scalar_lea.vmem %s44_s28, 32  ;;  %p13166_p1 = scmp.lt.s32.totalorder %s44_s28, %s44_s28 }
   0xa   :  { %p13162_p0 = scmp.ne.s32.totalorder %s44_s28, %s13161_s14  ;;  %p13167_p2 = scmp.lt.s32.totalorder %s13161_s14, %s13161_s14 }
   0xc   :  { %p13168_p3 = por %p13167_p2, %p13166_p1 }
   0xe   :  { %p13169_p4 = pnand %p13168_p3, %p13162_p0 }
  0x10   :  { %13172 = shalt.err (!%p13169_p4)
}
  0x11   :  { %46 = dma.hbm_to_vmem [thread:$0]  %s14110_s2, 32, %s44_s28, [#allocation9]  }
  0x12   :  { %s13181_s16 = scalar_lea.vmem %s66_s30, 16  ;;  %s13185_s17 = scalar_lea.vmem %s66_s30, 32 }
  0x13   :  { %p13182_p5 = scmp.ne.s32.totalorder %s66_s30, %s13181_s16  ;;  %p13186_p6 = scmp.lt.s32.totalorder %s66_s30, %s66_s30 }
  0x14   :  { %p13187_p7 = scmp.lt.s32.totalorder %s13185_s17, %s13181_s16 }
  0x16   :  { %p13188_p8 = por %p13187_p7, %p13186_p6 }
  0x18   :  { %p13189_p9 = pnand %p13188_p8, %p13182_p5 }
  0x1a   :  { %13192 = shalt.err (!%p13189_p9)
}
  0x1b   :  { %68 = dma.hbm_to_vmem [thread:$0]  %s14112_s4, 16, %s66_s30, [#allocation12]  }
  0x1c   :  { %s13389_s20 = smov [#allocation14]   ;;  %s13390_s22 = smov [#allocation17]  }
  0x1d   :  { %s86_s21 = sshll.u32 %s13389_s20, 4  ;;  %s108_s23 = sshll.u32 %s13390_s22, 4  ;;  %s87_s21 = int_to_ptr.vmem [resolvable:$true] %s86_s21  ;;  %s109_s23 = int_to_ptr.vmem [resolvable:$true] %s108_s23 }
  0x1e   :  { %s13201_s24 = scalar_lea.vmem %s87_s21, 2048  ;;  %p13206_p11 = scmp.lt.s32.totalorder %s87_s21, %s87_s21 }
  0x1f   :  { %p13202_p10 = scmp.ne.s32.totalorder %s87_s21, %s13201_s24  ;;  %p13207_p12 = scmp.lt.s32.totalorder %s13201_s24, %s13201_s24 }
  0x21   :  { %p13208_p13 = por %p13207_p12, %p13206_p11 }
  0x23   :  { %p13209_p0 = pnand %p13208_p13, %p13202_p10 }
  0x25   :  { %13212 = shalt.err (!%p13209_p0)
}
  0x26   :  { %s13391_s2 = smov 1024   ;;  %s13392_s25 = smov 64  }
  0x27   :  { %92 = dma.hbm_to_vmem [thread:$0]  %s14114_s6, 2048, %s87_s21, [#allocation15], %s13391_s2, %s13391_s2, %s13392_s25  }
  0x28   :  { %s13221_s27 = scalar_lea.vmem %s109_s23, 32768  ;;  %p13226_p2 = scmp.lt.s32.totalorder %s109_s23, %s109_s23 }
  0x29   :  { %p13222_p1 = scmp.ne.s32.totalorder %s109_s23, %s13221_s27  ;;  %p13227_p3 = scmp.lt.s32.totalorder %s13221_s27, %s13221_s27 }
  0x2b   :  { %p13228_p4 = por %p13227_p3, %p13226_p2 }
  0x2d   :  { %p13229_p5 = pnand %p13228_p4, %p13222_p1 }
  0x2f   :  { %13232 = shalt.err (!%p13229_p5)
}
  0x30   :  { %s13393_s28 = smov 256   ;;  %s13394_s29 = smov 16  }
  0x31   :  { %114 = dma.hbm_to_vmem [thread:$0]  %s14118_s10, 32768, %s109_s23, [#allocation18], %s13393_s28, %s13393_s28, %s13394_s29  }
  0x32   :  { %s13395_s12 = smov [#allocation6]   ;;  %s13396_s16 = smov [#allocation10]  }
  0x33   :  { %s33_s15 = sshll.u32 %s13395_s12, 4  ;;  %s52_s17 = sshll.u32 %s13396_s16, 4  ;;  %s34_s15 = int_to_ptr.vmem [resolvable:$true] %s33_s15  ;;  %s53_s17 = int_to_ptr.vmem [resolvable:$true] %s52_s17 }
  0x34   :  { %s13241_s6 = scalar_lea.vmem %s34_s15, 128  ;;  %p13246_p7 = scmp.lt.s32.totalorder %s34_s15, %s34_s15 }
  0x35   :  { %p13242_p6 = scmp.ne.s32.totalorder %s34_s15, %s13241_s6  ;;  %p13247_p8 = scmp.lt.s32.totalorder %s13241_s6, %s13241_s6 }
  0x37   :  { %p13248_p9 = por %p13247_p8, %p13246_p7 }
  0x39   :  { %p13249_p10 = pnand %p13248_p9, %p13242_p6 }
  0x3b   :  { %13252 = shalt.err (!%p13249_p10)
}
  0x3c   :  { %36 = dma.hbm_to_vmem [thread:$0]  %s14109_s1, 128, %s34_s15, [#allocation7]  }
  0x3d   :  { %s13261_s20 = scalar_lea.vmem %s53_s17, 256  ;;  %p13266_p12 = scmp.lt.s32.totalorder %s53_s17, %s53_s17 }
  0x3e   :  { %p13262_p11 = scmp.ne.s32.totalorder %s53_s17, %s13261_s20  ;;  %p13267_p13 = scmp.lt.s32.totalorder %s13261_s20, %s13261_s20 }
  0x40   :  { %p13268_p0 = por %p13267_p13, %p13266_p12 }
  0x42   :  { %p13269_p1 = pnand %p13268_p0, %p13262_p11 }
  0x44   :  { %13272 = shalt.err (!%p13269_p1)
}
  0x45   :  { %s13397_s10 = smov 128   ;;  %s13398_s21 = smov 8  }
  0x46   :  { %58 = dma.hbm_to_vmem [thread:$0]  %s14111_s3, 256, %s53_s17, [#allocation9], %s13397_s10, %s13397_s10, %s13398_s21  }
  0x47   :  { %s13399_s24 = smov [#allocation13]   ;;  %s13400_s4 = smov [#allocation16]  }
  0x48   :  { %s74_s26 = sshll.u32 %s13399_s24, 4  ;;  %s99_s27 = sshll.u32 %s13400_s4, 4  ;;  %s75_s26 = int_to_ptr.vmem [resolvable:$true] %s74_s26  ;;  %s100_s27 = int_to_ptr.vmem [resolvable:$true] %s99_s27 }
  0x49   :  { %s13281_s1 = scalar_lea.vmem %s75_s26, 2048  ;;  %p13286_p3 = scmp.lt.s32.totalorder %s75_s26, %s75_s26 }
  0x4a   :  { %p13282_p2 = scmp.ne.s32.totalorder %s75_s26, %s13281_s1  ;;  %p13287_p4 = scmp.lt.s32.totalorder %s13281_s1, %s13281_s1 }
  0x4c   :  { %p13288_p5 = por %p13287_p4, %p13286_p3 }
  0x4e   :  { %p13289_p6 = pnand %p13288_p5, %p13282_p2 }
  0x50   :  { %13292 = shalt.err (!%p13289_p6)
}
  0x51   :  { %80 = dma.hbm_to_vmem [thread:$0]  %s14113_s5, 2048, %s75_s26, [#allocation12], %s13391_s2, %s13391_s2, %s13392_s25  }
  0x52   :  { %s13301_s3 = scalar_lea.vmem %s100_s27, 512  ;;  %p13306_p8 = scmp.lt.s32.totalorder %s100_s27, %s100_s27 }
  0x53   :  { %p13302_p7 = scmp.ne.s32.totalorder %s100_s27, %s13301_s3  ;;  %p13307_p9 = scmp.lt.s32.totalorder %s13301_s3, %s13301_s3 }
  0x55   :  { %p13308_p10 = por %p13307_p9, %p13306_p8 }
  0x57   :  { %p13309_p11 = pnand %p13308_p10, %p13302_p7 }
  0x59   :  { %13312 = shalt.err (!%p13309_p11)
}
  0x5a   :  { %102 = dma.hbm_to_vmem [thread:$0]  %s14115_s7, 512, %s100_s27, [#allocation15]  }
  0x5b   :  { %s13401_s12 = smov [#allocation19]  }
  0x5c   :  { %s121_s15 = sshll.u32 %s13401_s12, 4  ;;  %s122_s15 = int_to_ptr.vmem [resolvable:$true] %s121_s15 }
  0x5d   :  { %s13321_s16 = scalar_lea.vmem %s122_s15, 128  ;;  %p13326_p13 = scmp.lt.s32.totalorder %s122_s15, %s122_s15 }
  0x5e   :  { %p13322_p12 = scmp.ne.s32.totalorder %s122_s15, %s13321_s16  ;;  %p13327_p0 = scmp.lt.s32.totalorder %s13321_s16, %s13321_s16 }
  0x60   :  { %p13328_p1 = por %p13327_p0, %p13326_p13 }
  0x62   :  { %p13329_p2 = pnand %p13328_p1, %p13322_p12 }
  0x64   :  { %13332 = shalt.err (!%p13329_p2)
}
  0x65   :  { %124 = dma.hbm_to_vmem [thread:$0]  %s14119_s11, 128, %s122_s15, [#allocation18]  }
  0x66   :  { %13373 = dma.done.wait [#allocation7], 128  }
  0x67   :  { %13374 = vsyncadd [#allocation7], 4294967168 }
  0x68   :  { %13375 = dma.done.wait [#allocation9], 288  }
  0x69   :  { %13376 = vsyncadd [#allocation9], 4294967008 }
  0x6a   :  { %13377 = dma.done.wait [#allocation12], 2064  }
  0x6b   :  { %13378 = vsyncadd [#allocation12], 4294965232 }
  0x6c   :  { %13379 = dma.done.wait [#allocation15], 2560  }
  0x6d   :  { %13380 = vsyncadd [#allocation15], 4294964736 }
  0x6e   :  { %13381 = dma.done.wait [#allocation18], 32896  }
  0x6f   :  { %13382 = vsyncadd [#allocation18], 4294934400  ;;  %v13402_v1 = vmov 0.0   ;;  %vm13403_vm0 = vmmov 0   ;;  %vm218_vm1 = vcmask 1041408   ;;  %vm193_vm2 = vcmask 15360  }
  0x70   :  { %12694 = vmatprep.subr.mxu1 %v13402_v1  ;;  %12698 = vmatprep.mubr.msk.f32.mxu1 %vm13403_vm0, %v13402_v1  ;;  %v185_v2 = vld [vmem:[#allocation8] sm:$0x3]  ;;  %v177_v3 = vld [vmem:[%s14108_s0] sm:$0xff]  ;;  %v13518_v4 = vld [vmem:[#allocation10 + $0x8] sm:$0x3]  ;;  %vm329_vm3 = vcmask 80896  }
  0x71   :  { %12680 = vmatprep.subr.msk.mxu0 %vm218_vm1, %v185_v2  ;;  %12682 = vmatprep.mubr.msk.f32.mxu0 %vm193_vm2, %v177_v3  ;;  %v178_v5 = vld [vmem:[%s14108_s0 + $0x8] sm:$0xff]  ;;  %v179_v7 = vld [vmem:[%s14108_s0 + $0x10] sm:$0xff]  ;;  %v180_v8 = vld [vmem:[%s14108_s0 + $0x18] sm:$0xff]  ;;  %vm1441_vm4 = vcmask 1043456   ;;  %vm1437_vm5 = vcmask 97280   ;;  %s13405_s28 = smov [#allocation3]  }
  0x72   :  { %v13525_v6 = vld [vmem:[#allocation10] sm:$0xff]  ;;  %12681 = vmatpush3.msk.msra.mxu0 %vm218_vm1, %v185_v2  ;;  %12695 = vmatpush3.msk.msra.mxu1 %vm218_vm1, %v13518_v4  ;;  %v13556_v10 = vld [vmem:[#allocation11] ss:$0 sm:$0xff]  ;;  %v181_v22 = vld [vmem:[%s14108_s0 + $0x20] sm:$0xff]  ;;  %s173_s29 = sshll.u32 %s13405_s28, 4  ;;  %s174_s29 = int_to_ptr.vmem [resolvable:$true] %s173_s29 }
  0x73   :  { %12683 = vmatmul.mubr.msk.f32.vlgmr.msra.gmra.mxu0 %vm193_vm2, %v178_v5  ;;  %12696 = vmatprep.subr.mxu1 %v13402_v1  ;;  %v182_v23 = vld [vmem:[%s14108_s0 + $0x28] sm:$0xff]  ;;  %v183_v24 = vld [vmem:[%s14108_s0 + $0x30] sm:$0xff]  ;;  %v184_v25 = vld [vmem:[%s14108_s0 + $0x38] sm:$0xff]  ;;  %s13404_s0 = smov [#allocation2]  }
  0x74   :  { %12697 = vmatpush3.msra.mxu1 %v13525_v6  ;;  %12722 = vmatprep.subr.mxu0 %v13402_v1  ;;  %v946_v57 = vld [vmem:[#allocation13 + $0x48] sm:$0x3]  ;;  %v948_v58 = vld [vmem:[#allocation13 + $0x58] sm:$0x3]  ;;  %v945_v59 = vld [vmem:[#allocation13 + $0x40] sm:$0x3] }
  0x75   :  { %12699 = vmatmul.mubr.f32.vlgmr.msra.gmra.mxu1 %v13402_v1  ;;  %12701 = vmatprep.subr.mxu1 %v13402_v1  ;;  %v947_v60 = vld [vmem:[#allocation13 + $0x50] sm:$0x3]  ;;  %v938_v61 = vld [vmem:[#allocation13 + $0x8] sm:$0xff]  ;;  %v940_v62 = vld [vmem:[#allocation13 + $0x18] sm:$0xff]  ;;  %s161_s1 = sshll.u32 %s13404_s0, 4  ;;  %s162_s1 = int_to_ptr.vmem [resolvable:$true] %s161_s1 }
  0x76   :  { %12702 = vmatpush3.msk.msra.mxu1 %vm218_vm1, %v13518_v4  ;;  %12705 = vmatprep.mubr.msk.f32.mxu1 %vm13403_vm0, %v13402_v1  ;;  %v937_v63 = vld [vmem:[#allocation13] sm:$0xff]  ;;  %v939_v0 = vld [vmem:[#allocation13 + $0x10] sm:$0xff]  ;;  %v950_v2 = vld [vmem:[#allocation13 + $0x68] sm:$0x3]  ;;  %s13341_s3 = scalar_lea.vmem %s162_s1, 65536  ;;  %p13346_p4 = scmp.lt.s32.totalorder %s162_s1, %s162_s1 }
  0x77   :  { %12703 = vmatprep.subr.mxu1 %v13402_v1  ;;  %12723 = vmatpush3.msk.msra.mxu0 %vm218_vm1, %v13518_v4  ;;  %v952_v3 = vld [vmem:[#allocation13 + $0x78] sm:$0x3]  ;;  %p13342_p3 = scmp.ne.s32.totalorder %s162_s1, %s13341_s3  ;;  %p13347_p5 = scmp.lt.s32.totalorder %s13341_s3, %s13341_s3 }
  0x78   :  { %12704 = vmatpush3.msra.mxu1 %v13525_v6  ;;  %12724 = vmatprep.subr.mxu0 %v13402_v1 }
  0x79   :  { %12708 = vmatprep.subr.mxu1 %v13402_v1  ;;  %12725 = vmatpush3.msra.mxu0 %v13525_v6  ;;  %p13348_p6 = por %p13347_p5, %p13346_p4 }
  0x7a   :  { %12736 = vmatprep.subr.mxu0 %v13402_v1  ;;  %12685 = vmatprep.mubr.msk.f32.mxu0 %vm193_vm2, %v179_v7 }
  0x7b   :  { %12686 = vmatmul.mubr.msk.f32.gmra.mxu0 %vm193_vm2, %v180_v8  ;;  %p13349_p7 = pnand %p13348_p6, %p13342_p3 }
  0x7c   :  { %12688 = vmatprep.mubr.msk.f32.mxu0 %vm193_vm2, %v181_v22  ;;  %v1351_v22 = vld [vmem:[#allocation14 + $0x10] sm:$0xff] }
  0x7f   :  { %12689 = vmatmul.mubr.msk.f32.gmra.mxu0 %vm193_vm2, %v182_v23  ;;  %v1362_v23 = vld [vmem:[#allocation14 + $0x68] sm:$0xf] }
  0x80   :  { %12691 = vmatprep.mubr.msk.f32.mxu0 %vm193_vm2, %v183_v24  ;;  %v1364_v24 = vld [vmem:[#allocation14 + $0x78] sm:$0xf] }
  0x83   :  { %12692 = vmatmul.mubr.msk.f32.gmra.mxu0 %vm193_vm2, %v184_v25  ;;  %v1348_v25 = vld [vmem:[#allocation6] sm:$0xff] }
  0x84   :  { %12726 = vmatprep.mubr.msk.f32.mxu0 %vm13403_vm0, %v13402_v1 }
 0x133   :  { %v12684_v9 = vpop.f32.mrf.mxu0 }
 0x134   :  { %v294_v17 = vadd.f32 %v12684_v9, %v13556_v10  ;;  %v949_v9 = vld [vmem:[#allocation13 + $0x60] sm:$0x3] }
 0x135   :  { %v288_v11 = vpop.f32.mrf.mxu0  ;;  %v402_v12 = vpop.f32.mrf.mxu1 }
 0x136   :  { %v289_v13 = vadd.f32 %v13556_v10, %v288_v11  ;;  %v951_v11 = vld [vmem:[#allocation13 + $0x70] sm:$0x3] }
 0x137   :  { %v12700_v14 = vpop.f32.mrf.mxu1 }
 0x138   :  { %v406_v15 = vadd.f32 %v402_v12, %v289_v13  ;;  %v942_v12 = vld [vmem:[#allocation13 + $0x28] sm:$0xff]  ;;  %v944_v13 = vld [vmem:[#allocation13 + $0x38] sm:$0xff]  ;;  %v941_v14 = vld [vmem:[#allocation13 + $0x20] sm:$0xff] }
 0x13a   :  { %v407_v16 = vmax.f32 %v406_v15, 0.0  ;;  %v943_v15 = vld [vmem:[#allocation13 + $0x30] sm:$0xff] }
 0x13b   :  { %v12687_v26 = vpop.f32.mrf.mxu0 }
 0x13c   :  { %12706 = vmatmul.mubr.msk.f32.vlgmr.msra.gmra.mxu1 %vm329_vm3, %v407_v16  ;;  %v304_v33 = vadd.f32 %v12687_v26, %v13556_v10  ;;  %v1360_v16 = vld [vmem:[#allocation14 + $0x58] sm:$0xf]  ;;  %v1361_v26 = vld [vmem:[#allocation14 + $0x60] sm:$0xf] }
 0x13d   :  { %12709 = vmatpush3.msk.msra.mxu1 %vm218_vm1, %v13518_v4  ;;  %12712 = vmatprep.mubr.msk.f32.mxu1 %vm13403_vm0, %v13402_v1  ;;  %v298_v27 = vpop.f32.mrf.mxu0 }
 0x13e   :  { %12710 = vmatprep.subr.mxu1 %v13402_v1  ;;  %v299_v28 = vadd.f32 %v13556_v10, %v298_v27  ;;  %v1363_v27 = vld [vmem:[#allocation14 + $0x70] sm:$0xf] }
 0x13f   :  { %12711 = vmatpush3.msra.mxu1 %v13525_v6  ;;  %v12690_v38 = vpop.f32.mrf.mxu0 }
 0x140   :  { %12715 = vmatprep.subr.mxu1 %v13402_v1  ;;  %v314_v47 = vadd.f32 %v12690_v38, %v13556_v10 }
 0x141   :  { %v308_v39 = vpop.f32.mrf.mxu0 }
 0x142   :  { %v309_v42 = vadd.f32 %v13556_v10, %v308_v39 }
 0x143   :  { %v12693_v40 = vpop.f32.mrf.mxu0 }
 0x145   :  { %v318_v41 = vpop.f32.mrf.mxu0 }
 0x146   :  { %v319_v52 = vadd.f32 %v13556_v10, %v318_v41 }
 0x1fc   :  { %v477_v18 = vpop.f32.mrf.mxu1 }
 0x1fd   :  { %v481_v19 = vadd.f32 %v477_v18, %v294_v17  ;;  %v1357_v17 = vld [vmem:[#allocation14 + $0x40] sm:$0xf]  ;;  %v1359_v18 = vld [vmem:[#allocation14 + $0x50] sm:$0xf] }
 0x1fe   :  { %v12707_v20 = vpop.f32.mrf.mxu1 }
 0x1ff   :  { %v482_v21 = vmax.f32 %v481_v19, 0.0  ;;  %v1350_v19 = vld [vmem:[#allocation14 + $0x8] sm:$0xff]  ;;  %v1352_v20 = vld [vmem:[#allocation14 + $0x18] sm:$0xff] }
 0x201   :  { %12713 = vmatmul.mubr.msk.f32.vlgmr.msra.gmra.mxu1 %vm329_vm3, %v482_v21  ;;  %v1349_v21 = vld [vmem:[#allocation14] sm:$0xff] }
 0x202   :  { %12716 = vmatpush3.msk.msra.mxu1 %vm218_vm1, %v13518_v4  ;;  %12719 = vmatprep.mubr.msk.f32.mxu1 %vm13403_vm0, %v13402_v1 }
 0x203   :  { %12717 = vmatprep.subr.mxu1 %v13402_v1 }
 0x204   :  { %12718 = vmatpush3.msra.mxu1 %v13525_v6 }
 0x205   :  { %12729 = vmatprep.subr.mxu1 %v13402_v1 }
 0x2c1   :  { %v552_v29 = vpop.f32.mrf.mxu1 }
 0x2c2   :  { %v556_v30 = vadd.f32 %v552_v29, %v299_v28  ;;  %v1354_v28 = vld [vmem:[#allocation14 + $0x28] sm:$0xff]  ;;  %v1356_v29 = vld [vmem:[#allocation14 + $0x38] sm:$0xff] }
 0x2c3   :  { %v12714_v31 = vpop.f32.mrf.mxu1 }
 0x2c4   :  { %v557_v32 = vmax.f32 %v556_v30, 0.0  ;;  %v1353_v30 = vld [vmem:[#allocation14 + $0x20] sm:$0xff]  ;;  %v1355_v31 = vld [vmem:[#allocation14 + $0x30] sm:$0xff] }
 0x2c6   :  { %12720 = vmatmul.mubr.msk.f32.vlgmr.msra.gmra.mxu1 %vm329_vm3, %v557_v32 }
 0x2c7   :  { %12730 = vmatpush3.msk.msra.mxu1 %vm218_vm1, %v13518_v4  ;;  %12733 = vmatprep.mubr.msk.f32.mxu1 %vm13403_vm0, %v13402_v1 }
 0x2c8   :  { %12731 = vmatprep.subr.mxu1 %v13402_v1 }
 0x2c9   :  { %12732 = vmatpush3.msra.mxu1 %v13525_v6 }
 0x2ca   :  { %12743 = vmatprep.subr.mxu1 %v13402_v1 }
 0x386   :  { %v627_v34 = vpop.f32.mrf.mxu1 }
 0x387   :  { %v631_v35 = vadd.f32 %v627_v34, %v304_v33 }
 0x388   :  { %v12721_v36 = vpop.f32.mrf.mxu1 }
 0x389   :  { %v632_v37 = vmax.f32 %v631_v35, 0.0 }
 0x38b   :  { %12727 = vmatmul.mubr.msk.f32.vlgmr.msra.gmra.mxu0 %vm329_vm3, %v632_v37 }
 0x38c   :  { %12737 = vmatpush3.msk.msra.mxu0 %vm218_vm1, %v13518_v4  ;;  %12740 = vmatprep.mubr.msk.f32.mxu0 %vm13403_vm0, %v13402_v1 }
 0x38d   :  { %12738 = vmatprep.subr.mxu0 %v13402_v1 }
 0x38e   :  { %12739 = vmatpush3.msra.mxu0 %v13525_v6 }
 0x38f   :  { %11340 = vmatprep.subr.msk.mxu0 %vm218_vm1, %v946_v57 }
 0x44b   :  { %v702_v43 = vpop.f32.mrf.mxu0 }
 0x44c   :  { %v706_v44 = vadd.f32 %v702_v43, %v309_v42 }
 0x44d   :  { %v12728_v45 = vpop.f32.mrf.mxu0 }
 0x44e   :  { %v707_v46 = vmax.f32 %v706_v44, 0.0 }
 0x450   :  { %12734 = vmatmul.mubr.msk.f32.vlgmr.msra.gmra.mxu1 %vm329_vm3, %v707_v46 }
 0x451   :  { %12744 = vmatpush3.msk.msra.mxu1 %vm218_vm1, %v13518_v4  ;;  %12747 = vmatprep.mubr.msk.f32.mxu1 %vm13403_vm0, %v13402_v1  ;;  %v324_v4 = vadd.f32 %v12693_v40, %v13556_v10  ;;  %v1358_v10 = vld [vmem:[#allocation14 + $0x48] sm:$0xf] }
 0x452   :  { %12745 = vmatprep.subr.mxu1 %v13402_v1 }
 0x453   :  { %12746 = vmatpush3.msra.mxu1 %v13525_v6 }
 0x454   :  { %11343 = vmatprep.subr.msk.mxu1 %vm218_vm1, %v948_v58 }
 0x510   :  { %v777_v48 = vpop.f32.mrf.mxu1 }
 0x511   :  { %v781_v49 = vadd.f32 %v777_v48, %v314_v47 }
 0x512   :  { %v12735_v50 = vpop.f32.mrf.mxu1 }
 0x513   :  { %v782_v51 = vmax.f32 %v781_v49, 0.0 }
 0x515   :  { %12741 = vmatmul.mubr.msk.f32.vlgmr.msra.gmra.mxu0 %vm329_vm3, %v782_v51 }
 0x516   :  { %1120 = vmatprep.mubr.f32.mxu0 %v13402_v1  ;;  %11341 = vmatpush1.msk.msra.mxu0 %vm218_vm1, %v945_v59 }
 0x517   :  { %1086 = vmatprep.subr.mxu0 %v938_v61 }
 0x518   :  { %1087 = vmatpush1.msra.mxu0 %v937_v63 }
 0x519   :  { %11346 = vmatprep.subr.msk.mxu0 %vm218_vm1, %v950_v2 }
 0x5d5   :  { %v852_v53 = vpop.f32.mrf.mxu0 }
 0x5d6   :  { %v856_v54 = vadd.f32 %v852_v53, %v319_v52 }
 0x5d7   :  { %v12742_v55 = vpop.f32.mrf.mxu0 }
 0x5d8   :  { %v857_v56 = vmax.f32 %v856_v54, 0.0 }
 0x5da   :  { %12748 = vmatmul.mubr.msk.f32.vlgmr.msra.gmra.mxu1 %vm329_vm3, %v857_v56 }
 0x5db   :  { %1191 = vmatprep.mubr.f32.mxu1 %v13402_v1  ;;  %11344 = vmatpush1.msk.msra.mxu1 %vm218_vm1, %v947_v60 }
 0x5dc   :  { %1157 = vmatprep.subr.mxu1 %v940_v62 }
 0x5dd   :  { %1158 = vmatpush1.msra.mxu1 %v939_v0 }
 0x5de   :  { %11349 = vmatprep.subr.msk.mxu1 %vm218_vm1, %v952_v3 }
 0x69a   :  { %v927_v5 = vpop.f32.mrf.mxu1 }
 0x69b   :  { %v931_v6 = vadd.f32 %v927_v5, %v324_v4 }
 0x69c   :  { %v12749_v7 = vpop.f32.mrf.mxu1 }
 0x69d   :  { %v932_v8 = vmax.f32 %v931_v6, 0.0 }
 0x69f   :  { %11342 = vmatmul.mubr.msk.f32.vlgmr.msra.gmra.mxu0 %vm329_vm3, %v932_v8  ;;  %11345 = vmatmul.mubr.msk.f32.vlgmr.msra.gmra.mxu1 %vm329_vm3, %v932_v8 }
 0x6a0   :  { %11347 = vmatpush1.msk.msra.mxu0 %vm218_vm1, %v949_v9  ;;  %11350 = vmatpush1.msk.msra.mxu1 %vm218_vm1, %v951_v11 }
 0x6a1   :  { %1228 = vmatprep.subr.mxu0 %v942_v12  ;;  %1299 = vmatprep.subr.mxu1 %v944_v13 }
 0x6a2   :  { %1229 = vmatpush1.msra.mxu0 %v941_v14  ;;  %1300 = vmatpush1.msra.mxu1 %v943_v15 }
 0x6a3   :  { %1262 = vmatprep.mubr.f32.mxu0 %v13402_v1  ;;  %1333 = vmatprep.mubr.f32.mxu1 %v13402_v1 }
 0x6a4   :  { %11352 = vmatprep.subr.msk.mxu0 %vm1441_vm4, %v1358_v10  ;;  %11355 = vmatprep.subr.msk.mxu1 %vm1441_vm4, %v1360_v16 }
 0x6a5   :  { %11348 = vmatmul.mubr.msk.f32.vlgmr.msra.gmra.mxu0 %vm329_vm3, %v932_v8  ;;  %11351 = vmatmul.mubr.msk.f32.vlgmr.msra.gmra.mxu1 %vm329_vm3, %v932_v8 }
 0x6a6   :  { %11353 = vmatpush1.msk.msra.mxu0 %vm1441_vm4, %v1357_v17  ;;  %11356 = vmatpush1.msk.msra.mxu1 %vm1441_vm4, %v1359_v18 }
 0x6a7   :  { %1496 = vmatprep.subr.mxu0 %v1350_v19  ;;  %1567 = vmatprep.subr.mxu1 %v1352_v20 }
 0x6a8   :  { %1497 = vmatpush1.msra.mxu0 %v1349_v21  ;;  %1568 = vmatpush1.msra.mxu1 %v1351_v22 }
 0x6a9   :  { %1530 = vmatprep.mubr.f32.mxu0 %v13402_v1  ;;  %1601 = vmatprep.mubr.f32.mxu1 %v13402_v1 }
 0x6aa   :  { %11358 = vmatprep.subr.msk.mxu0 %vm1441_vm4, %v1362_v23  ;;  %11361 = vmatprep.subr.msk.mxu1 %vm1441_vm4, %v1364_v24 }
 0x6ab   :  { %11354 = vmatmul.mubr.msk.f32.vlgmr.msra.gmra.mxu0 %vm1437_vm5, %v1348_v25  ;;  %11357 = vmatmul.mubr.msk.f32.vlgmr.msra.gmra.mxu1 %vm1437_vm5, %v1348_v25 }
 0x6ac   :  { %11359 = vmatpush1.msk.msra.mxu0 %vm1441_vm4, %v1361_v26  ;;  %11362 = vmatpush1.msk.msra.mxu1 %vm1441_vm4, %v1363_v27 }
 0x6ad   :  { %1638 = vmatprep.subr.mxu0 %v1354_v28  ;;  %1709 = vmatprep.subr.mxu1 %v1356_v29 }
 0x6ae   :  { %1639 = vmatpush1.msra.mxu0 %v1353_v30  ;;  %1710 = vmatpush1.msra.mxu1 %v1355_v31 }
 0x6af   :  { %1672 = vmatprep.mubr.f32.mxu0 %v13402_v1  ;;  %1743 = vmatprep.mubr.f32.mxu1 %v13402_v1 }
 0x6b0   :  { %11360 = vmatmul.mubr.msk.f32.vlgmr.msra.gmra.mxu0 %vm1437_vm5, %v1348_v25  ;;  %11363 = vmatmul.mubr.msk.f32.vlgmr.msra.gmra.mxu1 %vm1437_vm5, %v1348_v25 }
 0x6b1   :  { %13352 = shalt.err (!%p13349_p7)  }
 0x6b2   :  { %164 = dma.hbm_to_vmem [thread:$0]  %s14116_s8, 65536, %s162_s1, [#allocation4] }
 0x6b3   :  { %s13361_s12 = scalar_lea.vmem %s174_s29, 65536  ;;  %p13366_p9 = scmp.lt.s32.totalorder %s174_s29, %s174_s29 }
 0x6b4   :  { %p13362_p8 = scmp.ne.s32.totalorder %s174_s29, %s13361_s12  ;;  %p13367_p10 = scmp.lt.s32.totalorder %s13361_s12, %s13361_s12 }
 0x6b6   :  { %p13368_p11 = por %p13367_p10, %p13366_p9 }
 0x6b8   :  { %p13369_p12 = pnand %p13368_p11, %p13362_p8 }
 0x6ba   :  { %13372 = shalt.err (!%p13369_p12)  }
 0x6bb   :  { %176 = dma.hbm_to_vmem [thread:$0]  %s14117_s9, 65536, %s174_s29, [#allocation4 + $0x1]  ;;  %v957_v1 = vlaneseq  ;;  %v13667_v34 = vld [vmem:[#allocation16] sm:$0x77]  ;;  %v13669_v35 = vld [vmem:[#allocation16 + $0x8] sm:$0x77] }
 0x6bc   :  { %v13682_v41 = vld [vmem:[#allocation16 + $0x10] sm:$0x77]  ;;  %v13684_v42 = vld [vmem:[#allocation16 + $0x18] sm:$0x77] }
 0x6bd   :  { %v13662_v32 = vshrl.u32 %v957_v1, 7 }
 0x6bf   :  { %v13665_v33 = vsub.s32 0, %v13662_v32  ;;  %v13672_v36 = vsub.s32 4, %v13662_v32  ;;  %v13695_v51 = vsub.s32 1, %v13662_v32  ;;  %v13708_v60 = vsub.s32 5, %v13662_v32 }
 0x6c1   :  { %v960_v37 = vrot.slane %v13667_v34, %v13665_v33  ;;  %v968_v38 = vrot.slane %v13669_v35, %v13665_v33  ;;  %v964_v39 = vrot.slane %v13667_v34, %v13672_v36  ;;  %v972_v40 = vrot.slane %v13669_v35, %v13672_v36 }
 0x6c2   :  { %v976_v45 = vrot.slane %v13682_v41, %v13665_v33  ;;  %v984_v46 = vrot.slane %v13684_v42, %v13665_v33  ;;  %v980_v54 = vrot.slane %v13682_v41, %v13672_v36  ;;  %v988_v55 = vrot.slane %v13684_v42, %v13672_v36 }
 0x6c3   :  { %v1000_v43 = vrot.slane %v960_v37, %v13665_v33  ;;  %v1008_v44 = vrot.slane %v968_v38, %v13665_v33  ;;  %v1004_v47 = vrot.slane %v964_v39, %v13665_v33  ;;  %v1012_v48 = vrot.slane %v972_v40, %v13665_v33 }
 0x6c4   :  { %v1016_v58 = vrot.slane %v976_v45, %v13665_v33  ;;  %v1024_v59 = vrot.slane %v984_v46, %v13665_v33  ;;  %v1368_v2 = vrot.slane %v13667_v34, %v13695_v51  ;;  %v1376_v3 = vrot.slane %v13669_v35, %v13695_v51 }
 0x6c5   :  { %v1020_v6 = vrot.slane %v980_v54, %v13665_v33  ;;  %v1028_v7 = vrot.slane %v988_v55, %v13665_v33  ;;  %v1372_v13 = vrot.slane %v13667_v34, %v13708_v60  ;;  %v1380_v14 = vrot.slane %v13669_v35, %v13708_v60 }
 0x6c6   :  { %v1408_v16 = vrot.slane %v1368_v2, %v13695_v51  ;;  %v1416_v17 = vrot.slane %v1376_v3, %v13695_v51  ;;  %v1384_v22 = vrot.slane %v13682_v41, %v13695_v51  ;;  %v1392_v23 = vrot.slane %v13684_v42, %v13695_v51 }
 0x6c7   :  { %v1412_v26 = vrot.slane %v1372_v13, %v13695_v51  ;;  %v1420_v27 = vrot.slane %v1380_v14, %v13695_v51  ;;  %v1388_v30 = vrot.slane %v13682_v41, %v13708_v60  ;;  %v1396_v31 = vrot.slane %v13684_v42, %v13708_v60 }
 0x6c8   :  { %v1424_v40 = vrot.slane %v1384_v22, %v13695_v51 }
 0x75f   :  { %v1122_v49 = vpop.f32.mrf.mxu0  ;;  %v1193_v50 = vpop.f32.mrf.mxu1 }
 0x760   :  { %v13697_v52 = vadd.f32 %v1122_v49, %v1000_v43  ;;  %v13699_v53 = vadd.f32 %v1193_v50, %v1008_v44  ;;  %v1432_v43 = vrot.slane %v1392_v23, %v13695_v51  ;;  %v1436_v49 = vrot.slane %v1396_v31, %v13695_v51 }
 0x761   :  { %v1124_v56 = vpop.f32.mrf.mxu0  ;;  %v1195_v57 = vpop.f32.mrf.mxu1 }
 0x762   :  { %v1340_v61 = vmax.f32 %v13697_v52, 0.0  ;;  %v1342_v62 = vmax.f32 %v13699_v53, 0.0  ;;  %v13712_v63 = vadd.f32 %v1124_v56, %v1004_v47  ;;  %v13714_v0 = vadd.f32 %v1195_v57, %v1012_v48 }
 0x763   :  { %v1428_v48 = vrot.slane %v1388_v30, %v13695_v51 }
 0x764   :  { %v1341_v4 = vmax.f32 %v13712_v63, 0.0  ;;  %v1343_v5 = vmax.f32 %v13714_v0, 0.0 }
 0x765   :  { %v1264_v8 = vpop.f32.mrf.mxu0  ;;  %v1335_v9 = vpop.f32.mrf.mxu1 }
 0x766   :  { %v13724_v11 = vadd.f32 %v1264_v8, %v1016_v58  ;;  %v13726_v12 = vadd.f32 %v1335_v9, %v1024_v59 }
 0x767   :  { %v1266_v15 = vpop.f32.mrf.mxu0  ;;  %v1337_v10 = vpop.f32.mrf.mxu1 }
 0x768   :  { %v1344_v18 = vmax.f32 %v13724_v11, 0.0  ;;  %v1346_v19 = vmax.f32 %v13726_v12, 0.0  ;;  %v13736_v20 = vadd.f32 %v1266_v15, %v1020_v6  ;;  %v13738_v21 = vadd.f32 %v1337_v10, %v1028_v7 }
 0x76a   :  { %v1345_v24 = vmax.f32 %v13736_v20, 0.0  ;;  %v1347_v25 = vmax.f32 %v13738_v21, 0.0 }
 0x76b   :  { %v1532_v28 = vpop.f32.mrf.mxu0  ;;  %v1603_v29 = vpop.f32.mrf.mxu1 }
 0x76c   :  { %v13752_v1 = vadd.f32 %v1532_v28, %v1408_v16  ;;  %v13754_v37 = vadd.f32 %v1603_v29, %v1416_v17 }
 0x76d   :  { %v1534_v38 = vpop.f32.mrf.mxu0  ;;  %v1605_v39 = vpop.f32.mrf.mxu1 }
 0x76e   :  { %v1750_v44 = vmax.f32 %v13752_v1, 0.0  ;;  %v1752_v45 = vmax.f32 %v13754_v37, 0.0  ;;  %v1535_v46 = vadd.f32 %v1534_v38, %v1412_v26  ;;  %v1606_v47 = vadd.f32 %v1605_v39, %v1420_v27 }
 0x770   :  { %v1751_v50 = vmax.f32 %v1535_v46, 0.0  ;;  %v1753_v54 = vmax.f32 %v1606_v47, 0.0  ;;  %v1674_v55 = vpop.f32.mrf.mxu0  ;;  %v1745_v56 = vpop.f32.mrf.mxu1 }
 0x771   :  { %v13762_v57 = vadd.f32 %v1674_v55, %v1424_v40  ;;  %v13764_v58 = vadd.f32 %v1745_v56, %v1432_v43 }
 0x772   :  { %v1676_v59 = vpop.f32.mrf.mxu0  ;;  %v1747_v2 = vpop.f32.mrf.mxu1 }
 0x773   :  { %v1754_v3 = vmax.f32 %v13762_v57, 0.0  ;;  %v1756_v6 = vmax.f32 %v13764_v58, 0.0  ;;  %v13768_v7 = vadd.f32 %v1676_v59, %v1428_v48  ;;  %v13770_v8 = vadd.f32 %v1747_v2, %v1436_v49 }
 0x775   :  { %v1755_v9 = vmax.f32 %v13768_v7, 0.0  ;;  %v1757_v13 = vmax.f32 %v13770_v8, 0.0 }
 0x776   :  { %13383 = dma.done.wait [#allocation4], 65536 }
 0x777   :  { %13384 = vsyncadd [#allocation4], 4294901760 }
 0x778   :  { %13385 = dma.done.wait [#allocation4 + $0x1], 65536 }
 0x779   :  { %13386 = vsyncadd [#allocation4 + $0x1], 4294901760  ;;  %v13774_v14 = vpack.c.bf16 %v1751_v50, %v1751_v50  ;;  %v13776_v15 = vpack.c.bf16 %v1753_v54, %v1753_v54  ;;  %v2348_v10 = vld [vmem:[#allocation3 + $0x1c0] sm:$0xff]  ;;  %v13799_v37 = vpack.c.bf16 %v1757_v13, %v1757_v13  ;;  %v2465_v57 = vld [vmem:[#allocation3 + $0x568] sm:$0xff]  ;;  %vm11291_vm6 = vcmask 7168  }
 0x77a   :  { %v2352_v16 = vld [vmem:[#allocation3 + $0x1e0] sm:$0xff]  ;;  %v1817_v11 = vld [vmem:[#allocation2 + $0x168] sm:$0xff] }
 0x77b   :  { %5396 = vmatprep.mubr.bf16.mxu0 %v13774_v14  ;;  %5437 = vmatprep.mubr.bf16.mxu1 %v13776_v15  ;;  %v2476_v17 = vld [vmem:[#allocation3 + $0x5c0] sm:$0xff]  ;;  %v11421_v22 = vcombine.high %v2348_v10, %v2352_v16  ;;  %v11420_v26 = vcombine.low %v2348_v10, %v2352_v16 }
 0x77c   :  { %v2480_v23 = vld [vmem:[#allocation3 + $0x5e0] sm:$0xff] }
 0x77d   :  { %v2340_v27 = vld [vmem:[#allocation3 + $0x180] sm:$0xff]  ;;  %v11549_v29 = vcombine.high %v2476_v17, %v2480_v23  ;;  %v11548_v30 = vcombine.low %v2476_v17, %v2480_v23  ;;  %5364 = vmatprep.subr.bf16.mxu0 %v11421_v22 }
 0x77e   :  { %v2344_v28 = vld [vmem:[#allocation3 + $0x1a0] sm:$0xff]  ;;  %5365 = vmatpush1.bf16.msra.mxu0 %v11420_v26 }
 0x77f   :  { %v11413_v31 = vcombine.high %v2340_v27, %v2344_v28  ;;  %v2468_v38 = vld [vmem:[#allocation3 + $0x580] sm:$0xff]  ;;  %5405 = vmatprep.subr.bf16.mxu1 %v11549_v29  ;;  %v11412_v49 = vcombine.low %v2340_v27, %v2344_v28 }
 0x780   :  { %v2472_v39 = vld [vmem:[#allocation3 + $0x5a0] sm:$0xff]  ;;  %5406 = vmatpush1.bf16.msra.mxu1 %v11548_v30 }
 0x781   :  { %v2332_v40 = vld [vmem:[#allocation3 + $0x140] sm:$0xff]  ;;  %v11541_v43 = vcombine.high %v2468_v38, %v2472_v39  ;;  %5366 = vmatprep.subr.bf16.mxu0 %v11413_v31  ;;  %v11540_v50 = vcombine.low %v2468_v38, %v2472_v39 }
 0x782   :  { %v2336_v46 = vld [vmem:[#allocation3 + $0x160] sm:$0xff]  ;;  %5367 = vmatpush1.bf16.msra.mxu0 %v11412_v49 }
 0x783   :  { %v2460_v47 = vld [vmem:[#allocation3 + $0x540] sm:$0xff]  ;;  %v11405_v54 = vcombine.high %v2332_v40, %v2336_v46  ;;  %5407 = vmatprep.subr.bf16.mxu1 %v11541_v43  ;;  %v11404_v16 = vcombine.low %v2332_v40, %v2336_v46 }
 0x784   :  { %v2464_v48 = vld [vmem:[#allocation3 + $0x560] sm:$0xff]  ;;  %5408 = vmatpush1.bf16.msra.mxu1 %v11540_v50 }
 0x785   :  { %v11533_v55 = vcombine.high %v2460_v47, %v2464_v48  ;;  %v2324_v56 = vld [vmem:[#allocation3 + $0x100] sm:$0xff]  ;;  %5368 = vmatprep.subr.bf16.mxu0 %v11405_v54  ;;  %v11532_v17 = vcombine.low %v2460_v47, %v2464_v48 }
 0x786   :  { %v2328_v59 = vld [vmem:[#allocation3 + $0x120] sm:$0xff]  ;;  %5369 = vmatpush1.bf16.msra.mxu0 %v11404_v16 }
 0x787   :  { %v2452_v2 = vld [vmem:[#allocation3 + $0x500] sm:$0xff]  ;;  %v11397_v22 = vcombine.high %v2324_v56, %v2328_v59  ;;  %5409 = vmatprep.subr.bf16.mxu1 %v11533_v55  ;;  %v11396_v30 = vcombine.low %v2324_v56, %v2328_v59 }
 0x788   :  { %v2456_v10 = vld [vmem:[#allocation3 + $0x520] sm:$0xff]  ;;  %5410 = vmatpush1.bf16.msra.mxu1 %v11532_v17 }
 0x789   :  { %v11525_v23 = vcombine.high %v2452_v2, %v2456_v10  ;;  %v2316_v26 = vld [vmem:[#allocation3 + $0xc0] sm:$0xff]  ;;  %5370 = vmatprep.subr.bf16.mxu0 %v11397_v22  ;;  %v11524_v31 = vcombine.low %v2452_v2, %v2456_v10 }
 0x78a   :  { %v2320_v27 = vld [vmem:[#allocation3 + $0xe0] sm:$0xff]  ;;  %5371 = vmatpush1.bf16.msra.mxu0 %v11396_v30 }
 0x78b   :  { %v2444_v28 = vld [vmem:[#allocation3 + $0x4c0] sm:$0xff]  ;;  %v11389_v38 = vcombine.high %v2316_v26, %v2320_v27  ;;  %5411 = vmatprep.subr.bf16.mxu1 %v11525_v23  ;;  %v11388_v47 = vcombine.low %v2316_v26, %v2320_v27 }
 0x78c   :  { %v2448_v29 = vld [vmem:[#allocation3 + $0x4e0] sm:$0xff]  ;;  %5412 = vmatpush1.bf16.msra.mxu1 %v11524_v31 }
 0x78d   :  { %v11517_v39 = vcombine.high %v2444_v28, %v2448_v29  ;;  %v2308_v43 = vld [vmem:[#allocation3 + $0x80] sm:$0xff]  ;;  %5372 = vmatprep.subr.bf16.mxu0 %v11389_v38  ;;  %v11516_v48 = vcombine.low %v2444_v28, %v2448_v29 }
 0x78e   :  { %v2312_v40 = vld [vmem:[#allocation3 + $0xa0] sm:$0xff]  ;;  %5373 = vmatpush1.bf16.msra.mxu0 %v11388_v47 }
 0x78f   :  { %v2436_v46 = vld [vmem:[#allocation3 + $0x480] sm:$0xff]  ;;  %v11381_v50 = vcombine.high %v2308_v43, %v2312_v40  ;;  %5413 = vmatprep.subr.bf16.mxu1 %v11517_v39  ;;  %v11380_v2 = vcombine.low %v2308_v43, %v2312_v40 }
 0x790   :  { %v2440_v49 = vld [vmem:[#allocation3 + $0x4a0] sm:$0xff]  ;;  %5414 = vmatpush1.bf16.msra.mxu1 %v11516_v48 }
 0x791   :  { %v11509_v54 = vcombine.high %v2436_v46, %v2440_v49  ;;  %v2300_v55 = vld [vmem:[#allocation3 + $0x40] sm:$0xff]  ;;  %5374 = vmatprep.subr.bf16.mxu0 %v11381_v50  ;;  %v11508_v10 = vcombine.low %v2436_v46, %v2440_v49 }
 0x792   :  { %v2304_v56 = vld [vmem:[#allocation3 + $0x60] sm:$0xff]  ;;  %5375 = vmatpush1.bf16.msra.mxu0 %v11380_v2 }
 0x793   :  { %v2428_v59 = vld [vmem:[#allocation3 + $0x440] sm:$0xff]  ;;  %v11373_v17 = vcombine.high %v2300_v55, %v2304_v56  ;;  %5415 = vmatprep.subr.bf16.mxu1 %v11509_v54  ;;  %v11372_v28 = vcombine.low %v2300_v55, %v2304_v56 }
 0x794   :  { %v2432_v16 = vld [vmem:[#allocation3 + $0x460] sm:$0xff]  ;;  %5416 = vmatpush1.bf16.msra.mxu1 %v11508_v10 }
 0x795   :  { %v11501_v22 = vcombine.high %v2428_v59, %v2432_v16  ;;  %v2292_v23 = vld [vmem:[#allocation3] sm:$0xff]  ;;  %5376 = vmatprep.subr.bf16.mxu0 %v11373_v17  ;;  %v11500_v29 = vcombine.low %v2428_v59, %v2432_v16 }
 0x796   :  { %v2296_v26 = vld [vmem:[#allocation3 + $0x20] sm:$0xff]  ;;  %5377 = vmatpush1.bf16.msra.mxu0 %v11372_v28 }
 0x797   :  { %v2420_v27 = vld [vmem:[#allocation3 + $0x400] sm:$0xff]  ;;  %v11365_v31 = vcombine.high %v2292_v23, %v2296_v26  ;;  %5417 = vmatprep.subr.bf16.mxu1 %v11501_v22  ;;  %v11364_v46 = vcombine.low %v2292_v23, %v2296_v26 }
 0x798   :  { %v2424_v30 = vld [vmem:[#allocation3 + $0x420] sm:$0xff]  ;;  %5418 = vmatpush1.bf16.msra.mxu1 %v11500_v29 }
 0x799   :  { %v11493_v38 = vcombine.high %v2420_v27, %v2424_v30  ;;  %v2412_v39 = vld [vmem:[#allocation3 + $0x3c0] sm:$0xff]  ;;  %5378 = vmatprep.subr.bf16.mxu0 %v11365_v31  ;;  %v11492_v49 = vcombine.low %v2420_v27, %v2424_v30 }
 0x79a   :  { %v2416_v43 = vld [vmem:[#allocation3 + $0x3e0] sm:$0xff]  ;;  %5379 = vmatpush1.bf16.msra.mxu0 %v11364_v46 }
 0x79b   :  { %v2540_v40 = vld [vmem:[#allocation3 + $0x7c0] sm:$0xff]  ;;  %v11485_v48 = vcombine.high %v2412_v39, %v2416_v43  ;;  %5419 = vmatprep.subr.bf16.mxu1 %v11493_v38  ;;  %v11484_v59 = vcombine.low %v2412_v39, %v2416_v43 }
 0x79c   :  { %v2544_v47 = vld [vmem:[#allocation3 + $0x7e0] sm:$0xff]  ;;  %5420 = vmatpush1.bf16.msra.mxu1 %v11492_v49 }
 0x79d   :  { %v11613_v50 = vcombine.high %v2540_v40, %v2544_v47  ;;  %v2404_v54 = vld [vmem:[#allocation3 + $0x380] sm:$0xff]  ;;  %5380 = vmatprep.subr.bf16.mxu0 %v11485_v48  ;;  %v11612_v16 = vcombine.low %v2540_v40, %v2544_v47 }
 0x79e   :  { %v2408_v55 = vld [vmem:[#allocation3 + $0x3a0] sm:$0xff]  ;;  %5381 = vmatpush2.bf16.msra.mxu0 %v11484_v59 }
 0x79f   :  { %v2532_v56 = vld [vmem:[#allocation3 + $0x780] sm:$0xff]  ;;  %v11477_v10 = vcombine.high %v2404_v54, %v2408_v55  ;;  %5421 = vmatprep.subr.bf16.mxu1 %v11613_v50  ;;  %v11476_v27 = vcombine.low %v2404_v54, %v2408_v55 }
 0x7a0   :  { %v2536_v2 = vld [vmem:[#allocation3 + $0x7a0] sm:$0xff]  ;;  %5422 = vmatpush2.bf16.msra.mxu1 %v11612_v16 }
 0x7a1   :  { %v11605_v17 = vcombine.high %v2532_v56, %v2536_v2  ;;  %v2396_v22 = vld [vmem:[#allocation3 + $0x340] sm:$0xff]  ;;  %5382 = vmatprep.subr.bf16.mxu0 %v11477_v10  ;;  %v11604_v30 = vcombine.low %v2532_v56, %v2536_v2 }
 0x7a2   :  { %v2400_v23 = vld [vmem:[#allocation3 + $0x360] sm:$0xff]  ;;  %5383 = vmatpush2.bf16.msra.mxu0 %v11476_v27 }
 0x7a3   :  { %v2524_v26 = vld [vmem:[#allocation3 + $0x740] sm:$0xff]  ;;  %v11469_v29 = vcombine.high %v2396_v22, %v2400_v23  ;;  %5423 = vmatprep.subr.bf16.mxu1 %v11605_v17  ;;  %v11468_v40 = vcombine.low %v2396_v22, %v2400_v23 }
 0x7a4   :  { %v2528_v28 = vld [vmem:[#allocation3 + $0x760] sm:$0xff]  ;;  %5424 = vmatpush2.bf16.msra.mxu1 %v11604_v30 }
 0x7a5   :  { %v11597_v31 = vcombine.high %v2524_v26, %v2528_v28  ;;  %v2388_v38 = vld [vmem:[#allocation3 + $0x300] sm:$0xff]  ;;  %5384 = vmatprep.subr.bf16.mxu0 %v11469_v29  ;;  %v11596_v47 = vcombine.low %v2524_v26, %v2528_v28 }
 0x7a6   :  { %v2392_v39 = vld [vmem:[#allocation3 + $0x320] sm:$0xff]  ;;  %5385 = vmatpush2.bf16.msra.mxu0 %v11468_v40 }
 0x7a7   :  { %v2516_v43 = vld [vmem:[#allocation3 + $0x700] sm:$0xff]  ;;  %v11461_v49 = vcombine.high %v2388_v38, %v2392_v39  ;;  %5425 = vmatprep.subr.bf16.mxu1 %v11597_v31  ;;  %v11460_v56 = vcombine.low %v2388_v38, %v2392_v39 }
 0x7a8   :  { %v2520_v46 = vld [vmem:[#allocation3 + $0x720] sm:$0xff]  ;;  %5426 = vmatpush2.bf16.msra.mxu1 %v11596_v47 }
 0x7a9   :  { %v11589_v48 = vcombine.high %v2516_v43, %v2520_v46  ;;  %v2380_v50 = vld [vmem:[#allocation3 + $0x2c0] sm:$0xff]  ;;  %5386 = vmatprep.subr.bf16.mxu0 %v11461_v49  ;;  %v11588_v2 = vcombine.low %v2516_v43, %v2520_v46 }
 0x7aa   :  { %v2384_v54 = vld [vmem:[#allocation3 + $0x2e0] sm:$0xff]  ;;  %5387 = vmatpush2.bf16.msra.mxu0 %v11460_v56 }
 0x7ab   :  { %v2508_v55 = vld [vmem:[#allocation3 + $0x6c0] sm:$0xff]  ;;  %v11453_v16 = vcombine.high %v2380_v50, %v2384_v54  ;;  %5427 = vmatprep.subr.bf16.mxu1 %v11589_v48  ;;  %v11452_v26 = vcombine.low %v2380_v50, %v2384_v54 }
 0x7ac   :  { %v2512_v59 = vld [vmem:[#allocation3 + $0x6e0] sm:$0xff]  ;;  %5428 = vmatpush2.bf16.msra.mxu1 %v11588_v2 }
 0x7ad   :  { %v11581_v10 = vcombine.high %v2508_v55, %v2512_v59  ;;  %v2372_v17 = vld [vmem:[#allocation3 + $0x280] sm:$0xff]  ;;  %5388 = vmatprep.subr.bf16.mxu0 %v11453_v16  ;;  %v11580_v28 = vcombine.low %v2508_v55, %v2512_v59 }
 0x7ae   :  { %v2376_v22 = vld [vmem:[#allocation3 + $0x2a0] sm:$0xff]  ;;  %5389 = vmatpush2.bf16.msra.mxu0 %v11452_v26 }
 0x7af   :  { %v2500_v23 = vld [vmem:[#allocation3 + $0x680] sm:$0xff]  ;;  %v11445_v30 = vcombine.high %v2372_v17, %v2376_v22  ;;  %5429 = vmatprep.subr.bf16.mxu1 %v11581_v10  ;;  %v11444_v43 = vcombine.low %v2372_v17, %v2376_v22 }
 0x7b0   :  { %v2504_v27 = vld [vmem:[#allocation3 + $0x6a0] sm:$0xff]  ;;  %5430 = vmatpush2.bf16.msra.mxu1 %v11580_v28 }
 0x7b1   :  { %v11573_v29 = vcombine.high %v2500_v23, %v2504_v27  ;;  %v2364_v31 = vld [vmem:[#allocation3 + $0x240] sm:$0xff]  ;;  %5390 = vmatprep.subr.bf16.mxu0 %v11445_v30  ;;  %v11572_v46 = vcombine.low %v2500_v23, %v2504_v27 }
 0x7b2   :  { %v2368_v38 = vld [vmem:[#allocation3 + $0x260] sm:$0xff]  ;;  %5391 = vmatpush2.bf16.msra.mxu0 %v11444_v43  ;;  %v13788_v43 = vpack.c.bf16 %v1752_v45, %v1752_v45 }
 0x7b3   :  { %v2492_v39 = vld [vmem:[#allocation3 + $0x640] sm:$0xff]  ;;  %v11437_v47 = vcombine.high %v2364_v31, %v2368_v38  ;;  %5431 = vmatprep.subr.bf16.mxu1 %v11573_v29  ;;  %v11436_v55 = vcombine.low %v2364_v31, %v2368_v38  ;;  %v13783_v38 = vpack.c.bf16 %v1750_v44, %v1750_v44 }
 0x7b4   :  { %v2496_v40 = vld [vmem:[#allocation3 + $0x660] sm:$0xff]  ;;  %5432 = vmatpush2.bf16.msra.mxu1 %v11572_v46 }
 0x7b5   :  { %v11565_v49 = vcombine.high %v2492_v39, %v2496_v40  ;;  %v2356_v48 = vld [vmem:[#allocation3 + $0x200] sm:$0xff]  ;;  %5392 = vmatprep.subr.bf16.mxu0 %v11437_v47  ;;  %v11564_v59 = vcombine.low %v2492_v39, %v2496_v40 }
 0x7b6   :  { %v2360_v50 = vld [vmem:[#allocation3 + $0x220] sm:$0xff]  ;;  %5393 = vmatpush2.bf16.msra.mxu0 %v11436_v55 }
 0x7b7   :  { %v2484_v54 = vld [vmem:[#allocation3 + $0x600] sm:$0xff]  ;;  %v11429_v2 = vcombine.high %v2356_v48, %v2360_v50  ;;  %5433 = vmatprep.subr.bf16.mxu1 %v11565_v49  ;;  %v11428_v23 = vcombine.low %v2356_v48, %v2360_v50 }
 0x7b8   :  { %v2488_v56 = vld [vmem:[#allocation3 + $0x620] sm:$0xff]  ;;  %5434 = vmatpush2.bf16.msra.mxu1 %v11564_v59 }
 0x7b9   :  { %v11557_v16 = vcombine.high %v2484_v54, %v2488_v56  ;;  %v2604_v10 = vld [vmem:[#allocation3 + $0x9c0] sm:$0xff]  ;;  %5394 = vmatprep.subr.bf16.mxu0 %v11429_v2  ;;  %v11556_v27 = vcombine.low %v2484_v54, %v2488_v56  ;;  %v13793_v56 = vpack.c.bf16 %v1755_v9, %v1755_v9 }
 0x7ba   :  { %v2608_v17 = vld [vmem:[#allocation3 + $0x9e0] sm:$0xff]  ;;  %5395 = vmatpush2.bf16.msra.mxu0 %v11428_v23 }
 0x7bb   :  { %v2732_v22 = vld [vmem:[#allocation3 + $0xdc0] sm:$0xff]  ;;  %v11677_v28 = vcombine.high %v2604_v10, %v2608_v17  ;;  %5435 = vmatprep.subr.bf16.mxu1 %v11557_v16  ;;  %v11676_v46 = vcombine.low %v2604_v10, %v2608_v17 }
 0x7bc   :  { %v2736_v26 = vld [vmem:[#allocation3 + $0xde0] sm:$0xff]  ;;  %5436 = vmatpush2.bf16.msra.mxu1 %v11556_v27 }
 0x7bd   :  { %v11805_v30 = vcombine.high %v2732_v22, %v2736_v26  ;;  %v2596_v29 = vld [vmem:[#allocation3 + $0x980] sm:$0xff]  ;;  %5446 = vmatprep.subr.bf16.mxu0 %v11677_v28  ;;  %v11804_v47 = vcombine.low %v2732_v22, %v2736_v26  ;;  %5397 = vmatmul.mubr.bf16.vlgmr.msra.gmra.mxu0 %v13783_v38 }
 0x7be   :  { %v2600_v31 = vld [vmem:[#allocation3 + $0x9a0] sm:$0xff]  ;;  %5447 = vmatpush1.bf16.msra.mxu0 %v11676_v46  ;;  %5478 = vmatprep.mubr.bf16.mxu0 %v13793_v56 }
 0x7bf   :  { %v2724_v39 = vld [vmem:[#allocation3 + $0xd80] sm:$0xff]  ;;  %v11669_v49 = vcombine.high %v2596_v29, %v2600_v31  ;;  %5487 = vmatprep.subr.bf16.mxu1 %v11805_v30  ;;  %5438 = vmatmul.mubr.bf16.vlgmr.msra.gmra.mxu1 %v13788_v43  ;;  %v11668_v45 = vcombine.low %v2596_v29, %v2600_v31 }
 0x7c0   :  { %v2728_v40 = vld [vmem:[#allocation3 + $0xda0] sm:$0xff]  ;;  %5488 = vmatpush1.bf16.msra.mxu1 %v11804_v47  ;;  %5519 = vmatprep.mubr.bf16.mxu1 %v13799_v37 }
 0x7c1   :  { %v2588_v48 = vld [vmem:[#allocation3 + $0x940] sm:$0xff]  ;;  %v11797_v1 = vcombine.high %v2724_v39, %v2728_v40  ;;  %5448 = vmatprep.subr.bf16.mxu0 %v11669_v49  ;;  %v11796_v55 = vcombine.low %v2724_v39, %v2728_v40 }
 0x7c2   :  { %v2592_v50 = vld [vmem:[#allocation3 + $0x960] sm:$0xff]  ;;  %5449 = vmatpush1.bf16.msra.mxu0 %v11668_v45 }
 0x7c3   :  { %v2716_v54 = vld [vmem:[#allocation3 + $0xd40] sm:$0xff]  ;;  %v11661_v59 = vcombine.high %v2588_v48, %v2592_v50  ;;  %5489 = vmatprep.subr.bf16.mxu1 %v11797_v1  ;;  %v11660_v8 = vcombine.low %v2588_v48, %v2592_v50 }
 0x7c4   :  { %v2720_v44 = vld [vmem:[#allocation3 + $0xd60] sm:$0xff]  ;;  %5490 = vmatpush1.bf16.msra.mxu1 %v11796_v55 }
 0x7c5   :  { %v2580_v2 = vld [vmem:[#allocation3 + $0x900] sm:$0xff]  ;;  %v11789_v9 = vcombine.high %v2716_v54, %v2720_v44  ;;  %5450 = vmatprep.subr.bf16.mxu0 %v11661_v59  ;;  %v11788_v13 = vcombine.low %v2716_v54, %v2720_v44 }
 0x7c6   :  { %v2584_v7 = vld [vmem:[#allocation3 + $0x920] sm:$0xff]  ;;  %5451 = vmatpush1.bf16.msra.mxu0 %v11660_v8 }
 0x7c7   :  { %v2708_v16 = vld [vmem:[#allocation3 + $0xd00] sm:$0xff]  ;;  %v11653_v17 = vcombine.high %v2580_v2, %v2584_v7  ;;  %5491 = vmatprep.subr.bf16.mxu1 %v11789_v9  ;;  %v11652_v30 = vcombine.low %v2580_v2, %v2584_v7 }
 0x7c8   :  { %v2712_v10 = vld [vmem:[#allocation3 + $0xd20] sm:$0xff]  ;;  %5492 = vmatpush1.bf16.msra.mxu1 %v11788_v13 }
 0x7c9   :  { %v2572_v22 = vld [vmem:[#allocation3 + $0x8c0] sm:$0xff]  ;;  %v11781_v27 = vcombine.high %v2708_v16, %v2712_v10  ;;  %5452 = vmatprep.subr.bf16.mxu0 %v11653_v17  ;;  %v11780_v29 = vcombine.low %v2708_v16, %v2712_v10 }
 0x7ca   :  { %v2576_v26 = vld [vmem:[#allocation3 + $0x8e0] sm:$0xff]  ;;  %5453 = vmatpush1.bf16.msra.mxu0 %v11652_v30 }
 0x7cb   :  { %v2700_v23 = vld [vmem:[#allocation3 + $0xcc0] sm:$0xff]  ;;  %v11645_v31 = vcombine.high %v2572_v22, %v2576_v26  ;;  %5493 = vmatprep.subr.bf16.mxu1 %v11781_v27  ;;  %v11644_v48 = vcombine.low %v2572_v22, %v2576_v26 }
 0x7cc   :  { %v2704_v28 = vld [vmem:[#allocation3 + $0xce0] sm:$0xff]  ;;  %5494 = vmatpush1.bf16.msra.mxu1 %v11780_v29 }
 0x7cd   :  { %v2564_v39 = vld [vmem:[#allocation3 + $0x880] sm:$0xff]  ;;  %v11773_v47 = vcombine.high %v2700_v23, %v2704_v28  ;;  %5454 = vmatprep.subr.bf16.mxu0 %v11645_v31  ;;  %v11772_v50 = vcombine.low %v2700_v23, %v2704_v28 }
 0x7ce   :  { %v2568_v40 = vld [vmem:[#allocation3 + $0x8a0] sm:$0xff]  ;;  %5455 = vmatpush1.bf16.msra.mxu0 %v11644_v48 }
 0x7cf   :  { %v2692_v46 = vld [vmem:[#allocation3 + $0xc80] sm:$0xff]  ;;  %v11637_v54 = vcombine.high %v2564_v39, %v2568_v40  ;;  %5495 = vmatprep.subr.bf16.mxu1 %v11773_v47  ;;  %v11636_v2 = vcombine.low %v2564_v39, %v2568_v40 }
 0x7d0   :  { %v2696_v49 = vld [vmem:[#allocation3 + $0xca0] sm:$0xff]  ;;  %5496 = vmatpush1.bf16.msra.mxu1 %v11772_v50 }
 0x7d1   :  { %v2556_v1 = vld [vmem:[#allocation3 + $0x840] sm:$0xff]  ;;  %v11765_v55 = vcombine.high %v2692_v46, %v2696_v49  ;;  %5456 = vmatprep.subr.bf16.mxu0 %v11637_v54  ;;  %v11764_v7 = vcombine.low %v2692_v46, %v2696_v49 }
 0x7d2   :  { %v2560_v44 = vld [vmem:[#allocation3 + $0x860] sm:$0xff]  ;;  %5457 = vmatpush1.bf16.msra.mxu0 %v11636_v2 }
 0x7d3   :  { %v2684_v45 = vld [vmem:[#allocation3 + $0xc40] sm:$0xff]  ;;  %v11629_v16 = vcombine.high %v2556_v1, %v2560_v44  ;;  %5497 = vmatprep.subr.bf16.mxu1 %v11765_v55  ;;  %v11628_v22 = vcombine.low %v2556_v1, %v2560_v44 }
 0x7d4   :  { %v2688_v59 = vld [vmem:[#allocation3 + $0xc60] sm:$0xff]  ;;  %5498 = vmatpush1.bf16.msra.mxu1 %v11764_v7 }
 0x7d5   :  { %v2548_v9 = vld [vmem:[#allocation3 + $0x800] sm:$0xff]  ;;  %v11757_v13 = vcombine.high %v2684_v45, %v2688_v59  ;;  %5458 = vmatprep.subr.bf16.mxu0 %v11629_v16  ;;  %v11756_v26 = vcombine.low %v2684_v45, %v2688_v59 }
 0x7d6   :  { %v2552_v10 = vld [vmem:[#allocation3 + $0x820] sm:$0xff]  ;;  %5459 = vmatpush1.bf16.msra.mxu0 %v11628_v22 }
 0x7d7   :  { %v2676_v8 = vld [vmem:[#allocation3 + $0xc00] sm:$0xff]  ;;  %v11621_v23 = vcombine.high %v2548_v9, %v2552_v10  ;;  %5499 = vmatprep.subr.bf16.mxu1 %v11757_v13  ;;  %v11620_v39 = vcombine.low %v2548_v9, %v2552_v10 }
 0x7d8   :  { %v2680_v17 = vld [vmem:[#allocation3 + $0xc20] sm:$0xff]  ;;  %5500 = vmatpush1.bf16.msra.mxu1 %v11756_v26 }
 0x7d9   :  { %v2668_v27 = vld [vmem:[#allocation3 + $0xbc0] sm:$0xff]  ;;  %v11749_v29 = vcombine.high %v2676_v8, %v2680_v17  ;;  %5460 = vmatprep.subr.bf16.mxu0 %v11621_v23  ;;  %v11748_v40 = vcombine.low %v2676_v8, %v2680_v17 }
 0x7da   :  { %v2672_v28 = vld [vmem:[#allocation3 + $0xbe0] sm:$0xff]  ;;  %5461 = vmatpush1.bf16.msra.mxu0 %v11620_v39 }
 0x7db   :  { %v2796_v30 = vld [vmem:[#allocation3 + $0xfc0] sm:$0xff]  ;;  %v11741_v46 = vcombine.high %v2668_v27, %v2672_v28  ;;  %5501 = vmatprep.subr.bf16.mxu1 %v11749_v29  ;;  %v11740_v1 = vcombine.low %v2668_v27, %v2672_v28 }
 0x7dc   :  { %v2800_v31 = vld [vmem:[#allocation3 + $0xfe0] sm:$0xff]  ;;  %5502 = vmatpush1.bf16.msra.mxu1 %v11748_v40 }
 0x7dd   :  { %v2660_v47 = vld [vmem:[#allocation3 + $0xb80] sm:$0xff]  ;;  %v11869_v50 = vcombine.high %v2796_v30, %v2800_v31  ;;  %5462 = vmatprep.subr.bf16.mxu0 %v11741_v46  ;;  %v11868_v44 = vcombine.low %v2796_v30, %v2800_v31 }
 0x7de   :  { %v2664_v49 = vld [vmem:[#allocation3 + $0xba0] sm:$0xff]  ;;  %5463 = vmatpush2.bf16.msra.mxu0 %v11740_v1 }
 0x7df   :  { %v2788_v48 = vld [vmem:[#allocation3 + $0xf80] sm:$0xff]  ;;  %v11733_v45 = vcombine.high %v2660_v47, %v2664_v49  ;;  %5503 = vmatprep.subr.bf16.mxu1 %v11869_v50  ;;  %v11732_v9 = vcombine.low %v2660_v47, %v2664_v49 }
 0x7e0   :  { %v2792_v54 = vld [vmem:[#allocation3 + $0xfa0] sm:$0xff]  ;;  %5504 = vmatpush2.bf16.msra.mxu1 %v11868_v44 }
 0x7e1   :  { %v2652_v55 = vld [vmem:[#allocation3 + $0xb40] sm:$0xff]  ;;  %v11861_v7 = vcombine.high %v2788_v48, %v2792_v54  ;;  %5464 = vmatprep.subr.bf16.mxu0 %v11733_v45  ;;  %v11860_v10 = vcombine.low %v2788_v48, %v2792_v54 }
 0x7e2   :  { %v2656_v59 = vld [vmem:[#allocation3 + $0xb60] sm:$0xff]  ;;  %5465 = vmatpush2.bf16.msra.mxu0 %v11732_v9 }
 0x7e3   :  { %v2780_v2 = vld [vmem:[#allocation3 + $0xf40] sm:$0xff]  ;;  %v11725_v8 = vcombine.high %v2652_v55, %v2656_v59  ;;  %5505 = vmatprep.subr.bf16.mxu1 %v11861_v7  ;;  %v11724_v27 = vcombine.low %v2652_v55, %v2656_v59 }
 0x7e4   :  { %v2784_v16 = vld [vmem:[#allocation3 + $0xf60] sm:$0xff]  ;;  %5506 = vmatpush2.bf16.msra.mxu1 %v11860_v10 }
 0x7e5   :  { %v2644_v13 = vld [vmem:[#allocation3 + $0xb00] sm:$0xff]  ;;  %v11853_v26 = vcombine.high %v2780_v2, %v2784_v16  ;;  %5466 = vmatprep.subr.bf16.mxu0 %v11725_v8  ;;  %v11852_v28 = vcombine.low %v2780_v2, %v2784_v16 }
 0x7e6   :  { %v2648_v17 = vld [vmem:[#allocation3 + $0xb20] sm:$0xff]  ;;  %5467 = vmatpush2.bf16.msra.mxu0 %v11724_v27 }
 0x7e7   :  { %v2772_v22 = vld [vmem:[#allocation3 + $0xf00] sm:$0xff]  ;;  %v11717_v30 = vcombine.high %v2644_v13, %v2648_v17  ;;  %5507 = vmatprep.subr.bf16.mxu1 %v11853_v26  ;;  %v11716_v47 = vcombine.low %v2644_v13, %v2648_v17 }
 0x7e8   :  { %v2776_v23 = vld [vmem:[#allocation3 + $0xf20] sm:$0xff]  ;;  %5508 = vmatpush2.bf16.msra.mxu1 %v11852_v28 }
 0x7e9   :  { %v2636_v29 = vld [vmem:[#allocation3 + $0xac0] sm:$0xff]  ;;  %v11845_v40 = vcombine.high %v2772_v22, %v2776_v23  ;;  %5468 = vmatprep.subr.bf16.mxu0 %v11717_v30  ;;  %v11844_v49 = vcombine.low %v2772_v22, %v2776_v23 }
 0x7ea   :  { %v2640_v31 = vld [vmem:[#allocation3 + $0xae0] sm:$0xff]  ;;  %5469 = vmatpush2.bf16.msra.mxu0 %v11716_v47  ;;  %v2477_v47 = vld [vmem:[#allocation3 + $0x5c8] sm:$0xff] }
 0x7eb   :  { %v2764_v39 = vld [vmem:[#allocation3 + $0xec0] sm:$0xff]  ;;  %v11709_v48 = vcombine.high %v2636_v29, %v2640_v31  ;;  %5509 = vmatprep.subr.bf16.mxu1 %v11845_v40  ;;  %v11708_v55 = vcombine.low %v2636_v29, %v2640_v31  ;;  %v2349_v40 = vld [vmem:[#allocation3 + $0x1c8] sm:$0xff] }
 0x7ec   :  { %v2768_v46 = vld [vmem:[#allocation3 + $0xee0] sm:$0xff]  ;;  %5510 = vmatpush2.bf16.msra.mxu1 %v11844_v49 }
 0x7ed   :  { %v2628_v50 = vld [vmem:[#allocation3 + $0xa80] sm:$0xff]  ;;  %v11837_v44 = vcombine.high %v2764_v39, %v2768_v46  ;;  %5470 = vmatprep.subr.bf16.mxu0 %v11709_v48  ;;  %v11836_v59 = vcombine.low %v2764_v39, %v2768_v46  ;;  %v2353_v46 = vld [vmem:[#allocation3 + $0x1e8] sm:$0xff] }
 0x7ee   :  { %v2632_v54 = vld [vmem:[#allocation3 + $0xaa0] sm:$0xff]  ;;  %5471 = vmatpush2.bf16.msra.mxu0 %v11708_v55  ;;  %v2481_v48 = vld [vmem:[#allocation3 + $0x5e8] sm:$0xff] }
 0x7ef   :  { %v2756_v1 = vld [vmem:[#allocation3 + $0xe80] sm:$0xff]  ;;  %v11701_v2 = vcombine.high %v2628_v50, %v2632_v54  ;;  %5511 = vmatprep.subr.bf16.mxu1 %v11837_v44  ;;  %v11700_v13 = vcombine.low %v2628_v50, %v2632_v54  ;;  %v2341_v44 = vld [vmem:[#allocation3 + $0x188] sm:$0xff] }
 0x7f0   :  { %v2760_v45 = vld [vmem:[#allocation3 + $0xea0] sm:$0xff]  ;;  %5512 = vmatpush2.bf16.msra.mxu1 %v11836_v59  ;;  %v2469_v55 = vld [vmem:[#allocation3 + $0x588] sm:$0xff]  ;;  %v11551_v59 = vcombine.high %v2477_v47, %v2481_v48 }
 0x7f1   :  { %v2620_v7 = vld [vmem:[#allocation3 + $0xa40] sm:$0xff]  ;;  %v11829_v10 = vcombine.high %v2756_v1, %v2760_v45  ;;  %5472 = vmatprep.subr.bf16.mxu0 %v11701_v2  ;;  %v11828_v17 = vcombine.low %v2756_v1, %v2760_v45  ;;  %v11423_v1 = vcombine.high %v2349_v40, %v2353_v46  ;;  %v2345_v45 = vld [vmem:[#allocation3 + $0x1a8] sm:$0xff] }
 0x7f2   :  { %v2624_v16 = vld [vmem:[#allocation3 + $0xa60] sm:$0xff]  ;;  %5473 = vmatpush2.bf16.msra.mxu0 %v11700_v13  ;;  %v2473_v2 = vld [vmem:[#allocation3 + $0x5a8] sm:$0xff]  ;;  %v11414_v58 = vcombine.low %v2341_v44, %v2345_v45 }
 0x7f3   :  { %v2748_v9 = vld [vmem:[#allocation3 + $0xe40] sm:$0xff]  ;;  %v11693_v22 = vcombine.high %v2620_v7, %v2624_v16  ;;  %5513 = vmatprep.subr.bf16.mxu1 %v11829_v10  ;;  %v11692_v29 = vcombine.low %v2620_v7, %v2624_v16  ;;  %v13807_v7 = vpack.c.bf16 %v1754_v3, %v1754_v3  ;;  %v13812_v16 = vpack.c.bf16 %v1756_v6, %v1756_v6  ;;  %v2333_v13 = vld [vmem:[#allocation3 + $0x148] sm:$0xff] }
 0x7f4   :  { %v2752_v8 = vld [vmem:[#allocation3 + $0xe60] sm:$0xff]  ;;  %5514 = vmatpush2.bf16.msra.mxu1 %v11828_v17  ;;  %v11550_v10 = vcombine.low %v2477_v47, %v2481_v48  ;;  %v2337_v17 = vld [vmem:[#allocation3 + $0x168] sm:$0xff]  ;;  %v11542_v3 = vcombine.low %v2469_v55, %v2473_v2 }
 0x7f5   :  { %v2612_v26 = vld [vmem:[#allocation3 + $0xa00] sm:$0xff]  ;;  %v11821_v28 = vcombine.high %v2748_v9, %v2752_v8  ;;  %5474 = vmatprep.subr.bf16.mxu0 %v11693_v22  ;;  %v11820_v31 = vcombine.low %v2748_v9, %v2752_v8  ;;  %v11422_v9 = vcombine.low %v2349_v40, %v2353_v46  ;;  %v11415_v8 = vcombine.high %v2341_v44, %v2345_v45  ;;  %v2461_v22 = vld [vmem:[#allocation3 + $0x548] sm:$0xff] }
 0x7f6   :  { %v2616_v23 = vld [vmem:[#allocation3 + $0xa20] sm:$0xff]  ;;  %5475 = vmatpush2.bf16.msra.mxu0 %v11692_v29  ;;  %v11407_v6 = vcombine.high %v2333_v13, %v2337_v17  ;;  %v2457_v29 = vld [vmem:[#allocation3 + $0x528] sm:$0xff] }
 0x7f7   :  { %v2740_v27 = vld [vmem:[#allocation3 + $0xe00] sm:$0xff]  ;;  %v11685_v39 = vcombine.high %v2612_v26, %v2616_v23  ;;  %5515 = vmatprep.subr.bf16.mxu1 %v11821_v28  ;;  %v11684_v50 = vcombine.low %v2612_v26, %v2616_v23  ;;  %v11543_v26 = vcombine.high %v2469_v55, %v2473_v2  ;;  %v2325_v23 = vld [vmem:[#allocation3 + $0x108] sm:$0xff] }
 0x7f8   :  { %v2744_v30 = vld [vmem:[#allocation3 + $0xe20] sm:$0xff]  ;;  %5516 = vmatpush2.bf16.msra.mxu1 %v11820_v31  ;;  %v2453_v28 = vld [vmem:[#allocation3 + $0x508] sm:$0xff]  ;;  %v11406_v31 = vcombine.low %v2333_v13, %v2337_v17 }
 0x7f9   :  { %v11813_v49 = vcombine.high %v2740_v27, %v2744_v30  ;;  %5476 = vmatprep.subr.bf16.mxu0 %v11685_v39  ;;  %v11812_v54 = vcombine.low %v2740_v27, %v2744_v30  ;;  %v2329_v27 = vld [vmem:[#allocation3 + $0x128] sm:$0xff]  ;;  %v11535_v30 = vcombine.high %v2461_v22, %v2465_v57  ;;  %v11534_v39 = vcombine.low %v2461_v22, %v2465_v57  ;;  %v1808_v0 = vld [vmem:[#allocation2 + $0x120] sm:$0xff] }
 0x7fa   :  { %5477 = vmatpush2.bf16.msra.mxu0 %v11684_v50  ;;  %v11399_v40 = vcombine.high %v2325_v23, %v2329_v27  ;;  %v2317_v46 = vld [vmem:[#allocation3 + $0xc8] sm:$0xff]  ;;  %v11527_v48 = vcombine.high %v2453_v28, %v2457_v29  ;;  %v2072_v52 = vld [vmem:[#allocation2 + $0x960] sm:$0xff] }
 0x7fb   :  { %5517 = vmatprep.subr.bf16.mxu1 %v11813_v49  ;;  %5528 = vmatprep.subr.bf16.mxu0 %v11423_v1  ;;  %v2321_v47 = vld [vmem:[#allocation3 + $0xe8] sm:$0xff]  ;;  %v11526_v1 = vcombine.low %v2453_v28, %v2457_v29  ;;  %v2196_v53 = vld [vmem:[#allocation2 + $0xd40] sm:$0xff] }
 0x7fc   :  { %5518 = vmatpush2.bf16.msra.mxu1 %v11812_v54  ;;  %v2445_v49 = vld [vmem:[#allocation3 + $0x4c8] sm:$0xff]  ;;  %v11398_v54 = vcombine.low %v2325_v23, %v2329_v27  ;;  %v11391_v44 = vcombine.high %v2317_v46, %v2321_v47 }
 0x7fd   :  { %5569 = vmatprep.subr.bf16.mxu1 %v11551_v59  ;;  %5479 = vmatmul.mubr.bf16.vlgmr.msra.gmra.mxu0 %v13807_v7  ;;  %v2449_v50 = vld [vmem:[#allocation3 + $0x4e8] sm:$0xff] }
 0x7fe   :  { %5529 = vmatpush1.bf16.msra.mxu0 %v11422_v9  ;;  %5560 = vmatprep.mubr.bf16.mxu0 %v13774_v14  ;;  %v2309_v45 = vld [vmem:[#allocation3 + $0x88] sm:$0xff]  ;;  %v11519_v2 = vcombine.high %v2445_v49, %v2449_v50 }
 0x7ff   :  { %5520 = vmatmul.mubr.bf16.vlgmr.msra.gmra.mxu1 %v13812_v16  ;;  %5530 = vmatprep.subr.bf16.mxu0 %v11415_v8  ;;  %v2313_v55 = vld [vmem:[#allocation3 + $0xa8] sm:$0xff]  ;;  %v11518_v8 = vcombine.low %v2445_v49, %v2449_v50 }
 0x800   :  { %5570 = vmatpush1.bf16.msra.mxu1 %v11550_v10  ;;  %5601 = vmatprep.mubr.bf16.mxu1 %v13776_v15  ;;  %v2437_v59 = vld [vmem:[#allocation3 + $0x488] sm:$0xff]  ;;  %v11390_v10 = vcombine.low %v2317_v46, %v2321_v47  ;;  %v11383_v13 = vcombine.high %v2309_v45, %v2313_v55 }
 0x801   :  { %5571 = vmatprep.subr.bf16.mxu1 %v11543_v26  ;;  %v2441_v9 = vld [vmem:[#allocation3 + $0x4a8] sm:$0xff] }
 0x802   :  { %5531 = vmatpush1.bf16.msra.mxu0 %v11414_v58  ;;  %v2301_v17 = vld [vmem:[#allocation3 + $0x48] sm:$0xff]  ;;  %v11511_v57 = vcombine.high %v2437_v59, %v2441_v9 }
 0x803   :  { %5532 = vmatprep.subr.bf16.mxu0 %v11407_v6  ;;  %v2305_v22 = vld [vmem:[#allocation3 + $0x68] sm:$0xff]  ;;  %v11510_v6 = vcombine.low %v2437_v59, %v2441_v9 }
 0x804   :  { %5572 = vmatpush1.bf16.msra.mxu1 %v11542_v3  ;;  %v2429_v26 = vld [vmem:[#allocation3 + $0x448] sm:$0xff]  ;;  %v11382_v3 = vcombine.low %v2309_v45, %v2313_v55  ;;  %v11375_v23 = vcombine.high %v2301_v17, %v2305_v22 }
 0x805   :  { %5573 = vmatprep.subr.bf16.mxu1 %v11535_v30  ;;  %v2433_v58 = vld [vmem:[#allocation3 + $0x468] sm:$0xff] }
 0x806   :  { %5533 = vmatpush1.bf16.msra.mxu0 %v11406_v31  ;;  %v2293_v27 = vld [vmem:[#allocation3 + $0x8] sm:$0xff]  ;;  %v11503_v29 = vcombine.high %v2429_v26, %v2433_v58 }
 0x807   :  { %5534 = vmatprep.subr.bf16.mxu0 %v11399_v40  ;;  %v2297_v28 = vld [vmem:[#allocation3 + $0x28] sm:$0xff]  ;;  %v11502_v40 = vcombine.low %v2429_v26, %v2433_v58 }
 0x808   :  { %5574 = vmatpush1.bf16.msra.mxu1 %v11534_v39  ;;  %v2421_v30 = vld [vmem:[#allocation3 + $0x408] sm:$0xff]  ;;  %v11374_v39 = vcombine.low %v2301_v17, %v2305_v22  ;;  %v11367_v46 = vcombine.high %v2293_v27, %v2297_v28 }
 0x809   :  { %5575 = vmatprep.subr.bf16.mxu1 %v11527_v48  ;;  %v2425_v31 = vld [vmem:[#allocation3 + $0x428] sm:$0xff] }
 0x80a   :  { %5535 = vmatpush1.bf16.msra.mxu0 %v11398_v54  ;;  %v2413_v47 = vld [vmem:[#allocation3 + $0x3c8] sm:$0xff]  ;;  %v11495_v50 = vcombine.high %v2421_v30, %v2425_v31 }
 0x80b   :  { %5536 = vmatprep.subr.bf16.mxu0 %v11391_v44  ;;  %v2417_v49 = vld [vmem:[#allocation3 + $0x3e8] sm:$0xff]  ;;  %v11494_v44 = vcombine.low %v2421_v30, %v2425_v31 }
 0x80c   :  { %5576 = vmatpush1.bf16.msra.mxu1 %v11526_v1  ;;  %v2541_v48 = vld [vmem:[#allocation3 + $0x7c8] sm:$0xff]  ;;  %v11366_v1 = vcombine.low %v2293_v27, %v2297_v28  ;;  %v11487_v45 = vcombine.high %v2413_v47, %v2417_v49 }
 0x80d   :  { %5577 = vmatprep.subr.bf16.mxu1 %v11519_v2  ;;  %v2545_v54 = vld [vmem:[#allocation3 + $0x7e8] sm:$0xff] }
 0x80e   :  { %5537 = vmatpush1.bf16.msra.mxu0 %v11390_v10  ;;  %v2405_v55 = vld [vmem:[#allocation3 + $0x388] sm:$0xff]  ;;  %v11615_v9 = vcombine.high %v2541_v48, %v2545_v54 }
 0x80f   :  { %5538 = vmatprep.subr.bf16.mxu0 %v11383_v13  ;;  %v2409_v59 = vld [vmem:[#allocation3 + $0x3a8] sm:$0xff]  ;;  %v11614_v13 = vcombine.low %v2541_v48, %v2545_v54 }
 0x810   :  { %5578 = vmatpush1.bf16.msra.mxu1 %v11518_v8  ;;  %v2533_v2 = vld [vmem:[#allocation3 + $0x788] sm:$0xff]  ;;  %v11486_v8 = vcombine.low %v2413_v47, %v2417_v49  ;;  %v11479_v17 = vcombine.high %v2405_v55, %v2409_v59 }
 0x811   :  { %5579 = vmatprep.subr.bf16.mxu1 %v11511_v57  ;;  %v2537_v10 = vld [vmem:[#allocation3 + $0x7a8] sm:$0xff] }
 0x812   :  { %5539 = vmatpush1.bf16.msra.mxu0 %v11382_v3  ;;  %v2397_v22 = vld [vmem:[#allocation3 + $0x348] sm:$0xff]  ;;  %v11607_v58 = vcombine.high %v2533_v2, %v2537_v10 }
 0x813   :  { %5540 = vmatprep.subr.bf16.mxu0 %v11375_v23  ;;  %v2401_v26 = vld [vmem:[#allocation3 + $0x368] sm:$0xff]  ;;  %v11606_v23 = vcombine.low %v2533_v2, %v2537_v10 }
 0x814   :  { %5580 = vmatpush1.bf16.msra.mxu1 %v11510_v6  ;;  %v2525_v57 = vld [vmem:[#allocation3 + $0x748] sm:$0xff]  ;;  %v11478_v6 = vcombine.low %v2405_v55, %v2409_v59  ;;  %v11471_v27 = vcombine.high %v2397_v22, %v2401_v26 }
 0x815   :  { %5581 = vmatprep.subr.bf16.mxu1 %v11503_v29  ;;  %v2529_v3 = vld [vmem:[#allocation3 + $0x768] sm:$0xff] }
 0x816   :  { %5541 = vmatpush1.bf16.msra.mxu0 %v11374_v39  ;;  %v2389_v28 = vld [vmem:[#allocation3 + $0x308] sm:$0xff]  ;;  %v11599_v31 = vcombine.high %v2525_v57, %v2529_v3 }
 0x817   :  { %5542 = vmatprep.subr.bf16.mxu0 %v11367_v46  ;;  %v2393_v30 = vld [vmem:[#allocation3 + $0x328] sm:$0xff]  ;;  %v11598_v46 = vcombine.low %v2525_v57, %v2529_v3 }
 0x818   :  { %5582 = vmatpush1.bf16.msra.mxu1 %v11502_v40  ;;  %v2517_v29 = vld [vmem:[#allocation3 + $0x708] sm:$0xff]  ;;  %v11470_v40 = vcombine.low %v2397_v22, %v2401_v26  ;;  %v11463_v47 = vcombine.high %v2389_v28, %v2393_v30 }
 0x819   :  { %5583 = vmatprep.subr.bf16.mxu1 %v11495_v50  ;;  %v2521_v39 = vld [vmem:[#allocation3 + $0x728] sm:$0xff] }
 0x81a   :  { %5543 = vmatpush1.bf16.msra.mxu0 %v11366_v1  ;;  %v2381_v49 = vld [vmem:[#allocation3 + $0x2c8] sm:$0xff]  ;;  %v11591_v54 = vcombine.high %v2517_v29, %v2521_v39 }
 0x81b   :  { %5544 = vmatprep.subr.bf16.mxu0 %v11487_v45  ;;  %v2385_v48 = vld [vmem:[#allocation3 + $0x2e8] sm:$0xff]  ;;  %v11590_v45 = vcombine.low %v2517_v29, %v2521_v39 }
 0x81c   :  { %5584 = vmatpush1.bf16.msra.mxu1 %v11494_v44  ;;  %v2509_v50 = vld [vmem:[#allocation3 + $0x6c8] sm:$0xff]  ;;  %v11462_v44 = vcombine.low %v2389_v28, %v2393_v30  ;;  %v11455_v55 = vcombine.high %v2381_v49, %v2385_v48 }
 0x81d   :  { %5585 = vmatprep.subr.bf16.mxu1 %v11615_v9  ;;  %v2513_v1 = vld [vmem:[#allocation3 + $0x6e8] sm:$0xff] }
 0x81e   :  { %5545 = vmatpush2.bf16.msra.mxu0 %v11486_v8  ;;  %v2373_v59 = vld [vmem:[#allocation3 + $0x288] sm:$0xff]  ;;  %v11583_v10 = vcombine.high %v2509_v50, %v2513_v1 }
 0x81f   :  { %5546 = vmatprep.subr.bf16.mxu0 %v11479_v17  ;;  %v2377_v2 = vld [vmem:[#allocation3 + $0x2a8] sm:$0xff]  ;;  %v11582_v17 = vcombine.low %v2509_v50, %v2513_v1 }
 0x820   :  { %5586 = vmatpush2.bf16.msra.mxu1 %v11614_v13  ;;  %v2501_v9 = vld [vmem:[#allocation3 + $0x688] sm:$0xff]  ;;  %v11454_v13 = vcombine.low %v2381_v49, %v2385_v48  ;;  %v11447_v22 = vcombine.high %v2373_v59, %v2377_v2 }
 0x821   :  { %5587 = vmatprep.subr.bf16.mxu1 %v11607_v58  ;;  %v2505_v8 = vld [vmem:[#allocation3 + $0x6a8] sm:$0xff] }
 0x822   :  { %5547 = vmatpush2.bf16.msra.mxu0 %v11478_v6  ;;  %v2365_v26 = vld [vmem:[#allocation3 + $0x248] sm:$0xff]  ;;  %v11575_v3 = vcombine.high %v2501_v9, %v2505_v8 }
 0x823   :  { %5548 = vmatprep.subr.bf16.mxu0 %v11471_v27  ;;  %v2369_v57 = vld [vmem:[#allocation3 + $0x268] sm:$0xff]  ;;  %v11574_v27 = vcombine.low %v2501_v9, %v2505_v8 }
 0x824   :  { %5588 = vmatpush2.bf16.msra.mxu1 %v11606_v23  ;;  %v2493_v58 = vld [vmem:[#allocation3 + $0x648] sm:$0xff]  ;;  %v11446_v23 = vcombine.low %v2373_v59, %v2377_v2  ;;  %v11439_v28 = vcombine.high %v2365_v26, %v2369_v57 }
 0x825   :  { %5589 = vmatprep.subr.bf16.mxu1 %v11599_v31  ;;  %v2497_v6 = vld [vmem:[#allocation3 + $0x668] sm:$0xff] }
 0x826   :  { %5549 = vmatpush2.bf16.msra.mxu0 %v11470_v40  ;;  %v2357_v30 = vld [vmem:[#allocation3 + $0x208] sm:$0xff]  ;;  %v11567_v39 = vcombine.high %v2493_v58, %v2497_v6 }
 0x827   :  { %5550 = vmatprep.subr.bf16.mxu0 %v11463_v47  ;;  %v2361_v29 = vld [vmem:[#allocation3 + $0x228] sm:$0xff]  ;;  %v11566_v47 = vcombine.low %v2493_v58, %v2497_v6 }
 0x828   :  { %5590 = vmatpush2.bf16.msra.mxu1 %v11598_v46  ;;  %v2485_v31 = vld [vmem:[#allocation3 + $0x608] sm:$0xff]  ;;  %v11438_v46 = vcombine.low %v2365_v26, %v2369_v57  ;;  %v11431_v49 = vcombine.high %v2357_v30, %v2361_v29 }
 0x829   :  { %5591 = vmatprep.subr.bf16.mxu1 %v11591_v54  ;;  %v2489_v40 = vld [vmem:[#allocation3 + $0x628] sm:$0xff] }
 0x82a   :  { %5551 = vmatpush2.bf16.msra.mxu0 %v11462_v44  ;;  %v2605_v48 = vld [vmem:[#allocation3 + $0x9c8] sm:$0xff]  ;;  %v11559_v1 = vcombine.high %v2485_v31, %v2489_v40 }
 0x82b   :  { %5552 = vmatprep.subr.bf16.mxu0 %v11455_v55  ;;  %v2609_v50 = vld [vmem:[#allocation3 + $0x9e8] sm:$0xff]  ;;  %v11558_v55 = vcombine.low %v2485_v31, %v2489_v40 }
 0x82c   :  { %5592 = vmatpush2.bf16.msra.mxu1 %v11590_v45  ;;  %v2733_v54 = vld [vmem:[#allocation3 + $0xdc8] sm:$0xff]  ;;  %v11430_v45 = vcombine.low %v2357_v30, %v2361_v29  ;;  %v11679_v59 = vcombine.high %v2605_v48, %v2609_v50 }
 0x82d   :  { %5593 = vmatprep.subr.bf16.mxu1 %v11583_v10  ;;  %v2737_v44 = vld [vmem:[#allocation3 + $0xde8] sm:$0xff] }
 0x82e   :  { %5553 = vmatpush2.bf16.msra.mxu0 %v11454_v13  ;;  %v2597_v2 = vld [vmem:[#allocation3 + $0x988] sm:$0xff]  ;;  %v11807_v8 = vcombine.high %v2733_v54, %v2737_v44 }
 0x82f   :  { %5554 = vmatprep.subr.bf16.mxu0 %v11447_v22  ;;  %v2601_v9 = vld [vmem:[#allocation3 + $0x9a8] sm:$0xff]  ;;  %v11806_v22 = vcombine.low %v2733_v54, %v2737_v44 }
 0x830   :  { %5594 = vmatpush2.bf16.msra.mxu1 %v11582_v17  ;;  %v2725_v10 = vld [vmem:[#allocation3 + $0xd88] sm:$0xff]  ;;  %v11678_v17 = vcombine.low %v2605_v48, %v2609_v50  ;;  %v11671_v26 = vcombine.high %v2597_v2, %v2601_v9 }
 0x831   :  { %5595 = vmatprep.subr.bf16.mxu1 %v11575_v3  ;;  %v2729_v13 = vld [vmem:[#allocation3 + $0xda8] sm:$0xff] }
 0x832   :  { %5555 = vmatpush2.bf16.msra.mxu0 %v11446_v23  ;;  %v11799_v57 = vcombine.high %v2725_v10, %v2729_v13  ;;  %v2589_v58 = vld [vmem:[#allocation3 + $0x948] sm:$0xff] }
 0x833   :  { %5556 = vmatprep.subr.bf16.mxu0 %v11439_v28  ;;  %v2593_v3 = vld [vmem:[#allocation3 + $0x968] sm:$0xff]  ;;  %v11798_v28 = vcombine.low %v2725_v10, %v2729_v13 }
 0x834   :  { %5596 = vmatpush2.bf16.msra.mxu1 %v11574_v27  ;;  %v2717_v6 = vld [vmem:[#allocation3 + $0xd48] sm:$0xff]  ;;  %v11670_v27 = vcombine.low %v2597_v2, %v2601_v9  ;;  %v11663_v30 = vcombine.high %v2589_v58, %v2593_v3 }
 0x835   :  { %5597 = vmatprep.subr.bf16.mxu1 %v11567_v39  ;;  %v2721_v23 = vld [vmem:[#allocation3 + $0xd68] sm:$0xff] }
 0x836   :  { %5557 = vmatpush2.bf16.msra.mxu0 %v11438_v46  ;;  %v11791_v29 = vcombine.high %v2717_v6, %v2721_v23  ;;  %v2581_v31 = vld [vmem:[#allocation3 + $0x908] sm:$0xff] }
 0x837   :  { %5558 = vmatprep.subr.bf16.mxu0 %v11431_v49  ;;  %v2585_v39 = vld [vmem:[#allocation3 + $0x928] sm:$0xff]  ;;  %v11790_v49 = vcombine.low %v2717_v6, %v2721_v23 }
 0x838   :  { %5598 = vmatpush2.bf16.msra.mxu1 %v11566_v47  ;;  %v2709_v40 = vld [vmem:[#allocation3 + $0xd08] sm:$0xff]  ;;  %v11662_v47 = vcombine.low %v2589_v58, %v2593_v3  ;;  %v11655_v48 = vcombine.high %v2581_v31, %v2585_v39 }
 0x839   :  { %5599 = vmatprep.subr.bf16.mxu1 %v11559_v1  ;;  %v2713_v46 = vld [vmem:[#allocation3 + $0xd28] sm:$0xff] }
 0x83a   :  { %5559 = vmatpush2.bf16.msra.mxu0 %v11430_v45  ;;  %v11783_v50 = vcombine.high %v2709_v40, %v2713_v46  ;;  %v2573_v54 = vld [vmem:[#allocation3 + $0x8c8] sm:$0xff] }
 0x83b   :  { %5610 = vmatprep.subr.bf16.mxu0 %v11679_v59  ;;  %v2577_v1 = vld [vmem:[#allocation3 + $0x8e8] sm:$0xff]  ;;  %v11782_v59 = vcombine.low %v2709_v40, %v2713_v46 }
 0x83c   :  { %5600 = vmatpush2.bf16.msra.mxu1 %v11558_v55  ;;  %v2701_v44 = vld [vmem:[#allocation3 + $0xcc8] sm:$0xff]  ;;  %v11654_v55 = vcombine.low %v2581_v31, %v2585_v39  ;;  %v11647_v2 = vcombine.high %v2573_v54, %v2577_v1 }
 0x83d   :  { %5651 = vmatprep.subr.bf16.mxu1 %v11807_v8  ;;  %5561 = vmatmul.mubr.bf16.vlgmr.msra.gmra.mxu0 %v13783_v38  ;;  %v2705_v45 = vld [vmem:[#allocation3 + $0xce8] sm:$0xff] }
 0x83e   :  { %5611 = vmatpush1.bf16.msra.mxu0 %v11678_v17  ;;  %5642 = vmatprep.mubr.bf16.mxu0 %v13793_v56  ;;  %v11775_v9 = vcombine.high %v2701_v44, %v2705_v45  ;;  %v2565_v10 = vld [vmem:[#allocation3 + $0x888] sm:$0xff] }
 0x83f   :  { %5602 = vmatmul.mubr.bf16.vlgmr.msra.gmra.mxu1 %v13788_v43  ;;  %5612 = vmatprep.subr.bf16.mxu0 %v11671_v26  ;;  %v2569_v8 = vld [vmem:[#allocation3 + $0x8a8] sm:$0xff]  ;;  %v11774_v26 = vcombine.low %v2701_v44, %v2705_v45 }
 0x840   :  { %5652 = vmatpush1.bf16.msra.mxu1 %v11806_v22  ;;  %5683 = vmatprep.mubr.bf16.mxu1 %v13799_v37  ;;  %v2693_v13 = vld [vmem:[#allocation3 + $0xc88] sm:$0xff]  ;;  %v11646_v22 = vcombine.low %v2573_v54, %v2577_v1 }
 0x841   :  { %5653 = vmatprep.subr.bf16.mxu1 %v11799_v57  ;;  %v2697_v17 = vld [vmem:[#allocation3 + $0xca8] sm:$0xff]  ;;  %v11639_v57 = vcombine.high %v2565_v10, %v2569_v8 }
 0x842   :  { %5613 = vmatpush1.bf16.msra.mxu0 %v11670_v27  ;;  %v11767_v58 = vcombine.high %v2693_v13, %v2697_v17  ;;  %v2557_v3 = vld [vmem:[#allocation3 + $0x848] sm:$0xff] }
 0x843   :  { %5614 = vmatprep.subr.bf16.mxu0 %v11663_v30  ;;  %v2561_v6 = vld [vmem:[#allocation3 + $0x868] sm:$0xff]  ;;  %v11766_v30 = vcombine.low %v2693_v13, %v2697_v17 }
 0x844   :  { %5654 = vmatpush1.bf16.msra.mxu1 %v11798_v28  ;;  %v2685_v23 = vld [vmem:[#allocation3 + $0xc48] sm:$0xff]  ;;  %v11638_v28 = vcombine.low %v2565_v10, %v2569_v8 }
 0x845   :  { %5655 = vmatprep.subr.bf16.mxu1 %v11791_v29  ;;  %v2689_v27 = vld [vmem:[#allocation3 + $0xc68] sm:$0xff]  ;;  %v11631_v29 = vcombine.high %v2557_v3, %v2561_v6 }
 0x846   :  { %5615 = vmatpush1.bf16.msra.mxu0 %v11662_v47  ;;  %v11759_v31 = vcombine.high %v2685_v23, %v2689_v27  ;;  %v2549_v39 = vld [vmem:[#allocation3 + $0x808] sm:$0xff] }
 0x847   :  { %5616 = vmatprep.subr.bf16.mxu0 %v11655_v48  ;;  %v2553_v40 = vld [vmem:[#allocation3 + $0x828] sm:$0xff]  ;;  %v11758_v48 = vcombine.low %v2685_v23, %v2689_v27 }
 0x848   :  { %5656 = vmatpush1.bf16.msra.mxu1 %v11790_v49  ;;  %v2677_v46 = vld [vmem:[#allocation3 + $0xc08] sm:$0xff]  ;;  %v11630_v49 = vcombine.low %v2557_v3, %v2561_v6 }
 0x849   :  { %5657 = vmatprep.subr.bf16.mxu1 %v11783_v50  ;;  %v2681_v47 = vld [vmem:[#allocation3 + $0xc28] sm:$0xff]  ;;  %v11623_v50 = vcombine.high %v2549_v39, %v2553_v40 }
 0x84a   :  { %5617 = vmatpush1.bf16.msra.mxu0 %v11654_v55  ;;  %v11751_v54 = vcombine.high %v2677_v46, %v2681_v47  ;;  %v2669_v1 = vld [vmem:[#allocation3 + $0xbc8] sm:$0xff] }
 0x84b   :  { %5618 = vmatprep.subr.bf16.mxu0 %v11647_v2  ;;  %v2673_v44 = vld [vmem:[#allocation3 + $0xbe8] sm:$0xff]  ;;  %v11750_v2 = vcombine.low %v2677_v46, %v2681_v47 }
 0x84c   :  { %5658 = vmatpush1.bf16.msra.mxu1 %v11782_v59  ;;  %v2797_v45 = vld [vmem:[#allocation3 + $0xfc8] sm:$0xff]  ;;  %v11622_v59 = vcombine.low %v2549_v39, %v2553_v40 }
 0x84d   :  { %5659 = vmatprep.subr.bf16.mxu1 %v11775_v9  ;;  %v2801_v55 = vld [vmem:[#allocation3 + $0xfe8] sm:$0xff]  ;;  %v11743_v9 = vcombine.high %v2669_v1, %v2673_v44 }
 0x84e   :  { %5619 = vmatpush1.bf16.msra.mxu0 %v11646_v22  ;;  %v11871_v10 = vcombine.high %v2797_v45, %v2801_v55  ;;  %v2661_v8 = vld [vmem:[#allocation3 + $0xb88] sm:$0xff] }
 0x84f   :  { %5620 = vmatprep.subr.bf16.mxu0 %v11639_v57  ;;  %v2665_v13 = vld [vmem:[#allocation3 + $0xba8] sm:$0xff]  ;;  %v11870_v57 = vcombine.low %v2797_v45, %v2801_v55 }
 0x850   :  { %5660 = vmatpush1.bf16.msra.mxu1 %v11774_v26  ;;  %v2789_v17 = vld [vmem:[#allocation3 + $0xf88] sm:$0xff]  ;;  %v11742_v26 = vcombine.low %v2669_v1, %v2673_v44 }
 0x851   :  { %5661 = vmatprep.subr.bf16.mxu1 %v11767_v58  ;;  %v2793_v22 = vld [vmem:[#allocation3 + $0xfa8] sm:$0xff]  ;;  %v11735_v58 = vcombine.high %v2661_v8, %v2665_v13 }
 0x852   :  { %5621 = vmatpush1.bf16.msra.mxu0 %v11638_v28  ;;  %v11863_v3 = vcombine.high %v2789_v17, %v2793_v22  ;;  %v2653_v6 = vld [vmem:[#allocation3 + $0xb48] sm:$0xff] }
 0x853   :  { %5622 = vmatprep.subr.bf16.mxu0 %v11631_v29  ;;  %v2657_v23 = vld [vmem:[#allocation3 + $0xb68] sm:$0xff]  ;;  %v11862_v29 = vcombine.low %v2789_v17, %v2793_v22 }
 0x854   :  { %5662 = vmatpush1.bf16.msra.mxu1 %v11766_v30  ;;  %v2781_v27 = vld [vmem:[#allocation3 + $0xf48] sm:$0xff]  ;;  %v11734_v30 = vcombine.low %v2661_v8, %v2665_v13 }
 0x855   :  { %5663 = vmatprep.subr.bf16.mxu1 %v11759_v31  ;;  %v2785_v28 = vld [vmem:[#allocation3 + $0xf68] sm:$0xff]  ;;  %v11727_v31 = vcombine.high %v2653_v6, %v2657_v23 }
 0x856   :  { %5623 = vmatpush1.bf16.msra.mxu0 %v11630_v49  ;;  %v11855_v39 = vcombine.high %v2781_v27, %v2785_v28  ;;  %v2645_v40 = vld [vmem:[#allocation3 + $0xb08] sm:$0xff] }
 0x857   :  { %5624 = vmatprep.subr.bf16.mxu0 %v11623_v50  ;;  %v2649_v46 = vld [vmem:[#allocation3 + $0xb28] sm:$0xff]  ;;  %v11854_v50 = vcombine.low %v2781_v27, %v2785_v28 }
 0x858   :  { %5664 = vmatpush1.bf16.msra.mxu1 %v11758_v48  ;;  %v2773_v47 = vld [vmem:[#allocation3 + $0xf08] sm:$0xff]  ;;  %v11726_v48 = vcombine.low %v2653_v6, %v2657_v23 }
 0x859   :  { %5665 = vmatprep.subr.bf16.mxu1 %v11751_v54  ;;  %v2777_v49 = vld [vmem:[#allocation3 + $0xf28] sm:$0xff]  ;;  %v11719_v54 = vcombine.high %v2645_v40, %v2649_v46 }
 0x85a   :  { %5625 = vmatpush1.bf16.msra.mxu0 %v11622_v59  ;;  %v11847_v1 = vcombine.high %v2773_v47, %v2777_v49  ;;  %v2637_v44 = vld [vmem:[#allocation3 + $0xac8] sm:$0xff] }
 0x85b   :  { %5626 = vmatprep.subr.bf16.mxu0 %v11743_v9  ;;  %v2641_v45 = vld [vmem:[#allocation3 + $0xae8] sm:$0xff]  ;;  %v11846_v9 = vcombine.low %v2773_v47, %v2777_v49 }
 0x85c   :  { %5666 = vmatpush1.bf16.msra.mxu1 %v11750_v2  ;;  %v2765_v55 = vld [vmem:[#allocation3 + $0xec8] sm:$0xff]  ;;  %v11718_v2 = vcombine.low %v2645_v40, %v2649_v46 }
 0x85d   :  { %5667 = vmatprep.subr.bf16.mxu1 %v11871_v10  ;;  %v2769_v59 = vld [vmem:[#allocation3 + $0xee8] sm:$0xff]  ;;  %v11711_v10 = vcombine.high %v2637_v44, %v2641_v45 }
 0x85e   :  { %5627 = vmatpush2.bf16.msra.mxu0 %v11742_v26  ;;  %v11839_v8 = vcombine.high %v2765_v55, %v2769_v59  ;;  %v2629_v13 = vld [vmem:[#allocation3 + $0xa88] sm:$0xff] }
 0x85f   :  { %5628 = vmatprep.subr.bf16.mxu0 %v11735_v58  ;;  %v2633_v17 = vld [vmem:[#allocation3 + $0xaa8] sm:$0xff]  ;;  %v11838_v58 = vcombine.low %v2765_v55, %v2769_v59  ;;  %v2354_v55 = vld [vmem:[#allocation3 + $0x1f0] sm:$0xff] }
 0x860   :  { %5668 = vmatpush2.bf16.msra.mxu1 %v11870_v57  ;;  %v2757_v22 = vld [vmem:[#allocation3 + $0xe88] sm:$0xff]  ;;  %v11710_v57 = vcombine.low %v2637_v44, %v2641_v45  ;;  %v2350_v45 = vld [vmem:[#allocation3 + $0x1d0] sm:$0xff] }
 0x861   :  { %5669 = vmatprep.subr.bf16.mxu1 %v11863_v3  ;;  %v2761_v26 = vld [vmem:[#allocation3 + $0xea8] sm:$0xff]  ;;  %v11703_v3 = vcombine.high %v2629_v13, %v2633_v17  ;;  %v2478_v59 = vld [vmem:[#allocation3 + $0x5d0] sm:$0xff] }
 0x862   :  { %5629 = vmatpush2.bf16.msra.mxu0 %v11734_v30  ;;  %v11831_v6 = vcombine.high %v2757_v22, %v2761_v26  ;;  %v2621_v23 = vld [vmem:[#allocation3 + $0xa48] sm:$0xff] }
 0x863   :  { %5630 = vmatprep.subr.bf16.mxu0 %v11727_v31  ;;  %v2625_v27 = vld [vmem:[#allocation3 + $0xa68] sm:$0xff]  ;;  %v11830_v31 = vcombine.low %v2757_v22, %v2761_v26  ;;  %v2346_v22 = vld [vmem:[#allocation3 + $0x1b0] sm:$0xff] }
 0x864   :  { %5670 = vmatpush2.bf16.msra.mxu1 %v11862_v29  ;;  %v2749_v28 = vld [vmem:[#allocation3 + $0xe48] sm:$0xff]  ;;  %v11702_v29 = vcombine.low %v2629_v13, %v2633_v17  ;;  %v2342_v17 = vld [vmem:[#allocation3 + $0x190] sm:$0xff] }
 0x865   :  { %5671 = vmatprep.subr.bf16.mxu1 %v11855_v39  ;;  %v2753_v30 = vld [vmem:[#allocation3 + $0xe68] sm:$0xff]  ;;  %v11695_v39 = vcombine.high %v2621_v23, %v2625_v27  ;;  %v2470_v26 = vld [vmem:[#allocation3 + $0x590] sm:$0xff] }
 0x866   :  { %5631 = vmatpush2.bf16.msra.mxu0 %v11726_v48  ;;  %v11823_v40 = vcombine.high %v2749_v28, %v2753_v30  ;;  %v2613_v46 = vld [vmem:[#allocation3 + $0xa08] sm:$0xff] }
 0x867   :  { %5632 = vmatprep.subr.bf16.mxu0 %v11719_v54  ;;  %v2617_v47 = vld [vmem:[#allocation3 + $0xa28] sm:$0xff]  ;;  %v11822_v54 = vcombine.low %v2749_v28, %v2753_v30  ;;  %v2338_v28 = vld [vmem:[#allocation3 + $0x170] sm:$0xff] }
 0x868   :  { %5672 = vmatpush2.bf16.msra.mxu1 %v11854_v50  ;;  %v2741_v49 = vld [vmem:[#allocation3 + $0xe08] sm:$0xff]  ;;  %v11694_v50 = vcombine.low %v2621_v23, %v2625_v27  ;;  %v2334_v27 = vld [vmem:[#allocation3 + $0x150] sm:$0xff] }
 0x869   :  { %5673 = vmatprep.subr.bf16.mxu1 %v11847_v1  ;;  %v2745_v48 = vld [vmem:[#allocation3 + $0xe28] sm:$0xff]  ;;  %v11687_v1 = vcombine.high %v2613_v46, %v2617_v47 }
 0x86a   :  { %5633 = vmatpush2.bf16.msra.mxu0 %v11718_v2  ;;  %v11815_v44 = vcombine.high %v2741_v49, %v2745_v48  ;;  %v2482_v2 = vld [vmem:[#allocation3 + $0x5f0] sm:$0xff] }
 0x86b   :  { %5634 = vmatprep.subr.bf16.mxu0 %v11711_v10  ;;  %v11814_v10 = vcombine.low %v2741_v49, %v2745_v48  ;;  %v11553_v13 = vcombine.high %v2478_v59, %v2482_v2  ;;  %v11409_v48 = vcombine.high %v2334_v27, %v2338_v28 }
 0x86c   :  { %5674 = vmatpush2.bf16.msra.mxu1 %v11846_v9  ;;  %v11686_v9 = vcombine.low %v2613_v46, %v2617_v47 }
 0x86d   :  { %5675 = vmatprep.subr.bf16.mxu1 %v11839_v8  ;;  %v11425_v8 = vcombine.high %v2350_v45, %v2354_v55 }
 0x86e   :  { %5635 = vmatpush2.bf16.msra.mxu0 %v11710_v57  ;;  %v2474_v57 = vld [vmem:[#allocation3 + $0x5b0] sm:$0xff] }
 0x86f   :  { %5636 = vmatprep.subr.bf16.mxu0 %v11703_v3  ;;  %v11552_v3 = vcombine.low %v2478_v59, %v2482_v2  ;;  %v11545_v23 = vcombine.high %v2470_v26, %v2474_v57  ;;  %v11544_v49 = vcombine.low %v2470_v26, %v2474_v57  ;;  %v2454_v59 = vld [vmem:[#allocation3 + $0x510] sm:$0xff] }
 0x870   :  { %5676 = vmatpush2.bf16.msra.mxu1 %v11838_v58  ;;  %v11424_v58 = vcombine.low %v2350_v45, %v2354_v55  ;;  %v2458_v2 = vld [vmem:[#allocation3 + $0x530] sm:$0xff] }
 0x871   :  { %5677 = vmatprep.subr.bf16.mxu1 %v11831_v6  ;;  %v11417_v6 = vcombine.high %v2342_v17, %v2346_v22  ;;  %v11529_v26 = vcombine.high %v2454_v59, %v2458_v2  ;;  %v2318_v57 = vld [vmem:[#allocation3 + $0xd0] sm:$0xff] }
 0x872   :  { %5637 = vmatpush2.bf16.msra.mxu0 %v11702_v29  ;;  %v2462_v29 = vld [vmem:[#allocation3 + $0x550] sm:$0xff] }
 0x873   :  { %5638 = vmatprep.subr.bf16.mxu0 %v11695_v39 }
 0x874   :  { %5678 = vmatpush2.bf16.msra.mxu1 %v11830_v31  ;;  %v2466_v31 = vld [vmem:[#allocation3 + $0x570] sm:$0xff] }
 0x875   :  { %5679 = vmatprep.subr.bf16.mxu1 %v11823_v40  ;;  %v11416_v40 = vcombine.low %v2342_v17, %v2346_v22 }
 0x876   :  { %5639 = vmatpush2.bf16.msra.mxu0 %v11694_v50 }
 0x877   :  { %5640 = vmatprep.subr.bf16.mxu0 %v11687_v1  ;;  %v2326_v1 = vld [vmem:[#allocation3 + $0x110] sm:$0xff] }
 0x878   :  { %5680 = vmatpush2.bf16.msra.mxu1 %v11822_v54  ;;  %v11537_v54 = vcombine.high %v2462_v29, %v2466_v31 }
 0x879   :  { %5681 = vmatprep.subr.bf16.mxu1 %v11815_v44  ;;  %v2330_v44 = vld [vmem:[#allocation3 + $0x130] sm:$0xff] }
 0x87a   :  { %5641 = vmatpush2.bf16.msra.mxu0 %v11686_v9  ;;  %v11401_v17 = vcombine.high %v2326_v1, %v2330_v44 }
 0x87b   :  { %5692 = vmatprep.subr.bf16.mxu0 %v11425_v8 }
 0x87c   :  { %5682 = vmatpush2.bf16.msra.mxu1 %v11814_v10  ;;  %v11408_v10 = vcombine.low %v2334_v27, %v2338_v28  ;;  %v2310_v28 = vld [vmem:[#allocation3 + $0x90] sm:$0xff] }
 0x87d   :  { %5733 = vmatprep.subr.bf16.mxu1 %v11553_v13  ;;  %v5398_v30 = vpop.f32.mrf.mxu0  ;;  %5643 = vmatmul.mubr.bf16.vlgmr.msra.gmra.mxu0 %v13807_v7  ;;  %v11536_v13 = vcombine.low %v2462_v29, %v2466_v31  ;;  %v2442_v29 = vld [vmem:[#allocation3 + $0x4b0] sm:$0xff] }
 0x87e   :  { %5693 = vmatpush1.bf16.msra.mxu0 %v11424_v58  ;;  %5724 = vmatprep.mubr.bf16.mxu0 %v13774_v14  ;;  %v2322_v58 = vld [vmem:[#allocation3 + $0xf0] sm:$0xff] }
 0x87f   :  { %v5439_v39 = vpop.f32.mrf.mxu1  ;;  %5684 = vmatmul.mubr.bf16.vlgmr.msra.gmra.mxu1 %v13812_v16  ;;  %v5400_v47 = vpop.f32.mrf.mxu0  ;;  %5694 = vmatprep.subr.bf16.mxu0 %v11417_v6  ;;  %v2450_v6 = vld [vmem:[#allocation3 + $0x4f0] sm:$0xff]  ;;  %v11392_v31 = vcombine.low %v2318_v57, %v2322_v58 }
 0x880   :  { %v13824_v46 = vadd.f32 %v5439_v39, %v5398_v30  ;;  %5734 = vmatpush1.bf16.msra.mxu1 %v11552_v3  ;;  %5765 = vmatprep.mubr.bf16.mxu1 %v13776_v15  ;;  %v2446_v3 = vld [vmem:[#allocation3 + $0x4d0] sm:$0xff]  ;;  %v11528_v30 = vcombine.low %v2454_v59, %v2458_v2  ;;  %v11393_v39 = vcombine.high %v2318_v57, %v2322_v58 }
 0x881   :  { %v5441_v50 = vpop.f32.mrf.mxu1  ;;  %5735 = vmatprep.subr.bf16.mxu1 %v11545_v23  ;;  %v5402_v55 = vpop.f32.mrf.mxu0  ;;  %v11400_v23 = vcombine.low %v2326_v1, %v2330_v44  ;;  %v11521_v27 = vcombine.high %v2446_v3, %v2450_v6  ;;  %v2306_v1 = vld [vmem:[#allocation3 + $0x70] sm:$0xff] }
 0x882   :  { %v13827_v45 = vadd.f32 %v5441_v50, %v5400_v47  ;;  %5695 = vmatpush1.bf16.msra.mxu0 %v11416_v40  ;;  %v2314_v40 = vld [vmem:[#allocation3 + $0xb0] sm:$0xff] }
 0x883   :  { %v5443_v9 = vpop.f32.mrf.mxu1  ;;  %v5403_v8 = vpop.f32.mrf.mxu0  ;;  %5696 = vmatprep.subr.bf16.mxu0 %v11409_v48  ;;  %v2438_v47 = vld [vmem:[#allocation3 + $0x490] sm:$0xff]  ;;  %v11385_v48 = vcombine.high %v2310_v28, %v2314_v40  ;;  %v11384_v59 = vcombine.low %v2310_v28, %v2314_v40 }
 0x884   :  { %5736 = vmatpush1.bf16.msra.mxu1 %v11544_v49  ;;  %v11520_v49 = vcombine.low %v2446_v3, %v2450_v6  ;;  %v11513_v50 = vcombine.high %v2438_v47, %v2442_v29  ;;  %v2430_v44 = vld [vmem:[#allocation3 + $0x450] sm:$0xff]  ;;  %v11512_v2 = vcombine.low %v2438_v47, %v2442_v29 }
 0x885   :  { %v5444_v22 = vpop.f32.mrf.mxu1  ;;  %5737 = vmatprep.subr.bf16.mxu1 %v11537_v54  ;;  %v2302_v54 = vld [vmem:[#allocation3 + $0x50] sm:$0xff] }
 0x886   :  { %5697 = vmatpush1.bf16.msra.mxu0 %v11408_v10  ;;  %v2434_v55 = vld [vmem:[#allocation3 + $0x470] sm:$0xff]  ;;  %v11377_v9 = vcombine.high %v2302_v54, %v2306_v1 }
 0x887   :  { %5698 = vmatprep.subr.bf16.mxu0 %v11401_v17  ;;  %v11505_v10 = vcombine.high %v2430_v44, %v2434_v55  ;;  %v2294_v8 = vld [vmem:[#allocation3 + $0x10] sm:$0xff]  ;;  %v11504_v57 = vcombine.low %v2430_v44, %v2434_v55 }
 0x888   :  { %5738 = vmatpush1.bf16.msra.mxu1 %v11536_v13  ;;  %v2298_v13 = vld [vmem:[#allocation3 + $0x30] sm:$0xff] }
 0x889   :  { %5739 = vmatprep.subr.bf16.mxu1 %v11529_v26  ;;  %v2422_v17 = vld [vmem:[#allocation3 + $0x410] sm:$0xff]  ;;  %v11376_v26 = vcombine.low %v2302_v54, %v2306_v1  ;;  %v11369_v58 = vcombine.high %v2294_v8, %v2298_v13 }
 0x88a   :  { %5699 = vmatpush1.bf16.msra.mxu0 %v11400_v23  ;;  %v2426_v22 = vld [vmem:[#allocation3 + $0x430] sm:$0xff] }
 0x88b   :  { %5700 = vmatprep.subr.bf16.mxu0 %v11393_v39  ;;  %v11497_v3 = vcombine.high %v2422_v17, %v2426_v22  ;;  %v2414_v6 = vld [vmem:[#allocation3 + $0x3d0] sm:$0xff]  ;;  %v11496_v28 = vcombine.low %v2422_v17, %v2426_v22 }
 0x88c   :  { %5740 = vmatpush1.bf16.msra.mxu1 %v11528_v30  ;;  %v2418_v23 = vld [vmem:[#allocation3 + $0x3f0] sm:$0xff] }
 0x88d   :  { %5741 = vmatprep.subr.bf16.mxu1 %v11521_v27  ;;  %v2542_v30 = vld [vmem:[#allocation3 + $0x7d0] sm:$0xff]  ;;  %v11368_v27 = vcombine.low %v2294_v8, %v2298_v13  ;;  %v11489_v40 = vcombine.high %v2414_v6, %v2418_v23 }
 0x88e   :  { %5701 = vmatpush1.bf16.msra.mxu0 %v11392_v31  ;;  %v2546_v39 = vld [vmem:[#allocation3 + $0x7f0] sm:$0xff] }
 0x88f   :  { %5702 = vmatprep.subr.bf16.mxu0 %v11385_v48  ;;  %v11617_v47 = vcombine.high %v2542_v30, %v2546_v39  ;;  %v2406_v29 = vld [vmem:[#allocation3 + $0x390] sm:$0xff]  ;;  %v11616_v54 = vcombine.low %v2542_v30, %v2546_v39 }
 0x890   :  { %5742 = vmatpush1.bf16.msra.mxu1 %v11520_v49  ;;  %v2410_v31 = vld [vmem:[#allocation3 + $0x3b0] sm:$0xff] }
 0x891   :  { %5743 = vmatprep.subr.bf16.mxu1 %v11513_v50  ;;  %v2534_v49 = vld [vmem:[#allocation3 + $0x790] sm:$0xff]  ;;  %v11488_v50 = vcombine.low %v2414_v6, %v2418_v23  ;;  %v11481_v1 = vcombine.high %v2406_v29, %v2410_v31 }
 0x892   :  { %5703 = vmatpush1.bf16.msra.mxu0 %v11384_v59  ;;  %v2538_v48 = vld [vmem:[#allocation3 + $0x7b0] sm:$0xff] }
 0x893   :  { %5704 = vmatprep.subr.bf16.mxu0 %v11377_v9  ;;  %v11609_v44 = vcombine.high %v2534_v49, %v2538_v48  ;;  %v2398_v55 = vld [vmem:[#allocation3 + $0x350] sm:$0xff]  ;;  %v11608_v8 = vcombine.low %v2534_v49, %v2538_v48 }
 0x894   :  { %5744 = vmatpush1.bf16.msra.mxu1 %v11512_v2  ;;  %v2402_v59 = vld [vmem:[#allocation3 + $0x370] sm:$0xff] }
 0x895   :  { %5745 = vmatprep.subr.bf16.mxu1 %v11505_v10  ;;  %v2526_v2 = vld [vmem:[#allocation3 + $0x750] sm:$0xff]  ;;  %v11480_v10 = vcombine.low %v2406_v29, %v2410_v31  ;;  %v11473_v13 = vcombine.high %v2398_v55, %v2402_v59 }
 0x896   :  { %5705 = vmatpush1.bf16.msra.mxu0 %v11376_v26  ;;  %v2530_v9 = vld [vmem:[#allocation3 + $0x770] sm:$0xff] }
 0x897   :  { %5706 = vmatprep.subr.bf16.mxu0 %v11369_v58  ;;  %v11601_v17 = vcombine.high %v2526_v2, %v2530_v9  ;;  %v2390_v22 = vld [vmem:[#allocation3 + $0x310] sm:$0xff]  ;;  %v11600_v6 = vcombine.low %v2526_v2, %v2530_v9 }
 0x898   :  { %5746 = vmatpush1.bf16.msra.mxu1 %v11504_v57  ;;  %v2394_v26 = vld [vmem:[#allocation3 + $0x330] sm:$0xff] }
 0x899   :  { %5747 = vmatprep.subr.bf16.mxu1 %v11497_v3  ;;  %v2518_v57 = vld [vmem:[#allocation3 + $0x710] sm:$0xff]  ;;  %v11472_v3 = vcombine.low %v2398_v55, %v2402_v59  ;;  %v11465_v23 = vcombine.high %v2390_v22, %v2394_v26 }
 0x89a   :  { %5707 = vmatpush1.bf16.msra.mxu0 %v11368_v27  ;;  %v2522_v58 = vld [vmem:[#allocation3 + $0x730] sm:$0xff] }
 0x89b   :  { %5708 = vmatprep.subr.bf16.mxu0 %v11489_v40  ;;  %v11593_v30 = vcombine.high %v2518_v57, %v2522_v58  ;;  %v2382_v39 = vld [vmem:[#allocation3 + $0x2d0] sm:$0xff]  ;;  %v11592_v29 = vcombine.low %v2518_v57, %v2522_v58 }
 0x89c   :  { %5748 = vmatpush1.bf16.msra.mxu1 %v11496_v28  ;;  %v2386_v27 = vld [vmem:[#allocation3 + $0x2f0] sm:$0xff] }
 0x89d   :  { %5749 = vmatprep.subr.bf16.mxu1 %v11617_v47  ;;  %v2510_v28 = vld [vmem:[#allocation3 + $0x6d0] sm:$0xff]  ;;  %v11464_v47 = vcombine.low %v2390_v22, %v2394_v26  ;;  %v11457_v31 = vcombine.high %v2382_v39, %v2386_v27 }
 0x89e   :  { %5709 = vmatpush2.bf16.msra.mxu0 %v11488_v50  ;;  %v2514_v40 = vld [vmem:[#allocation3 + $0x6f0] sm:$0xff] }
 0x89f   :  { %5710 = vmatprep.subr.bf16.mxu0 %v11481_v1  ;;  %v11585_v49 = vcombine.high %v2510_v28, %v2514_v40  ;;  %v2374_v48 = vld [vmem:[#allocation3 + $0x290] sm:$0xff]  ;;  %v11584_v55 = vcombine.low %v2510_v28, %v2514_v40 }
 0x8a0   :  { %5750 = vmatpush2.bf16.msra.mxu1 %v11616_v54  ;;  %v2378_v50 = vld [vmem:[#allocation3 + $0x2b0] sm:$0xff] }
 0x8a1   :  { %5751 = vmatprep.subr.bf16.mxu1 %v11609_v44  ;;  %v2502_v54 = vld [vmem:[#allocation3 + $0x690] sm:$0xff]  ;;  %v11456_v44 = vcombine.low %v2382_v39, %v2386_v27  ;;  %v11449_v59 = vcombine.high %v2374_v48, %v2378_v50 }
 0x8a2   :  { %5711 = vmatpush2.bf16.msra.mxu0 %v11480_v10  ;;  %v2506_v1 = vld [vmem:[#allocation3 + $0x6b0] sm:$0xff] }
 0x8a3   :  { %5712 = vmatprep.subr.bf16.mxu0 %v11473_v13  ;;  %v11577_v2 = vcombine.high %v2502_v54, %v2506_v1  ;;  %v2366_v9 = vld [vmem:[#allocation3 + $0x250] sm:$0xff]  ;;  %v11576_v22 = vcombine.low %v2502_v54, %v2506_v1 }
 0x8a4   :  { %5752 = vmatpush2.bf16.msra.mxu1 %v11608_v8  ;;  %v2370_v10 = vld [vmem:[#allocation3 + $0x270] sm:$0xff] }
 0x8a5   :  { %5753 = vmatprep.subr.bf16.mxu1 %v11601_v17  ;;  %v2494_v8 = vld [vmem:[#allocation3 + $0x650] sm:$0xff]  ;;  %v11448_v17 = vcombine.low %v2374_v48, %v2378_v50  ;;  %v11441_v26 = vcombine.high %v2366_v9, %v2370_v10 }
 0x8a6   :  { %5713 = vmatpush2.bf16.msra.mxu0 %v11472_v3  ;;  %v2498_v13 = vld [vmem:[#allocation3 + $0x670] sm:$0xff] }
 0x8a7   :  { %5714 = vmatprep.subr.bf16.mxu0 %v11465_v23  ;;  %v11569_v57 = vcombine.high %v2494_v8, %v2498_v13  ;;  %v2358_v58 = vld [vmem:[#allocation3 + $0x210] sm:$0xff]  ;;  %v11568_v39 = vcombine.low %v2494_v8, %v2498_v13 }
 0x8a8   :  { %5754 = vmatpush2.bf16.msra.mxu1 %v11600_v6  ;;  %v2362_v3 = vld [vmem:[#allocation3 + $0x230] sm:$0xff] }
 0x8a9   :  { %5755 = vmatprep.subr.bf16.mxu1 %v11593_v30  ;;  %v2486_v6 = vld [vmem:[#allocation3 + $0x610] sm:$0xff]  ;;  %v11440_v30 = vcombine.low %v2366_v9, %v2370_v10  ;;  %v11433_v27 = vcombine.high %v2358_v58, %v2362_v3 }
 0x8aa   :  { %5715 = vmatpush2.bf16.msra.mxu0 %v11464_v47  ;;  %v2490_v23 = vld [vmem:[#allocation3 + $0x630] sm:$0xff] }
 0x8ab   :  { %5716 = vmatprep.subr.bf16.mxu0 %v11457_v31  ;;  %v11561_v28 = vcombine.high %v2486_v6, %v2490_v23  ;;  %v2606_v40 = vld [vmem:[#allocation3 + $0x9d0] sm:$0xff]  ;;  %v11560_v48 = vcombine.low %v2486_v6, %v2490_v23 }
 0x8ac   :  { %5756 = vmatpush2.bf16.msra.mxu1 %v11592_v29  ;;  %v2610_v47 = vld [vmem:[#allocation3 + $0x9f0] sm:$0xff] }
 0x8ad   :  { %5757 = vmatprep.subr.bf16.mxu1 %v11585_v49  ;;  %v2734_v29 = vld [vmem:[#allocation3 + $0xdd0] sm:$0xff]  ;;  %v11432_v49 = vcombine.low %v2358_v58, %v2362_v3  ;;  %v11681_v50 = vcombine.high %v2606_v40, %v2610_v47 }
 0x8ae   :  { %5717 = vmatpush2.bf16.msra.mxu0 %v11456_v44  ;;  %v2738_v31 = vld [vmem:[#allocation3 + $0xdf0] sm:$0xff] }
 0x8af   :  { %5718 = vmatprep.subr.bf16.mxu0 %v11449_v59  ;;  %v11809_v54 = vcombine.high %v2734_v29, %v2738_v31  ;;  %v2598_v1 = vld [vmem:[#allocation3 + $0x990] sm:$0xff]  ;;  %v11808_v9 = vcombine.low %v2734_v29, %v2738_v31 }
 0x8b0   :  { %5758 = vmatpush2.bf16.msra.mxu1 %v11584_v55  ;;  %v2602_v44 = vld [vmem:[#allocation3 + $0x9b0] sm:$0xff] }
 0x8b1   :  { %5759 = vmatprep.subr.bf16.mxu1 %v11577_v2  ;;  %v2726_v55 = vld [vmem:[#allocation3 + $0xd90] sm:$0xff]  ;;  %v11680_v2 = vcombine.low %v2606_v40, %v2610_v47  ;;  %v11673_v10 = vcombine.high %v2598_v1, %v2602_v44  ;;  %v11672_v6 = vcombine.low %v2598_v1, %v2602_v44 }
 0x8b2   :  { %5719 = vmatpush2.bf16.msra.mxu0 %v11448_v17  ;;  %v2730_v59 = vld [vmem:[#allocation3 + $0xdb0] sm:$0xff] }
 0x8b3   :  { %5720 = vmatprep.subr.bf16.mxu0 %v11441_v26  ;;  %v11801_v8 = vcombine.high %v2726_v55, %v2730_v59  ;;  %v2590_v13 = vld [vmem:[#allocation3 + $0x950] sm:$0xff] }
 0x8b4   :  { %5760 = vmatpush2.bf16.msra.mxu1 %v11576_v22  ;;  %v2594_v17 = vld [vmem:[#allocation3 + $0x970] sm:$0xff] }
 0x8b5   :  { %5761 = vmatprep.subr.bf16.mxu1 %v11569_v57  ;;  %v2718_v26 = vld [vmem:[#allocation3 + $0xd50] sm:$0xff]  ;;  %v11664_v1 = vcombine.low %v2590_v13, %v2594_v17 }
 0x8b6   :  { %5721 = vmatpush2.bf16.msra.mxu0 %v11440_v30  ;;  %v2722_v57 = vld [vmem:[#allocation3 + $0xd70] sm:$0xff]  ;;  %v11800_v30 = vcombine.low %v2726_v55, %v2730_v59 }
 0x8b7   :  { %5722 = vmatprep.subr.bf16.mxu0 %v11433_v27  ;;  %v11793_v47 = vcombine.high %v2718_v26, %v2722_v57  ;;  %v2582_v29 = vld [vmem:[#allocation3 + $0x910] sm:$0xff] }
 0x8b8   :  { %5762 = vmatpush2.bf16.msra.mxu1 %v11568_v39  ;;  %v11665_v39 = vcombine.high %v2590_v13, %v2594_v17  ;;  %v2586_v31 = vld [vmem:[#allocation3 + $0x930] sm:$0xff] }
 0x8b9   :  { %5763 = vmatprep.subr.bf16.mxu1 %v11561_v28  ;;  %v11657_v55 = vcombine.high %v2582_v29, %v2586_v31  ;;  %v2566_v17 = vld [vmem:[#allocation3 + $0x890] sm:$0xff] }
 0x8ba   :  { %5723 = vmatpush2.bf16.msra.mxu0 %v11432_v49  ;;  %v2710_v49 = vld [vmem:[#allocation3 + $0xd10] sm:$0xff] }
 0x8bb   :  { %5774 = vmatprep.subr.bf16.mxu0 %v11681_v50 }
 0x8bc   :  { %5764 = vmatpush2.bf16.msra.mxu1 %v11560_v48  ;;  %v2714_v48 = vld [vmem:[#allocation3 + $0xd30] sm:$0xff] }
 0x8bd   :  { %5815 = vmatprep.subr.bf16.mxu1 %v11809_v54  ;;  %v5480_v22 = vpop.f32.mrf.mxu0  ;;  %5725 = vmatmul.mubr.bf16.vlgmr.msra.gmra.mxu0 %v13783_v38 }
 0x8be   :  { %v5481_v58 = vadd.f32 %v5480_v22, %v13824_v46  ;;  %5775 = vmatpush1.bf16.msra.mxu0 %v11680_v2  ;;  %5806 = vmatprep.mubr.bf16.mxu0 %v13793_v56  ;;  %v11785_v2 = vcombine.high %v2710_v49, %v2714_v48  ;;  %v2706_v22 = vld [vmem:[#allocation3 + $0xcf0] sm:$0xff] }
 0x8bf   :  { %v5521_v3 = vpop.f32.mrf.mxu1  ;;  %5766 = vmatmul.mubr.bf16.vlgmr.msra.gmra.mxu1 %v13788_v43  ;;  %v5482_v23 = vpop.f32.mrf.mxu0  ;;  %5776 = vmatprep.subr.bf16.mxu0 %v11673_v10  ;;  %v2578_v10 = vld [vmem:[#allocation3 + $0x8f0] sm:$0xff] }
 0x8c0   :  { %5816 = vmatpush1.bf16.msra.mxu1 %v11808_v9  ;;  %v13833_v27 = vadd.f32 %v5521_v3, %v5481_v58  ;;  %v5483_v28 = vadd.f32 %v5482_v23, %v13827_v45  ;;  %5847 = vmatprep.mubr.bf16.mxu1 %v13799_v37  ;;  %v11792_v45 = vcombine.low %v2718_v26, %v2722_v57  ;;  %v2574_v9 = vld [vmem:[#allocation3 + $0x8d0] sm:$0xff] }
 0x8c1   :  { %v5523_v40 = vpop.f32.mrf.mxu1  ;;  %5817 = vmatprep.subr.bf16.mxu1 %v11801_v8  ;;  %v5484_v46 = vpop.f32.mrf.mxu0  ;;  %v2702_v8 = vld [vmem:[#allocation3 + $0xcd0] sm:$0xff]  ;;  %v11656_v58 = vcombine.low %v2582_v29, %v2586_v31  ;;  %v11784_v3 = vcombine.low %v2710_v49, %v2714_v48  ;;  %v11649_v23 = vcombine.high %v2574_v9, %v2578_v10  ;;  %v11648_v57 = vcombine.low %v2574_v9, %v2578_v10 }
 0x8c2   :  { %v13838_v50 = vadd.f32 %v5523_v40, %v5483_v28  ;;  %5777 = vmatpush1.bf16.msra.mxu0 %v11672_v6  ;;  %v11777_v13 = vcombine.high %v2702_v8, %v2706_v22  ;;  %v2570_v6 = vld [vmem:[#allocation3 + $0x8b0] sm:$0xff] }
 0x8c3   :  { %v5525_v54 = vpop.f32.mrf.mxu1  ;;  %v5485_v44 = vpop.f32.mrf.mxu0  ;;  %5778 = vmatprep.subr.bf16.mxu0 %v11665_v39  ;;  %v2698_v26 = vld [vmem:[#allocation3 + $0xcb0] sm:$0xff]  ;;  %v11776_v39 = vcombine.low %v2702_v8, %v2706_v22  ;;  %v11641_v28 = vcombine.high %v2566_v17, %v2570_v6  ;;  %v11640_v49 = vcombine.low %v2566_v17, %v2570_v6 }
 0x8c4   :  { %5818 = vmatpush1.bf16.msra.mxu1 %v11800_v30  ;;  %v2694_v30 = vld [vmem:[#allocation3 + $0xc90] sm:$0xff] }
 0x8c5   :  { %v5526_v59 = vpop.f32.mrf.mxu1  ;;  %5819 = vmatprep.subr.bf16.mxu1 %v11793_v47  ;;  %v11769_v40 = vcombine.high %v2694_v30, %v2698_v26  ;;  %v2558_v47 = vld [vmem:[#allocation3 + $0x850] sm:$0xff]  ;;  %v11768_v48 = vcombine.low %v2694_v30, %v2698_v26 }
 0x8c6   :  { %5779 = vmatpush1.bf16.msra.mxu0 %v11664_v1  ;;  %v2562_v29 = vld [vmem:[#allocation3 + $0x870] sm:$0xff] }
 0x8c7   :  { %5780 = vmatprep.subr.bf16.mxu0 %v11657_v55  ;;  %v2686_v31 = vld [vmem:[#allocation3 + $0xc50] sm:$0xff]  ;;  %v11633_v54 = vcombine.high %v2558_v47, %v2562_v29 }
 0x8c8   :  { %5820 = vmatpush1.bf16.msra.mxu1 %v11792_v45  ;;  %v2690_v46 = vld [vmem:[#allocation3 + $0xc70] sm:$0xff] }
 0x8c9   :  { %5821 = vmatprep.subr.bf16.mxu1 %v11785_v2  ;;  %v11761_v1 = vcombine.high %v2686_v31, %v2690_v46  ;;  %v2550_v44 = vld [vmem:[#allocation3 + $0x810] sm:$0xff]  ;;  %v11632_v2 = vcombine.low %v2558_v47, %v2562_v29  ;;  %v11760_v9 = vcombine.low %v2686_v31, %v2690_v46 }
 0x8ca   :  { %5781 = vmatpush1.bf16.msra.mxu0 %v11656_v58  ;;  %v2554_v45 = vld [vmem:[#allocation3 + $0x830] sm:$0xff] }
 0x8cb   :  { %5782 = vmatprep.subr.bf16.mxu0 %v11649_v23  ;;  %v2678_v55 = vld [vmem:[#allocation3 + $0xc10] sm:$0xff]  ;;  %v11625_v10 = vcombine.high %v2550_v44, %v2554_v45 }
 0x8cc   :  { %5822 = vmatpush1.bf16.msra.mxu1 %v11784_v3  ;;  %v2682_v59 = vld [vmem:[#allocation3 + $0xc30] sm:$0xff] }
 0x8cd   :  { %5823 = vmatprep.subr.bf16.mxu1 %v11777_v13  ;;  %v11753_v8 = vcombine.high %v2678_v55, %v2682_v59  ;;  %v2670_v22 = vld [vmem:[#allocation3 + $0xbd0] sm:$0xff]  ;;  %v11624_v13 = vcombine.low %v2550_v44, %v2554_v45  ;;  %v11752_v17 = vcombine.low %v2678_v55, %v2682_v59 }
 0x8ce   :  { %5783 = vmatpush1.bf16.msra.mxu0 %v11648_v57  ;;  %v2674_v58 = vld [vmem:[#allocation3 + $0xbf0] sm:$0xff] }
 0x8cf   :  { %5784 = vmatprep.subr.bf16.mxu0 %v11641_v28  ;;  %v2798_v3 = vld [vmem:[#allocation3 + $0xfd0] sm:$0xff]  ;;  %v11745_v6 = vcombine.high %v2670_v22, %v2674_v58 }
 0x8d0   :  { %5824 = vmatpush1.bf16.msra.mxu1 %v11776_v39  ;;  %v2802_v23 = vld [vmem:[#allocation3 + $0xff0] sm:$0xff] }
 0x8d1   :  { %5825 = vmatprep.subr.bf16.mxu1 %v11769_v40  ;;  %v11873_v30 = vcombine.high %v2798_v3, %v2802_v23  ;;  %v2662_v26 = vld [vmem:[#allocation3 + $0xb90] sm:$0xff]  ;;  %v11744_v40 = vcombine.low %v2670_v22, %v2674_v58  ;;  %v11872_v47 = vcombine.low %v2798_v3, %v2802_v23 }
 0x8d2   :  { %5785 = vmatpush1.bf16.msra.mxu0 %v11640_v49  ;;  %v2666_v57 = vld [vmem:[#allocation3 + $0xbb0] sm:$0xff] }
 0x8d3   :  { %5786 = vmatprep.subr.bf16.mxu0 %v11633_v54  ;;  %v2790_v39 = vld [vmem:[#allocation3 + $0xf90] sm:$0xff]  ;;  %v11737_v29 = vcombine.high %v2662_v26, %v2666_v57 }
 0x8d4   :  { %5826 = vmatpush1.bf16.msra.mxu1 %v11768_v48  ;;  %v2794_v28 = vld [vmem:[#allocation3 + $0xfb0] sm:$0xff] }
 0x8d5   :  { %5827 = vmatprep.subr.bf16.mxu1 %v11761_v1  ;;  %v11865_v31 = vcombine.high %v2790_v39, %v2794_v28  ;;  %v2654_v46 = vld [vmem:[#allocation3 + $0xb50] sm:$0xff]  ;;  %v11736_v1 = vcombine.low %v2662_v26, %v2666_v57  ;;  %v11864_v44 = vcombine.low %v2790_v39, %v2794_v28 }
 0x8d6   :  { %5787 = vmatpush1.bf16.msra.mxu0 %v11632_v2  ;;  %v2658_v49 = vld [vmem:[#allocation3 + $0xb70] sm:$0xff] }
 0x8d7   :  { %5788 = vmatprep.subr.bf16.mxu0 %v11625_v10  ;;  %v2782_v48 = vld [vmem:[#allocation3 + $0xf50] sm:$0xff]  ;;  %v11729_v45 = vcombine.high %v2654_v46, %v2658_v49 }
 0x8d8   :  { %5828 = vmatpush1.bf16.msra.mxu1 %v11760_v9  ;;  %v2786_v54 = vld [vmem:[#allocation3 + $0xf70] sm:$0xff] }
 0x8d9   :  { %5829 = vmatprep.subr.bf16.mxu1 %v11753_v8  ;;  %v11857_v55 = vcombine.high %v2782_v48, %v2786_v54  ;;  %v2646_v59 = vld [vmem:[#allocation3 + $0xb10] sm:$0xff]  ;;  %v11728_v8 = vcombine.low %v2654_v46, %v2658_v49  ;;  %v11856_v22 = vcombine.low %v2782_v48, %v2786_v54 }
 0x8da   :  { %5789 = vmatpush1.bf16.msra.mxu0 %v11624_v13  ;;  %v2650_v2 = vld [vmem:[#allocation3 + $0xb30] sm:$0xff] }
 0x8db   :  { %5790 = vmatprep.subr.bf16.mxu0 %v11745_v6  ;;  %v2774_v9 = vld [vmem:[#allocation3 + $0xf10] sm:$0xff]  ;;  %v11721_v58 = vcombine.high %v2646_v59, %v2650_v2 }
 0x8dc   :  { %5830 = vmatpush1.bf16.msra.mxu1 %v11752_v17  ;;  %v2778_v10 = vld [vmem:[#allocation3 + $0xf30] sm:$0xff] }
 0x8dd   :  { %5831 = vmatprep.subr.bf16.mxu1 %v11873_v30  ;;  %v11849_v3 = vcombine.high %v2774_v9, %v2778_v10  ;;  %v2638_v23 = vld [vmem:[#allocation3 + $0xad0] sm:$0xff]  ;;  %v11720_v30 = vcombine.low %v2646_v59, %v2650_v2  ;;  %v11848_v26 = vcombine.low %v2774_v9, %v2778_v10 }
 0x8de   :  { %5791 = vmatpush2.bf16.msra.mxu0 %v11744_v40  ;;  %v2642_v13 = vld [vmem:[#allocation3 + $0xaf0] sm:$0xff] }
 0x8df   :  { %5792 = vmatprep.subr.bf16.mxu0 %v11737_v29  ;;  %v2766_v17 = vld [vmem:[#allocation3 + $0xed0] sm:$0xff]  ;;  %v11713_v57 = vcombine.high %v2638_v23, %v2642_v13 }
 0x8e0   :  { %5832 = vmatpush2.bf16.msra.mxu1 %v11872_v47  ;;  %v2770_v6 = vld [vmem:[#allocation3 + $0xef0] sm:$0xff] }
 0x8e1   :  { %5833 = vmatprep.subr.bf16.mxu1 %v11865_v31  ;;  %v11841_v39 = vcombine.high %v2766_v17, %v2770_v6  ;;  %v2630_v28 = vld [vmem:[#allocation3 + $0xa90] sm:$0xff]  ;;  %v11712_v31 = vcombine.low %v2638_v23, %v2642_v13  ;;  %v11840_v46 = vcombine.low %v2766_v17, %v2770_v6  ;;  %v2351_v6 = vld [vmem:[#allocation3 + $0x1d8] sm:$0xff] }
 0x8e2   :  { %5793 = vmatpush2.bf16.msra.mxu0 %v11736_v1  ;;  %v2634_v40 = vld [vmem:[#allocation3 + $0xab0] sm:$0xff] }
 0x8e3   :  { %5794 = vmatprep.subr.bf16.mxu0 %v11729_v45  ;;  %v2758_v47 = vld [vmem:[#allocation3 + $0xe90] sm:$0xff]  ;;  %v11705_v49 = vcombine.high %v2630_v28, %v2634_v40 }
 0x8e4   :  { %5834 = vmatpush2.bf16.msra.mxu1 %v11864_v44  ;;  %v2762_v29 = vld [vmem:[#allocation3 + $0xeb0] sm:$0xff] }
 0x8e5   :  { %5835 = vmatprep.subr.bf16.mxu1 %v11857_v55  ;;  %v11833_v48 = vcombine.high %v2758_v47, %v2762_v29  ;;  %v2622_v54 = vld [vmem:[#allocation3 + $0xa50] sm:$0xff]  ;;  %v11704_v55 = vcombine.low %v2630_v28, %v2634_v40  ;;  %v11832_v59 = vcombine.low %v2758_v47, %v2762_v29  ;;  %v2343_v29 = vld [vmem:[#allocation3 + $0x198] sm:$0xff] }
 0x8e6   :  { %5795 = vmatpush2.bf16.msra.mxu0 %v11728_v8  ;;  %v2626_v1 = vld [vmem:[#allocation3 + $0xa70] sm:$0xff] }
 0x8e7   :  { %5796 = vmatprep.subr.bf16.mxu0 %v11721_v58  ;;  %v2750_v44 = vld [vmem:[#allocation3 + $0xe50] sm:$0xff]  ;;  %v11697_v2 = vcombine.high %v2622_v54, %v2626_v1 }
 0x8e8   :  { %5836 = vmatpush2.bf16.msra.mxu1 %v11856_v22  ;;  %v2754_v45 = vld [vmem:[#allocation3 + $0xe70] sm:$0xff] }
 0x8e9   :  { %5837 = vmatprep.subr.bf16.mxu1 %v11849_v3  ;;  %v11825_v9 = vcombine.high %v2750_v44, %v2754_v45  ;;  %v2614_v10 = vld [vmem:[#allocation3 + $0xa10] sm:$0xff]  ;;  %v11696_v3 = vcombine.low %v2622_v54, %v2626_v1  ;;  %v11824_v23 = vcombine.low %v2750_v44, %v2754_v45  ;;  %v2335_v45 = vld [vmem:[#allocation3 + $0x158] sm:$0xff] }
 0x8ea   :  { %5797 = vmatpush2.bf16.msra.mxu0 %v11720_v30  ;;  %v2618_v8 = vld [vmem:[#allocation3 + $0xa30] sm:$0xff]  ;;  %v2355_v30 = vld [vmem:[#allocation3 + $0x1f8] sm:$0xff] }
 0x8eb   :  { %5798 = vmatprep.subr.bf16.mxu0 %v11713_v57  ;;  %v2742_v22 = vld [vmem:[#allocation3 + $0xe10] sm:$0xff]  ;;  %v11689_v13 = vcombine.high %v2614_v10, %v2618_v8  ;;  %v2483_v57 = vld [vmem:[#allocation3 + $0x5f8] sm:$0xff]  ;;  %v11427_v40 = vcombine.high %v2351_v6, %v2355_v30 }
 0x8ec   :  { %5838 = vmatpush2.bf16.msra.mxu1 %v11848_v26  ;;  %v2746_v58 = vld [vmem:[#allocation3 + $0xe30] sm:$0xff]  ;;  %v2479_v26 = vld [vmem:[#allocation3 + $0x5d8] sm:$0xff] }
 0x8ed   :  { %5839 = vmatprep.subr.bf16.mxu1 %v11841_v39  ;;  %v11817_v17 = vcombine.high %v2742_v22, %v2746_v58  ;;  %v11688_v39 = vcombine.low %v2614_v10, %v2618_v8  ;;  %v11816_v28 = vcombine.low %v2742_v22, %v2746_v58  ;;  %v11555_v47 = vcombine.high %v2479_v26, %v2483_v57 }
 0x8ee   :  { %5799 = vmatpush2.bf16.msra.mxu0 %v11712_v31  ;;  %v2347_v31 = vld [vmem:[#allocation3 + $0x1b8] sm:$0xff]  ;;  %v11554_v54 = vcombine.low %v2479_v26, %v2483_v57 }
 0x8ef   :  { %5800 = vmatprep.subr.bf16.mxu0 %v11705_v49  ;;  %v2475_v49 = vld [vmem:[#allocation3 + $0x5b8] sm:$0xff]  ;;  %v11419_v1 = vcombine.high %v2343_v29, %v2347_v31  ;;  %v11418_v8 = vcombine.low %v2343_v29, %v2347_v31 }
 0x8f0   :  { %5840 = vmatpush2.bf16.msra.mxu1 %v11840_v46  ;;  %v2471_v46 = vld [vmem:[#allocation3 + $0x598] sm:$0xff] }
 0x8f1   :  { %5841 = vmatprep.subr.bf16.mxu1 %v11833_v48  ;;  %v11426_v48 = vcombine.low %v2351_v6, %v2355_v30  ;;  %v11547_v44 = vcombine.high %v2471_v46, %v2475_v49  ;;  %v2327_v6 = vld [vmem:[#allocation3 + $0x118] sm:$0xff] }
 0x8f2   :  { %5801 = vmatpush2.bf16.msra.mxu0 %v11704_v55  ;;  %v2339_v55 = vld [vmem:[#allocation3 + $0x178] sm:$0xff] }
 0x8f3   :  { %5802 = vmatprep.subr.bf16.mxu0 %v11697_v2  ;;  %v2463_v2 = vld [vmem:[#allocation3 + $0x558] sm:$0xff] }
 0x8f4   :  { %5842 = vmatpush2.bf16.msra.mxu1 %v11832_v59  ;;  %v2331_v30 = vld [vmem:[#allocation3 + $0x138] sm:$0xff] }
 0x8f5   :  { %5843 = vmatprep.subr.bf16.mxu1 %v11825_v9  ;;  %v2467_v9 = vld [vmem:[#allocation3 + $0x578] sm:$0xff] }
 0x8f6   :  { %5803 = vmatpush2.bf16.msra.mxu0 %v11696_v3  ;;  %v11546_v3 = vcombine.low %v2471_v46, %v2475_v49  ;;  %v11538_v31 = vcombine.low %v2463_v2, %v2467_v9  ;;  %v11403_v46 = vcombine.high %v2327_v6, %v2331_v30 }
 0x8f7   :  { %5804 = vmatprep.subr.bf16.mxu0 %v11689_v13 }
 0x8f8   :  { %5844 = vmatpush2.bf16.msra.mxu1 %v11824_v23  ;;  %v11411_v23 = vcombine.high %v2335_v45, %v2339_v55 }
 0x8f9   :  { %5845 = vmatprep.subr.bf16.mxu1 %v11817_v17  ;;  %v11539_v17 = vcombine.high %v2463_v2, %v2467_v9  ;;  %v2443_v2 = vld [vmem:[#allocation3 + $0x4b8] sm:$0xff] }
 0x8fa   :  { %5805 = vmatpush2.bf16.msra.mxu0 %v11688_v39  ;;  %v2455_v39 = vld [vmem:[#allocation3 + $0x518] sm:$0xff] }
 0x8fb   :  { %5856 = vmatprep.subr.bf16.mxu0 %v11427_v40 }
 0x8fc   :  { %5846 = vmatpush2.bf16.msra.mxu1 %v11816_v28  ;;  %v2459_v28 = vld [vmem:[#allocation3 + $0x538] sm:$0xff] }
 0x8fd   :  { %5897 = vmatprep.subr.bf16.mxu1 %v11555_v47  ;;  %v5562_v59 = vpop.f32.mrf.mxu0  ;;  %5807 = vmatmul.mubr.bf16.vlgmr.msra.gmra.mxu0 %v13807_v7  ;;  %v11410_v47 = vcombine.low %v2335_v45, %v2339_v55  ;;  %v2311_v55 = vld [vmem:[#allocation3 + $0x98] sm:$0xff] }
 0x8fe   :  { %5857 = vmatpush1.bf16.msra.mxu0 %v11426_v48  ;;  %5888 = vmatprep.mubr.bf16.mxu0 %v13774_v14  ;;  %v11531_v48 = vcombine.high %v2455_v39, %v2459_v28  ;;  %v2323_v14 = vld [vmem:[#allocation3 + $0xf8] sm:$0xff] }
 0x8ff   :  { %v5603_v10 = vpop.f32.mrf.mxu1  ;;  %5848 = vmatmul.mubr.bf16.vlgmr.msra.gmra.mxu1 %v13812_v16  ;;  %v5564_v58 = vpop.f32.mrf.mxu0  ;;  %5858 = vmatprep.subr.bf16.mxu0 %v11419_v1  ;;  %v2447_v1 = vld [vmem:[#allocation3 + $0x4d8] sm:$0xff] }
 0x900   :  { %v13842_v22 = vadd.f32 %v5603_v10, %v5562_v59  ;;  %5898 = vmatpush1.bf16.msra.mxu1 %v11554_v54  ;;  %5929 = vmatprep.mubr.bf16.mxu1 %v13776_v15  ;;  %v2319_v54 = vld [vmem:[#allocation3 + $0xd8] sm:$0xff]  ;;  %v11402_v59 = vcombine.low %v2327_v6, %v2331_v30  ;;  %v11530_v15 = vcombine.low %v2455_v39, %v2459_v28 }
 0x901   :  { %v5605_v13 = vpop.f32.mrf.mxu1  ;;  %5899 = vmatprep.subr.bf16.mxu1 %v11547_v44  ;;  %v5566_v57 = vpop.f32.mrf.mxu0  ;;  %v2451_v44 = vld [vmem:[#allocation3 + $0x4f8] sm:$0xff]  ;;  %v11395_v10 = vcombine.high %v2319_v54, %v2323_v14  ;;  %v11394_v9 = vcombine.low %v2319_v54, %v2323_v14 }
 0x902   :  { %v13845_v26 = vadd.f32 %v5605_v13, %v5564_v58  ;;  %5859 = vmatpush1.bf16.msra.mxu0 %v11418_v8  ;;  %v11523_v45 = vcombine.high %v2447_v1, %v2451_v44  ;;  %v2315_v8 = vld [vmem:[#allocation3 + $0xb8] sm:$0xff] }
 0x903   :  { %v5607_v40 = vpop.f32.mrf.mxu1  ;;  %v5567_v29 = vpop.f32.mrf.mxu0  ;;  %5860 = vmatprep.subr.bf16.mxu0 %v11411_v23  ;;  %v2439_v58 = vld [vmem:[#allocation3 + $0x498] sm:$0xff]  ;;  %v11387_v23 = vcombine.high %v2311_v55, %v2315_v8  ;;  %v11386_v39 = vcombine.low %v2311_v55, %v2315_v8 }
 0x904   :  { %5900 = vmatpush1.bf16.msra.mxu1 %v11546_v3  ;;  %v11522_v3 = vcombine.low %v2447_v1, %v2451_v44  ;;  %v11515_v13 = vcombine.high %v2439_v58, %v2443_v2  ;;  %v2307_v6 = vld [vmem:[#allocation3 + $0x78] sm:$0xff]  ;;  %v11514_v28 = vcombine.low %v2439_v58, %v2443_v2 }
 0x905   :  { %v5608_v49 = vpop.f32.mrf.mxu1  ;;  %5901 = vmatprep.subr.bf16.mxu1 %v11539_v17  ;;  %v2303_v17 = vld [vmem:[#allocation3 + $0x58] sm:$0xff] }
 0x906   :  { %5861 = vmatpush1.bf16.msra.mxu0 %v11410_v47  ;;  %v2431_v30 = vld [vmem:[#allocation3 + $0x458] sm:$0xff]  ;;  %v11379_v40 = vcombine.high %v2303_v17, %v2307_v6 }
 0x907   :  { %5862 = vmatprep.subr.bf16.mxu0 %v11403_v46  ;;  %v2435_v57 = vld [vmem:[#allocation3 + $0x478] sm:$0xff] }
 0x908   :  { %5902 = vmatpush1.bf16.msra.mxu1 %v11538_v31  ;;  %v11507_v47 = vcombine.high %v2431_v30, %v2435_v57  ;;  %v2295_v29 = vld [vmem:[#allocation3 + $0x18] sm:$0xff]  ;;  %v11506_v54 = vcombine.low %v2431_v30, %v2435_v57 }
 0x909   :  { %5903 = vmatprep.subr.bf16.mxu1 %v11531_v48  ;;  %v2299_v31 = vld [vmem:[#allocation3 + $0x38] sm:$0xff]  ;;  %v11378_v48 = vcombine.low %v2303_v17, %v2307_v6 }
 0x90a   :  { %5863 = vmatpush1.bf16.msra.mxu0 %v11402_v59  ;;  %v2423_v46 = vld [vmem:[#allocation3 + $0x418] sm:$0xff]  ;;  %v11371_v14 = vcombine.high %v2295_v29, %v2299_v31 }
 0x90b   :  { %5864 = vmatprep.subr.bf16.mxu0 %v11395_v10  ;;  %v2427_v49 = vld [vmem:[#allocation3 + $0x438] sm:$0xff] }
 0x90c   :  { %5904 = vmatpush1.bf16.msra.mxu1 %v11530_v15  ;;  %v11499_v1 = vcombine.high %v2423_v46, %v2427_v49  ;;  %v2415_v44 = vld [vmem:[#allocation3 + $0x3d8] sm:$0xff]  ;;  %v11498_v55 = vcombine.low %v2423_v46, %v2427_v49 }
 0x90d   :  { %5905 = vmatprep.subr.bf16.mxu1 %v11523_v45  ;;  %v2419_v59 = vld [vmem:[#allocation3 + $0x3f8] sm:$0xff]  ;;  %v11370_v45 = vcombine.low %v2295_v29, %v2299_v31 }
 0x90e   :  { %5865 = vmatpush1.bf16.msra.mxu0 %v11394_v9  ;;  %v2543_v15 = vld [vmem:[#allocation3 + $0x7d8] sm:$0xff]  ;;  %v11491_v8 = vcombine.high %v2415_v44, %v2419_v59 }
 0x90f   :  { %5866 = vmatprep.subr.bf16.mxu0 %v11387_v23  ;;  %v2547_v10 = vld [vmem:[#allocation3 + $0x7f8] sm:$0xff] }
 0x910   :  { %5906 = vmatpush1.bf16.msra.mxu1 %v11522_v3  ;;  %v11619_v58 = vcombine.high %v2543_v15, %v2547_v10  ;;  %v2407_v2 = vld [vmem:[#allocation3 + $0x398] sm:$0xff]  ;;  %v11618_v17 = vcombine.low %v2543_v15, %v2547_v10 }
 0x911   :  { %5907 = vmatprep.subr.bf16.mxu1 %v11515_v13  ;;  %v2411_v9 = vld [vmem:[#allocation3 + $0x3b8] sm:$0xff]  ;;  %v11490_v13 = vcombine.low %v2415_v44, %v2419_v59 }
 0x912   :  { %5867 = vmatpush1.bf16.msra.mxu0 %v11386_v39  ;;  %v2535_v3 = vld [vmem:[#allocation3 + $0x798] sm:$0xff]  ;;  %v11483_v6 = vcombine.high %v2407_v2, %v2411_v9 }
 0x913   :  { %5868 = vmatprep.subr.bf16.mxu0 %v11379_v40  ;;  %v2539_v23 = vld [vmem:[#allocation3 + $0x7b8] sm:$0xff] }
 0x914   :  { %5908 = vmatpush1.bf16.msra.mxu1 %v11514_v28  ;;  %v11611_v30 = vcombine.high %v2535_v3, %v2539_v23  ;;  %v2399_v57 = vld [vmem:[#allocation3 + $0x358] sm:$0xff]  ;;  %v11610_v29 = vcombine.low %v2535_v3, %v2539_v23 }
 0x915   :  { %5909 = vmatprep.subr.bf16.mxu1 %v11507_v47  ;;  %v2403_v39 = vld [vmem:[#allocation3 + $0x378] sm:$0xff]  ;;  %v11482_v47 = vcombine.low %v2407_v2, %v2411_v9 }
 0x916   :  { %5869 = vmatpush1.bf16.msra.mxu0 %v11378_v48  ;;  %v2527_v28 = vld [vmem:[#allocation3 + $0x758] sm:$0xff]  ;;  %v11475_v31 = vcombine.high %v2399_v57, %v2403_v39 }
 0x917   :  { %5870 = vmatprep.subr.bf16.mxu0 %v11371_v14  ;;  %v2531_v40 = vld [vmem:[#allocation3 + $0x778] sm:$0xff] }
 0x918   :  { %5910 = vmatpush1.bf16.msra.mxu1 %v11506_v54  ;;  %v11603_v46 = vcombine.high %v2527_v28, %v2531_v40  ;;  %v2391_v49 = vld [vmem:[#allocation3 + $0x318] sm:$0xff]  ;;  %v11602_v44 = vcombine.low %v2527_v28, %v2531_v40 }
 0x919   :  { %5911 = vmatprep.subr.bf16.mxu1 %v11499_v1  ;;  %v2395_v48 = vld [vmem:[#allocation3 + $0x338] sm:$0xff]  ;;  %v11474_v1 = vcombine.low %v2399_v57, %v2403_v39 }
 0x91a   :  { %5871 = vmatpush1.bf16.msra.mxu0 %v11370_v45  ;;  %v2519_v54 = vld [vmem:[#allocation3 + $0x718] sm:$0xff]  ;;  %v11467_v59 = vcombine.high %v2391_v49, %v2395_v48 }
 0x91b   :  { %5872 = vmatprep.subr.bf16.mxu0 %v11491_v8  ;;  %v2523_v14 = vld [vmem:[#allocation3 + $0x738] sm:$0xff] }
 0x91c   :  { %5912 = vmatpush1.bf16.msra.mxu1 %v11498_v55  ;;  %v11595_v15 = vcombine.high %v2519_v54, %v2523_v14  ;;  %v2383_v10 = vld [vmem:[#allocation3 + $0x2d8] sm:$0xff]  ;;  %v11594_v2 = vcombine.low %v2519_v54, %v2523_v14 }
 0x91d   :  { %5913 = vmatprep.subr.bf16.mxu1 %v11619_v58  ;;  %v2387_v45 = vld [vmem:[#allocation3 + $0x2f8] sm:$0xff]  ;;  %v11466_v58 = vcombine.low %v2391_v49, %v2395_v48 }
 0x91e   :  { %5873 = vmatpush2.bf16.msra.mxu0 %v11490_v13  ;;  %v2511_v55 = vld [vmem:[#allocation3 + $0x6d8] sm:$0xff]  ;;  %v11459_v9 = vcombine.high %v2383_v10, %v2387_v45 }
 0x91f   :  { %5874 = vmatprep.subr.bf16.mxu0 %v11483_v6  ;;  %v2515_v8 = vld [vmem:[#allocation3 + $0x6f8] sm:$0xff] }
 0x920   :  { %5914 = vmatpush2.bf16.msra.mxu1 %v11618_v17  ;;  %v11587_v3 = vcombine.high %v2511_v55, %v2515_v8  ;;  %v2375_v23 = vld [vmem:[#allocation3 + $0x298] sm:$0xff]  ;;  %v11586_v57 = vcombine.low %v2511_v55, %v2515_v8 }
 0x921   :  { %5915 = vmatprep.subr.bf16.mxu1 %v11611_v30  ;;  %v2379_v13 = vld [vmem:[#allocation3 + $0x2b8] sm:$0xff]  ;;  %v11458_v30 = vcombine.low %v2383_v10, %v2387_v45 }
 0x922   :  { %5875 = vmatpush2.bf16.msra.mxu0 %v11482_v47  ;;  %v2503_v17 = vld [vmem:[#allocation3 + $0x698] sm:$0xff]  ;;  %v11451_v39 = vcombine.high %v2375_v23, %v2379_v13 }
 0x923   :  { %5876 = vmatprep.subr.bf16.mxu0 %v11475_v31  ;;  %v2507_v6 = vld [vmem:[#allocation3 + $0x6b8] sm:$0xff] }
 0x924   :  { %5916 = vmatpush2.bf16.msra.mxu1 %v11610_v29  ;;  %v11579_v28 = vcombine.high %v2503_v17, %v2507_v6  ;;  %v2367_v40 = vld [vmem:[#allocation3 + $0x258] sm:$0xff]  ;;  %v11578_v49 = vcombine.low %v2503_v17, %v2507_v6 }
 0x925   :  { %5917 = vmatprep.subr.bf16.mxu1 %v11603_v46  ;;  %v2371_v47 = vld [vmem:[#allocation3 + $0x278] sm:$0xff]  ;;  %v11450_v46 = vcombine.low %v2375_v23, %v2379_v13 }
 0x926   :  { %5877 = vmatpush2.bf16.msra.mxu0 %v11474_v1  ;;  %v2495_v29 = vld [vmem:[#allocation3 + $0x658] sm:$0xff]  ;;  %v11443_v48 = vcombine.high %v2367_v40, %v2371_v47 }
 0x927   :  { %5878 = vmatprep.subr.bf16.mxu0 %v11467_v59  ;;  %v2499_v31 = vld [vmem:[#allocation3 + $0x678] sm:$0xff] }
 0x928   :  { %5918 = vmatpush2.bf16.msra.mxu1 %v11602_v44  ;;  %v11571_v54 = vcombine.high %v2495_v29, %v2499_v31  ;;  %v2359_v14 = vld [vmem:[#allocation3 + $0x218] sm:$0xff]  ;;  %v11570_v10 = vcombine.low %v2495_v29, %v2499_v31 }
 0x929   :  { %5919 = vmatprep.subr.bf16.mxu1 %v11595_v15  ;;  %v2363_v1 = vld [vmem:[#allocation3 + $0x238] sm:$0xff]  ;;  %v11442_v15 = vcombine.low %v2367_v40, %v2371_v47 }
 0x92a   :  { %5879 = vmatpush2.bf16.msra.mxu0 %v11466_v58  ;;  %v2487_v44 = vld [vmem:[#allocation3 + $0x618] sm:$0xff]  ;;  %v11435_v45 = vcombine.high %v2359_v14, %v2363_v1 }
 0x92b   :  { %5880 = vmatprep.subr.bf16.mxu0 %v11459_v9  ;;  %v2491_v59 = vld [vmem:[#allocation3 + $0x638] sm:$0xff] }
 0x92c   :  { %5920 = vmatpush2.bf16.msra.mxu1 %v11594_v2  ;;  %v11563_v55 = vcombine.high %v2487_v44, %v2491_v59  ;;  %v2607_v8 = vld [vmem:[#allocation3 + $0x9d8] sm:$0xff]  ;;  %v11562_v23 = vcombine.low %v2487_v44, %v2491_v59 }
 0x92d   :  { %5921 = vmatprep.subr.bf16.mxu1 %v11587_v3  ;;  %v2611_v58 = vld [vmem:[#allocation3 + $0x9f8] sm:$0xff]  ;;  %v11434_v3 = vcombine.low %v2359_v14, %v2363_v1 }
 0x92e   :  { %5881 = vmatpush2.bf16.msra.mxu0 %v11458_v30  ;;  %v2735_v2 = vld [vmem:[#allocation3 + $0xdd8] sm:$0xff]  ;;  %v11683_v13 = vcombine.high %v2607_v8, %v2611_v58 }
 0x92f   :  { %5882 = vmatprep.subr.bf16.mxu0 %v11451_v39  ;;  %v2739_v9 = vld [vmem:[#allocation3 + $0xdf8] sm:$0xff] }
 0x930   :  { %5922 = vmatpush2.bf16.msra.mxu1 %v11586_v57  ;;  %v11811_v17 = vcombine.high %v2735_v2, %v2739_v9  ;;  %v2599_v6 = vld [vmem:[#allocation3 + $0x998] sm:$0xff]  ;;  %v11810_v40 = vcombine.low %v2735_v2, %v2739_v9 }
 0x931   :  { %5923 = vmatprep.subr.bf16.mxu1 %v11579_v28  ;;  %v2603_v30 = vld [vmem:[#allocation3 + $0x9b8] sm:$0xff]  ;;  %v11682_v28 = vcombine.low %v2607_v8, %v2611_v58 }
 0x932   :  { %5883 = vmatpush2.bf16.msra.mxu0 %v11450_v46  ;;  %v2727_v57 = vld [vmem:[#allocation3 + $0xd98] sm:$0xff]  ;;  %v11675_v47 = vcombine.high %v2599_v6, %v2603_v30  ;;  %v11674_v44 = vcombine.low %v2599_v6, %v2603_v30 }
 0x933   :  { %5884 = vmatprep.subr.bf16.mxu0 %v11443_v48  ;;  %v2731_v39 = vld [vmem:[#allocation3 + $0xdb8] sm:$0xff] }
 0x934   :  { %5924 = vmatpush2.bf16.msra.mxu1 %v11578_v49  ;;  %v11803_v29 = vcombine.high %v2727_v57, %v2731_v39  ;;  %v2591_v31 = vld [vmem:[#allocation3 + $0x958] sm:$0xff] }
 0x935   :  { %5925 = vmatprep.subr.bf16.mxu1 %v11571_v54  ;;  %v2595_v46 = vld [vmem:[#allocation3 + $0x978] sm:$0xff] }
 0x936   :  { %5885 = vmatpush2.bf16.msra.mxu0 %v11442_v15  ;;  %v2719_v48 = vld [vmem:[#allocation3 + $0xd58] sm:$0xff]  ;;  %v11802_v15 = vcombine.low %v2727_v57, %v2731_v39 }
 0x937   :  { %5886 = vmatprep.subr.bf16.mxu0 %v11435_v45  ;;  %v2723_v54 = vld [vmem:[#allocation3 + $0xd78] sm:$0xff] }
 0x938   :  { %5926 = vmatpush2.bf16.msra.mxu1 %v11570_v10  ;;  %v11667_v10 = vcombine.high %v2591_v31, %v2595_v46  ;;  %v2583_v58 = vld [vmem:[#allocation3 + $0x918] sm:$0xff] }
 0x939   :  { %5927 = vmatprep.subr.bf16.mxu1 %v11563_v55  ;;  %v2587_v2 = vld [vmem:[#allocation3 + $0x938] sm:$0xff] }
 0x93a   :  { %5887 = vmatpush2.bf16.msra.mxu0 %v11434_v3  ;;  %v2715_v9 = vld [vmem:[#allocation3 + $0xd38] sm:$0xff]  ;;  %v11659_v6 = vcombine.high %v2583_v58, %v2587_v2 }
 0x93b   :  { %5938 = vmatprep.subr.bf16.mxu0 %v11683_v13  ;;  %v11666_v13 = vcombine.low %v2591_v31, %v2595_v46  ;;  %v2575_v39 = vld [vmem:[#allocation3 + $0x8d8] sm:$0xff] }
 0x93c   :  { %5928 = vmatpush2.bf16.msra.mxu1 %v11562_v23  ;;  %v2567_v46 = vld [vmem:[#allocation3 + $0x898] sm:$0xff] }
 0x93d   :  { %5979 = vmatprep.subr.bf16.mxu1 %v11811_v17  ;;  %v5644_v49 = vpop.f32.mrf.mxu0  ;;  %5889 = vmatmul.mubr.bf16.vlgmr.msra.gmra.mxu0 %v13783_v38  ;;  %v11795_v38 = vcombine.high %v2719_v48, %v2723_v54 }
 0x93e   :  { %v5645_v14 = vadd.f32 %v5644_v49, %v13842_v22  ;;  %5939 = vmatpush1.bf16.msra.mxu0 %v11682_v28  ;;  %5970 = vmatprep.mubr.bf16.mxu0 %v13793_v56  ;;  %v2579_v56 = vld [vmem:[#allocation3 + $0x8f8] sm:$0xff] }
 0x93f   :  { %v5685_v1 = vpop.f32.mrf.mxu1  ;;  %5930 = vmatmul.mubr.bf16.vlgmr.msra.gmra.mxu1 %v13788_v43  ;;  %v5646_v59 = vpop.f32.mrf.mxu0  ;;  %5940 = vmatprep.subr.bf16.mxu0 %v11675_v47  ;;  %v2711_v43 = vld [vmem:[#allocation3 + $0xd18] sm:$0xff]  ;;  %v11658_v47 = vcombine.low %v2583_v58, %v2587_v2 }
 0x940   :  { %5980 = vmatpush1.bf16.msra.mxu1 %v11810_v40  ;;  %v13851_v45 = vadd.f32 %v5685_v1, %v5645_v14  ;;  %v5647_v55 = vadd.f32 %v5646_v59, %v13845_v26  ;;  %6011 = vmatprep.mubr.bf16.mxu1 %v13799_v37  ;;  %v11794_v26 = vcombine.low %v2719_v48, %v2723_v54  ;;  %v2703_v28 = vld [vmem:[#allocation3 + $0xcd8] sm:$0xff] }
 0x941   :  { %v5687_v8 = vpop.f32.mrf.mxu1  ;;  %5981 = vmatprep.subr.bf16.mxu1 %v11803_v29  ;;  %v5648_v22 = vpop.f32.mrf.mxu0  ;;  %v11787_v57 = vcombine.high %v2711_v43, %v2715_v9  ;;  %v2707_v40 = vld [vmem:[#allocation3 + $0xcf8] sm:$0xff]  ;;  %v11786_v37 = vcombine.low %v2711_v43, %v2715_v9  ;;  %v11651_v29 = vcombine.high %v2575_v39, %v2579_v56  ;;  %v11650_v54 = vcombine.low %v2575_v39, %v2579_v56 }
 0x942   :  { %v13856_v3 = vadd.f32 %v5687_v8, %v5647_v55  ;;  %5941 = vmatpush1.bf16.msra.mxu0 %v11674_v44  ;;  %v11779_v31 = vcombine.high %v2703_v28, %v2707_v40  ;;  %v2571_v49 = vld [vmem:[#allocation3 + $0x8b8] sm:$0xff]  ;;  %v11778_v1 = vcombine.low %v2703_v28, %v2707_v40 }
 0x943   :  { %v5689_v23 = vpop.f32.mrf.mxu1  ;;  %v5649_v17 = vpop.f32.mrf.mxu0  ;;  %5942 = vmatprep.subr.bf16.mxu0 %v11667_v10  ;;  %v2695_v14 = vld [vmem:[#allocation3 + $0xc98] sm:$0xff]  ;;  %v11643_v44 = vcombine.high %v2567_v46, %v2571_v49 }
 0x944   :  { %5982 = vmatpush1.bf16.msra.mxu1 %v11802_v15  ;;  %v2699_v48 = vld [vmem:[#allocation3 + $0xcb8] sm:$0xff] }
 0x945   :  { %v5690_v30 = vpop.f32.mrf.mxu1  ;;  %5983 = vmatprep.subr.bf16.mxu1 %v11795_v38  ;;  %v11771_v59 = vcombine.high %v2695_v14, %v2699_v48  ;;  %v2559_v15 = vld [vmem:[#allocation3 + $0x858] sm:$0xff]  ;;  %v11642_v38 = vcombine.low %v2567_v46, %v2571_v49  ;;  %v11770_v58 = vcombine.low %v2695_v14, %v2699_v48 }
 0x946   :  { %5943 = vmatpush1.bf16.msra.mxu0 %v11666_v13  ;;  %v2563_v10 = vld [vmem:[#allocation3 + $0x878] sm:$0xff] }
 0x947   :  { %5944 = vmatprep.subr.bf16.mxu0 %v11659_v6  ;;  %v2687_v55 = vld [vmem:[#allocation3 + $0xc58] sm:$0xff]  ;;  %v11635_v2 = vcombine.high %v2559_v15, %v2563_v10  ;;  %v11634_v17 = vcombine.low %v2559_v15, %v2563_v10 }
 0x948   :  { %5984 = vmatpush1.bf16.msra.mxu1 %v11794_v26  ;;  %v2691_v8 = vld [vmem:[#allocation3 + $0xc78] sm:$0xff] }
 0x949   :  { %5985 = vmatprep.subr.bf16.mxu1 %v11787_v57  ;;  %v11763_v22 = vcombine.high %v2687_v55, %v2691_v8  ;;  %v2551_v43 = vld [vmem:[#allocation3 + $0x818] sm:$0xff]  ;;  %v11762_v26 = vcombine.low %v2687_v55, %v2691_v8 }
 0x94a   :  { %5945 = vmatpush1.bf16.msra.mxu0 %v11658_v47  ;;  %v2555_v9 = vld [vmem:[#allocation3 + $0x838] sm:$0xff] }
 0x94b   :  { %5946 = vmatprep.subr.bf16.mxu0 %v11651_v29  ;;  %v2679_v23 = vld [vmem:[#allocation3 + $0xc18] sm:$0xff]  ;;  %v11627_v6 = vcombine.high %v2551_v43, %v2555_v9  ;;  %v11626_v40 = vcombine.low %v2551_v43, %v2555_v9 }
 0x94c   :  { %5986 = vmatpush1.bf16.msra.mxu1 %v11786_v37  ;;  %v2683_v13 = vld [vmem:[#allocation3 + $0xc38] sm:$0xff] }
 0x94d   :  { %5987 = vmatprep.subr.bf16.mxu1 %v11779_v31  ;;  %v11755_v30 = vcombine.high %v2679_v23, %v2683_v13  ;;  %v2671_v57 = vld [vmem:[#allocation3 + $0xbd8] sm:$0xff]  ;;  %v11754_v47 = vcombine.low %v2679_v23, %v2683_v13 }
 0x94e   :  { %5947 = vmatpush1.bf16.msra.mxu0 %v11650_v54  ;;  %v2675_v39 = vld [vmem:[#allocation3 + $0xbf8] sm:$0xff] }
 0x94f   :  { %5948 = vmatprep.subr.bf16.mxu0 %v11643_v44  ;;  %v2799_v56 = vld [vmem:[#allocation3 + $0xfd8] sm:$0xff]  ;;  %v11747_v37 = vcombine.high %v2671_v57, %v2675_v39  ;;  %v11746_v48 = vcombine.low %v2671_v57, %v2675_v39 }
 0x950   :  { %5988 = vmatpush1.bf16.msra.mxu1 %v11778_v1  ;;  %v2803_v28 = vld [vmem:[#allocation3 + $0xff8] sm:$0xff] }
 0x951   :  { %5989 = vmatprep.subr.bf16.mxu1 %v11771_v59  ;;  %v11875_v29 = vcombine.high %v2799_v56, %v2803_v28  ;;  %v2663_v31 = vld [vmem:[#allocation3 + $0xb98] sm:$0xff]  ;;  %v11874_v54 = vcombine.low %v2799_v56, %v2803_v28 }
 0x952   :  { %5949 = vmatpush1.bf16.msra.mxu0 %v11642_v38  ;;  %v2667_v46 = vld [vmem:[#allocation3 + $0xbb8] sm:$0xff] }
 0x953   :  { %5950 = vmatprep.subr.bf16.mxu0 %v11635_v2  ;;  %v2791_v49 = vld [vmem:[#allocation3 + $0xf98] sm:$0xff]  ;;  %v11739_v1 = vcombine.high %v2663_v31, %v2667_v46  ;;  %v11738_v8 = vcombine.low %v2663_v31, %v2667_v46 }
 0x954   :  { %5990 = vmatpush1.bf16.msra.mxu1 %v11770_v58  ;;  %v2795_v14 = vld [vmem:[#allocation3 + $0xfb8] sm:$0xff] }
 0x955   :  { %5991 = vmatprep.subr.bf16.mxu1 %v11763_v22  ;;  %v11867_v44 = vcombine.high %v2791_v49, %v2795_v14  ;;  %v2655_v59 = vld [vmem:[#allocation3 + $0xb58] sm:$0xff]  ;;  %v11866_v38 = vcombine.low %v2791_v49, %v2795_v14 }
 0x956   :  { %5951 = vmatpush1.bf16.msra.mxu0 %v11634_v17  ;;  %v2659_v15 = vld [vmem:[#allocation3 + $0xb78] sm:$0xff] }
 0x957   :  { %5952 = vmatprep.subr.bf16.mxu0 %v11627_v6  ;;  %v2783_v10 = vld [vmem:[#allocation3 + $0xf58] sm:$0xff]  ;;  %v11731_v58 = vcombine.high %v2655_v59, %v2659_v15  ;;  %v11730_v13 = vcombine.low %v2655_v59, %v2659_v15 }
 0x958   :  { %5992 = vmatpush1.bf16.msra.mxu1 %v11762_v26  ;;  %v2787_v55 = vld [vmem:[#allocation3 + $0xf78] sm:$0xff] }
 0x959   :  { %5993 = vmatprep.subr.bf16.mxu1 %v11755_v30  ;;  %v11859_v2 = vcombine.high %v2783_v10, %v2787_v55  ;;  %v2647_v22 = vld [vmem:[#allocation3 + $0xb18] sm:$0xff]  ;;  %v11858_v17 = vcombine.low %v2783_v10, %v2787_v55 }
 0x95a   :  { %5953 = vmatpush1.bf16.msra.mxu0 %v11626_v40  ;;  %v2651_v43 = vld [vmem:[#allocation3 + $0xb38] sm:$0xff] }
 0x95b   :  { %5954 = vmatprep.subr.bf16.mxu0 %v11747_v37  ;;  %v2775_v9 = vld [vmem:[#allocation3 + $0xf18] sm:$0xff]  ;;  %v11723_v26 = vcombine.high %v2647_v22, %v2651_v43  ;;  %v11722_v28 = vcombine.low %v2647_v22, %v2651_v43 }
 0x95c   :  { %5994 = vmatpush1.bf16.msra.mxu1 %v11754_v47  ;;  %v2779_v23 = vld [vmem:[#allocation3 + $0xf38] sm:$0xff] }
 0x95d   :  { %5995 = vmatprep.subr.bf16.mxu1 %v11875_v29  ;;  %v11851_v6 = vcombine.high %v2775_v9, %v2779_v23  ;;  %v2639_v30 = vld [vmem:[#allocation3 + $0xad8] sm:$0xff]  ;;  %v11850_v40 = vcombine.low %v2775_v9, %v2779_v23 }
 0x95e   :  { %5955 = vmatpush2.bf16.msra.mxu0 %v11746_v48  ;;  %v2643_v57 = vld [vmem:[#allocation3 + $0xaf8] sm:$0xff] }
 0x95f   :  { %5956 = vmatprep.subr.bf16.mxu0 %v11739_v1  ;;  %v2767_v39 = vld [vmem:[#allocation3 + $0xed8] sm:$0xff]  ;;  %v11715_v47 = vcombine.high %v2639_v30, %v2643_v57  ;;  %v11714_v14 = vcombine.low %v2639_v30, %v2643_v57  ;;  %v1832_v30 = vld [vmem:[#allocation2 + $0x1e0] sm:$0xff] }
 0x960   :  { %5996 = vmatpush2.bf16.msra.mxu1 %v11874_v54  ;;  %v2771_v56 = vld [vmem:[#allocation3 + $0xef8] sm:$0xff]  ;;  %v1956_v57 = vld [vmem:[#allocation2 + $0x5c0] sm:$0xff] }
 0x961   :  { %5997 = vmatprep.subr.bf16.mxu1 %v11867_v44  ;;  %v11843_v37 = vcombine.high %v2767_v39, %v2771_v56  ;;  %v2631_v29 = vld [vmem:[#allocation3 + $0xa98] sm:$0xff]  ;;  %v11842_v48 = vcombine.low %v2767_v39, %v2771_v56  ;;  %v1960_v39 = vld [vmem:[#allocation2 + $0x5e0] sm:$0xff] }
 0x962   :  { %5957 = vmatpush2.bf16.msra.mxu0 %v11738_v8  ;;  %v2635_v31 = vld [vmem:[#allocation3 + $0xab8] sm:$0xff] }
 0x963   :  { %5958 = vmatprep.subr.bf16.mxu0 %v11731_v58  ;;  %v2759_v46 = vld [vmem:[#allocation3 + $0xe98] sm:$0xff]  ;;  %v11707_v54 = vcombine.high %v2631_v29, %v2635_v31  ;;  %v11706_v55 = vcombine.low %v2631_v29, %v2635_v31  ;;  %v1824_v29 = vld [vmem:[#allocation2 + $0x1a0] sm:$0xff] }
 0x964   :  { %5998 = vmatpush2.bf16.msra.mxu1 %v11866_v38  ;;  %v2763_v49 = vld [vmem:[#allocation3 + $0xeb8] sm:$0xff]  ;;  %v1948_v31 = vld [vmem:[#allocation2 + $0x580] sm:$0xff] }
 0x965   :  { %5999 = vmatprep.subr.bf16.mxu1 %v11859_v2  ;;  %v11835_v1 = vcombine.high %v2759_v46, %v2763_v49  ;;  %v2623_v44 = vld [vmem:[#allocation3 + $0xa58] sm:$0xff]  ;;  %v11834_v8 = vcombine.low %v2759_v46, %v2763_v49  ;;  %v1952_v46 = vld [vmem:[#allocation2 + $0x5a0] sm:$0xff] }
 0x966   :  { %5959 = vmatpush2.bf16.msra.mxu0 %v11730_v13  ;;  %v2627_v59 = vld [vmem:[#allocation3 + $0xa78] sm:$0xff] }
 0x967   :  { %5960 = vmatprep.subr.bf16.mxu0 %v11723_v26  ;;  %v2751_v15 = vld [vmem:[#allocation3 + $0xe58] sm:$0xff]  ;;  %v11699_v38 = vcombine.high %v2623_v44, %v2627_v59  ;;  %v11698_v23 = vcombine.low %v2623_v44, %v2627_v59  ;;  %v1816_v44 = vld [vmem:[#allocation2 + $0x160] sm:$0xff]  ;;  %v13861_v59 = vpack.c.bf16 %v1341_v4, %v1341_v4  ;;  %v12052_v4 = vcombine.low %v1948_v31, %v1952_v46 }
 0x968   :  { %6000 = vmatpush2.bf16.msra.mxu1 %v11858_v17  ;;  %v2755_v10 = vld [vmem:[#allocation3 + $0xe78] sm:$0xff] }
 0x969   :  { %6001 = vmatprep.subr.bf16.mxu1 %v11851_v6  ;;  %v11827_v58 = vcombine.high %v2751_v15, %v2755_v10  ;;  %v2615_v2 = vld [vmem:[#allocation3 + $0xa18] sm:$0xff]  ;;  %v11826_v13 = vcombine.low %v2751_v15, %v2755_v10  ;;  %v1828_v6 = vld [vmem:[#allocation2 + $0x1c0] sm:$0xff] }
 0x96a   :  { %5961 = vmatpush2.bf16.msra.mxu0 %v11722_v28  ;;  %v2619_v22 = vld [vmem:[#allocation3 + $0xa38] sm:$0xff]  ;;  %v11932_v49 = vcombine.low %v1828_v6, %v1832_v30  ;;  %v1940_v10 = vld [vmem:[#allocation2 + $0x540] sm:$0xff] }
 0x96b   :  { %5962 = vmatprep.subr.bf16.mxu0 %v11715_v47  ;;  %v2743_v43 = vld [vmem:[#allocation3 + $0xe18] sm:$0xff]  ;;  %v11691_v17 = vcombine.high %v2615_v2, %v2619_v22  ;;  %v11690_v56 = vcombine.low %v2615_v2, %v2619_v22  ;;  %v12061_v47 = vcombine.high %v1956_v57, %v1960_v39 }
 0x96c   :  { %6002 = vmatpush2.bf16.msra.mxu1 %v11850_v40  ;;  %v2747_v9 = vld [vmem:[#allocation3 + $0xe38] sm:$0xff]  ;;  %v11933_v40 = vcombine.high %v1828_v6, %v1832_v30 }
 0x96d   :  { %6003 = vmatprep.subr.bf16.mxu1 %v11843_v37  ;;  %v11819_v26 = vcombine.high %v2743_v43, %v2747_v9  ;;  %v11818_v28 = vcombine.low %v2743_v43, %v2747_v9  ;;  %v1820_v37 = vld [vmem:[#allocation2 + $0x180] sm:$0xff] }
 0x96e   :  { %5963 = vmatpush2.bf16.msra.mxu0 %v11714_v14  ;;  %v12060_v14 = vcombine.low %v1956_v57, %v1960_v39  ;;  %v1804_v9 = vld [vmem:[#allocation2 + $0x100] sm:$0xff] }
 0x96f   :  { %5964 = vmatprep.subr.bf16.mxu0 %v11707_v54  ;;  %v12053_v54 = vcombine.high %v1948_v31, %v1952_v46  ;;  %v11909_v57 = vcombine.high %v1804_v9, %v1808_v0 }
 0x970   :  { %6004 = vmatpush2.bf16.msra.mxu1 %v11842_v48  ;;  %v11925_v48 = vcombine.high %v1820_v37, %v1824_v29 }
 0x971   :  { %6005 = vmatprep.subr.bf16.mxu1 %v11835_v1  ;;  %v1812_v1 = vld [vmem:[#allocation2 + $0x140] sm:$0xff] }
 0x972   :  { %5965 = vmatpush2.bf16.msra.mxu0 %v11706_v55  ;;  %v1944_v55 = vld [vmem:[#allocation2 + $0x560] sm:$0xff]  ;;  %v11917_v22 = vcombine.high %v1812_v1, %v1816_v44 }
 0x973   :  { %5966 = vmatprep.subr.bf16.mxu0 %v11699_v38  ;;  %v12045_v43 = vcombine.high %v1940_v10, %v1944_v55  ;;  %v12044_v30 = vcombine.low %v1940_v10, %v1944_v55 }
 0x974   :  { %6006 = vmatpush2.bf16.msra.mxu1 %v11834_v8  ;;  %v13867_v8 = vpack.c.bf16 %v1343_v5, %v1343_v5 }
 0x975   :  { %6007 = vmatprep.subr.bf16.mxu1 %v11827_v58  ;;  %v11924_v58 = vcombine.low %v1820_v37, %v1824_v29  ;;  %v1928_v37 = vld [vmem:[#allocation2 + $0x4e0] sm:$0xff]  ;;  %v11908_v29 = vcombine.low %v1804_v9, %v1808_v0 }
 0x976   :  { %5967 = vmatpush2.bf16.msra.mxu0 %v11698_v23  ;;  %v1772_v0 = vld [vmem:[#allocation2] sm:$0xff] }
 0x977   :  { %5968 = vmatprep.subr.bf16.mxu0 %v11691_v17 }
 0x978   :  { %6008 = vmatpush2.bf16.msra.mxu1 %v11826_v13  ;;  %v1936_v13 = vld [vmem:[#allocation2 + $0x520] sm:$0xff] }
 0x979   :  { %6009 = vmatprep.subr.bf16.mxu1 %v11819_v26  ;;  %v11916_v26 = vcombine.low %v1812_v1, %v1816_v44  ;;  %v1920_v1 = vld [vmem:[#allocation2 + $0x4a0] sm:$0xff] }
 0x97a   :  { %5969 = vmatpush2.bf16.msra.mxu0 %v11690_v56 }
 0x97b   :  { %8580 = vmatprep.subr.bf16.mxu0 %v11933_v40  ;;  %v1800_v40 = vld [vmem:[#allocation2 + $0xe0] sm:$0xff] }
 0x97c   :  { %6010 = vmatpush2.bf16.msra.mxu1 %v11818_v28  ;;  %v1796_v28 = vld [vmem:[#allocation2 + $0xc0] sm:$0xff] }
 0x97d   :  { %8621 = vmatprep.subr.bf16.mxu1 %v12061_v47  ;;  %v5726_v15 = vpop.f32.mrf.mxu0  ;;  %5971 = vmatmul.mubr.bf16.vlgmr.msra.gmra.mxu0 %v13807_v7  ;;  %v1924_v47 = vld [vmem:[#allocation2 + $0x4c0] sm:$0xff]  ;;  %v11901_v46 = vcombine.high %v1796_v28, %v1800_v40  ;;  %v11900_v44 = vcombine.low %v1796_v28, %v1800_v40 }
 0x97e   :  { %8581 = vmatpush1.bf16.msra.mxu0 %v11932_v49  ;;  %8612 = vmatprep.mubr.bf16.mxu0 %v13861_v59  ;;  %v12029_v49 = vcombine.high %v1924_v47, %v1928_v37  ;;  %v2024_v28 = vld [vmem:[#allocation2 + $0x7e0] sm:$0xff] }
 0x97f   :  { %v5767_v38 = vpop.f32.mrf.mxu1  ;;  %6012 = vmatmul.mubr.bf16.vlgmr.msra.gmra.mxu1 %v13812_v16  ;;  %v5728_v63 = vpop.f32.mrf.mxu0  ;;  %8582 = vmatprep.subr.bf16.mxu0 %v11925_v48  ;;  %v1932_v16 = vld [vmem:[#allocation2 + $0x500] sm:$0xff] }
 0x980   :  { %v13870_v2 = vadd.f32 %v5767_v38, %v5726_v15  ;;  %8622 = vmatpush1.bf16.msra.mxu1 %v12060_v14  ;;  %8653 = vmatprep.mubr.bf16.mxu1 %v13867_v8  ;;  %v12037_v56 = vcombine.high %v1932_v16, %v1936_v13  ;;  %v12036_v31 = vcombine.low %v1932_v16, %v1936_v13  ;;  %v1788_v14 = vld [vmem:[#allocation2 + $0x80] sm:$0xff] }
 0x981   :  { %v5769_v7 = vpop.f32.mrf.mxu1  ;;  %8623 = vmatprep.subr.bf16.mxu1 %v12053_v54  ;;  %v5730_v23 = vpop.f32.mrf.mxu0  ;;  %v1792_v48 = vld [vmem:[#allocation2 + $0xa0] sm:$0xff]  ;;  %v12028_v15 = vcombine.low %v1924_v47, %v1928_v37 }
 0x982   :  { %v13873_v5 = vadd.f32 %v5769_v7, %v5728_v63  ;;  %8583 = vmatpush1.bf16.msra.mxu0 %v11924_v58  ;;  %v1916_v54 = vld [vmem:[#allocation2 + $0x480] sm:$0xff]  ;;  %v11893_v10 = vcombine.high %v1788_v14, %v1792_v48 }
 0x983   :  { %v5771_v17 = vpop.f32.mrf.mxu1  ;;  %v5731_v6 = vpop.f32.mrf.mxu0  ;;  %8584 = vmatprep.subr.bf16.mxu0 %v11917_v22  ;;  %v12021_v55 = vcombine.high %v1916_v54, %v1920_v1  ;;  %v1780_v38 = vld [vmem:[#allocation2 + $0x40] sm:$0xff]  ;;  %v11892_v22 = vcombine.low %v1788_v14, %v1792_v48  ;;  %v12020_v7 = vcombine.low %v1916_v54, %v1920_v1 }
 0x984   :  { %8624 = vmatpush1.bf16.msra.mxu1 %v12052_v4  ;;  %v1784_v58 = vld [vmem:[#allocation2 + $0x60] sm:$0xff] }
 0x985   :  { %v5772_v39 = vpop.f32.mrf.mxu1  ;;  %8625 = vmatprep.subr.bf16.mxu1 %v12045_v43  ;;  %v1908_v63 = vld [vmem:[#allocation2 + $0x440] sm:$0xff]  ;;  %v11885_v43 = vcombine.high %v1780_v38, %v1784_v58  ;;  %v11884_v17 = vcombine.low %v1780_v38, %v1784_v58 }
 0x986   :  { %8585 = vmatpush1.bf16.msra.mxu0 %v11916_v26  ;;  %v1912_v4 = vld [vmem:[#allocation2 + $0x460] sm:$0xff] }
 0x987   :  { %8586 = vmatprep.subr.bf16.mxu0 %v11909_v57  ;;  %v12013_v9 = vcombine.high %v1908_v63, %v1912_v4  ;;  %v1776_v23 = vld [vmem:[#allocation2 + $0x20] sm:$0xff]  ;;  %v12012_v26 = vcombine.low %v1908_v63, %v1912_v4 }
 0x988   :  { %8626 = vmatpush1.bf16.msra.mxu1 %v12044_v30  ;;  %v1900_v16 = vld [vmem:[#allocation2 + $0x400] sm:$0xff]  ;;  %v11877_v6 = vcombine.high %v1772_v0, %v1776_v23  ;;  %v11876_v40 = vcombine.low %v1772_v0, %v1776_v23 }
 0x989   :  { %8627 = vmatprep.subr.bf16.mxu1 %v12037_v56  ;;  %v1904_v13 = vld [vmem:[#allocation2 + $0x420] sm:$0xff] }
 0x98a   :  { %8587 = vmatpush1.bf16.msra.mxu0 %v11908_v29  ;;  %v12005_v30 = vcombine.high %v1900_v16, %v1904_v13  ;;  %v1892_v57 = vld [vmem:[#allocation2 + $0x3c0] sm:$0xff]  ;;  %v12004_v47 = vcombine.low %v1900_v16, %v1904_v13 }
 0x98b   :  { %8588 = vmatprep.subr.bf16.mxu0 %v11901_v46  ;;  %v1896_v39 = vld [vmem:[#allocation2 + $0x3e0] sm:$0xff] }
 0x98c   :  { %8628 = vmatpush1.bf16.msra.mxu1 %v12036_v31  ;;  %v2020_v56 = vld [vmem:[#allocation2 + $0x7c0] sm:$0xff]  ;;  %v11997_v37 = vcombine.high %v1892_v57, %v1896_v39  ;;  %v11996_v48 = vcombine.low %v1892_v57, %v1896_v39 }
 0x98d   :  { %8629 = vmatprep.subr.bf16.mxu1 %v12029_v49  ;;  %v12125_v29 = vcombine.high %v2020_v56, %v2024_v28  ;;  %v1884_v31 = vld [vmem:[#allocation2 + $0x380] sm:$0xff]  ;;  %v12124_v54 = vcombine.low %v2020_v56, %v2024_v28 }
 0x98e   :  { %8589 = vmatpush1.bf16.msra.mxu0 %v11900_v44  ;;  %v1888_v46 = vld [vmem:[#allocation2 + $0x3a0] sm:$0xff] }
 0x98f   :  { %8590 = vmatprep.subr.bf16.mxu0 %v11893_v10  ;;  %v2012_v49 = vld [vmem:[#allocation2 + $0x780] sm:$0xff]  ;;  %v11989_v1 = vcombine.high %v1884_v31, %v1888_v46  ;;  %v11988_v58 = vcombine.low %v1884_v31, %v1888_v46 }
 0x990   :  { %8630 = vmatpush1.bf16.msra.mxu1 %v12028_v15  ;;  %v2016_v14 = vld [vmem:[#allocation2 + $0x7a0] sm:$0xff] }
 0x991   :  { %8631 = vmatprep.subr.bf16.mxu1 %v12021_v55  ;;  %v12117_v44 = vcombine.high %v2012_v49, %v2016_v14  ;;  %v1876_v15 = vld [vmem:[#allocation2 + $0x340] sm:$0xff]  ;;  %v12116_v63 = vcombine.low %v2012_v49, %v2016_v14 }
 0x992   :  { %8591 = vmatpush1.bf16.msra.mxu0 %v11892_v22  ;;  %v1880_v10 = vld [vmem:[#allocation2 + $0x360] sm:$0xff] }
 0x993   :  { %8592 = vmatprep.subr.bf16.mxu0 %v11885_v43  ;;  %v2004_v55 = vld [vmem:[#allocation2 + $0x740] sm:$0xff]  ;;  %v11981_v4 = vcombine.high %v1876_v15, %v1880_v10  ;;  %v11980_v23 = vcombine.low %v1876_v15, %v1880_v10 }
 0x994   :  { %8632 = vmatpush1.bf16.msra.mxu1 %v12020_v7  ;;  %v2008_v38 = vld [vmem:[#allocation2 + $0x760] sm:$0xff] }
 0x995   :  { %8633 = vmatprep.subr.bf16.mxu1 %v12013_v9  ;;  %v12109_v22 = vcombine.high %v2004_v55, %v2008_v38  ;;  %v1868_v7 = vld [vmem:[#allocation2 + $0x300] sm:$0xff]  ;;  %v12108_v16 = vcombine.low %v2004_v55, %v2008_v38 }
 0x996   :  { %8593 = vmatpush1.bf16.msra.mxu0 %v11884_v17  ;;  %v1872_v43 = vld [vmem:[#allocation2 + $0x320] sm:$0xff] }
 0x997   :  { %8594 = vmatprep.subr.bf16.mxu0 %v11877_v6  ;;  %v1996_v9 = vld [vmem:[#allocation2 + $0x700] sm:$0xff]  ;;  %v11973_v13 = vcombine.high %v1868_v7, %v1872_v43  ;;  %v11972_v39 = vcombine.low %v1868_v7, %v1872_v43 }
 0x998   :  { %8634 = vmatpush1.bf16.msra.mxu1 %v12012_v26  ;;  %v2000_v0 = vld [vmem:[#allocation2 + $0x720] sm:$0xff] }
 0x999   :  { %8635 = vmatprep.subr.bf16.mxu1 %v12005_v30  ;;  %v12101_v17 = vcombine.high %v1996_v9, %v2000_v0  ;;  %v1860_v26 = vld [vmem:[#allocation2 + $0x2c0] sm:$0xff]  ;;  %v12100_v56 = vcombine.low %v1996_v9, %v2000_v0 }
 0x99a   :  { %8595 = vmatpush1.bf16.msra.mxu0 %v11876_v40  ;;  %v1864_v6 = vld [vmem:[#allocation2 + $0x2e0] sm:$0xff] }
 0x99b   :  { %8596 = vmatprep.subr.bf16.mxu0 %v11997_v37  ;;  %v1988_v30 = vld [vmem:[#allocation2 + $0x6c0] sm:$0xff]  ;;  %v11965_v28 = vcombine.high %v1860_v26, %v1864_v6  ;;  %v11964_v46 = vcombine.low %v1860_v26, %v1864_v6 }
 0x99c   :  { %8636 = vmatpush1.bf16.msra.mxu1 %v12004_v47  ;;  %v1992_v57 = vld [vmem:[#allocation2 + $0x6e0] sm:$0xff] }
 0x99d   :  { %8637 = vmatprep.subr.bf16.mxu1 %v12125_v29  ;;  %v12093_v40 = vcombine.high %v1988_v30, %v1992_v57  ;;  %v1852_v47 = vld [vmem:[#allocation2 + $0x280] sm:$0xff]  ;;  %v12092_v49 = vcombine.low %v1988_v30, %v1992_v57 }
 0x99e   :  { %8597 = vmatpush2.bf16.msra.mxu0 %v11996_v48  ;;  %v1856_v37 = vld [vmem:[#allocation2 + $0x2a0] sm:$0xff] }
 0x99f   :  { %8598 = vmatprep.subr.bf16.mxu0 %v11989_v1  ;;  %v1980_v29 = vld [vmem:[#allocation2 + $0x680] sm:$0xff]  ;;  %v11957_v14 = vcombine.high %v1852_v47, %v1856_v37  ;;  %v11956_v10 = vcombine.low %v1852_v47, %v1856_v37 }
 0x9a0   :  { %8638 = vmatpush2.bf16.msra.mxu1 %v12124_v54  ;;  %v1984_v31 = vld [vmem:[#allocation2 + $0x6a0] sm:$0xff] }
 0x9a1   :  { %8639 = vmatprep.subr.bf16.mxu1 %v12117_v44  ;;  %v12085_v48 = vcombine.high %v1980_v29, %v1984_v31  ;;  %v1844_v54 = vld [vmem:[#allocation2 + $0x240] sm:$0xff]  ;;  %v12084_v55 = vcombine.low %v1980_v29, %v1984_v31  ;;  %v13884_v29 = vpack.c.bf16 %v1342_v62, %v1342_v62 }
 0x9a2   :  { %8599 = vmatpush2.bf16.msra.mxu0 %v11988_v58  ;;  %v1848_v1 = vld [vmem:[#allocation2 + $0x260] sm:$0xff] }
 0x9a3   :  { %8600 = vmatprep.subr.bf16.mxu0 %v11981_v4  ;;  %v1972_v44 = vld [vmem:[#allocation2 + $0x640] sm:$0xff]  ;;  %v11949_v38 = vcombine.high %v1844_v54, %v1848_v1  ;;  %v11948_v43 = vcombine.low %v1844_v54, %v1848_v1  ;;  %v13895_v1 = vpack.c.bf16 %v1347_v25, %v1347_v25 }
 0x9a4   :  { %8640 = vmatpush2.bf16.msra.mxu1 %v12116_v63  ;;  %v1976_v15 = vld [vmem:[#allocation2 + $0x660] sm:$0xff] }
 0x9a5   :  { %8641 = vmatprep.subr.bf16.mxu1 %v12109_v22  ;;  %v12077_v58 = vcombine.high %v1972_v44, %v1976_v15  ;;  %v1836_v63 = vld [vmem:[#allocation2 + $0x200] sm:$0xff]  ;;  %v12076_v9 = vcombine.low %v1972_v44, %v1976_v15 }
 0x9a6   :  { %8601 = vmatpush2.bf16.msra.mxu0 %v11980_v23  ;;  %v1840_v4 = vld [vmem:[#allocation2 + $0x220] sm:$0xff] }
 0x9a7   :  { %8602 = vmatprep.subr.bf16.mxu0 %v11973_v13  ;;  %v1964_v22 = vld [vmem:[#allocation2 + $0x600] sm:$0xff]  ;;  %v11941_v0 = vcombine.high %v1836_v63, %v1840_v4  ;;  %v11940_v6 = vcombine.low %v1836_v63, %v1840_v4 }
 0x9a8   :  { %8642 = vmatpush2.bf16.msra.mxu1 %v12108_v16  ;;  %v1968_v7 = vld [vmem:[#allocation2 + $0x620] sm:$0xff] }
 0x9a9   :  { %8643 = vmatprep.subr.bf16.mxu1 %v12101_v17  ;;  %v12069_v23 = vcombine.high %v1964_v22, %v1968_v7  ;;  %v2084_v16 = vld [vmem:[#allocation2 + $0x9c0] sm:$0xff]  ;;  %v12068_v30 = vcombine.low %v1964_v22, %v1968_v7 }
 0x9aa   :  { %8603 = vmatpush2.bf16.msra.mxu0 %v11972_v39  ;;  %v2088_v13 = vld [vmem:[#allocation2 + $0x9e0] sm:$0xff] }
 0x9ab   :  { %8604 = vmatprep.subr.bf16.mxu0 %v11965_v28  ;;  %v2212_v17 = vld [vmem:[#allocation2 + $0xdc0] sm:$0xff]  ;;  %v12189_v57 = vcombine.high %v2084_v16, %v2088_v13  ;;  %v12188_v31 = vcombine.low %v2084_v16, %v2088_v13 }
 0x9ac   :  { %8644 = vmatpush2.bf16.msra.mxu1 %v12100_v56  ;;  %v2216_v26 = vld [vmem:[#allocation2 + $0xde0] sm:$0xff] }
 0x9ad   :  { %8645 = vmatprep.subr.bf16.mxu1 %v12093_v40  ;;  %v12317_v39 = vcombine.high %v2212_v17, %v2216_v26  ;;  %v2076_v56 = vld [vmem:[#allocation2 + $0x980] sm:$0xff]  ;;  %v13879_v40 = vpack.c.bf16 %v1340_v61, %v1340_v61  ;;  %v13889_v61 = vpack.c.bf16 %v1345_v24, %v1345_v24 }
 0x9ae   :  { %8605 = vmatpush2.bf16.msra.mxu0 %v11964_v46  ;;  %v2080_v28 = vld [vmem:[#allocation2 + $0x9a0] sm:$0xff]  ;;  %v12316_v46 = vcombine.low %v2212_v17, %v2216_v26 }
 0x9af   :  { %8606 = vmatprep.subr.bf16.mxu0 %v11957_v14  ;;  %v2204_v47 = vld [vmem:[#allocation2 + $0xd80] sm:$0xff]  ;;  %v12180_v20 = vcombine.low %v2076_v56, %v2080_v28 }
 0x9b0   :  { %8646 = vmatpush2.bf16.msra.mxu1 %v12092_v49  ;;  %v2208_v37 = vld [vmem:[#allocation2 + $0xda0] sm:$0xff]  ;;  %v12181_v49 = vcombine.high %v2076_v56, %v2080_v28 }
 0x9b1   :  { %8647 = vmatprep.subr.bf16.mxu1 %v12085_v48  ;;  %v12309_v14 = vcombine.high %v2204_v47, %v2208_v37  ;;  %v2068_v48 = vld [vmem:[#allocation2 + $0x940] sm:$0xff] }
 0x9b2   :  { %8607 = vmatpush2.bf16.msra.mxu0 %v11956_v10  ;;  %v2200_v62 = vld [vmem:[#allocation2 + $0xd60] sm:$0xff]  ;;  %v12308_v10 = vcombine.low %v2204_v47, %v2208_v37 }
 0x9b3   :  { %8608 = vmatprep.subr.bf16.mxu0 %v11949_v38  ;;  %v12301_v25 = vcombine.high %v2196_v53, %v2200_v62  ;;  %v2060_v63 = vld [vmem:[#allocation2 + $0x900] sm:$0xff] }
 0x9b4   :  { %8648 = vmatpush2.bf16.msra.mxu1 %v12084_v55  ;;  %v12173_v55 = vcombine.high %v2068_v48, %v2072_v52  ;;  %v2064_v4 = vld [vmem:[#allocation2 + $0x920] sm:$0xff] }
 0x9b5   :  { %8649 = vmatprep.subr.bf16.mxu1 %v12077_v58  ;;  %v2188_v22 = vld [vmem:[#allocation2 + $0xd00] sm:$0xff]  ;;  %v12165_v16 = vcombine.high %v2060_v63, %v2064_v4 }
 0x9b6   :  { %8609 = vmatpush2.bf16.msra.mxu0 %v11948_v43  ;;  %v2192_v7 = vld [vmem:[#allocation2 + $0xd20] sm:$0xff] }
 0x9b7   :  { %8610 = vmatprep.subr.bf16.mxu0 %v11941_v0  ;;  %v12172_v0 = vcombine.low %v2068_v48, %v2072_v52  ;;  %v12293_v17 = vcombine.high %v2188_v22, %v2192_v7  ;;  %v2052_v26 = vld [vmem:[#allocation2 + $0x8c0] sm:$0xff]  ;;  %v12292_v56 = vcombine.low %v2188_v22, %v2192_v7 }
 0x9b8   :  { %8650 = vmatpush2.bf16.msra.mxu1 %v12076_v9  ;;  %v2044_v37 = vld [vmem:[#allocation2 + $0x880] sm:$0xff] }
 0x9b9   :  { %8651 = vmatprep.subr.bf16.mxu1 %v12069_v23 }
 0x9ba   :  { %8611 = vmatpush2.bf16.msra.mxu0 %v11940_v6  ;;  %v2056_v6 = vld [vmem:[#allocation2 + $0x8e0] sm:$0xff] }
 0x9bb   :  { %8662 = vmatprep.subr.bf16.mxu0 %v12189_v57  ;;  %v2184_v57 = vld [vmem:[#allocation2 + $0xce0] sm:$0xff]  ;;  %v12157_v28 = vcombine.high %v2052_v26, %v2056_v6 }
 0x9bc   :  { %8652 = vmatpush2.bf16.msra.mxu1 %v12068_v30  ;;  %v2180_v30 = vld [vmem:[#allocation2 + $0xcc0] sm:$0xff] }
 0x9bd   :  { %8703 = vmatprep.subr.bf16.mxu1 %v12317_v39  ;;  %v5808_v54 = vpop.f32.mrf.mxu0  ;;  %8613 = vmatmul.mubr.bf16.vlgmr.msra.gmra.mxu0 %v13879_v40  ;;  %v12164_v39 = vcombine.low %v2060_v63, %v2064_v4  ;;  %v12285_v47 = vcombine.high %v2180_v30, %v2184_v57  ;;  %v12284_v48 = vcombine.low %v2180_v30, %v2184_v57  ;;  %v2160_v63 = vld [vmem:[#allocation2 + $0xc20] sm:$0xff] }
 0x9be   :  { %v5809_v44 = vadd.f32 %v5808_v54, %v13870_v2  ;;  %8663 = vmatpush1.bf16.msra.mxu0 %v12188_v31  ;;  %8694 = vmatprep.mubr.bf16.mxu0 %v13889_v61  ;;  %v2048_v31 = vld [vmem:[#allocation2 + $0x8a0] sm:$0xff] }
 0x9bf   :  { %v5849_v15 = vpop.f32.mrf.mxu1  ;;  %8654 = vmatmul.mubr.bf16.vlgmr.msra.gmra.mxu1 %v13884_v29  ;;  %v5810_v24 = vpop.f32.mrf.mxu0  ;;  %8664 = vmatprep.subr.bf16.mxu0 %v12181_v49  ;;  %v2176_v49 = vld [vmem:[#allocation2 + $0xca0] sm:$0xff]  ;;  %v12149_v52 = vcombine.high %v2044_v37, %v2048_v31 }
 0x9c0   :  { %8704 = vmatpush1.bf16.msra.mxu1 %v12316_v46  ;;  %v13899_v38 = vadd.f32 %v5849_v15, %v5809_v44  ;;  %v5811_v58 = vadd.f32 %v5810_v24, %v13873_v5  ;;  %8735 = vmatprep.mubr.bf16.mxu1 %v13895_v1  ;;  %v12300_v5 = vcombine.low %v2196_v53, %v2200_v62  ;;  %v2172_v46 = vld [vmem:[#allocation2 + $0xc80] sm:$0xff] }
 0x9c1   :  { %v5851_v21 = vpop.f32.mrf.mxu1  ;;  %8705 = vmatprep.subr.bf16.mxu1 %v12309_v14  ;;  %v5812_v2 = vpop.f32.mrf.mxu0  ;;  %v12156_v14 = vcombine.low %v2052_v26, %v2056_v6  ;;  %v12277_v54 = vcombine.high %v2172_v46, %v2176_v49  ;;  %v2036_v53 = vld [vmem:[#allocation2 + $0x840] sm:$0xff]  ;;  %v12276_v24 = vcombine.low %v2172_v46, %v2176_v49 }
 0x9c2   :  { %v13904_v43 = vadd.f32 %v5851_v21, %v5811_v58  ;;  %8665 = vmatpush1.bf16.msra.mxu0 %v12180_v20  ;;  %v2040_v62 = vld [vmem:[#allocation2 + $0x860] sm:$0xff]  ;;  %v12148_v20 = vcombine.low %v2044_v37, %v2048_v31 }
 0x9c3   :  { %v5853_v9 = vpop.f32.mrf.mxu1  ;;  %v5813_v23 = vpop.f32.mrf.mxu0  ;;  %8666 = vmatprep.subr.bf16.mxu0 %v12173_v55  ;;  %v2164_v44 = vld [vmem:[#allocation2 + $0xc40] sm:$0xff]  ;;  %v12140_v4 = vcombine.low %v2036_v53, %v2040_v62 }
 0x9c4   :  { %8706 = vmatpush1.bf16.msra.mxu1 %v12308_v10  ;;  %v2168_v15 = vld [vmem:[#allocation2 + $0xc60] sm:$0xff]  ;;  %v12141_v10 = vcombine.high %v2036_v53, %v2040_v62 }
 0x9c5   :  { %v5854_v13 = vpop.f32.mrf.mxu1  ;;  %8707 = vmatprep.subr.bf16.mxu1 %v12301_v25  ;;  %v12269_v55 = vcombine.high %v2164_v44, %v2168_v15  ;;  %v2028_v58 = vld [vmem:[#allocation2 + $0x800] sm:$0xff]  ;;  %v12268_v2 = vcombine.low %v2164_v44, %v2168_v15 }
 0x9c6   :  { %8667 = vmatpush1.bf16.msra.mxu0 %v12172_v0  ;;  %v2032_v21 = vld [vmem:[#allocation2 + $0x820] sm:$0xff] }
 0x9c7   :  { %8668 = vmatprep.subr.bf16.mxu0 %v12165_v16  ;;  %v2156_v25 = vld [vmem:[#allocation2 + $0xc00] sm:$0xff]  ;;  %v12133_v22 = vcombine.high %v2028_v58, %v2032_v21  ;;  %v12132_v16 = vcombine.low %v2028_v58, %v2032_v21 }
 0x9c8   :  { %8708 = vmatpush1.bf16.msra.mxu1 %v12300_v5  ;;  %v12261_v7 = vcombine.high %v2156_v25, %v2160_v63  ;;  %v2148_v9 = vld [vmem:[#allocation2 + $0xbc0] sm:$0xff]  ;;  %v12260_v13 = vcombine.low %v2156_v25, %v2160_v63 }
 0x9c9   :  { %8709 = vmatprep.subr.bf16.mxu1 %v12293_v17  ;;  %v2152_v0 = vld [vmem:[#allocation2 + $0xbe0] sm:$0xff] }
 0x9ca   :  { %8669 = vmatpush1.bf16.msra.mxu0 %v12164_v39  ;;  %v2276_v23 = vld [vmem:[#allocation2 + $0xfc0] sm:$0xff]  ;;  %v12253_v17 = vcombine.high %v2148_v9, %v2152_v0 }
 0x9cb   :  { %8670 = vmatprep.subr.bf16.mxu0 %v12157_v28  ;;  %v2280_v5 = vld [vmem:[#allocation2 + $0xfe0] sm:$0xff] }
 0x9cc   :  { %8710 = vmatpush1.bf16.msra.mxu1 %v12292_v56  ;;  %v12381_v26 = vcombine.high %v2276_v23, %v2280_v5  ;;  %v2140_v6 = vld [vmem:[#allocation2 + $0xb80] sm:$0xff]  ;;  %v12252_v56 = vcombine.low %v2148_v9, %v2152_v0  ;;  %v12380_v28 = vcombine.low %v2276_v23, %v2280_v5 }
 0x9cd   :  { %8711 = vmatprep.subr.bf16.mxu1 %v12285_v47  ;;  %v2144_v30 = vld [vmem:[#allocation2 + $0xba0] sm:$0xff] }
 0x9ce   :  { %8671 = vmatpush1.bf16.msra.mxu0 %v12156_v14  ;;  %v2268_v57 = vld [vmem:[#allocation2 + $0xf80] sm:$0xff]  ;;  %v12245_v47 = vcombine.high %v2140_v6, %v2144_v30 }
 0x9cf   :  { %8672 = vmatprep.subr.bf16.mxu0 %v12149_v52  ;;  %v2272_v39 = vld [vmem:[#allocation2 + $0xfa0] sm:$0xff] }
 0x9d0   :  { %8712 = vmatpush1.bf16.msra.mxu1 %v12284_v48  ;;  %v12373_v37 = vcombine.high %v2268_v57, %v2272_v39  ;;  %v2132_v31 = vld [vmem:[#allocation2 + $0xb40] sm:$0xff]  ;;  %v12244_v48 = vcombine.low %v2140_v6, %v2144_v30  ;;  %v12372_v52 = vcombine.low %v2268_v57, %v2272_v39 }
 0x9d1   :  { %8713 = vmatprep.subr.bf16.mxu1 %v12277_v54  ;;  %v2136_v46 = vld [vmem:[#allocation2 + $0xb60] sm:$0xff] }
 0x9d2   :  { %8673 = vmatpush1.bf16.msra.mxu0 %v12148_v20  ;;  %v2260_v49 = vld [vmem:[#allocation2 + $0xf40] sm:$0xff]  ;;  %v12237_v54 = vcombine.high %v2132_v31, %v2136_v46 }
 0x9d3   :  { %8674 = vmatprep.subr.bf16.mxu0 %v12141_v10  ;;  %v2264_v14 = vld [vmem:[#allocation2 + $0xf60] sm:$0xff] }
 0x9d4   :  { %8714 = vmatpush1.bf16.msra.mxu1 %v12276_v24  ;;  %v12365_v53 = vcombine.high %v2260_v49, %v2264_v14  ;;  %v2124_v62 = vld [vmem:[#allocation2 + $0xb00] sm:$0xff]  ;;  %v12236_v24 = vcombine.low %v2132_v31, %v2136_v46  ;;  %v12364_v10 = vcombine.low %v2260_v49, %v2264_v14 }
 0x9d5   :  { %8715 = vmatprep.subr.bf16.mxu1 %v12269_v55  ;;  %v2128_v44 = vld [vmem:[#allocation2 + $0xb20] sm:$0xff] }
 0x9d6   :  { %8675 = vmatpush1.bf16.msra.mxu0 %v12140_v4  ;;  %v2252_v15 = vld [vmem:[#allocation2 + $0xf00] sm:$0xff]  ;;  %v12229_v55 = vcombine.high %v2124_v62, %v2128_v44 }
 0x9d7   :  { %8676 = vmatprep.subr.bf16.mxu0 %v12133_v22  ;;  %v2256_v20 = vld [vmem:[#allocation2 + $0xf20] sm:$0xff] }
 0x9d8   :  { %8716 = vmatpush1.bf16.msra.mxu1 %v12268_v2  ;;  %v12357_v58 = vcombine.high %v2252_v15, %v2256_v20  ;;  %v2116_v21 = vld [vmem:[#allocation2 + $0xac0] sm:$0xff]  ;;  %v12228_v2 = vcombine.low %v2124_v62, %v2128_v44  ;;  %v12356_v22 = vcombine.low %v2252_v15, %v2256_v20  ;;  %v1829_v44 = vld [vmem:[#allocation2 + $0x1c8] sm:$0xff] }
 0x9d9   :  { %8717 = vmatprep.subr.bf16.mxu1 %v12261_v7  ;;  %v2120_v25 = vld [vmem:[#allocation2 + $0xae0] sm:$0xff]  ;;  %v1833_v15 = vld [vmem:[#allocation2 + $0x1e8] sm:$0xff] }
 0x9da   :  { %8677 = vmatpush1.bf16.msra.mxu0 %v12132_v16  ;;  %v2244_v63 = vld [vmem:[#allocation2 + $0xec0] sm:$0xff]  ;;  %v12221_v7 = vcombine.high %v2116_v21, %v2120_v25  ;;  %v1957_v20 = vld [vmem:[#allocation2 + $0x5c8] sm:$0xff] }
 0x9db   :  { %8678 = vmatprep.subr.bf16.mxu0 %v12253_v17  ;;  %v2248_v4 = vld [vmem:[#allocation2 + $0xee0] sm:$0xff] }
 0x9dc   :  { %8718 = vmatpush1.bf16.msra.mxu1 %v12260_v13  ;;  %v12349_v9 = vcombine.high %v2244_v63, %v2248_v4  ;;  %v2108_v0 = vld [vmem:[#allocation2 + $0xa80] sm:$0xff]  ;;  %v12220_v13 = vcombine.low %v2116_v21, %v2120_v25  ;;  %v12348_v17 = vcombine.low %v2244_v63, %v2248_v4  ;;  %v1821_v25 = vld [vmem:[#allocation2 + $0x188] sm:$0xff]  ;;  %v13909_v4 = vpack.c.bf16 %v1344_v18, %v1344_v18 }
 0x9dd   :  { %8719 = vmatprep.subr.bf16.mxu1 %v12381_v26  ;;  %v2112_v23 = vld [vmem:[#allocation2 + $0xaa0] sm:$0xff]  ;;  %v1825_v63 = vld [vmem:[#allocation2 + $0x1a8] sm:$0xff] }
 0x9de   :  { %8679 = vmatpush2.bf16.msra.mxu0 %v12252_v56  ;;  %v2236_v5 = vld [vmem:[#allocation2 + $0xe80] sm:$0xff]  ;;  %v12213_v26 = vcombine.high %v2108_v0, %v2112_v23  ;;  %v1941_v18 = vld [vmem:[#allocation2 + $0x548] sm:$0xff]  ;;  %v11926_v12 = vcombine.low %v1821_v25, %v1825_v63 }
 0x9df   :  { %8680 = vmatprep.subr.bf16.mxu0 %v12245_v47  ;;  %v2240_v16 = vld [vmem:[#allocation2 + $0xea0] sm:$0xff] }
 0x9e0   :  { %8720 = vmatpush2.bf16.msra.mxu1 %v12380_v28  ;;  %v12341_v6 = vcombine.high %v2236_v5, %v2240_v16  ;;  %v2100_v30 = vld [vmem:[#allocation2 + $0xa40] sm:$0xff]  ;;  %v12212_v28 = vcombine.low %v2108_v0, %v2112_v23  ;;  %v12340_v47 = vcombine.low %v2236_v5, %v2240_v16  ;;  %v11927_v23 = vcombine.high %v1821_v25, %v1825_v63  ;;  %v1813_v16 = vld [vmem:[#allocation2 + $0x148] sm:$0xff] }
 0x9e1   :  { %8721 = vmatprep.subr.bf16.mxu1 %v12373_v37  ;;  %v2104_v57 = vld [vmem:[#allocation2 + $0xa60] sm:$0xff]  ;;  %v1789_v63 = vld [vmem:[#allocation2 + $0x88] sm:$0xff] }
 0x9e2   :  { %8681 = vmatpush2.bf16.msra.mxu0 %v12244_v48  ;;  %v2228_v39 = vld [vmem:[#allocation2 + $0xe40] sm:$0xff]  ;;  %v12205_v37 = vcombine.high %v2100_v30, %v2104_v57 }
 0x9e3   :  { %8682 = vmatprep.subr.bf16.mxu0 %v12237_v54  ;;  %v2232_v56 = vld [vmem:[#allocation2 + $0xe60] sm:$0xff] }
 0x9e4   :  { %8722 = vmatpush2.bf16.msra.mxu1 %v12372_v52  ;;  %v12333_v31 = vcombine.high %v2228_v39, %v2232_v56  ;;  %v2092_v46 = vld [vmem:[#allocation2 + $0xa00] sm:$0xff]  ;;  %v12204_v52 = vcombine.low %v2100_v30, %v2104_v57  ;;  %v12332_v54 = vcombine.low %v2228_v39, %v2232_v56  ;;  %v11919_v57 = vcombine.high %v1813_v16, %v1817_v11 }
 0x9e5   :  { %8723 = vmatprep.subr.bf16.mxu1 %v12365_v53  ;;  %v2096_v49 = vld [vmem:[#allocation2 + $0xa20] sm:$0xff] }
 0x9e6   :  { %8683 = vmatpush2.bf16.msra.mxu0 %v12236_v24  ;;  %v2220_v14 = vld [vmem:[#allocation2 + $0xe00] sm:$0xff]  ;;  %v12197_v53 = vcombine.high %v2092_v46, %v2096_v49  ;;  %v1961_v24 = vld [vmem:[#allocation2 + $0x5e8] sm:$0xff] }
 0x9e7   :  { %8684 = vmatprep.subr.bf16.mxu0 %v12229_v55  ;;  %v2224_v48 = vld [vmem:[#allocation2 + $0xe20] sm:$0xff]  ;;  %v12063_v21 = vcombine.high %v1957_v20, %v1961_v24  ;;  %v12062_v0 = vcombine.low %v1957_v20, %v1961_v24  ;;  %v1801_v20 = vld [vmem:[#allocation2 + $0xe8] sm:$0xff] }
 0x9e8   :  { %8724 = vmatpush2.bf16.msra.mxu1 %v12364_v10  ;;  %v12325_v62 = vcombine.high %v2220_v14, %v2224_v48  ;;  %v12196_v10 = vcombine.low %v2092_v46, %v2096_v49  ;;  %v12324_v55 = vcombine.low %v2220_v14, %v2224_v48  ;;  %v1933_v46 = vld [vmem:[#allocation2 + $0x508] sm:$0xff]  ;;  %v11918_v48 = vcombine.low %v1813_v16, %v1817_v11 }
 0x9e9   :  { %8725 = vmatprep.subr.bf16.mxu1 %v12357_v58  ;;  %v11935_v58 = vcombine.high %v1829_v44, %v1833_v15  ;;  %v1937_v49 = vld [vmem:[#allocation2 + $0x528] sm:$0xff] }
 0x9ea   :  { %8685 = vmatpush2.bf16.msra.mxu0 %v12228_v2  ;;  %v1949_v2 = vld [vmem:[#allocation2 + $0x588] sm:$0xff] }
 0x9eb   :  { %8686 = vmatprep.subr.bf16.mxu0 %v12221_v7  ;;  %v13914_v7 = vpack.c.bf16 %v1346_v19, %v1346_v19  ;;  %v1925_v24 = vld [vmem:[#allocation2 + $0x4c8] sm:$0xff] }
 0x9ec   :  { %8726 = vmatpush2.bf16.msra.mxu1 %v12356_v22  ;;  %v1953_v22 = vld [vmem:[#allocation2 + $0x5a8] sm:$0xff] }
 0x9ed   :  { %8727 = vmatprep.subr.bf16.mxu1 %v12349_v9  ;;  %v11934_v9 = vcombine.low %v1829_v44, %v1833_v15  ;;  %v12055_v5 = vcombine.high %v1949_v2, %v1953_v22  ;;  %v12054_v30 = vcombine.low %v1949_v2, %v1953_v22  ;;  %v12039_v44 = vcombine.high %v1933_v46, %v1937_v49  ;;  %v1797_v15 = vld [vmem:[#allocation2 + $0xc8] sm:$0xff] }
 0x9ee   :  { %8687 = vmatpush2.bf16.msra.mxu0 %v12220_v13  ;;  %v1793_v2 = vld [vmem:[#allocation2 + $0xa8] sm:$0xff] }
 0x9ef   :  { %8688 = vmatprep.subr.bf16.mxu0 %v12213_v26  ;;  %v1917_v22 = vld [vmem:[#allocation2 + $0x488] sm:$0xff] }
 0x9f0   :  { %8728 = vmatpush2.bf16.msra.mxu1 %v12348_v17  ;;  %v1945_v17 = vld [vmem:[#allocation2 + $0x568] sm:$0xff] }
 0x9f1   :  { %8729 = vmatprep.subr.bf16.mxu1 %v12341_v6  ;;  %v12047_v56 = vcombine.high %v1941_v18, %v1945_v17  ;;  %v1781_v11 = vld [vmem:[#allocation2 + $0x48] sm:$0xff] }
 0x9f2   :  { %8689 = vmatpush2.bf16.msra.mxu0 %v12212_v28  ;;  %v1805_v28 = vld [vmem:[#allocation2 + $0x108] sm:$0xff] }
 0x9f3   :  { %8690 = vmatprep.subr.bf16.mxu0 %v12205_v37 }
 0x9f4   :  { %8730 = vmatpush2.bf16.msra.mxu1 %v12340_v47  ;;  %v1809_v47 = vld [vmem:[#allocation2 + $0x128] sm:$0xff] }
 0x9f5   :  { %8731 = vmatprep.subr.bf16.mxu1 %v12333_v31 }
 0x9f6   :  { %8691 = vmatpush2.bf16.msra.mxu0 %v12204_v52 }
 0x9f7   :  { %8692 = vmatprep.subr.bf16.mxu0 %v12197_v53  ;;  %v11911_v53 = vcombine.high %v1805_v28, %v1809_v47 }
 0x9f8   :  { %8732 = vmatpush2.bf16.msra.mxu1 %v12332_v54  ;;  %v12046_v54 = vcombine.low %v1941_v18, %v1945_v17  ;;  %v1909_v18 = vld [vmem:[#allocation2 + $0x448] sm:$0xff] }
 0x9f9   :  { %8733 = vmatprep.subr.bf16.mxu1 %v12325_v62  ;;  %v1913_v17 = vld [vmem:[#allocation2 + $0x468] sm:$0xff] }
 0x9fa   :  { %8693 = vmatpush2.bf16.msra.mxu0 %v12196_v10  ;;  %v1929_v10 = vld [vmem:[#allocation2 + $0x4e8] sm:$0xff] }
 0x9fb   :  { %8744 = vmatprep.subr.bf16.mxu0 %v11935_v58  ;;  %v12038_v58 = vcombine.low %v1933_v46, %v1937_v49  ;;  %v12031_v25 = vcombine.high %v1925_v24, %v1929_v10 }
 0x9fc   :  { %8734 = vmatpush2.bf16.msra.mxu1 %v12324_v55  ;;  %v11910_v55 = vcombine.low %v1805_v28, %v1809_v47  ;;  %v1905_v28 = vld [vmem:[#allocation2 + $0x428] sm:$0xff] }
 0x9fd   :  { %8785 = vmatprep.subr.bf16.mxu1 %v12063_v21  ;;  %v5890_v13 = vpop.f32.mrf.mxu0  ;;  %8695 = vmatmul.mubr.bf16.vlgmr.msra.gmra.mxu0 %v13909_v4  ;;  %v11903_v21 = vcombine.high %v1797_v15, %v1801_v20 }
 0x9fe   :  { %8745 = vmatpush1.bf16.msra.mxu0 %v11934_v9  ;;  %8776 = vmatprep.mubr.bf16.mxu0 %v13861_v59  ;;  %v1921_v9 = vld [vmem:[#allocation2 + $0x4a8] sm:$0xff] }
 0x9ff   :  { %v5931_v26 = vpop.f32.mrf.mxu1  ;;  %8736 = vmatmul.mubr.bf16.vlgmr.msra.gmra.mxu1 %v13914_v7  ;;  %v5892_v6 = vpop.f32.mrf.mxu0  ;;  %8746 = vmatprep.subr.bf16.mxu0 %v11927_v23  ;;  %v12030_v23 = vcombine.low %v1925_v24, %v1929_v10  ;;  %v12023_v16 = vcombine.high %v1917_v22, %v1921_v9  ;;  %v1889_v24 = vld [vmem:[#allocation2 + $0x3a8] sm:$0xff] }
 0xa00   :  { %v13918_v19 = vadd.f32 %v5931_v26, %v5890_v13  ;;  %8786 = vmatpush1.bf16.msra.mxu1 %v12062_v0  ;;  %8817 = vmatprep.mubr.bf16.mxu1 %v13867_v8  ;;  %v11902_v0 = vcombine.low %v1797_v15, %v1801_v20  ;;  %v1785_v13 = vld [vmem:[#allocation2 + $0x68] sm:$0xff]  ;;  %v11894_v26 = vcombine.low %v1789_v63, %v1793_v2 }
 0xa01   :  { %v5933_v39 = vpop.f32.mrf.mxu1  ;;  %8787 = vmatprep.subr.bf16.mxu1 %v12055_v5  ;;  %v5894_v31 = vpop.f32.mrf.mxu0  ;;  %v11895_v5 = vcombine.high %v1789_v63, %v1793_v2  ;;  %v11886_v47 = vcombine.low %v1781_v11, %v1785_v13  ;;  %v1885_v20 = vld [vmem:[#allocation2 + $0x388] sm:$0xff] }
 0xa02   :  { %v13921_v37 = vadd.f32 %v5933_v39, %v5892_v6  ;;  %8747 = vmatpush1.bf16.msra.mxu0 %v11926_v12  ;;  %v12022_v12 = vcombine.low %v1917_v22, %v1921_v9  ;;  %v11887_v6 = vcombine.high %v1781_v11, %v1785_v13  ;;  %v1777_v39 = vld [vmem:[#allocation2 + $0x28] sm:$0xff]  ;;  %v12014_v31 = vcombine.low %v1909_v18, %v1913_v17 }
 0xa03   :  { %v5935_v14 = vpop.f32.mrf.mxu1  ;;  %v5895_v52 = vpop.f32.mrf.mxu0  ;;  %8748 = vmatprep.subr.bf16.mxu0 %v11919_v57  ;;  %v1773_v57 = vld [vmem:[#allocation2 + $0x8] sm:$0xff] }
 0xa04   :  { %8788 = vmatpush1.bf16.msra.mxu1 %v12054_v30  ;;  %v12015_v30 = vcombine.high %v1909_v18, %v1913_v17  ;;  %v11879_v46 = vcombine.high %v1773_v57, %v1777_v39  ;;  %v1893_v14 = vld [vmem:[#allocation2 + $0x3c8] sm:$0xff] }
 0xa05   :  { %v5936_v62 = vpop.f32.mrf.mxu1  ;;  %8789 = vmatprep.subr.bf16.mxu1 %v12047_v56  ;;  %v1901_v56 = vld [vmem:[#allocation2 + $0x408] sm:$0xff] }
 0xa06   :  { %8749 = vmatpush1.bf16.msra.mxu0 %v11918_v48  ;;  %v12007_v49 = vcombine.high %v1901_v56, %v1905_v28  ;;  %v1897_v48 = vld [vmem:[#allocation2 + $0x3e8] sm:$0xff]  ;;  %v12006_v62 = vcombine.low %v1901_v56, %v1905_v28 }
 0xa07   :  { %8750 = vmatprep.subr.bf16.mxu0 %v11911_v53  ;;  %v2021_v52 = vld [vmem:[#allocation2 + $0x7c8] sm:$0xff]  ;;  %v11878_v53 = vcombine.low %v1773_v57, %v1777_v39 }
 0xa08   :  { %8790 = vmatpush1.bf16.msra.mxu1 %v12046_v54  ;;  %v2025_v54 = vld [vmem:[#allocation2 + $0x7e8] sm:$0xff] }
 0xa09   :  { %8791 = vmatprep.subr.bf16.mxu1 %v12039_v44  ;;  %v11999_v44 = vcombine.high %v1893_v14, %v1897_v48  ;;  %v12127_v15 = vcombine.high %v2021_v52, %v2025_v54  ;;  %v2013_v10 = vld [vmem:[#allocation2 + $0x788] sm:$0xff] }
 0xa0a   :  { %8751 = vmatpush1.bf16.msra.mxu0 %v11910_v55  ;;  %v2017_v55 = vld [vmem:[#allocation2 + $0x7a8] sm:$0xff] }
 0xa0b   :  { %8752 = vmatprep.subr.bf16.mxu0 %v11903_v21  ;;  %v12126_v21 = vcombine.low %v2021_v52, %v2025_v54  ;;  %v12119_v63 = vcombine.high %v2013_v10, %v2017_v55  ;;  %v1877_v2 = vld [vmem:[#allocation2 + $0x348] sm:$0xff] }
 0xa0c   :  { %8792 = vmatpush1.bf16.msra.mxu1 %v12038_v58  ;;  %v11998_v58 = vcombine.low %v1893_v14, %v1897_v48  ;;  %v1881_v22 = vld [vmem:[#allocation2 + $0x368] sm:$0xff] }
 0xa0d   :  { %8793 = vmatprep.subr.bf16.mxu1 %v12031_v25  ;;  %v11991_v25 = vcombine.high %v1885_v20, %v1889_v24  ;;  %v2005_v9 = vld [vmem:[#allocation2 + $0x748] sm:$0xff] }
 0xa0e   :  { %8753 = vmatpush1.bf16.msra.mxu0 %v11902_v0  ;;  %v2009_v0 = vld [vmem:[#allocation2 + $0x768] sm:$0xff] }
 0xa0f   :  { %8754 = vmatprep.subr.bf16.mxu0 %v11895_v5  ;;  %v12118_v5 = vcombine.low %v2013_v10, %v2017_v55  ;;  %v12111_v11 = vcombine.high %v2005_v9, %v2009_v0  ;;  %v1869_v13 = vld [vmem:[#allocation2 + $0x308] sm:$0xff] }
 0xa10   :  { %8794 = vmatpush1.bf16.msra.mxu1 %v12030_v23  ;;  %v11990_v23 = vcombine.low %v1885_v20, %v1889_v24  ;;  %v1873_v18 = vld [vmem:[#allocation2 + $0x328] sm:$0xff] }
 0xa11   :  { %8795 = vmatprep.subr.bf16.mxu1 %v12023_v16  ;;  %v11983_v16 = vcombine.high %v1877_v2, %v1881_v22  ;;  %v1997_v17 = vld [vmem:[#allocation2 + $0x708] sm:$0xff] }
 0xa12   :  { %8755 = vmatpush1.bf16.msra.mxu0 %v11894_v26  ;;  %v2001_v26 = vld [vmem:[#allocation2 + $0x728] sm:$0xff] }
 0xa13   :  { %8756 = vmatprep.subr.bf16.mxu0 %v11887_v6  ;;  %v12110_v6 = vcombine.low %v2005_v9, %v2009_v0  ;;  %v12103_v57 = vcombine.high %v1997_v17, %v2001_v26  ;;  %v1861_v39 = vld [vmem:[#allocation2 + $0x2c8] sm:$0xff] }
 0xa14   :  { %8796 = vmatpush1.bf16.msra.mxu1 %v12022_v12  ;;  %v11982_v12 = vcombine.low %v1877_v2, %v1881_v22  ;;  %v1865_v56 = vld [vmem:[#allocation2 + $0x2e8] sm:$0xff] }
 0xa15   :  { %8797 = vmatprep.subr.bf16.mxu1 %v12015_v30  ;;  %v11975_v30 = vcombine.high %v1869_v13, %v1873_v18  ;;  %v1989_v28 = vld [vmem:[#allocation2 + $0x6c8] sm:$0xff] }
 0xa16   :  { %8757 = vmatpush1.bf16.msra.mxu0 %v11886_v47  ;;  %v1993_v47 = vld [vmem:[#allocation2 + $0x6e8] sm:$0xff] }
 0xa17   :  { %8758 = vmatprep.subr.bf16.mxu0 %v11879_v46  ;;  %v12102_v46 = vcombine.low %v1997_v17, %v2001_v26  ;;  %v12095_v14 = vcombine.high %v1989_v28, %v1993_v47  ;;  %v1853_v48 = vld [vmem:[#allocation2 + $0x288] sm:$0xff] }
 0xa18   :  { %8798 = vmatpush1.bf16.msra.mxu1 %v12014_v31  ;;  %v11974_v31 = vcombine.low %v1869_v13, %v1873_v18  ;;  %v1857_v52 = vld [vmem:[#allocation2 + $0x2a8] sm:$0xff] }
 0xa19   :  { %8799 = vmatprep.subr.bf16.mxu1 %v12007_v49  ;;  %v11967_v49 = vcombine.high %v1861_v39, %v1865_v56  ;;  %v1981_v54 = vld [vmem:[#allocation2 + $0x688] sm:$0xff] }
 0xa1a   :  { %8759 = vmatpush1.bf16.msra.mxu0 %v11878_v53  ;;  %v1985_v53 = vld [vmem:[#allocation2 + $0x6a8] sm:$0xff] }
 0xa1b   :  { %8760 = vmatprep.subr.bf16.mxu0 %v11999_v44  ;;  %v12094_v44 = vcombine.low %v1989_v28, %v1993_v47  ;;  %v12087_v20 = vcombine.high %v1981_v54, %v1985_v53  ;;  %v1845_v24 = vld [vmem:[#allocation2 + $0x248] sm:$0xff] }
 0xa1c   :  { %8800 = vmatpush1.bf16.msra.mxu1 %v12006_v62  ;;  %v11966_v62 = vcombine.low %v1861_v39, %v1865_v56  ;;  %v1849_v10 = vld [vmem:[#allocation2 + $0x268] sm:$0xff] }
 0xa1d   :  { %8801 = vmatprep.subr.bf16.mxu1 %v12127_v15  ;;  %v11959_v15 = vcombine.high %v1853_v48, %v1857_v52  ;;  %v1973_v55 = vld [vmem:[#allocation2 + $0x648] sm:$0xff] }
 0xa1e   :  { %8761 = vmatpush2.bf16.msra.mxu0 %v11998_v58  ;;  %v1977_v58 = vld [vmem:[#allocation2 + $0x668] sm:$0xff] }
 0xa1f   :  { %8762 = vmatprep.subr.bf16.mxu0 %v11991_v25  ;;  %v12086_v25 = vcombine.low %v1981_v54, %v1985_v53  ;;  %v12079_v2 = vcombine.high %v1973_v55, %v1977_v58  ;;  %v1837_v22 = vld [vmem:[#allocation2 + $0x208] sm:$0xff] }
 0xa20   :  { %8802 = vmatpush2.bf16.msra.mxu1 %v12126_v21  ;;  %v11958_v21 = vcombine.low %v1853_v48, %v1857_v52  ;;  %v1841_v9 = vld [vmem:[#allocation2 + $0x228] sm:$0xff] }
 0xa21   :  { %8803 = vmatprep.subr.bf16.mxu1 %v12119_v63  ;;  %v11951_v63 = vcombine.high %v1845_v24, %v1849_v10  ;;  %v1965_v0 = vld [vmem:[#allocation2 + $0x608] sm:$0xff] }
 0xa22   :  { %8763 = vmatpush2.bf16.msra.mxu0 %v11990_v23  ;;  %v1969_v23 = vld [vmem:[#allocation2 + $0x628] sm:$0xff] }
 0xa23   :  { %8764 = vmatprep.subr.bf16.mxu0 %v11983_v16  ;;  %v12078_v16 = vcombine.low %v1973_v55, %v1977_v58  ;;  %v12071_v13 = vcombine.high %v1965_v0, %v1969_v23  ;;  %v2085_v18 = vld [vmem:[#allocation2 + $0x9c8] sm:$0xff] }
 0xa24   :  { %8804 = vmatpush2.bf16.msra.mxu1 %v12118_v5  ;;  %v11950_v5 = vcombine.low %v1845_v24, %v1849_v10  ;;  %v2089_v17 = vld [vmem:[#allocation2 + $0x9e8] sm:$0xff] }
 0xa25   :  { %8805 = vmatprep.subr.bf16.mxu1 %v12111_v11  ;;  %v11943_v11 = vcombine.high %v1837_v22, %v1841_v9  ;;  %v2213_v26 = vld [vmem:[#allocation2 + $0xdc8] sm:$0xff] }
 0xa26   :  { %8765 = vmatpush2.bf16.msra.mxu0 %v11982_v12  ;;  %v2217_v12 = vld [vmem:[#allocation2 + $0xde8] sm:$0xff] }
 0xa27   :  { %8766 = vmatprep.subr.bf16.mxu0 %v11975_v30  ;;  %v12070_v30 = vcombine.low %v1965_v0, %v1969_v23  ;;  %v12319_v39 = vcombine.high %v2213_v26, %v2217_v12  ;;  %v2077_v56 = vld [vmem:[#allocation2 + $0x988] sm:$0xff] }
 0xa28   :  { %8806 = vmatpush2.bf16.msra.mxu1 %v12110_v6  ;;  %v11942_v6 = vcombine.low %v1837_v22, %v1841_v9  ;;  %v2081_v28 = vld [vmem:[#allocation2 + $0x9a8] sm:$0xff] }
 0xa29   :  { %8807 = vmatprep.subr.bf16.mxu1 %v12103_v57  ;;  %v12191_v57 = vcombine.high %v2085_v18, %v2089_v17  ;;  %v2205_v47 = vld [vmem:[#allocation2 + $0xd88] sm:$0xff]  ;;  %v12182_v24 = vcombine.low %v2077_v56, %v2081_v28 }
 0xa2a   :  { %8767 = vmatpush2.bf16.msra.mxu0 %v11974_v31  ;;  %v2209_v31 = vld [vmem:[#allocation2 + $0xda8] sm:$0xff] }
 0xa2b   :  { %8768 = vmatprep.subr.bf16.mxu0 %v11967_v49  ;;  %v12318_v49 = vcombine.low %v2213_v26, %v2217_v12  ;;  %v12311_v48 = vcombine.high %v2205_v47, %v2209_v31  ;;  %v2069_v52 = vld [vmem:[#allocation2 + $0x948] sm:$0xff]  ;;  %v12310_v55 = vcombine.low %v2205_v47, %v2209_v31 }
 0xa2c   :  { %8808 = vmatpush2.bf16.msra.mxu1 %v12102_v46  ;;  %v12190_v46 = vcombine.low %v2085_v18, %v2089_v17  ;;  %v2073_v54 = vld [vmem:[#allocation2 + $0x968] sm:$0xff] }
 0xa2d   :  { %8809 = vmatprep.subr.bf16.mxu1 %v12095_v14  ;;  %v12183_v14 = vcombine.high %v2077_v56, %v2081_v28  ;;  %v12175_v58 = vcombine.high %v2069_v52, %v2073_v54  ;;  %v2061_v22 = vld [vmem:[#allocation2 + $0x908] sm:$0xff] }
 0xa2e   :  { %8769 = vmatpush2.bf16.msra.mxu0 %v11966_v62  ;;  %v2197_v62 = vld [vmem:[#allocation2 + $0xd48] sm:$0xff] }
 0xa2f   :  { %8770 = vmatprep.subr.bf16.mxu0 %v11959_v15  ;;  %v2065_v9 = vld [vmem:[#allocation2 + $0x928] sm:$0xff] }
 0xa30   :  { %8810 = vmatpush2.bf16.msra.mxu1 %v12094_v44  ;;  %v2201_v44 = vld [vmem:[#allocation2 + $0xd68] sm:$0xff]  ;;  %v12167_v18 = vcombine.high %v2061_v22, %v2065_v9 }
 0xa31   :  { %8811 = vmatprep.subr.bf16.mxu1 %v12087_v20  ;;  %v2189_v0 = vld [vmem:[#allocation2 + $0xd08] sm:$0xff] }
 0xa32   :  { %8771 = vmatpush2.bf16.msra.mxu0 %v11958_v21  ;;  %v2193_v23 = vld [vmem:[#allocation2 + $0xd28] sm:$0xff] }
 0xa33   :  { %8772 = vmatprep.subr.bf16.mxu0 %v11951_v63  ;;  %v12295_v26 = vcombine.high %v2189_v0, %v2193_v23  ;;  %v2053_v12 = vld [vmem:[#allocation2 + $0x8c8] sm:$0xff]  ;;  %v12294_v56 = vcombine.low %v2189_v0, %v2193_v23 }
 0xa34   :  { %8812 = vmatpush2.bf16.msra.mxu1 %v12086_v25  ;;  %v2045_v31 = vld [vmem:[#allocation2 + $0x888] sm:$0xff] }
 0xa35   :  { %8813 = vmatprep.subr.bf16.mxu1 %v12079_v2  ;;  %v12303_v2 = vcombine.high %v2197_v62, %v2201_v44 }
 0xa36   :  { %8773 = vmatpush2.bf16.msra.mxu0 %v11950_v5 }
 0xa37   :  { %8774 = vmatprep.subr.bf16.mxu0 %v11943_v11  ;;  %v12174_v11 = vcombine.low %v2069_v52, %v2073_v54 }
 0xa38   :  { %8814 = vmatpush2.bf16.msra.mxu1 %v12078_v16 }
 0xa39   :  { %8815 = vmatprep.subr.bf16.mxu1 %v12071_v13 }
 0xa3a   :  { %8775 = vmatpush2.bf16.msra.mxu0 %v11942_v6  ;;  %v2057_v6 = vld [vmem:[#allocation2 + $0x8e8] sm:$0xff] }
 0xa3b   :  { %8826 = vmatprep.subr.bf16.mxu0 %v12191_v57  ;;  %v2185_v57 = vld [vmem:[#allocation2 + $0xce8] sm:$0xff]  ;;  %v12159_v28 = vcombine.high %v2053_v12, %v2057_v6 }
 0xa3c   :  { %8816 = vmatpush2.bf16.msra.mxu1 %v12070_v30  ;;  %v2181_v30 = vld [vmem:[#allocation2 + $0xcc8] sm:$0xff] }
 0xa3d   :  { %8867 = vmatprep.subr.bf16.mxu1 %v12319_v39  ;;  %v5972_v53 = vpop.f32.mrf.mxu0  ;;  %8777 = vmatmul.mubr.bf16.vlgmr.msra.gmra.mxu0 %v13879_v40  ;;  %v12166_v39 = vcombine.low %v2061_v22, %v2065_v9  ;;  %v12287_v47 = vcombine.high %v2181_v30, %v2185_v57  ;;  %v12286_v52 = vcombine.low %v2181_v30, %v2185_v57  ;;  %v2161_v22 = vld [vmem:[#allocation2 + $0xc28] sm:$0xff] }
 0xa3e   :  { %v5973_v15 = vadd.f32 %v5972_v53, %v13918_v19  ;;  %8827 = vmatpush1.bf16.msra.mxu0 %v12190_v46  ;;  %8858 = vmatprep.mubr.bf16.mxu0 %v13889_v61  ;;  %v2049_v46 = vld [vmem:[#allocation2 + $0x8a8] sm:$0xff] }
 0xa3f   :  { %v6013_v20 = vpop.f32.mrf.mxu1  ;;  %8818 = vmatmul.mubr.bf16.vlgmr.msra.gmra.mxu1 %v13884_v29  ;;  %v5974_v10 = vpop.f32.mrf.mxu0  ;;  %8828 = vmatprep.subr.bf16.mxu0 %v12183_v14  ;;  %v2177_v14 = vld [vmem:[#allocation2 + $0xca8] sm:$0xff]  ;;  %v12151_v54 = vcombine.high %v2045_v31, %v2049_v46 }
 0xa40   :  { %8868 = vmatpush1.bf16.msra.mxu1 %v12318_v49  ;;  %v13927_v21 = vadd.f32 %v6013_v20, %v5973_v15  ;;  %v5975_v25 = vadd.f32 %v5974_v10, %v13921_v37  ;;  %8899 = vmatprep.mubr.bf16.mxu1 %v13895_v1  ;;  %v12302_v37 = vcombine.low %v2197_v62, %v2201_v44  ;;  %v2173_v49 = vld [vmem:[#allocation2 + $0xc88] sm:$0xff] }
 0xa41   :  { %v6015_v63 = vpop.f32.mrf.mxu1  ;;  %8869 = vmatprep.subr.bf16.mxu1 %v12311_v48  ;;  %v5976_v19 = vpop.f32.mrf.mxu0  ;;  %v12158_v48 = vcombine.low %v2053_v12, %v2057_v6  ;;  %v12279_v53 = vcombine.high %v2173_v49, %v2177_v14  ;;  %v2037_v62 = vld [vmem:[#allocation2 + $0x848] sm:$0xff]  ;;  %v12278_v10 = vcombine.low %v2173_v49, %v2177_v14 }
 0xa42   :  { %v13932_v5 = vadd.f32 %v6015_v63, %v5975_v25  ;;  %8829 = vmatpush1.bf16.msra.mxu0 %v12182_v24  ;;  %v2041_v44 = vld [vmem:[#allocation2 + $0x868] sm:$0xff]  ;;  %v12150_v24 = vcombine.low %v2045_v31, %v2049_v46 }
 0xa43   :  { %v6017_v16 = vpop.f32.mrf.mxu1  ;;  %v5977_v13 = vpop.f32.mrf.mxu0  ;;  %8830 = vmatprep.subr.bf16.mxu0 %v12175_v58  ;;  %v2165_v15 = vld [vmem:[#allocation2 + $0xc48] sm:$0xff]  ;;  %v12142_v9 = vcombine.low %v2037_v62, %v2041_v44 }
 0xa44   :  { %8870 = vmatpush1.bf16.msra.mxu1 %v12310_v55  ;;  %v2169_v20 = vld [vmem:[#allocation2 + $0xc68] sm:$0xff]  ;;  %v12143_v55 = vcombine.high %v2037_v62, %v2041_v44 }
 0xa45   :  { %v6018_v17 = vpop.f32.mrf.mxu1  ;;  %8871 = vmatprep.subr.bf16.mxu1 %v12303_v2  ;;  %v12271_v58 = vcombine.high %v2165_v15, %v2169_v20  ;;  %v2029_v25 = vld [vmem:[#allocation2 + $0x808] sm:$0xff]  ;;  %v12270_v19 = vcombine.low %v2165_v15, %v2169_v20 }
 0xa46   :  { %8831 = vmatpush1.bf16.msra.mxu0 %v12174_v11  ;;  %v2033_v63 = vld [vmem:[#allocation2 + $0x828] sm:$0xff] }
 0xa47   :  { %8832 = vmatprep.subr.bf16.mxu0 %v12167_v18  ;;  %v2157_v2 = vld [vmem:[#allocation2 + $0xc08] sm:$0xff]  ;;  %v12135_v0 = vcombine.high %v2029_v25, %v2033_v63  ;;  %v12134_v18 = vcombine.low %v2029_v25, %v2033_v63 }
 0xa48   :  { %8872 = vmatpush1.bf16.msra.mxu1 %v12302_v37  ;;  %v12263_v23 = vcombine.high %v2157_v2, %v2161_v22  ;;  %v2149_v16 = vld [vmem:[#allocation2 + $0xbc8] sm:$0xff]  ;;  %v12262_v17 = vcombine.low %v2157_v2, %v2161_v22 }
 0xa49   :  { %8873 = vmatprep.subr.bf16.mxu1 %v12295_v26  ;;  %v2153_v11 = vld [vmem:[#allocation2 + $0xbe8] sm:$0xff] }
 0xa4a   :  { %8833 = vmatpush1.bf16.msra.mxu0 %v12166_v39  ;;  %v2277_v13 = vld [vmem:[#allocation2 + $0xfc8] sm:$0xff]  ;;  %v12255_v26 = vcombine.high %v2149_v16, %v2153_v11 }
 0xa4b   :  { %8834 = vmatprep.subr.bf16.mxu0 %v12159_v28  ;;  %v2281_v37 = vld [vmem:[#allocation2 + $0xfe8] sm:$0xff] }
 0xa4c   :  { %8874 = vmatpush1.bf16.msra.mxu1 %v12294_v56  ;;  %v12383_v12 = vcombine.high %v2277_v13, %v2281_v37  ;;  %v2141_v6 = vld [vmem:[#allocation2 + $0xb88] sm:$0xff]  ;;  %v12254_v56 = vcombine.low %v2149_v16, %v2153_v11  ;;  %v12382_v28 = vcombine.low %v2277_v13, %v2281_v37 }
 0xa4d   :  { %8875 = vmatprep.subr.bf16.mxu1 %v12287_v47  ;;  %v2145_v30 = vld [vmem:[#allocation2 + $0xba8] sm:$0xff] }
 0xa4e   :  { %8835 = vmatpush1.bf16.msra.mxu0 %v12158_v48  ;;  %v2269_v57 = vld [vmem:[#allocation2 + $0xf88] sm:$0xff]  ;;  %v12247_v47 = vcombine.high %v2141_v6, %v2145_v30 }
 0xa4f   :  { %8836 = vmatprep.subr.bf16.mxu0 %v12151_v54  ;;  %v2273_v39 = vld [vmem:[#allocation2 + $0xfa8] sm:$0xff] }
 0xa50   :  { %8876 = vmatpush1.bf16.msra.mxu1 %v12286_v52  ;;  %v12375_v31 = vcombine.high %v2269_v57, %v2273_v39  ;;  %v2133_v46 = vld [vmem:[#allocation2 + $0xb48] sm:$0xff]  ;;  %v12246_v52 = vcombine.low %v2141_v6, %v2145_v30  ;;  %v12374_v54 = vcombine.low %v2269_v57, %v2273_v39 }
 0xa51   :  { %8877 = vmatprep.subr.bf16.mxu1 %v12279_v53  ;;  %v2137_v49 = vld [vmem:[#allocation2 + $0xb68] sm:$0xff] }
 0xa52   :  { %8837 = vmatpush1.bf16.msra.mxu0 %v12150_v24  ;;  %v2261_v14 = vld [vmem:[#allocation2 + $0xf48] sm:$0xff]  ;;  %v12239_v53 = vcombine.high %v2133_v46, %v2137_v49 }
 0xa53   :  { %8838 = vmatprep.subr.bf16.mxu0 %v12143_v55  ;;  %v2265_v48 = vld [vmem:[#allocation2 + $0xf68] sm:$0xff] }
 0xa54   :  { %8878 = vmatpush1.bf16.msra.mxu1 %v12278_v10  ;;  %v12367_v62 = vcombine.high %v2261_v14, %v2265_v48  ;;  %v2125_v44 = vld [vmem:[#allocation2 + $0xb08] sm:$0xff]  ;;  %v12238_v10 = vcombine.low %v2133_v46, %v2137_v49  ;;  %v12366_v55 = vcombine.low %v2261_v14, %v2265_v48 }
 0xa55   :  { %8879 = vmatprep.subr.bf16.mxu1 %v12271_v58  ;;  %v2129_v15 = vld [vmem:[#allocation2 + $0xb28] sm:$0xff] }
 0xa56   :  { %8839 = vmatpush1.bf16.msra.mxu0 %v12142_v9  ;;  %v2253_v20 = vld [vmem:[#allocation2 + $0xf08] sm:$0xff]  ;;  %v12231_v58 = vcombine.high %v2125_v44, %v2129_v15 }
 0xa57   :  { %8840 = vmatprep.subr.bf16.mxu0 %v12135_v0  ;;  %v2257_v24 = vld [vmem:[#allocation2 + $0xf28] sm:$0xff] }
 0xa58   :  { %8880 = vmatpush1.bf16.msra.mxu1 %v12270_v19  ;;  %v12359_v25 = vcombine.high %v2253_v20, %v2257_v24  ;;  %v2117_v63 = vld [vmem:[#allocation2 + $0xac8] sm:$0xff]  ;;  %v12230_v19 = vcombine.low %v2125_v44, %v2129_v15  ;;  %v12358_v0 = vcombine.low %v2253_v20, %v2257_v24  ;;  %v1830_v15 = vld [vmem:[#allocation2 + $0x1d0] sm:$0xff] }
 0xa59   :  { %8881 = vmatprep.subr.bf16.mxu1 %v12263_v23  ;;  %v2121_v2 = vld [vmem:[#allocation2 + $0xae8] sm:$0xff]  ;;  %v1834_v20 = vld [vmem:[#allocation2 + $0x1f0] sm:$0xff] }
 0xa5a   :  { %8841 = vmatpush1.bf16.msra.mxu0 %v12134_v18  ;;  %v2245_v22 = vld [vmem:[#allocation2 + $0xec8] sm:$0xff]  ;;  %v12223_v23 = vcombine.high %v2117_v63, %v2121_v2  ;;  %v1958_v24 = vld [vmem:[#allocation2 + $0x5d0] sm:$0xff] }
 0xa5b   :  { %8842 = vmatprep.subr.bf16.mxu0 %v12255_v26  ;;  %v2249_v9 = vld [vmem:[#allocation2 + $0xee8] sm:$0xff] }
 0xa5c   :  { %8882 = vmatpush1.bf16.msra.mxu1 %v12262_v17  ;;  %v12351_v16 = vcombine.high %v2245_v22, %v2249_v9  ;;  %v2109_v11 = vld [vmem:[#allocation2 + $0xa88] sm:$0xff]  ;;  %v12222_v17 = vcombine.low %v2117_v63, %v2121_v2  ;;  %v12350_v26 = vcombine.low %v2245_v22, %v2249_v9  ;;  %v1822_v2 = vld [vmem:[#allocation2 + $0x190] sm:$0xff] }
 0xa5d   :  { %8883 = vmatprep.subr.bf16.mxu1 %v12383_v12  ;;  %v2113_v13 = vld [vmem:[#allocation2 + $0xaa8] sm:$0xff]  ;;  %v1826_v22 = vld [vmem:[#allocation2 + $0x1b0] sm:$0xff] }
 0xa5e   :  { %8843 = vmatpush2.bf16.msra.mxu0 %v12254_v56  ;;  %v2237_v37 = vld [vmem:[#allocation2 + $0xe88] sm:$0xff]  ;;  %v12215_v12 = vcombine.high %v2109_v11, %v2113_v13  ;;  %v1950_v9 = vld [vmem:[#allocation2 + $0x590] sm:$0xff] }
 0xa5f   :  { %8844 = vmatprep.subr.bf16.mxu0 %v12247_v47  ;;  %v2241_v18 = vld [vmem:[#allocation2 + $0xea8] sm:$0xff] }
 0xa60   :  { %8884 = vmatpush2.bf16.msra.mxu1 %v12382_v28  ;;  %v12343_v6 = vcombine.high %v2237_v37, %v2241_v18  ;;  %v2101_v30 = vld [vmem:[#allocation2 + $0xa48] sm:$0xff]  ;;  %v12214_v28 = vcombine.low %v2109_v11, %v2113_v13  ;;  %v12342_v47 = vcombine.low %v2237_v37, %v2241_v18  ;;  %v1814_v13 = vld [vmem:[#allocation2 + $0x150] sm:$0xff] }
 0xa61   :  { %8885 = vmatprep.subr.bf16.mxu1 %v12375_v31  ;;  %v2105_v57 = vld [vmem:[#allocation2 + $0xa68] sm:$0xff]  ;;  %v1818_v37 = vld [vmem:[#allocation2 + $0x170] sm:$0xff] }
 0xa62   :  { %8845 = vmatpush2.bf16.msra.mxu0 %v12246_v52  ;;  %v2229_v39 = vld [vmem:[#allocation2 + $0xe48] sm:$0xff]  ;;  %v12207_v31 = vcombine.high %v2101_v30, %v2105_v57 }
 0xa63   :  { %8846 = vmatprep.subr.bf16.mxu0 %v12239_v53  ;;  %v2233_v56 = vld [vmem:[#allocation2 + $0xe68] sm:$0xff] }
 0xa64   :  { %8886 = vmatpush2.bf16.msra.mxu1 %v12374_v54  ;;  %v12335_v46 = vcombine.high %v2229_v39, %v2233_v56  ;;  %v2093_v49 = vld [vmem:[#allocation2 + $0xa08] sm:$0xff]  ;;  %v12206_v54 = vcombine.low %v2101_v30, %v2105_v57  ;;  %v12334_v53 = vcombine.low %v2229_v39, %v2233_v56  ;;  %v11928_v30 = vcombine.low %v1822_v2, %v1826_v22 }
 0xa65   :  { %8887 = vmatprep.subr.bf16.mxu1 %v12367_v62  ;;  %v2097_v14 = vld [vmem:[#allocation2 + $0xa28] sm:$0xff]  ;;  %v11921_v56 = vcombine.high %v1814_v13, %v1818_v37 }
 0xa66   :  { %8847 = vmatpush2.bf16.msra.mxu0 %v12238_v10  ;;  %v2221_v48 = vld [vmem:[#allocation2 + $0xe08] sm:$0xff]  ;;  %v12199_v62 = vcombine.high %v2093_v49, %v2097_v14  ;;  %v1962_v10 = vld [vmem:[#allocation2 + $0x5f0] sm:$0xff] }
 0xa67   :  { %8848 = vmatprep.subr.bf16.mxu0 %v12231_v58  ;;  %v2225_v52 = vld [vmem:[#allocation2 + $0xe28] sm:$0xff]  ;;  %v12065_v63 = vcombine.high %v1958_v24, %v1962_v10 }
 0xa68   :  { %8888 = vmatpush2.bf16.msra.mxu1 %v12366_v55  ;;  %v12327_v44 = vcombine.high %v2221_v48, %v2225_v52  ;;  %v12198_v55 = vcombine.low %v2093_v49, %v2097_v14  ;;  %v12326_v58 = vcombine.low %v2221_v48, %v2225_v52  ;;  %v1806_v49 = vld [vmem:[#allocation2 + $0x110] sm:$0xff] }
 0xa69   :  { %8889 = vmatprep.subr.bf16.mxu1 %v12359_v25  ;;  %v11937_v25 = vcombine.high %v1830_v15, %v1834_v20  ;;  %v1810_v14 = vld [vmem:[#allocation2 + $0x130] sm:$0xff] }
 0xa6a   :  { %8849 = vmatpush2.bf16.msra.mxu0 %v12230_v19  ;;  %v1954_v19 = vld [vmem:[#allocation2 + $0x5b0] sm:$0xff] }
 0xa6b   :  { %8850 = vmatprep.subr.bf16.mxu0 %v12223_v23  ;;  %v12064_v23 = vcombine.low %v1958_v24, %v1962_v10  ;;  %v12057_v11 = vcombine.high %v1950_v9, %v1954_v19  ;;  %v12056_v39 = vcombine.low %v1950_v9, %v1954_v19  ;;  %v1934_v48 = vld [vmem:[#allocation2 + $0x510] sm:$0xff] }
 0xa6c   :  { %8890 = vmatpush2.bf16.msra.mxu1 %v12358_v0  ;;  %v11936_v0 = vcombine.low %v1830_v15, %v1834_v20  ;;  %v1938_v52 = vld [vmem:[#allocation2 + $0x530] sm:$0xff]  ;;  %v11913_v15 = vcombine.high %v1806_v49, %v1810_v14 }
 0xa6d   :  { %8891 = vmatprep.subr.bf16.mxu1 %v12351_v16  ;;  %v11929_v16 = vcombine.high %v1822_v2, %v1826_v22  ;;  %v12041_v24 = vcombine.high %v1934_v48, %v1938_v52  ;;  %v1798_v10 = vld [vmem:[#allocation2 + $0xd0] sm:$0xff]  ;;  %v12040_v2 = vcombine.low %v1934_v48, %v1938_v52 }
 0xa6e   :  { %8851 = vmatpush2.bf16.msra.mxu0 %v12222_v17  ;;  %v1942_v17 = vld [vmem:[#allocation2 + $0x550] sm:$0xff] }
 0xa6f   :  { %8852 = vmatprep.subr.bf16.mxu0 %v12215_v12  ;;  %v1790_v19 = vld [vmem:[#allocation2 + $0x90] sm:$0xff] }
 0xa70   :  { %8892 = vmatpush2.bf16.msra.mxu1 %v12350_v26  ;;  %v1946_v26 = vld [vmem:[#allocation2 + $0x570] sm:$0xff] }
 0xa71   :  { %8893 = vmatprep.subr.bf16.mxu1 %v12343_v6 }
 0xa72   :  { %8853 = vmatpush2.bf16.msra.mxu0 %v12214_v28 }
 0xa73   :  { %8854 = vmatprep.subr.bf16.mxu0 %v12207_v31 }
 0xa74   :  { %8894 = vmatpush2.bf16.msra.mxu1 %v12342_v47 }
 0xa75   :  { %8895 = vmatprep.subr.bf16.mxu1 %v12335_v46  ;;  %v12049_v46 = vcombine.high %v1942_v17, %v1946_v26 }
 0xa76   :  { %8855 = vmatpush2.bf16.msra.mxu0 %v12206_v54 }
 0xa77   :  { %8856 = vmatprep.subr.bf16.mxu0 %v12199_v62  ;;  %v11920_v62 = vcombine.low %v1814_v13, %v1818_v37 }
 0xa78   :  { %8896 = vmatpush2.bf16.msra.mxu1 %v12334_v53 }
 0xa79   :  { %8897 = vmatprep.subr.bf16.mxu1 %v12327_v44 }
 0xa7a   :  { %8857 = vmatpush2.bf16.msra.mxu0 %v12198_v55  ;;  %v1802_v55 = vld [vmem:[#allocation2 + $0xf0] sm:$0xff] }
 0xa7b   :  { %8908 = vmatprep.subr.bf16.mxu0 %v11937_v25  ;;  %v1930_v25 = vld [vmem:[#allocation2 + $0x4f0] sm:$0xff]  ;;  %v11905_v22 = vcombine.high %v1798_v10, %v1802_v55 }
 0xa7c   :  { %8898 = vmatpush2.bf16.msra.mxu1 %v12326_v58  ;;  %v1926_v58 = vld [vmem:[#allocation2 + $0x4d0] sm:$0xff] }
 0xa7d   :  { %8949 = vmatprep.subr.bf16.mxu1 %v12065_v63  ;;  %v8614_v18 = vpop.f32.mrf.mxu0  ;;  %8859 = vmatmul.mubr.bf16.vlgmr.msra.gmra.mxu0 %v13909_v4  ;;  %v11912_v63 = vcombine.low %v1806_v49, %v1810_v14  ;;  %v12033_v9 = vcombine.high %v1926_v58, %v1930_v25  ;;  %v12032_v13 = vcombine.low %v1926_v58, %v1930_v25  ;;  %v1906_v49 = vld [vmem:[#allocation2 + $0x430] sm:$0xff] }
 0xa7e   :  { %v8615_v12 = vadd.f32 %v8614_v18, %v13833_v27  ;;  %8909 = vmatpush1.bf16.msra.mxu0 %v11936_v0  ;;  %8940 = vmatprep.mubr.bf16.mxu0 %v13861_v59  ;;  %v1794_v0 = vld [vmem:[#allocation2 + $0xb0] sm:$0xff] }
 0xa7f   :  { %v8655_v6 = vpop.f32.mrf.mxu1  ;;  %8900 = vmatmul.mubr.bf16.vlgmr.msra.gmra.mxu1 %v13914_v7  ;;  %v8616_v57 = vpop.f32.mrf.mxu0  ;;  %8910 = vmatprep.subr.bf16.mxu0 %v11929_v16  ;;  %v1922_v16 = vld [vmem:[#allocation2 + $0x4b0] sm:$0xff]  ;;  %v11897_v37 = vcombine.high %v1790_v19, %v1794_v0 }
 0xa80   :  { %8950 = vmatpush1.bf16.msra.mxu1 %v12064_v23  ;;  %v13937_v28 = vadd.f32 %v8655_v6, %v8615_v12  ;;  %v8617_v47 = vadd.f32 %v8616_v57, %v13838_v50  ;;  %8981 = vmatprep.mubr.bf16.mxu1 %v13867_v8  ;;  %v12048_v50 = vcombine.low %v1942_v17, %v1946_v26  ;;  %v1918_v23 = vld [vmem:[#allocation2 + $0x490] sm:$0xff] }
 0xa81   :  { %v8657_v31 = vpop.f32.mrf.mxu1  ;;  %8951 = vmatprep.subr.bf16.mxu1 %v12057_v11  ;;  %v8618_v27 = vpop.f32.mrf.mxu0  ;;  %v11904_v11 = vcombine.low %v1798_v10, %v1802_v55  ;;  %v12025_v18 = vcombine.high %v1918_v23, %v1922_v16  ;;  %v1782_v17 = vld [vmem:[#allocation2 + $0x50] sm:$0xff]  ;;  %v12024_v57 = vcombine.low %v1918_v23, %v1922_v16 }
 0xa82   :  { %v13942_v54 = vadd.f32 %v8657_v31, %v8617_v47  ;;  %8911 = vmatpush1.bf16.msra.mxu0 %v11928_v30  ;;  %v1786_v26 = vld [vmem:[#allocation2 + $0x70] sm:$0xff]  ;;  %v11896_v30 = vcombine.low %v1790_v19, %v1794_v0 }
 0xa83   :  { %v8659_v53 = vpop.f32.mrf.mxu1  ;;  %v8619_v44 = vpop.f32.mrf.mxu0  ;;  %8912 = vmatprep.subr.bf16.mxu0 %v11921_v56  ;;  %v1910_v12 = vld [vmem:[#allocation2 + $0x450] sm:$0xff]  ;;  %v11888_v14 = vcombine.low %v1782_v17, %v1786_v26 }
 0xa84   :  { %8952 = vmatpush1.bf16.msra.mxu1 %v12056_v39  ;;  %v1914_v6 = vld [vmem:[#allocation2 + $0x470] sm:$0xff]  ;;  %v11889_v39 = vcombine.high %v1782_v17, %v1786_v26 }
 0xa85   :  { %v8660_v20 = vpop.f32.mrf.mxu1  ;;  %8953 = vmatprep.subr.bf16.mxu1 %v12049_v46  ;;  %v12017_v56 = vcombine.high %v1910_v12, %v1914_v6  ;;  %v1774_v47 = vld [vmem:[#allocation2 + $0x10] sm:$0xff]  ;;  %v12016_v27 = vcombine.low %v1910_v12, %v1914_v6 }
 0xa86   :  { %8913 = vmatpush1.bf16.msra.mxu0 %v11920_v62  ;;  %v1778_v31 = vld [vmem:[#allocation2 + $0x30] sm:$0xff] }
 0xa87   :  { %8914 = vmatprep.subr.bf16.mxu0 %v11913_v15  ;;  %v1902_v46 = vld [vmem:[#allocation2 + $0x410] sm:$0xff]  ;;  %v11881_v48 = vcombine.high %v1774_v47, %v1778_v31  ;;  %v11880_v15 = vcombine.low %v1774_v47, %v1778_v31 }
 0xa88   :  { %8954 = vmatpush1.bf16.msra.mxu1 %v12048_v50  ;;  %v12009_v52 = vcombine.high %v1902_v46, %v1906_v49  ;;  %v1894_v53 = vld [vmem:[#allocation2 + $0x3d0] sm:$0xff]  ;;  %v12008_v20 = vcombine.low %v1902_v46, %v1906_v49 }
 0xa89   :  { %8955 = vmatprep.subr.bf16.mxu1 %v12041_v24  ;;  %v1898_v62 = vld [vmem:[#allocation2 + $0x3f0] sm:$0xff] }
 0xa8a   :  { %8915 = vmatpush1.bf16.msra.mxu0 %v11912_v63  ;;  %v2022_v44 = vld [vmem:[#allocation2 + $0x7d0] sm:$0xff]  ;;  %v12001_v24 = vcombine.high %v1894_v53, %v1898_v62 }
 0xa8b   :  { %8916 = vmatprep.subr.bf16.mxu0 %v11905_v22  ;;  %v2026_v50 = vld [vmem:[#allocation2 + $0x7f0] sm:$0xff] }
 0xa8c   :  { %8956 = vmatpush1.bf16.msra.mxu1 %v12040_v2  ;;  %v12129_v10 = vcombine.high %v2022_v44, %v2026_v50  ;;  %v1886_v55 = vld [vmem:[#allocation2 + $0x390] sm:$0xff]  ;;  %v12000_v2 = vcombine.low %v1894_v53, %v1898_v62  ;;  %v12128_v22 = vcombine.low %v2022_v44, %v2026_v50 }
 0xa8d   :  { %8957 = vmatprep.subr.bf16.mxu1 %v12033_v9  ;;  %v1890_v58 = vld [vmem:[#allocation2 + $0x3b0] sm:$0xff] }
 0xa8e   :  { %8917 = vmatpush1.bf16.msra.mxu0 %v11904_v11  ;;  %v2014_v25 = vld [vmem:[#allocation2 + $0x790] sm:$0xff]  ;;  %v11993_v9 = vcombine.high %v1886_v55, %v1890_v58 }
 0xa8f   :  { %8918 = vmatprep.subr.bf16.mxu0 %v11897_v37  ;;  %v2018_v63 = vld [vmem:[#allocation2 + $0x7b0] sm:$0xff] }
 0xa90   :  { %8958 = vmatpush1.bf16.msra.mxu1 %v12032_v13  ;;  %v12121_v19 = vcombine.high %v2014_v25, %v2018_v63  ;;  %v1878_v0 = vld [vmem:[#allocation2 + $0x350] sm:$0xff]  ;;  %v11992_v13 = vcombine.low %v1886_v55, %v1890_v58  ;;  %v12120_v37 = vcombine.low %v2014_v25, %v2018_v63 }
 0xa91   :  { %8959 = vmatprep.subr.bf16.mxu1 %v12025_v18  ;;  %v1882_v23 = vld [vmem:[#allocation2 + $0x370] sm:$0xff] }
 0xa92   :  { %8919 = vmatpush1.bf16.msra.mxu0 %v11896_v30  ;;  %v2006_v16 = vld [vmem:[#allocation2 + $0x750] sm:$0xff]  ;;  %v11985_v18 = vcombine.high %v1878_v0, %v1882_v23 }
 0xa93   :  { %8920 = vmatprep.subr.bf16.mxu0 %v11889_v39  ;;  %v2010_v11 = vld [vmem:[#allocation2 + $0x770] sm:$0xff] }
 0xa94   :  { %8960 = vmatpush1.bf16.msra.mxu1 %v12024_v57  ;;  %v12113_v17 = vcombine.high %v2006_v16, %v2010_v11  ;;  %v1870_v26 = vld [vmem:[#allocation2 + $0x310] sm:$0xff]  ;;  %v11984_v57 = vcombine.low %v1878_v0, %v1882_v23  ;;  %v12112_v39 = vcombine.low %v2006_v16, %v2010_v11 }
 0xa95   :  { %8961 = vmatprep.subr.bf16.mxu1 %v12017_v56  ;;  %v1874_v12 = vld [vmem:[#allocation2 + $0x330] sm:$0xff] }
 0xa96   :  { %8921 = vmatpush1.bf16.msra.mxu0 %v11888_v14  ;;  %v1998_v6 = vld [vmem:[#allocation2 + $0x710] sm:$0xff]  ;;  %v11977_v56 = vcombine.high %v1870_v26, %v1874_v12 }
 0xa97   :  { %8922 = vmatprep.subr.bf16.mxu0 %v11881_v48  ;;  %v2002_v30 = vld [vmem:[#allocation2 + $0x730] sm:$0xff] }
 0xa98   :  { %8962 = vmatpush1.bf16.msra.mxu1 %v12016_v27  ;;  %v12105_v47 = vcombine.high %v1998_v6, %v2002_v30  ;;  %v1862_v31 = vld [vmem:[#allocation2 + $0x2d0] sm:$0xff]  ;;  %v11976_v27 = vcombine.low %v1870_v26, %v1874_v12  ;;  %v12104_v48 = vcombine.low %v1998_v6, %v2002_v30 }
 0xa99   :  { %8963 = vmatprep.subr.bf16.mxu1 %v12009_v52  ;;  %v1866_v46 = vld [vmem:[#allocation2 + $0x2f0] sm:$0xff] }
 0xa9a   :  { %8923 = vmatpush1.bf16.msra.mxu0 %v11880_v15  ;;  %v1990_v49 = vld [vmem:[#allocation2 + $0x6d0] sm:$0xff]  ;;  %v11969_v52 = vcombine.high %v1862_v31, %v1866_v46 }
 0xa9b   :  { %8924 = vmatprep.subr.bf16.mxu0 %v12001_v24  ;;  %v1994_v14 = vld [vmem:[#allocation2 + $0x6f0] sm:$0xff] }
 0xa9c   :  { %8964 = vmatpush1.bf16.msra.mxu1 %v12008_v20  ;;  %v12097_v53 = vcombine.high %v1990_v49, %v1994_v14  ;;  %v1854_v62 = vld [vmem:[#allocation2 + $0x290] sm:$0xff]  ;;  %v11968_v20 = vcombine.low %v1862_v31, %v1866_v46  ;;  %v12096_v24 = vcombine.low %v1990_v49, %v1994_v14 }
 0xa9d   :  { %8965 = vmatprep.subr.bf16.mxu1 %v12129_v10  ;;  %v1858_v44 = vld [vmem:[#allocation2 + $0x2b0] sm:$0xff] }
 0xa9e   :  { %8925 = vmatpush2.bf16.msra.mxu0 %v12000_v2  ;;  %v1982_v50 = vld [vmem:[#allocation2 + $0x690] sm:$0xff]  ;;  %v11961_v10 = vcombine.high %v1854_v62, %v1858_v44 }
 0xa9f   :  { %8926 = vmatprep.subr.bf16.mxu0 %v11993_v9  ;;  %v1986_v15 = vld [vmem:[#allocation2 + $0x6b0] sm:$0xff] }
 0xaa0   :  { %8966 = vmatpush2.bf16.msra.mxu1 %v12128_v22  ;;  %v12089_v55 = vcombine.high %v1982_v50, %v1986_v15  ;;  %v1846_v58 = vld [vmem:[#allocation2 + $0x250] sm:$0xff]  ;;  %v11960_v22 = vcombine.low %v1854_v62, %v1858_v44  ;;  %v12088_v9 = vcombine.low %v1982_v50, %v1986_v15 }
 0xaa1   :  { %8967 = vmatprep.subr.bf16.mxu1 %v12121_v19  ;;  %v1850_v25 = vld [vmem:[#allocation2 + $0x270] sm:$0xff] }
 0xaa2   :  { %8927 = vmatpush2.bf16.msra.mxu0 %v11992_v13  ;;  %v1974_v63 = vld [vmem:[#allocation2 + $0x650] sm:$0xff]  ;;  %v11953_v19 = vcombine.high %v1846_v58, %v1850_v25 }
 0xaa3   :  { %8928 = vmatprep.subr.bf16.mxu0 %v11985_v18  ;;  %v1978_v2 = vld [vmem:[#allocation2 + $0x670] sm:$0xff] }
 0xaa4   :  { %8968 = vmatpush2.bf16.msra.mxu1 %v12120_v37  ;;  %v12081_v0 = vcombine.high %v1974_v63, %v1978_v2  ;;  %v1838_v23 = vld [vmem:[#allocation2 + $0x210] sm:$0xff]  ;;  %v11952_v37 = vcombine.low %v1846_v58, %v1850_v25  ;;  %v12080_v18 = vcombine.low %v1974_v63, %v1978_v2 }
 0xaa5   :  { %8969 = vmatprep.subr.bf16.mxu1 %v12113_v17  ;;  %v1842_v16 = vld [vmem:[#allocation2 + $0x230] sm:$0xff] }
 0xaa6   :  { %8929 = vmatpush2.bf16.msra.mxu0 %v11984_v57  ;;  %v1966_v11 = vld [vmem:[#allocation2 + $0x610] sm:$0xff]  ;;  %v11945_v17 = vcombine.high %v1838_v23, %v1842_v16 }
 0xaa7   :  { %8930 = vmatprep.subr.bf16.mxu0 %v11977_v56  ;;  %v1970_v13 = vld [vmem:[#allocation2 + $0x630] sm:$0xff] }
 0xaa8   :  { %8970 = vmatpush2.bf16.msra.mxu1 %v12112_v39  ;;  %v12073_v26 = vcombine.high %v1966_v11, %v1970_v13  ;;  %v2086_v12 = vld [vmem:[#allocation2 + $0x9d0] sm:$0xff]  ;;  %v11944_v39 = vcombine.low %v1838_v23, %v1842_v16  ;;  %v12072_v56 = vcombine.low %v1966_v11, %v1970_v13 }
 0xaa9   :  { %8971 = vmatprep.subr.bf16.mxu1 %v12105_v47  ;;  %v2090_v6 = vld [vmem:[#allocation2 + $0x9f0] sm:$0xff] }
 0xaaa   :  { %8931 = vmatpush2.bf16.msra.mxu0 %v11976_v27  ;;  %v2214_v30 = vld [vmem:[#allocation2 + $0xdd0] sm:$0xff]  ;;  %v12193_v47 = vcombine.high %v2086_v12, %v2090_v6 }
 0xaab   :  { %8932 = vmatprep.subr.bf16.mxu0 %v11969_v52  ;;  %v2218_v57 = vld [vmem:[#allocation2 + $0xdf0] sm:$0xff] }
 0xaac   :  { %8972 = vmatpush2.bf16.msra.mxu1 %v12104_v48  ;;  %v12321_v31 = vcombine.high %v2214_v30, %v2218_v57  ;;  %v2078_v46 = vld [vmem:[#allocation2 + $0x990] sm:$0xff]  ;;  %v12192_v48 = vcombine.low %v2086_v12, %v2090_v6  ;;  %v12320_v52 = vcombine.low %v2214_v30, %v2218_v57 }
 0xaad   :  { %8973 = vmatprep.subr.bf16.mxu1 %v12097_v53  ;;  %v2082_v49 = vld [vmem:[#allocation2 + $0x9b0] sm:$0xff] }
 0xaae   :  { %8933 = vmatpush2.bf16.msra.mxu0 %v11968_v20  ;;  %v2206_v14 = vld [vmem:[#allocation2 + $0xd90] sm:$0xff]  ;;  %v12185_v53 = vcombine.high %v2078_v46, %v2082_v49  ;;  %v12184_v58 = vcombine.low %v2078_v46, %v2082_v49 }
 0xaaf   :  { %8934 = vmatprep.subr.bf16.mxu0 %v11961_v10  ;;  %v2210_v27 = vld [vmem:[#allocation2 + $0xdb0] sm:$0xff] }
 0xab0   :  { %8974 = vmatpush2.bf16.msra.mxu1 %v12096_v24  ;;  %v12313_v62 = vcombine.high %v2206_v14, %v2210_v27  ;;  %v2070_v44 = vld [vmem:[#allocation2 + $0x950] sm:$0xff]  ;;  %v12312_v63 = vcombine.low %v2206_v14, %v2210_v27 }
 0xab1   :  { %8975 = vmatprep.subr.bf16.mxu1 %v12089_v55  ;;  %v2074_v50 = vld [vmem:[#allocation2 + $0x970] sm:$0xff] }
 0xab2   :  { %8935 = vmatpush2.bf16.msra.mxu0 %v11960_v22  ;;  %v2198_v20 = vld [vmem:[#allocation2 + $0xd50] sm:$0xff]  ;;  %v12177_v2 = vcombine.high %v2070_v44, %v2074_v50 }
 0xab3   :  { %8936 = vmatprep.subr.bf16.mxu0 %v11953_v19  ;;  %v2202_v24 = vld [vmem:[#allocation2 + $0xd70] sm:$0xff] }
 0xab4   :  { %8976 = vmatpush2.bf16.msra.mxu1 %v12088_v9  ;;  %v2062_v23 = vld [vmem:[#allocation2 + $0x910] sm:$0xff] }
 0xab5   :  { %8977 = vmatprep.subr.bf16.mxu1 %v12081_v0  ;;  %v12305_v0 = vcombine.high %v2198_v20, %v2202_v24  ;;  %v2066_v16 = vld [vmem:[#allocation2 + $0x930] sm:$0xff] }
 0xab6   :  { %8937 = vmatpush2.bf16.msra.mxu0 %v11952_v37  ;;  %v2190_v11 = vld [vmem:[#allocation2 + $0xd10] sm:$0xff]  ;;  %v12169_v12 = vcombine.high %v2062_v23, %v2066_v16 }
 0xab7   :  { %8938 = vmatprep.subr.bf16.mxu0 %v11945_v17  ;;  %v2194_v13 = vld [vmem:[#allocation2 + $0xd30] sm:$0xff]  ;;  %v12176_v17 = vcombine.low %v2070_v44, %v2074_v50 }
 0xab8   :  { %8978 = vmatpush2.bf16.msra.mxu1 %v12080_v18  ;;  %v12297_v30 = vcombine.high %v2190_v11, %v2194_v13  ;;  %v2054_v57 = vld [vmem:[#allocation2 + $0x8d0] sm:$0xff]  ;;  %v12296_v46 = vcombine.low %v2190_v11, %v2194_v13 }
 0xab9   :  { %8979 = vmatprep.subr.bf16.mxu1 %v12073_v26  ;;  %v2046_v27 = vld [vmem:[#allocation2 + $0x890] sm:$0xff] }
 0xaba   :  { %8939 = vmatpush2.bf16.msra.mxu0 %v11944_v39  ;;  %v2058_v39 = vld [vmem:[#allocation2 + $0x8f0] sm:$0xff] }
 0xabb   :  { %8990 = vmatprep.subr.bf16.mxu0 %v12193_v47  ;;  %v2186_v47 = vld [vmem:[#allocation2 + $0xcf0] sm:$0xff]  ;;  %v12161_v49 = vcombine.high %v2054_v57, %v2058_v39 }
 0xabc   :  { %8980 = vmatpush2.bf16.msra.mxu1 %v12072_v56  ;;  %v2182_v56 = vld [vmem:[#allocation2 + $0xcd0] sm:$0xff] }
 0xabd   :  { %9031 = vmatprep.subr.bf16.mxu1 %v12321_v31  ;;  %v8696_v15 = vpop.f32.mrf.mxu0  ;;  %8941 = vmatmul.mubr.bf16.vlgmr.msra.gmra.mxu0 %v13879_v40  ;;  %v12168_v31 = vcombine.low %v2062_v23, %v2066_v16  ;;  %v12289_v14 = vcombine.high %v2182_v56, %v2186_v47  ;;  %v12288_v44 = vcombine.low %v2182_v56, %v2186_v47  ;;  %v2162_v23 = vld [vmem:[#allocation2 + $0xc30] sm:$0xff] }
 0xabe   :  { %v8697_v10 = vadd.f32 %v8696_v15, %v13937_v28  ;;  %8991 = vmatpush1.bf16.msra.mxu0 %v12192_v48  ;;  %9022 = vmatprep.mubr.bf16.mxu0 %v13889_v61  ;;  %v2050_v48 = vld [vmem:[#allocation2 + $0x8b0] sm:$0xff] }
 0xabf   :  { %v8737_v55 = vpop.f32.mrf.mxu1  ;;  %8982 = vmatmul.mubr.bf16.vlgmr.msra.gmra.mxu1 %v13884_v29  ;;  %v8698_v25 = vpop.f32.mrf.mxu0  ;;  %8992 = vmatprep.subr.bf16.mxu0 %v12185_v53  ;;  %v2178_v53 = vld [vmem:[#allocation2 + $0xcb0] sm:$0xff]  ;;  %v12153_v50 = vcombine.high %v2046_v27, %v2050_v48 }
 0xac0   :  { %9032 = vmatpush1.bf16.msra.mxu1 %v12320_v52  ;;  %v13947_v22 = vadd.f32 %v8737_v55, %v8697_v10  ;;  %v8699_v9 = vadd.f32 %v8698_v25, %v13942_v54  ;;  %9063 = vmatprep.mubr.bf16.mxu1 %v13895_v1  ;;  %v12304_v54 = vcombine.low %v2198_v20, %v2202_v24  ;;  %v2174_v52 = vld [vmem:[#allocation2 + $0xc90] sm:$0xff] }
 0xac1   :  { %v8739_v19 = vpop.f32.mrf.mxu1  ;;  %9033 = vmatprep.subr.bf16.mxu1 %v12313_v62  ;;  %v8700_v28 = vpop.f32.mrf.mxu0  ;;  %v12160_v62 = vcombine.low %v2054_v57, %v2058_v39  ;;  %v12281_v15 = vcombine.high %v2174_v52, %v2178_v53  ;;  %v2038_v20 = vld [vmem:[#allocation2 + $0x850] sm:$0xff]  ;;  %v12280_v25 = vcombine.low %v2174_v52, %v2178_v53 }
 0xac2   :  { %v13952_v37 = vadd.f32 %v8739_v19, %v8699_v9  ;;  %8993 = vmatpush1.bf16.msra.mxu0 %v12184_v58  ;;  %v2042_v24 = vld [vmem:[#allocation2 + $0x870] sm:$0xff]  ;;  %v12152_v58 = vcombine.low %v2046_v27, %v2050_v48 }
 0xac3   :  { %v8741_v18 = vpop.f32.mrf.mxu1  ;;  %v8701_v26 = vpop.f32.mrf.mxu0  ;;  %8994 = vmatprep.subr.bf16.mxu0 %v12177_v2  ;;  %v2166_v10 = vld [vmem:[#allocation2 + $0xc50] sm:$0xff]  ;;  %v12144_v16 = vcombine.low %v2038_v20, %v2042_v24 }
 0xac4   :  { %9034 = vmatpush1.bf16.msra.mxu1 %v12312_v63  ;;  %v2170_v55 = vld [vmem:[#allocation2 + $0xc70] sm:$0xff]  ;;  %v12145_v63 = vcombine.high %v2038_v20, %v2042_v24 }
 0xac5   :  { %v8742_v6 = vpop.f32.mrf.mxu1  ;;  %9035 = vmatprep.subr.bf16.mxu1 %v12305_v0  ;;  %v12273_v2 = vcombine.high %v2166_v10, %v2170_v55  ;;  %v2030_v9 = vld [vmem:[#allocation2 + $0x810] sm:$0xff]  ;;  %v12272_v28 = vcombine.low %v2166_v10, %v2170_v55 }
 0xac6   :  { %8995 = vmatpush1.bf16.msra.mxu0 %v12176_v17  ;;  %v2034_v19 = vld [vmem:[#allocation2 + $0x830] sm:$0xff] }
 0xac7   :  { %8996 = vmatprep.subr.bf16.mxu0 %v12169_v12  ;;  %v2158_v0 = vld [vmem:[#allocation2 + $0xc10] sm:$0xff]  ;;  %v12137_v11 = vcombine.high %v2030_v9, %v2034_v19  ;;  %v12136_v12 = vcombine.low %v2030_v9, %v2034_v19 }
 0xac8   :  { %9036 = vmatpush1.bf16.msra.mxu1 %v12304_v54  ;;  %v12265_v13 = vcombine.high %v2158_v0, %v2162_v23  ;;  %v2150_v18 = vld [vmem:[#allocation2 + $0xbd0] sm:$0xff]  ;;  %v12264_v6 = vcombine.low %v2158_v0, %v2162_v23 }
 0xac9   :  { %9037 = vmatprep.subr.bf16.mxu1 %v12297_v30  ;;  %v2154_v17 = vld [vmem:[#allocation2 + $0xbf0] sm:$0xff] }
 0xaca   :  { %8997 = vmatpush1.bf16.msra.mxu0 %v12168_v31  ;;  %v2278_v26 = vld [vmem:[#allocation2 + $0xfd0] sm:$0xff]  ;;  %v12257_v30 = vcombine.high %v2150_v18, %v2154_v17 }
 0xacb   :  { %8998 = vmatprep.subr.bf16.mxu0 %v12161_v49  ;;  %v2282_v54 = vld [vmem:[#allocation2 + $0xff0] sm:$0xff] }
 0xacc   :  { %9038 = vmatpush1.bf16.msra.mxu1 %v12296_v46  ;;  %v12385_v57 = vcombine.high %v2278_v26, %v2282_v54  ;;  %v2142_v39 = vld [vmem:[#allocation2 + $0xb90] sm:$0xff]  ;;  %v12256_v46 = vcombine.low %v2150_v18, %v2154_v17  ;;  %v12384_v49 = vcombine.low %v2278_v26, %v2282_v54 }
 0xacd   :  { %9039 = vmatprep.subr.bf16.mxu1 %v12289_v14  ;;  %v2146_v56 = vld [vmem:[#allocation2 + $0xbb0] sm:$0xff] }
 0xace   :  { %8999 = vmatpush1.bf16.msra.mxu0 %v12160_v62  ;;  %v2270_v47 = vld [vmem:[#allocation2 + $0xf90] sm:$0xff]  ;;  %v12249_v14 = vcombine.high %v2142_v39, %v2146_v56 }
 0xacf   :  { %9000 = vmatprep.subr.bf16.mxu0 %v12153_v50  ;;  %v2274_v31 = vld [vmem:[#allocation2 + $0xfb0] sm:$0xff] }
 0xad0   :  { %9040 = vmatpush1.bf16.msra.mxu1 %v12288_v44  ;;  %v12377_v27 = vcombine.high %v2270_v47, %v2274_v31  ;;  %v2134_v48 = vld [vmem:[#allocation2 + $0xb50] sm:$0xff]  ;;  %v12248_v44 = vcombine.low %v2142_v39, %v2146_v56  ;;  %v12376_v50 = vcombine.low %v2270_v47, %v2274_v31 }
 0xad1   :  { %9041 = vmatprep.subr.bf16.mxu1 %v12281_v15  ;;  %v2138_v52 = vld [vmem:[#allocation2 + $0xb70] sm:$0xff] }
 0xad2   :  { %9001 = vmatpush1.bf16.msra.mxu0 %v12152_v58  ;;  %v2262_v53 = vld [vmem:[#allocation2 + $0xf50] sm:$0xff]  ;;  %v12241_v15 = vcombine.high %v2134_v48, %v2138_v52 }
 0xad3   :  { %9002 = vmatprep.subr.bf16.mxu0 %v12145_v63  ;;  %v2266_v62 = vld [vmem:[#allocation2 + $0xf70] sm:$0xff] }
 0xad4   :  { %9042 = vmatpush1.bf16.msra.mxu1 %v12280_v25  ;;  %v12369_v20 = vcombine.high %v2262_v53, %v2266_v62  ;;  %v2126_v24 = vld [vmem:[#allocation2 + $0xb10] sm:$0xff]  ;;  %v12240_v25 = vcombine.low %v2134_v48, %v2138_v52  ;;  %v12368_v63 = vcombine.low %v2262_v53, %v2266_v62 }
 0xad5   :  { %9043 = vmatprep.subr.bf16.mxu1 %v12273_v2  ;;  %v2130_v10 = vld [vmem:[#allocation2 + $0xb30] sm:$0xff] }
 0xad6   :  { %9003 = vmatpush1.bf16.msra.mxu0 %v12144_v16  ;;  %v2254_v55 = vld [vmem:[#allocation2 + $0xf10] sm:$0xff]  ;;  %v12233_v2 = vcombine.high %v2126_v24, %v2130_v10 }
 0xad7   :  { %9004 = vmatprep.subr.bf16.mxu0 %v12137_v11  ;;  %v2258_v58 = vld [vmem:[#allocation2 + $0xf30] sm:$0xff] }
 0xad8   :  { %9044 = vmatpush1.bf16.msra.mxu1 %v12272_v28  ;;  %v12361_v9 = vcombine.high %v2254_v55, %v2258_v58  ;;  %v2118_v19 = vld [vmem:[#allocation2 + $0xad0] sm:$0xff]  ;;  %v12232_v28 = vcombine.low %v2126_v24, %v2130_v10  ;;  %v12360_v11 = vcombine.low %v2254_v55, %v2258_v58  ;;  %v1831_v10 = vld [vmem:[#allocation2 + $0x1d8] sm:$0xff] }
 0xad9   :  { %9045 = vmatprep.subr.bf16.mxu1 %v12265_v13  ;;  %v2122_v0 = vld [vmem:[#allocation2 + $0xaf0] sm:$0xff]  ;;  %v1835_v55 = vld [vmem:[#allocation2 + $0x1f8] sm:$0xff] }
 0xada   :  { %9005 = vmatpush1.bf16.msra.mxu0 %v12136_v12  ;;  %v2246_v23 = vld [vmem:[#allocation2 + $0xed0] sm:$0xff]  ;;  %v12225_v13 = vcombine.high %v2118_v19, %v2122_v0  ;;  %v1959_v58 = vld [vmem:[#allocation2 + $0x5d8] sm:$0xff] }
 0xadb   :  { %9006 = vmatprep.subr.bf16.mxu0 %v12257_v30  ;;  %v2250_v16 = vld [vmem:[#allocation2 + $0xef0] sm:$0xff] }
 0xadc   :  { %9046 = vmatpush1.bf16.msra.mxu1 %v12264_v6  ;;  %v12353_v18 = vcombine.high %v2246_v23, %v2250_v16  ;;  %v2110_v17 = vld [vmem:[#allocation2 + $0xa90] sm:$0xff]  ;;  %v12224_v6 = vcombine.low %v2118_v19, %v2122_v0  ;;  %v12352_v30 = vcombine.low %v2246_v23, %v2250_v16  ;;  %v1823_v0 = vld [vmem:[#allocation2 + $0x198] sm:$0xff] }
 0xadd   :  { %9047 = vmatprep.subr.bf16.mxu1 %v12385_v57  ;;  %v2114_v26 = vld [vmem:[#allocation2 + $0xab0] sm:$0xff]  ;;  %v1827_v23 = vld [vmem:[#allocation2 + $0x1b8] sm:$0xff] }
 0xade   :  { %9007 = vmatpush2.bf16.msra.mxu0 %v12256_v46  ;;  %v2238_v54 = vld [vmem:[#allocation2 + $0xe90] sm:$0xff]  ;;  %v12217_v57 = vcombine.high %v2110_v17, %v2114_v26  ;;  %v1951_v16 = vld [vmem:[#allocation2 + $0x598] sm:$0xff] }
 0xadf   :  { %9008 = vmatprep.subr.bf16.mxu0 %v12249_v14  ;;  %v2242_v12 = vld [vmem:[#allocation2 + $0xeb0] sm:$0xff] }
 0xae0   :  { %9048 = vmatpush2.bf16.msra.mxu1 %v12384_v49  ;;  %v12345_v39 = vcombine.high %v2238_v54, %v2242_v12  ;;  %v2102_v56 = vld [vmem:[#allocation2 + $0xa50] sm:$0xff]  ;;  %v12216_v49 = vcombine.low %v2110_v17, %v2114_v26  ;;  %v12344_v14 = vcombine.low %v2238_v54, %v2242_v12  ;;  %v1815_v26 = vld [vmem:[#allocation2 + $0x158] sm:$0xff] }
 0xae1   :  { %9049 = vmatprep.subr.bf16.mxu1 %v12377_v27  ;;  %v2106_v47 = vld [vmem:[#allocation2 + $0xa70] sm:$0xff]  ;;  %v1819_v54 = vld [vmem:[#allocation2 + $0x178] sm:$0xff] }
 0xae2   :  { %9009 = vmatpush2.bf16.msra.mxu0 %v12248_v44  ;;  %v2230_v31 = vld [vmem:[#allocation2 + $0xe50] sm:$0xff]  ;;  %v12209_v27 = vcombine.high %v2102_v56, %v2106_v47 }
 0xae3   :  { %9010 = vmatprep.subr.bf16.mxu0 %v12241_v15  ;;  %v2234_v46 = vld [vmem:[#allocation2 + $0xe70] sm:$0xff] }
 0xae4   :  { %9050 = vmatpush2.bf16.msra.mxu1 %v12376_v50  ;;  %v12337_v48 = vcombine.high %v2230_v31, %v2234_v46  ;;  %v2094_v52 = vld [vmem:[#allocation2 + $0xa10] sm:$0xff]  ;;  %v12208_v50 = vcombine.low %v2102_v56, %v2106_v47  ;;  %v12336_v15 = vcombine.low %v2230_v31, %v2234_v46  ;;  %v11930_v56 = vcombine.low %v1823_v0, %v1827_v23 }
 0xae5   :  { %9051 = vmatprep.subr.bf16.mxu1 %v12369_v20  ;;  %v2098_v53 = vld [vmem:[#allocation2 + $0xa30] sm:$0xff]  ;;  %v11923_v46 = vcombine.high %v1815_v26, %v1819_v54 }
 0xae6   :  { %9011 = vmatpush2.bf16.msra.mxu0 %v12240_v25  ;;  %v2222_v62 = vld [vmem:[#allocation2 + $0xe10] sm:$0xff]  ;;  %v12201_v20 = vcombine.high %v2094_v52, %v2098_v53  ;;  %v1963_v25 = vld [vmem:[#allocation2 + $0x5f8] sm:$0xff] }
 0xae7   :  { %9012 = vmatprep.subr.bf16.mxu0 %v12233_v2  ;;  %v2226_v44 = vld [vmem:[#allocation2 + $0xe30] sm:$0xff]  ;;  %v12067_v19 = vcombine.high %v1959_v58, %v1963_v25 }
 0xae8   :  { %9052 = vmatpush2.bf16.msra.mxu1 %v12368_v63  ;;  %v12329_v24 = vcombine.high %v2222_v62, %v2226_v44  ;;  %v12200_v63 = vcombine.low %v2094_v52, %v2098_v53  ;;  %v12328_v2 = vcombine.low %v2222_v62, %v2226_v44  ;;  %v1807_v52 = vld [vmem:[#allocation2 + $0x118] sm:$0xff] }
 0xae9   :  { %9053 = vmatprep.subr.bf16.mxu1 %v12361_v9  ;;  %v11939_v9 = vcombine.high %v1831_v10, %v1835_v55  ;;  %v1811_v53 = vld [vmem:[#allocation2 + $0x138] sm:$0xff] }
 0xaea   :  { %9013 = vmatpush2.bf16.msra.mxu0 %v12232_v28  ;;  %v1955_v28 = vld [vmem:[#allocation2 + $0x5b8] sm:$0xff] }
 0xaeb   :  { %9014 = vmatprep.subr.bf16.mxu0 %v12225_v13  ;;  %v12066_v13 = vcombine.low %v1959_v58, %v1963_v25  ;;  %v12059_v17 = vcombine.high %v1951_v16, %v1955_v28  ;;  %v12058_v31 = vcombine.low %v1951_v16, %v1955_v28  ;;  %v1935_v62 = vld [vmem:[#allocation2 + $0x518] sm:$0xff] }
 0xaec   :  { %9054 = vmatpush2.bf16.msra.mxu1 %v12360_v11  ;;  %v11938_v11 = vcombine.low %v1831_v10, %v1835_v55  ;;  %v1939_v44 = vld [vmem:[#allocation2 + $0x538] sm:$0xff]  ;;  %v11915_v10 = vcombine.high %v1807_v52, %v1811_v53 }
 0xaed   :  { %9055 = vmatprep.subr.bf16.mxu1 %v12353_v18  ;;  %v11931_v18 = vcombine.high %v1823_v0, %v1827_v23  ;;  %v12043_v58 = vcombine.high %v1935_v62, %v1939_v44  ;;  %v1799_v25 = vld [vmem:[#allocation2 + $0xd8] sm:$0xff] }
 0xaee   :  { %9015 = vmatpush2.bf16.msra.mxu0 %v12224_v6  ;;  %v1943_v6 = vld [vmem:[#allocation2 + $0x558] sm:$0xff] }
 0xaef   :  { %9016 = vmatprep.subr.bf16.mxu0 %v12217_v57  ;;  %v1791_v23 = vld [vmem:[#allocation2 + $0x98] sm:$0xff] }
 0xaf0   :  { %9056 = vmatpush2.bf16.msra.mxu1 %v12352_v30  ;;  %v1947_v30 = vld [vmem:[#allocation2 + $0x578] sm:$0xff] }
 0xaf1   :  { %9057 = vmatprep.subr.bf16.mxu1 %v12345_v39  ;;  %v1795_v16 = vld [vmem:[#allocation2 + $0xb8] sm:$0xff] }
 0xaf2   :  { %9017 = vmatpush2.bf16.msra.mxu0 %v12216_v49  ;;  %v1919_v28 = vld [vmem:[#allocation2 + $0x498] sm:$0xff] }
 0xaf3   :  { %9018 = vmatprep.subr.bf16.mxu0 %v12209_v27 }
 0xaf4   :  { %9058 = vmatpush2.bf16.msra.mxu1 %v12344_v14 }
 0xaf5   :  { %9059 = vmatprep.subr.bf16.mxu1 %v12337_v48  ;;  %v12051_v48 = vcombine.high %v1943_v6, %v1947_v30 }
 0xaf6   :  { %9019 = vmatpush2.bf16.msra.mxu0 %v12208_v50 }
 0xaf7   :  { %9020 = vmatprep.subr.bf16.mxu0 %v12201_v20  ;;  %v11922_v20 = vcombine.low %v1815_v26, %v1819_v54  ;;  %v1783_v54 = vld [vmem:[#allocation2 + $0x58] sm:$0xff] }
 0xaf8   :  { %9060 = vmatpush2.bf16.msra.mxu1 %v12336_v15 }
 0xaf9   :  { %9061 = vmatprep.subr.bf16.mxu1 %v12329_v24 }
 0xafa   :  { %9021 = vmatpush2.bf16.msra.mxu0 %v12200_v63  ;;  %v1927_v63 = vld [vmem:[#allocation2 + $0x4d8] sm:$0xff] }
 0xafb   :  { %9072 = vmatprep.subr.bf16.mxu0 %v11939_v9  ;;  %v11914_v9 = vcombine.low %v1807_v52, %v1811_v53 }
 0xafc   :  { %9062 = vmatpush2.bf16.msra.mxu1 %v12328_v2  ;;  %v1931_v2 = vld [vmem:[#allocation2 + $0x4f8] sm:$0xff] }
 0xafd   :  { %9113 = vmatprep.subr.bf16.mxu1 %v12067_v19  ;;  %v8778_v12 = vpop.f32.mrf.mxu0  ;;  %9023 = vmatmul.mubr.bf16.vlgmr.msra.gmra.mxu0 %v13909_v4  ;;  %v12035_v0 = vcombine.high %v1927_v63, %v1931_v2 }
 0xafe   :  { %v8779_v57 = vadd.f32 %v8778_v12, %v13851_v45  ;;  %9073 = vmatpush1.bf16.msra.mxu0 %v11938_v11  ;;  %9104 = vmatprep.mubr.bf16.mxu0 %v13861_v59  ;;  %v1803_v59 = vld [vmem:[#allocation2 + $0xf8] sm:$0xff] }
 0xaff   :  { %v8819_v39 = vpop.f32.mrf.mxu1  ;;  %9064 = vmatmul.mubr.bf16.vlgmr.msra.gmra.mxu1 %v13914_v7  ;;  %v8780_v47 = vpop.f32.mrf.mxu0  ;;  %9074 = vmatprep.subr.bf16.mxu0 %v11931_v18  ;;  %v11907_v19 = vcombine.high %v1799_v25, %v1803_v59  ;;  %v1923_v11 = vld [vmem:[#allocation2 + $0x4b8] sm:$0xff]  ;;  %v12034_v18 = vcombine.low %v1927_v63, %v1931_v2 }
 0xb00   :  { %9114 = vmatpush1.bf16.msra.mxu1 %v12066_v13  ;;  %v13957_v49 = vadd.f32 %v8819_v39, %v8779_v57  ;;  %v8781_v14 = vadd.f32 %v8780_v47, %v13856_v3  ;;  %9145 = vmatprep.mubr.bf16.mxu1 %v13867_v8  ;;  %v12050_v3 = vcombine.low %v1943_v6, %v1947_v30  ;;  %v1787_v12 = vld [vmem:[#allocation2 + $0x78] sm:$0xff] }
 0xb01   :  { %v8821_v27 = vpop.f32.mrf.mxu1  ;;  %9115 = vmatprep.subr.bf16.mxu1 %v12059_v17  ;;  %v8782_v45 = vpop.f32.mrf.mxu0  ;;  %v12042_v8 = vcombine.low %v1935_v62, %v1939_v44  ;;  %v11906_v13 = vcombine.low %v1799_v25, %v1803_v59  ;;  %v11899_v17 = vcombine.high %v1791_v23, %v1795_v16  ;;  %v12027_v26 = vcombine.high %v1919_v28, %v1923_v11  ;;  %v1911_v6 = vld [vmem:[#allocation2 + $0x458] sm:$0xff] }
 0xb02   :  { %v13962_v50 = vadd.f32 %v8821_v27, %v8781_v14  ;;  %9075 = vmatpush1.bf16.msra.mxu0 %v11930_v56  ;;  %v1915_v30 = vld [vmem:[#allocation2 + $0x478] sm:$0xff]  ;;  %v11898_v57 = vcombine.low %v1791_v23, %v1795_v16  ;;  %v12026_v39 = vcombine.low %v1919_v28, %v1923_v11  ;;  %v11891_v56 = vcombine.high %v1783_v54, %v1787_v12 }
 0xb03   :  { %v8823_v15 = vpop.f32.mrf.mxu1  ;;  %v8783_v24 = vpop.f32.mrf.mxu0  ;;  %9076 = vmatprep.subr.bf16.mxu0 %v11923_v46  ;;  %v12019_v47 = vcombine.high %v1911_v6, %v1915_v30  ;;  %v1779_v46 = vld [vmem:[#allocation2 + $0x38] sm:$0xff]  ;;  %v12018_v52 = vcombine.low %v1911_v6, %v1915_v30 }
 0xb04   :  { %9116 = vmatpush1.bf16.msra.mxu1 %v12058_v31  ;;  %v1775_v31 = vld [vmem:[#allocation2 + $0x18] sm:$0xff] }
 0xb05   :  { %v8824_v55 = vpop.f32.mrf.mxu1  ;;  %9117 = vmatprep.subr.bf16.mxu1 %v12051_v48  ;;  %v1903_v14 = vld [vmem:[#allocation2 + $0x418] sm:$0xff]  ;;  %v11890_v48 = vcombine.low %v1783_v54, %v1787_v12  ;;  %v11883_v53 = vcombine.high %v1775_v31, %v1779_v46  ;;  %v11882_v24 = vcombine.low %v1775_v31, %v1779_v46 }
 0xb06   :  { %9077 = vmatpush1.bf16.msra.mxu0 %v11922_v20  ;;  %v1907_v27 = vld [vmem:[#allocation2 + $0x438] sm:$0xff] }
 0xb07   :  { %9078 = vmatprep.subr.bf16.mxu0 %v11915_v10  ;;  %v12011_v45 = vcombine.high %v1903_v14, %v1907_v27  ;;  %v1895_v62 = vld [vmem:[#allocation2 + $0x3d8] sm:$0xff] }
 0xb08   :  { %9118 = vmatpush1.bf16.msra.mxu1 %v12050_v3  ;;  %v1899_v44 = vld [vmem:[#allocation2 + $0x3f8] sm:$0xff]  ;;  %v12010_v3 = vcombine.low %v1903_v14, %v1907_v27 }
 0xb09   :  { %9119 = vmatprep.subr.bf16.mxu1 %v12043_v58  ;;  %v2023_v15 = vld [vmem:[#allocation2 + $0x7d8] sm:$0xff]  ;;  %v12003_v10 = vcombine.high %v1895_v62, %v1899_v44  ;;  %v12002_v2 = vcombine.low %v1895_v62, %v1899_v44 }
 0xb0a   :  { %9079 = vmatpush1.bf16.msra.mxu0 %v11914_v9  ;;  %v2027_v20 = vld [vmem:[#allocation2 + $0x7f8] sm:$0xff] }
 0xb0b   :  { %9080 = vmatprep.subr.bf16.mxu0 %v11907_v19  ;;  %v12131_v55 = vcombine.high %v2023_v15, %v2027_v20  ;;  %v1887_v58 = vld [vmem:[#allocation2 + $0x398] sm:$0xff]  ;;  %v12130_v9 = vcombine.low %v2023_v15, %v2027_v20 }
 0xb0c   :  { %9120 = vmatpush1.bf16.msra.mxu1 %v12042_v8  ;;  %v1891_v25 = vld [vmem:[#allocation2 + $0x3b8] sm:$0xff] }
 0xb0d   :  { %9121 = vmatprep.subr.bf16.mxu1 %v12035_v0  ;;  %v2015_v59 = vld [vmem:[#allocation2 + $0x798] sm:$0xff]  ;;  %v11995_v8 = vcombine.high %v1887_v58, %v1891_v25  ;;  %v11994_v11 = vcombine.low %v1887_v58, %v1891_v25 }
 0xb0e   :  { %9081 = vmatpush1.bf16.msra.mxu0 %v11906_v13  ;;  %v2019_v63 = vld [vmem:[#allocation2 + $0x7b8] sm:$0xff] }
 0xb0f   :  { %9082 = vmatprep.subr.bf16.mxu0 %v11899_v17  ;;  %v12123_v19 = vcombine.high %v2015_v59, %v2019_v63  ;;  %v1879_v0 = vld [vmem:[#allocation2 + $0x358] sm:$0xff]  ;;  %v12122_v13 = vcombine.low %v2015_v59, %v2019_v63 }
 0xb10   :  { %9122 = vmatpush1.bf16.msra.mxu1 %v12034_v18  ;;  %v1883_v23 = vld [vmem:[#allocation2 + $0x378] sm:$0xff] }
 0xb11   :  { %9123 = vmatprep.subr.bf16.mxu1 %v12027_v26  ;;  %v2007_v16 = vld [vmem:[#allocation2 + $0x758] sm:$0xff]  ;;  %v11987_v18 = vcombine.high %v1879_v0, %v1883_v23  ;;  %v11986_v30 = vcombine.low %v1879_v0, %v1883_v23 }
 0xb12   :  { %9083 = vmatpush1.bf16.msra.mxu0 %v11898_v57  ;;  %v2011_v28 = vld [vmem:[#allocation2 + $0x778] sm:$0xff] }
 0xb13   :  { %9084 = vmatprep.subr.bf16.mxu0 %v11891_v56  ;;  %v12115_v17 = vcombine.high %v2007_v16, %v2011_v28  ;;  %v1871_v26 = vld [vmem:[#allocation2 + $0x318] sm:$0xff]  ;;  %v12114_v57 = vcombine.low %v2007_v16, %v2011_v28 }
 0xb14   :  { %9124 = vmatpush1.bf16.msra.mxu1 %v12026_v39  ;;  %v1875_v54 = vld [vmem:[#allocation2 + $0x338] sm:$0xff] }
 0xb15   :  { %9125 = vmatprep.subr.bf16.mxu1 %v12019_v47  ;;  %v1999_v12 = vld [vmem:[#allocation2 + $0x718] sm:$0xff]  ;;  %v11979_v39 = vcombine.high %v1871_v26, %v1875_v54  ;;  %v11978_v27 = vcombine.low %v1871_v26, %v1875_v54 }
 0xb16   :  { %9085 = vmatpush1.bf16.msra.mxu0 %v11890_v48  ;;  %v2003_v6 = vld [vmem:[#allocation2 + $0x738] sm:$0xff] }
 0xb17   :  { %9086 = vmatprep.subr.bf16.mxu0 %v11883_v53  ;;  %v12107_v56 = vcombine.high %v1999_v12, %v2003_v6  ;;  %v1863_v47 = vld [vmem:[#allocation2 + $0x2d8] sm:$0xff]  ;;  %v12106_v48 = vcombine.low %v1999_v12, %v2003_v6 }
 0xb18   :  { %9126 = vmatpush1.bf16.msra.mxu1 %v12018_v52  ;;  %v1867_v31 = vld [vmem:[#allocation2 + $0x2f8] sm:$0xff] }
 0xb19   :  { %9127 = vmatprep.subr.bf16.mxu1 %v12011_v45  ;;  %v1991_v46 = vld [vmem:[#allocation2 + $0x6d8] sm:$0xff]  ;;  %v11971_v52 = vcombine.high %v1863_v47, %v1867_v31  ;;  %v11970_v20 = vcombine.low %v1863_v47, %v1867_v31 }
 0xb1a   :  { %9087 = vmatpush1.bf16.msra.mxu0 %v11882_v24  ;;  %v1995_v14 = vld [vmem:[#allocation2 + $0x6f8] sm:$0xff] }
 0xb1b   :  { %9088 = vmatprep.subr.bf16.mxu0 %v12003_v10  ;;  %v12099_v53 = vcombine.high %v1991_v46, %v1995_v14  ;;  %v1855_v45 = vld [vmem:[#allocation2 + $0x298] sm:$0xff]  ;;  %v12098_v24 = vcombine.low %v1991_v46, %v1995_v14 }
 0xb1c   :  { %9128 = vmatpush1.bf16.msra.mxu1 %v12010_v3  ;;  %v1859_v62 = vld [vmem:[#allocation2 + $0x2b8] sm:$0xff] }
 0xb1d   :  { %9129 = vmatprep.subr.bf16.mxu1 %v12131_v55  ;;  %v1983_v44 = vld [vmem:[#allocation2 + $0x698] sm:$0xff]  ;;  %v11963_v3 = vcombine.high %v1855_v45, %v1859_v62  ;;  %v11962_v63 = vcombine.low %v1855_v45, %v1859_v62 }
 0xb1e   :  { %9089 = vmatpush2.bf16.msra.mxu0 %v12002_v2  ;;  %v1987_v15 = vld [vmem:[#allocation2 + $0x6b8] sm:$0xff] }
 0xb1f   :  { %9090 = vmatprep.subr.bf16.mxu0 %v11995_v8  ;;  %v12091_v10 = vcombine.high %v1983_v44, %v1987_v15  ;;  %v1847_v55 = vld [vmem:[#allocation2 + $0x258] sm:$0xff]  ;;  %v12090_v2 = vcombine.low %v1983_v44, %v1987_v15 }
 0xb20   :  { %9130 = vmatpush2.bf16.msra.mxu1 %v12130_v9  ;;  %v1851_v58 = vld [vmem:[#allocation2 + $0x278] sm:$0xff] }
 0xb21   :  { %9131 = vmatprep.subr.bf16.mxu1 %v12123_v19  ;;  %v1975_v25 = vld [vmem:[#allocation2 + $0x658] sm:$0xff]  ;;  %v11955_v9 = vcombine.high %v1847_v55, %v1851_v58  ;;  %v11954_v28 = vcombine.low %v1847_v55, %v1851_v58 }
 0xb22   :  { %9091 = vmatpush2.bf16.msra.mxu0 %v11994_v11  ;;  %v1979_v59 = vld [vmem:[#allocation2 + $0x678] sm:$0xff] }
 0xb23   :  { %9092 = vmatprep.subr.bf16.mxu0 %v11987_v18  ;;  %v12083_v8 = vcombine.high %v1975_v25, %v1979_v59  ;;  %v1839_v19 = vld [vmem:[#allocation2 + $0x218] sm:$0xff]  ;;  %v12082_v11 = vcombine.low %v1975_v25, %v1979_v59 }
 0xb24   :  { %9132 = vmatpush2.bf16.msra.mxu1 %v12122_v13  ;;  %v1843_v0 = vld [vmem:[#allocation2 + $0x238] sm:$0xff] }
 0xb25   :  { %9133 = vmatprep.subr.bf16.mxu1 %v12115_v17  ;;  %v1967_v23 = vld [vmem:[#allocation2 + $0x618] sm:$0xff]  ;;  %v11947_v13 = vcombine.high %v1839_v19, %v1843_v0  ;;  %v11946_v6 = vcombine.low %v1839_v19, %v1843_v0 }
 0xb26   :  { %9093 = vmatpush2.bf16.msra.mxu0 %v11986_v30  ;;  %v1971_v16 = vld [vmem:[#allocation2 + $0x638] sm:$0xff] }
 0xb27   :  { %9094 = vmatprep.subr.bf16.mxu0 %v11979_v39  ;;  %v12075_v18 = vcombine.high %v1967_v23, %v1971_v16  ;;  %v2087_v17 = vld [vmem:[#allocation2 + $0x9d8] sm:$0xff]  ;;  %v12074_v30 = vcombine.low %v1967_v23, %v1971_v16 }
 0xb28   :  { %9134 = vmatpush2.bf16.msra.mxu1 %v12114_v57  ;;  %v2091_v26 = vld [vmem:[#allocation2 + $0x9f8] sm:$0xff] }
 0xb29   :  { %9135 = vmatprep.subr.bf16.mxu1 %v12107_v56  ;;  %v2215_v54 = vld [vmem:[#allocation2 + $0xdd8] sm:$0xff]  ;;  %v12195_v57 = vcombine.high %v2087_v17, %v2091_v26  ;;  %v12194_v14 = vcombine.low %v2087_v17, %v2091_v26 }
 0xb2a   :  { %9095 = vmatpush2.bf16.msra.mxu0 %v11978_v27  ;;  %v2219_v12 = vld [vmem:[#allocation2 + $0xdf8] sm:$0xff] }
 0xb2b   :  { %9096 = vmatprep.subr.bf16.mxu0 %v11971_v52  ;;  %v12323_v39 = vcombine.high %v2215_v54, %v2219_v12  ;;  %v2079_v56 = vld [vmem:[#allocation2 + $0x998] sm:$0xff]  ;;  %v12322_v27 = vcombine.low %v2215_v54, %v2219_v12 }
 0xb2c   :  { %9136 = vmatpush2.bf16.msra.mxu1 %v12106_v48  ;;  %v2083_v47 = vld [vmem:[#allocation2 + $0x9b8] sm:$0xff] }
 0xb2d   :  { %9137 = vmatprep.subr.bf16.mxu1 %v12099_v53  ;;  %v2207_v31 = vld [vmem:[#allocation2 + $0xd98] sm:$0xff]  ;;  %v12187_v48 = vcombine.high %v2079_v56, %v2083_v47 }
 0xb2e   :  { %9097 = vmatpush2.bf16.msra.mxu0 %v11970_v20  ;;  %v2211_v46 = vld [vmem:[#allocation2 + $0xdb8] sm:$0xff] }
 0xb2f   :  { %9098 = vmatprep.subr.bf16.mxu0 %v11963_v3  ;;  %v12315_v52 = vcombine.high %v2207_v31, %v2211_v46  ;;  %v2071_v53 = vld [vmem:[#allocation2 + $0x958] sm:$0xff]  ;;  %v12186_v3 = vcombine.low %v2079_v56, %v2083_v47  ;;  %v12314_v55 = vcombine.low %v2207_v31, %v2211_v46 }
 0xb30   :  { %9138 = vmatpush2.bf16.msra.mxu1 %v12098_v24  ;;  %v2075_v45 = vld [vmem:[#allocation2 + $0x978] sm:$0xff] }
 0xb31   :  { %9139 = vmatprep.subr.bf16.mxu1 %v12091_v10  ;;  %v2199_v44 = vld [vmem:[#allocation2 + $0xd58] sm:$0xff]  ;;  %v12179_v58 = vcombine.high %v2071_v53, %v2075_v45  ;;  %v12178_v19 = vcombine.low %v2071_v53, %v2075_v45 }
 0xb32   :  { %9099 = vmatpush2.bf16.msra.mxu0 %v11962_v63  ;;  %v2203_v15 = vld [vmem:[#allocation2 + $0xd78] sm:$0xff] }
 0xb33   :  { %9100 = vmatprep.subr.bf16.mxu0 %v11955_v9  ;;  %v2063_v63 = vld [vmem:[#allocation2 + $0x918] sm:$0xff]  ;;  %v12306_v23 = vcombine.low %v2199_v44, %v2203_v15 }
 0xb34   :  { %9140 = vmatpush2.bf16.msra.mxu1 %v12090_v2  ;;  %v2067_v2 = vld [vmem:[#allocation2 + $0x938] sm:$0xff] }
 0xb35   :  { %9141 = vmatprep.subr.bf16.mxu1 %v12083_v8  ;;  %v2195_v9 = vld [vmem:[#allocation2 + $0xd38] sm:$0xff]  ;;  %v12171_v16 = vcombine.high %v2063_v63, %v2067_v2  ;;  %v12170_v26 = vcombine.low %v2063_v63, %v2067_v2 }
 0xb36   :  { %9101 = vmatpush2.bf16.msra.mxu0 %v11954_v28  ;;  %v2183_v17 = vld [vmem:[#allocation2 + $0xcd8] sm:$0xff] }
 0xb37   :  { %9102 = vmatprep.subr.bf16.mxu0 %v11947_v13  ;;  %v2055_v13 = vld [vmem:[#allocation2 + $0x8d8] sm:$0xff] }
 0xb38   :  { %9142 = vmatpush2.bf16.msra.mxu1 %v12082_v11  ;;  %v2151_v2 = vld [vmem:[#allocation2 + $0xbd8] sm:$0xff] }
 0xb39   :  { %9143 = vmatprep.subr.bf16.mxu1 %v12075_v18  ;;  %v2059_v18 = vld [vmem:[#allocation2 + $0x8f8] sm:$0xff] }
 0xb3a   :  { %9103 = vmatpush2.bf16.msra.mxu0 %v11946_v6  ;;  %v12163_v54 = vcombine.high %v2055_v13, %v2059_v18  ;;  %v2047_v6 = vld [vmem:[#allocation2 + $0x898] sm:$0xff]  ;;  %v12162_v56 = vcombine.low %v2055_v13, %v2059_v18 }
 0xb3b   :  { %9154 = vmatprep.subr.bf16.mxu0 %v12195_v57  ;;  %v2175_v57 = vld [vmem:[#allocation2 + $0xc98] sm:$0xff] }
 0xb3c   :  { %9144 = vmatpush2.bf16.msra.mxu1 %v12074_v30  ;;  %v2051_v30 = vld [vmem:[#allocation2 + $0x8b8] sm:$0xff] }
 0xb3d   :  { %9195 = vmatprep.subr.bf16.mxu1 %v12323_v39  ;;  %v8860_v62 = vpop.f32.mrf.mxu0  ;;  %9105 = vmatmul.mubr.bf16.vlgmr.msra.gmra.mxu0 %v13879_v40  ;;  %v12307_v40 = vcombine.high %v2199_v44, %v2203_v15  ;;  %v2179_v39 = vld [vmem:[#allocation2 + $0xcb8] sm:$0xff]  ;;  %v12155_v31 = vcombine.high %v2047_v6, %v2051_v30  ;;  %v12154_v53 = vcombine.low %v2047_v6, %v2051_v30 }
 0xb3e   :  { %v8861_v20 = vadd.f32 %v8860_v62, %v13957_v49  ;;  %9155 = vmatpush1.bf16.msra.mxu0 %v12194_v14  ;;  %9186 = vmatprep.mubr.bf16.mxu0 %v13889_v61  ;;  %v2187_v61 = vld [vmem:[#allocation2 + $0xcf8] sm:$0xff]  ;;  %v12283_v46 = vcombine.high %v2175_v57, %v2179_v39  ;;  %v12282_v45 = vcombine.low %v2175_v57, %v2179_v39 }
 0xb3f   :  { %v8901_v24 = vpop.f32.mrf.mxu1  ;;  %9146 = vmatmul.mubr.bf16.vlgmr.msra.gmra.mxu1 %v13884_v29  ;;  %v13967_v10 = vpop.f32.mrf.mxu0  ;;  %9156 = vmatprep.subr.bf16.mxu0 %v12187_v48  ;;  %v2191_v29 = vld [vmem:[#allocation2 + $0xd18] sm:$0xff]  ;;  %v12291_v12 = vcombine.high %v2183_v17, %v2187_v61  ;;  %v12290_v47 = vcombine.low %v2183_v17, %v2187_v61 }
 0xb40   :  { %9196 = vmatpush1.bf16.msra.mxu1 %v12322_v27  ;;  %v13969_v25 = vadd.f32 %v8901_v24, %v8861_v20  ;;  %9227 = vmatprep.mubr.bf16.mxu1 %v13895_v1  ;;  %v12299_v11 = vcombine.high %v2191_v29, %v2195_v9  ;;  %v12298_v1 = vcombine.low %v2191_v29, %v2195_v9  ;;  %v2039_v14 = vld [vmem:[#allocation2 + $0x858] sm:$0xff] }
 0xb41   :  { %v13971_v59 = vpop.f32.mrf.mxu1  ;;  %9197 = vmatprep.subr.bf16.mxu1 %v12315_v52  ;;  %v8864_v49 = vpop.f32.mrf.mxu0  ;;  %v2043_v27 = vld [vmem:[#allocation2 + $0x878] sm:$0xff] }
 0xb42   :  { %9157 = vmatpush1.bf16.msra.mxu0 %v12186_v3  ;;  %v2167_v48 = vld [vmem:[#allocation2 + $0xc58] sm:$0xff]  ;;  %v12147_v62 = vcombine.high %v2039_v14, %v2043_v27 }
 0xb43   :  { %v8905_v8 = vpop.f32.mrf.mxu1  ;;  %v8865_v0 = vpop.f32.mrf.mxu0  ;;  %9158 = vmatprep.subr.bf16.mxu0 %v12179_v58  ;;  %v2171_v52 = vld [vmem:[#allocation2 + $0xc78] sm:$0xff] }
 0xb44   :  { %9198 = vmatpush1.bf16.msra.mxu1 %v12314_v55  ;;  %v12275_v44 = vcombine.high %v2167_v48, %v2171_v52  ;;  %v2031_v15 = vld [vmem:[#allocation2 + $0x818] sm:$0xff]  ;;  %v12146_v55 = vcombine.low %v2039_v14, %v2043_v27  ;;  %v12274_v58 = vcombine.low %v2167_v48, %v2171_v52 }
 0xb45   :  { %v8906_v28 = vpop.f32.mrf.mxu1  ;;  %9199 = vmatprep.subr.bf16.mxu1 %v12307_v40  ;;  %v2035_v20 = vld [vmem:[#allocation2 + $0x838] sm:$0xff] }
 0xb46   :  { %9159 = vmatpush1.bf16.msra.mxu0 %v12178_v19  ;;  %v2159_v24 = vld [vmem:[#allocation2 + $0xc18] sm:$0xff]  ;;  %v12139_v40 = vcombine.high %v2031_v15, %v2035_v20  ;;  %v12138_v8 = vcombine.low %v2031_v15, %v2035_v20 }
 0xb47   :  { %9160 = vmatprep.subr.bf16.mxu0 %v12171_v16  ;;  %v2163_v3 = vld [vmem:[#allocation2 + $0xc38] sm:$0xff] }
 0xb48   :  { %9200 = vmatpush1.bf16.msra.mxu1 %v12306_v23  ;;  %v12267_v63 = vcombine.high %v2159_v24, %v2163_v3  ;;  %v2155_v49 = vld [vmem:[#allocation2 + $0xbf8] sm:$0xff]  ;;  %v12266_v19 = vcombine.low %v2159_v24, %v2163_v3 }
 0xb49   :  { %9201 = vmatprep.subr.bf16.mxu1 %v12299_v11  ;;  %v2279_v29 = vld [vmem:[#allocation2 + $0xfd8] sm:$0xff]  ;;  %v12259_v0 = vcombine.high %v2151_v2, %v2155_v49  ;;  %v12258_v18 = vcombine.low %v2151_v2, %v2155_v49 }
 0xb4a   :  { %9161 = vmatpush1.bf16.msra.mxu0 %v12170_v26  ;;  %v2283_v9 = vld [vmem:[#allocation2 + $0xff8] sm:$0xff] }
 0xb4b   :  { %9162 = vmatprep.subr.bf16.mxu0 %v12163_v54  ;;  %v12387_v23 = vcombine.high %v2279_v29, %v2283_v9  ;;  %v2143_v16 = vld [vmem:[#allocation2 + $0xb98] sm:$0xff]  ;;  %v12386_v17 = vcombine.low %v2279_v29, %v2283_v9 }
 0xb4c   :  { %9202 = vmatpush1.bf16.msra.mxu1 %v12298_v1  ;;  %v2147_v28 = vld [vmem:[#allocation2 + $0xbb8] sm:$0xff] }
 0xb4d   :  { %9203 = vmatprep.subr.bf16.mxu1 %v12291_v12  ;;  %v2271_v11 = vld [vmem:[#allocation2 + $0xf98] sm:$0xff]  ;;  %v12251_v61 = vcombine.high %v2143_v16, %v2147_v28  ;;  %v12250_v30 = vcombine.low %v2143_v16, %v2147_v28 }
 0xb4e   :  { %9163 = vmatpush1.bf16.msra.mxu0 %v12162_v56  ;;  %v2275_v13 = vld [vmem:[#allocation2 + $0xfb8] sm:$0xff] }
 0xb4f   :  { %9164 = vmatprep.subr.bf16.mxu0 %v12155_v31  ;;  %v12379_v26 = vcombine.high %v2271_v11, %v2275_v13  ;;  %v2135_v1 = vld [vmem:[#allocation2 + $0xb58] sm:$0xff]  ;;  %v12378_v57 = vcombine.low %v2271_v11, %v2275_v13  ;;  %v8863_v13 = vadd.f32 %v13967_v10, %v13962_v50 }
 0xb50   :  { %9204 = vmatpush1.bf16.msra.mxu1 %v12290_v47  ;;  %v2139_v54 = vld [vmem:[#allocation2 + $0xb78] sm:$0xff] }
 0xb51   :  { %9205 = vmatprep.subr.bf16.mxu1 %v12283_v46  ;;  %v2263_v12 = vld [vmem:[#allocation2 + $0xf58] sm:$0xff]  ;;  %v12243_v39 = vcombine.high %v2135_v1, %v2139_v54  ;;  %v12242_v27 = vcombine.low %v2135_v1, %v2139_v54  ;;  %v8904_v10 = vadd.f32 %v13971_v59, %v8863_v13  ;;  %v12774_v59 = vld [vmem:[#allocation17 + $0x2e4] ss:$16 sps:$4 sm:$0xff]  }
 0xb52   :  { %9165 = vmatpush1.bf16.msra.mxu0 %v12154_v53  ;;  %v2267_v6 = vld [vmem:[#allocation2 + $0xf78] sm:$0xff]  ;;  %v12792_v13 = vld [vmem:[#allocation17 + $0x284] ss:$16 sps:$4 sm:$0xff]  }
 0xb53   :  { %9166 = vmatprep.subr.bf16.mxu0 %v12147_v62  ;;  %v12371_v56 = vcombine.high %v2263_v12, %v2267_v6  ;;  %v2127_v47 = vld [vmem:[#allocation2 + $0xb18] sm:$0xff]  ;;  %v12370_v48 = vcombine.low %v2263_v12, %v2267_v6 }
 0xb54   :  { %9206 = vmatpush1.bf16.msra.mxu1 %v12282_v45  ;;  %v2131_v31 = vld [vmem:[#allocation2 + $0xb38] sm:$0xff] }
 0xb55   :  { %9207 = vmatprep.subr.bf16.mxu1 %v12275_v44  ;;  %v2255_v46 = vld [vmem:[#allocation2 + $0xf18] sm:$0xff]  ;;  %v12235_v52 = vcombine.high %v2127_v47, %v2131_v31  ;;  %v12234_v20 = vcombine.low %v2127_v47, %v2131_v31 }
 0xb56   :  { %9167 = vmatpush1.bf16.msra.mxu0 %v12146_v55  ;;  %v2259_v14 = vld [vmem:[#allocation2 + $0xf38] sm:$0xff] }
 0xb57   :  { %9168 = vmatprep.subr.bf16.mxu0 %v12139_v40  ;;  %v12363_v53 = vcombine.high %v2255_v46, %v2259_v14  ;;  %v2119_v45 = vld [vmem:[#allocation2 + $0xad8] sm:$0xff]  ;;  %v12362_v24 = vcombine.low %v2255_v46, %v2259_v14 }
 0xb58   :  { %9208 = vmatpush1.bf16.msra.mxu1 %v12274_v58  ;;  %v2123_v62 = vld [vmem:[#allocation2 + $0xaf8] sm:$0xff] }
 0xb59   :  { %9209 = vmatprep.subr.bf16.mxu1 %v12267_v63  ;;  %v2247_v44 = vld [vmem:[#allocation2 + $0xed8] sm:$0xff]  ;;  %v12227_v3 = vcombine.high %v2119_v45, %v2123_v62  ;;  %v13976_v63 = vsub.s32 6, %v13662_v32  ;;  %v12226_v29 = vcombine.low %v2119_v45, %v2123_v62 }
 0xb5a   :  { %9169 = vmatpush1.bf16.msra.mxu0 %v12138_v8  ;;  %v2251_v15 = vld [vmem:[#allocation2 + $0xef8] sm:$0xff] }
 0xb5b   :  { %9170 = vmatprep.subr.bf16.mxu0 %v12259_v0  ;;  %v12355_v55 = vcombine.high %v2247_v44, %v2251_v15  ;;  %v2111_v58 = vld [vmem:[#allocation2 + $0xa98] sm:$0xff]  ;;  %v12354_v9 = vcombine.low %v2247_v44, %v2251_v15  ;;  %v9243_v16 = vrot.slane %v13667_v34, %v13976_v63 }
 0xb5c   :  { %9210 = vmatpush1.bf16.msra.mxu1 %v12266_v19  ;;  %v2115_v40 = vld [vmem:[#allocation2 + $0xab8] sm:$0xff] }
 0xb5d   :  { %9211 = vmatprep.subr.bf16.mxu1 %v12387_v23  ;;  %v2239_v2 = vld [vmem:[#allocation2 + $0xe98] sm:$0xff]  ;;  %v12219_v8 = vcombine.high %v2111_v58, %v2115_v40 }
 0xb5e   :  { %9171 = vmatpush2.bf16.msra.mxu0 %v12258_v18  ;;  %v2243_v49 = vld [vmem:[#allocation2 + $0xeb8] sm:$0xff]  ;;  %v9251_v18 = vrot.slane %v13669_v35, %v13976_v63 }
 0xb5f   :  { %9172 = vmatprep.subr.bf16.mxu0 %v12251_v61  ;;  %v12347_v19 = vcombine.high %v2239_v2, %v2243_v49  ;;  %v2103_v0 = vld [vmem:[#allocation2 + $0xa58] sm:$0xff]  ;;  %v13985_v61 = vsub.s32 2, %v13662_v32 }
 0xb60   :  { %9212 = vmatpush2.bf16.msra.mxu1 %v12386_v17  ;;  %v2107_v23 = vld [vmem:[#allocation2 + $0xa78] sm:$0xff]  ;;  %v12218_v17 = vcombine.low %v2111_v58, %v2115_v40 }
 0xb61   :  { %9213 = vmatprep.subr.bf16.mxu1 %v12379_v26  ;;  %v2231_v28 = vld [vmem:[#allocation2 + $0xe58] sm:$0xff]  ;;  %v12346_v26 = vcombine.low %v2239_v2, %v2243_v49  ;;  %v12211_v1 = vcombine.high %v2103_v0, %v2107_v23 }
 0xb62   :  { %9173 = vmatpush2.bf16.msra.mxu0 %v12250_v30  ;;  %v2235_v11 = vld [vmem:[#allocation2 + $0xe78] sm:$0xff]  ;;  %v9283_v30 = vrot.slane %v9243_v16, %v13985_v61 }
 0xb63   :  { %9174 = vmatprep.subr.bf16.mxu0 %v12243_v39  ;;  %v12339_v54 = vcombine.high %v2231_v28, %v2235_v11  ;;  %v2095_v12 = vld [vmem:[#allocation2 + $0xa18] sm:$0xff]  ;;  %v9291_v39 = vrot.slane %v9251_v18, %v13985_v61  ;;  %v12338_v47 = vcombine.low %v2231_v28, %v2235_v11  ;;  %v12789_v28 = vld [vmem:[#allocation17 + $0x84] ss:$16 sps:$4 sm:$0xff]  }
 0xb64   :  { %9214 = vmatpush2.bf16.msra.mxu1 %v12378_v57  ;;  %v2099_v6 = vld [vmem:[#allocation2 + $0xa38] sm:$0xff]  ;;  %v9309_v14 = vadd.f32 %v9283_v30, %v13952_v37  ;;  %v12804_v30 = vld [vmem:[#allocation17 + $0x244] ss:$16 sps:$4 sm:$0xff]  }
 0xb65   :  { %9215 = vmatprep.subr.bf16.mxu1 %v12371_v56  ;;  %v2223_v57 = vld [vmem:[#allocation2 + $0xe18] sm:$0xff]  ;;  %v12210_v56 = vcombine.low %v2103_v0, %v2107_v23  ;;  %v12203_v31 = vcombine.high %v2095_v12, %v2099_v6 }
 0xb66   :  { %9175 = vmatpush2.bf16.msra.mxu0 %v12242_v27  ;;  %v2227_v50 = vld [vmem:[#allocation2 + $0xe38] sm:$0xff]  ;;  %v9311_v27 = vadd.f32 %v9291_v39, %v8904_v10  ;;  %v9317_v45 = vmax.f32 %v9309_v14, 0.0  ;;  %v12807_v10 = vld [vmem:[#allocation17 + $0x24] ss:$16 sps:$4 sm:$0xff]  }
 0xb67   :  { %9176 = vmatprep.subr.bf16.mxu0 %v12235_v52  ;;  %v12331_v46 = vcombine.high %v2223_v57, %v2227_v50  ;;  %v12330_v52 = vcombine.low %v2223_v57, %v2227_v50  ;;  %v12769_v44 = vld [vmem:[#allocation17 + $0xe0] ss:$16 sps:$4 sm:$0xff]   ;;  %v12810_v39 = vld [vmem:[#allocation17 + $0x224] ss:$16 sps:$4 sm:$0xff]  }
 0xb68   :  { %9216 = vmatpush2.bf16.msra.mxu1 %v12370_v48  ;;  %v12202_v48 = vcombine.low %v2095_v12, %v2099_v6  ;;  %v9319_v62 = vmax.f32 %v9311_v27, 0.0  ;;  %v12772_v15 = vld [vmem:[#allocation17 + $0x2e0] ss:$16 sps:$4 sm:$0xff]   ;;  %v12801_v6 = vld [vmem:[#allocation17 + $0x44] ss:$16 sps:$4 sm:$0xff]  }
 0xb69   :  { %9217 = vmatprep.subr.bf16.mxu1 %v12363_v53  ;;  %v12771_v53 = vld [vmem:[#allocation17 + $0xe4] ss:$16 sps:$4 sm:$0xff]   ;;  %v12775_v2 = vld [vmem:[#allocation17 + $0xc0] ss:$16 sps:$4 sm:$0xff]  }
 0xb6a   :  { %9177 = vmatpush2.bf16.msra.mxu0 %v12234_v20  ;;  %v12777_v20 = vld [vmem:[#allocation17 + $0xc4] ss:$16 sps:$4 sm:$0xff]   ;;  %v12781_v0 = vld [vmem:[#allocation17 + $0xa0] ss:$16 sps:$4 sm:$0xff]  }
 0xb6b   :  { %9178 = vmatprep.subr.bf16.mxu0 %v12227_v3  ;;  %v12780_v3 = vld [vmem:[#allocation17 + $0x2c4] ss:$16 sps:$4 sm:$0xff]   ;;  %v12784_v16 = vld [vmem:[#allocation17 + $0x2a0] ss:$16 sps:$4 sm:$0xff]  }
 0xb6c   :  { %9218 = vmatpush2.bf16.msra.mxu1 %v12362_v24  ;;  %v13991_v24 = vpack.c.bf16 %v9317_v45, %v9317_v45  ;;  %v12787_v18 = vld [vmem:[#allocation17 + $0x80] ss:$16 sps:$4 sm:$0xff]   ;;  %v12825_v45 = vld [vmem:[#allocation17 + $0x1c4] ss:$16 sps:$4 sm:$0xff]  }
 0xb6d   :  { %9219 = vmatprep.subr.bf16.mxu1 %v12355_v55  ;;  %v13994_v55 = vpack.c.bf16 %v9319_v62, %v9319_v62  ;;  %v12796_v12 = vld [vmem:[#allocation17 + $0x260] ss:$16 sps:$4 sm:$0xff]   ;;  %v12828_v62 = vld [vmem:[#allocation17 + $0x3c4] ss:$16 sps:$4 sm:$0xff]  }
 0xb6e   :  { %9179 = vmatpush2.bf16.msra.mxu0 %v12226_v29  ;;  %v12778_v29 = vld [vmem:[#allocation17 + $0x2c0] ss:$16 sps:$4 sm:$0xff]  }
 0xb6f   :  { %9180 = vmatprep.subr.bf16.mxu0 %v12219_v8  ;;  %v12799_v57 = vld [vmem:[#allocation17 + $0x40] ss:$16 sps:$4 sm:$0xff]  }
 0xb70   :  { %9220 = vmatpush2.bf16.msra.mxu1 %v12354_v9  ;;  %v12783_v9 = vld [vmem:[#allocation17 + $0xa4] ss:$16 sps:$4 sm:$0xff]   ;;  %v12802_v50 = vld [vmem:[#allocation17 + $0x240] ss:$16 sps:$4 sm:$0xff]  }
 0xb71   :  { %9221 = vmatprep.subr.bf16.mxu1 %v12347_v19  ;;  %v12811_v14 = vld [vmem:[#allocation17] ss:$16 sps:$4 sm:$0xff]  }
 0xb72   :  { %9181 = vmatpush2.bf16.msra.mxu0 %v12218_v17  ;;  %v12790_v17 = vld [vmem:[#allocation17 + $0x280] ss:$16 sps:$4 sm:$0xff]  }
 0xb73   :  { %9182 = vmatprep.subr.bf16.mxu0 %v12211_v1  ;;  %v12798_v1 = vld [vmem:[#allocation17 + $0x264] ss:$16 sps:$4 sm:$0xff]   ;;  %v12814_v27 = vld [vmem:[#allocation17 + $0x200] ss:$16 sps:$4 sm:$0xff]  }
 0xb74   :  { %9222 = vmatpush2.bf16.msra.mxu1 %v12346_v26  ;;  %v12795_v26 = vld [vmem:[#allocation17 + $0x64] ss:$16 sps:$4 sm:$0xff]  }
 0xb75   :  { %9223 = vmatprep.subr.bf16.mxu1 %v12339_v54  ;;  %v12793_v54 = vld [vmem:[#allocation17 + $0x60] ss:$16 sps:$4 sm:$0xff]  }
 0xb76   :  { %9183 = vmatpush2.bf16.msra.mxu0 %v12210_v56  ;;  %v12805_v56 = vld [vmem:[#allocation17 + $0x20] ss:$16 sps:$4 sm:$0xff]  }
 0xb77   :  { %9184 = vmatprep.subr.bf16.mxu0 %v12203_v31  ;;  %v12813_v31 = vld [vmem:[#allocation17 + $0x4] ss:$16 sps:$4 sm:$0xff]  }
 0xb78   :  { %9224 = vmatpush2.bf16.msra.mxu1 %v12338_v47  ;;  %v12808_v47 = vld [vmem:[#allocation17 + $0x220] ss:$16 sps:$4 sm:$0xff]  }
 0xb79   :  { %9225 = vmatprep.subr.bf16.mxu1 %v12331_v46  ;;  %v12816_v46 = vld [vmem:[#allocation17 + $0x204] ss:$16 sps:$4 sm:$0xff]  }
 0xb7a   :  { %9185 = vmatpush2.bf16.msra.mxu0 %v12202_v48  ;;  %v12819_v48 = vld [vmem:[#allocation17 + $0x1e4] ss:$16 sps:$4 sm:$0xff]  }
 0xb7b   :  { %10906 = vmatprep.subr.bf16.mxu0 %v12771_v53  ;;  %v12817_v53 = vld [vmem:[#allocation17 + $0x1e0] ss:$16 sps:$4 sm:$0xff]  }
 0xb7c   :  { %9226 = vmatpush2.bf16.msra.mxu1 %v12330_v52  ;;  %v12822_v52 = vld [vmem:[#allocation17 + $0x3e4] ss:$16 sps:$4 sm:$0xff]  }
 0xb7d   :  { %10947 = vmatprep.subr.bf16.mxu1 %v12774_v59  ;;  %v8942_v37 = vpop.f32.mrf.mxu0  ;;  %9187 = vmatmul.mubr.bf16.vlgmr.msra.gmra.mxu0 %v13909_v4  ;;  %v12820_v59 = vld [vmem:[#allocation17 + $0x3e0] ss:$16 sps:$4 sm:$0xff]  }
 0xb7e   :  { %v8943_v58 = vadd.f32 %v8942_v37, %v13899_v38  ;;  %10907 = vmatpush1.bf16.msra.mxu0 %v12769_v44  ;;  %10938 = vmatprep.mubr.bf16.mxu0 %v13991_v24  ;;  %v12786_v38 = vld [vmem:[#allocation17 + $0x2a4] ss:$16 sps:$4 sm:$0xff]   ;;  %v12823_v44 = vld [vmem:[#allocation17 + $0x1c0] ss:$16 sps:$4 sm:$0xff]  }
 0xb7f   :  { %v8983_v40 = vpop.f32.mrf.mxu1  ;;  %9228 = vmatmul.mubr.bf16.vlgmr.msra.gmra.mxu1 %v13914_v7  ;;  %v13999_v49 = vpop.f32.mrf.mxu0  ;;  %10908 = vmatprep.subr.bf16.mxu0 %v12777_v20  ;;  %v12831_v20 = vld [vmem:[#allocation17 + $0x1a4] ss:$16 sps:$4 sm:$0xff]  }
 0xb80   :  { %10948 = vmatpush1.bf16.msra.mxu1 %v12772_v15  ;;  %v14001_v8 = vadd.f32 %v8983_v40, %v8943_v58  ;;  %10979 = vmatprep.mubr.bf16.mxu1 %v13994_v55  ;;  %v12826_v15 = vld [vmem:[#allocation17 + $0x3c0] ss:$16 sps:$4 sm:$0xff]   ;;  %v12834_v37 = vld [vmem:[#allocation17 + $0x3a4] ss:$16 sps:$4 sm:$0xff]  }
 0xb81   :  { %v14004_v4 = vpop.f32.mrf.mxu1  ;;  %v8946_v19 = vpop.f32.mrf.mxu0  ;;  %10949 = vmatprep.subr.bf16.mxu1 %v12780_v3  ;;  %v12829_v3 = vld [vmem:[#allocation17 + $0x1a0] ss:$16 sps:$4 sm:$0xff]   ;;  %v12837_v40 = vld [vmem:[#allocation17 + $0x184] ss:$16 sps:$4 sm:$0xff]  }
 0xb82   :  { %10909 = vmatpush1.bf16.msra.mxu0 %v12775_v2  ;;  %v12832_v58 = vld [vmem:[#allocation17 + $0x3a0] ss:$16 sps:$4 sm:$0xff]   ;;  %v12840_v2 = vld [vmem:[#allocation17 + $0x384] ss:$16 sps:$4 sm:$0xff]  }
 0xb83   :  { %v8987_v7 = vpop.f32.mrf.mxu1  ;;  %v8947_v23 = vpop.f32.mrf.mxu0  ;;  %10910 = vmatprep.subr.bf16.mxu0 %v12783_v9  ;;  %v12838_v9 = vld [vmem:[#allocation17 + $0x380] ss:$16 sps:$4 sm:$0xff]   ;;  %v12846_v19 = vld [vmem:[#allocation17 + $0x364] ss:$16 sps:$4 sm:$0xff]  }
 0xb84   :  { %10950 = vmatpush1.bf16.msra.mxu1 %v12778_v29  ;;  %v12835_v29 = vld [vmem:[#allocation17 + $0x180] ss:$16 sps:$4 sm:$0xff]  }
 0xb85   :  { %v8988_v11 = vpop.f32.mrf.mxu1  ;;  %10951 = vmatprep.subr.bf16.mxu1 %v12786_v38  ;;  %v12843_v38 = vld [vmem:[#allocation17 + $0x164] ss:$16 sps:$4 sm:$0xff]   ;;  %v12841_v7 = vld [vmem:[#allocation17 + $0x160] ss:$16 sps:$4 sm:$0xff]  }
 0xb86   :  { %10911 = vmatpush1.bf16.msra.mxu0 %v12781_v0  ;;  %v9239_v0 = vrot.slane %v13667_v34, %v13985_v61  ;;  %v12844_v23 = vld [vmem:[#allocation17 + $0x360] ss:$16 sps:$4 sm:$0xff]   ;;  %v12852_v11 = vld [vmem:[#allocation17 + $0x344] ss:$16 sps:$4 sm:$0xff]  }
 0xb87   :  { %10912 = vmatprep.subr.bf16.mxu0 %v12789_v28  ;;  %v9247_v28 = vrot.slane %v13669_v35, %v13985_v61  ;;  %v12858_v34 = vld [vmem:[#allocation17 + $0x324] ss:$16 sps:$4 sm:$0xff]   ;;  %v12856_v35 = vld [vmem:[#allocation17 + $0x320] ss:$16 sps:$4 sm:$0xff]  }
 0xb88   :  { %10952 = vmatpush1.bf16.msra.mxu1 %v12784_v16  ;;  %v12849_v16 = vld [vmem:[#allocation17 + $0x144] ss:$16 sps:$4 sm:$0xff]  }
 0xb89   :  { %10953 = vmatprep.subr.bf16.mxu1 %v12792_v13  ;;  %v12847_v13 = vld [vmem:[#allocation17 + $0x140] ss:$16 sps:$4 sm:$0xff]  }
 0xb8a   :  { %10913 = vmatpush1.bf16.msra.mxu0 %v12787_v18  ;;  %v9279_v18 = vrot.slane %v9239_v0, %v13985_v61 }
 0xb8b   :  { %10914 = vmatprep.subr.bf16.mxu0 %v12795_v26  ;;  %v12855_v26 = vld [vmem:[#allocation17 + $0x124] ss:$16 sps:$4 sm:$0xff]  }
 0xb8c   :  { %10954 = vmatpush1.bf16.msra.mxu1 %v12790_v17  ;;  %v12850_v17 = vld [vmem:[#allocation17 + $0x340] ss:$16 sps:$4 sm:$0xff]  }
 0xb8d   :  { %10955 = vmatprep.subr.bf16.mxu1 %v12798_v1  ;;  %v9287_v1 = vrot.slane %v9247_v28, %v13985_v61  ;;  %v12874_v28 = vld [vmem:[#allocation17 + $0x480] ss:$16 sps:$4 sm:$0xff]  }
 0xb8e   :  { %10915 = vmatpush1.bf16.msra.mxu0 %v12793_v54  ;;  %v12853_v54 = vld [vmem:[#allocation17 + $0x120] ss:$16 sps:$4 sm:$0xff]  }
 0xb8f   :  { %10916 = vmatprep.subr.bf16.mxu0 %v12801_v6  ;;  %v12861_v6 = vld [vmem:[#allocation17 + $0x104] ss:$16 sps:$4 sm:$0xff]  }
 0xb90   :  { %10956 = vmatpush1.bf16.msra.mxu1 %v12796_v12  ;;  %v9308_v12 = vadd.f32 %v9279_v18, %v13947_v22  ;;  %v8945_v22 = vadd.f32 %v13999_v49, %v13904_v43 }
 0xb91   :  { %10957 = vmatprep.subr.bf16.mxu1 %v12804_v30  ;;  %v9310_v30 = vadd.f32 %v9287_v1, %v13969_v25  ;;  %v12870_v25 = vld [vmem:[#allocation17 + $0x4c4] ss:$16 sps:$4 sm:$0xff]  }
 0xb92   :  { %10917 = vmatpush1.bf16.msra.mxu0 %v12799_v57  ;;  %v12864_v57 = vld [vmem:[#allocation17 + $0x304] ss:$16 sps:$4 sm:$0xff]   ;;  %v8986_v43 = vadd.f32 %v14004_v4, %v8945_v22 }
 0xb93   :  { %10918 = vmatprep.subr.bf16.mxu0 %v12807_v10  ;;  %v9316_v10 = vmax.f32 %v9308_v12, 0.0  ;;  %v12882_v1 = vld [vmem:[#allocation17 + $0x444] ss:$16 sps:$4 sm:$0xff]   ;;  %v12880_v12 = vld [vmem:[#allocation17 + $0x440] ss:$16 sps:$4 sm:$0xff]  }
 0xb94   :  { %10958 = vmatpush1.bf16.msra.mxu1 %v12802_v50  ;;  %v12859_v50 = vld [vmem:[#allocation17 + $0x100] ss:$16 sps:$4 sm:$0xff]   ;;  %v12975_v22 = vld [vmem:[#allocation17 + $0x7e4] ss:$16 sps:$4 sm:$0xff]  }
 0xb95   :  { %10959 = vmatprep.subr.bf16.mxu1 %v12810_v39  ;;  %v12862_v39 = vld [vmem:[#allocation17 + $0x300] ss:$16 sps:$4 sm:$0xff]  }
 0xb96   :  { %10919 = vmatpush1.bf16.msra.mxu0 %v12805_v56  ;;  %v12867_v56 = vld [vmem:[#allocation17 + $0x4e4] ss:$16 sps:$4 sm:$0xff]  }
 0xb97   :  { %10920 = vmatprep.subr.bf16.mxu0 %v12813_v31  ;;  %v12927_v31 = vld [vmem:[#allocation17 + $0x6e4] ss:$16 sps:$4 sm:$0xff]  }
 0xb98   :  { %10960 = vmatpush1.bf16.msra.mxu1 %v12808_v47  ;;  %v9318_v47 = vmax.f32 %v9310_v30, 0.0  ;;  %v12963_v30 = vld [vmem:[#allocation17 + $0x624] ss:$16 sps:$4 sm:$0xff]  }
 0xb99   :  { %10961 = vmatprep.subr.bf16.mxu1 %v12816_v46  ;;  %v12865_v46 = vld [vmem:[#allocation17 + $0x4e0] ss:$16 sps:$4 sm:$0xff]  }
 0xb9a   :  { %10921 = vmatpush1.bf16.msra.mxu0 %v12811_v14  ;;  %v14016_v14 = vpack.c.bf16 %v9316_v10, %v9316_v10  ;;  %v12961_v10 = vld [vmem:[#allocation17 + $0x620] ss:$16 sps:$4 sm:$0xff]  }
 0xb9b   :  { %10922 = vmatprep.subr.bf16.mxu0 %v12819_v48  ;;  %v14018_v48 = vpack.c.bf16 %v9318_v47, %v9318_v47  ;;  %v12891_v47 = vld [vmem:[#allocation17 + $0x5e4] ss:$16 sps:$4 sm:$0xff]  }
 0xb9c   :  { %10962 = vmatpush1.bf16.msra.mxu1 %v12814_v27  ;;  %v12925_v27 = vld [vmem:[#allocation17 + $0x6e0] ss:$16 sps:$4 sm:$0xff]  }
 0xb9d   :  { %10963 = vmatprep.subr.bf16.mxu1 %v12822_v52  ;;  %v9259_v52 = vrot.slane %v13682_v41, %v13976_v63 }
 0xb9e   :  { %10923 = vmatpush2.bf16.msra.mxu0 %v12817_v53  ;;  %v12933_v53 = vld [vmem:[#allocation17 + $0x6c4] ss:$16 sps:$4 sm:$0xff]  }
 0xb9f   :  { %10924 = vmatprep.subr.bf16.mxu0 %v12825_v45  ;;  %v12868_v45 = vld [vmem:[#allocation17 + $0x4c0] ss:$16 sps:$4 sm:$0xff]  }
 0xba0   :  { %10964 = vmatpush2.bf16.msra.mxu1 %v12820_v59 }
 0xba1   :  { %10965 = vmatprep.subr.bf16.mxu1 %v12828_v62 }
 0xba2   :  { %10925 = vmatpush2.bf16.msra.mxu0 %v12823_v44  ;;  %v12873_v44 = vld [vmem:[#allocation17 + $0x4a4] ss:$16 sps:$4 sm:$0xff]  }
 0xba3   :  { %10926 = vmatprep.subr.bf16.mxu0 %v12831_v20 }
 0xba4   :  { %10966 = vmatpush2.bf16.msra.mxu1 %v12826_v15  ;;  %v12931_v15 = vld [vmem:[#allocation17 + $0x6c0] ss:$16 sps:$4 sm:$0xff]  }
 0xba5   :  { %10967 = vmatprep.subr.bf16.mxu1 %v12834_v37 }
 0xba6   :  { %10927 = vmatpush2.bf16.msra.mxu0 %v12829_v3  ;;  %v9299_v3 = vrot.slane %v9259_v52, %v13985_v61  ;;  %v12981_v52 = vld [vmem:[#allocation17 + $0x7c4] ss:$16 sps:$4 sm:$0xff]  }
 0xba7   :  { %10928 = vmatprep.subr.bf16.mxu0 %v12837_v40 }
 0xba8   :  { %10968 = vmatpush2.bf16.msra.mxu1 %v12832_v58  ;;  %v12939_v58 = vld [vmem:[#allocation17 + $0x6a4] ss:$16 sps:$4 sm:$0xff]  }
 0xba9   :  { %10969 = vmatprep.subr.bf16.mxu1 %v12840_v2 }
 0xbaa   :  { %10929 = vmatpush2.bf16.msra.mxu0 %v12835_v29  ;;  %v12871_v29 = vld [vmem:[#allocation17 + $0x4a0] ss:$16 sps:$4 sm:$0xff]  }
 0xbab   :  { %10930 = vmatprep.subr.bf16.mxu0 %v12843_v38  ;;  %v12876_v38 = vld [vmem:[#allocation17 + $0x484] ss:$16 sps:$4 sm:$0xff]  }
 0xbac   :  { %10970 = vmatpush2.bf16.msra.mxu1 %v12838_v9 }
 0xbad   :  { %10971 = vmatprep.subr.bf16.mxu1 %v12846_v19  ;;  %v12937_v19 = vld [vmem:[#allocation17 + $0x6a0] ss:$16 sps:$4 sm:$0xff]  }
 0xbae   :  { %10931 = vmatpush2.bf16.msra.mxu0 %v12841_v7 }
 0xbaf   :  { %10932 = vmatprep.subr.bf16.mxu0 %v12849_v16 }
 0xbb0   :  { %10972 = vmatpush2.bf16.msra.mxu1 %v12844_v23  ;;  %v12945_v23 = vld [vmem:[#allocation17 + $0x684] ss:$16 sps:$4 sm:$0xff]  }
 0xbb1   :  { %10973 = vmatprep.subr.bf16.mxu1 %v12852_v11  ;;  %v12879_v11 = vld [vmem:[#allocation17 + $0x464] ss:$16 sps:$4 sm:$0xff]  }
 0xbb2   :  { %10933 = vmatpush2.bf16.msra.mxu0 %v12847_v13  ;;  %v12943_v13 = vld [vmem:[#allocation17 + $0x680] ss:$16 sps:$4 sm:$0xff]  }
 0xbb3   :  { %10934 = vmatprep.subr.bf16.mxu0 %v12855_v26  ;;  %v12877_v26 = vld [vmem:[#allocation17 + $0x460] ss:$16 sps:$4 sm:$0xff]  }
 0xbb4   :  { %10974 = vmatpush2.bf16.msra.mxu1 %v12850_v17  ;;  %v12951_v17 = vld [vmem:[#allocation17 + $0x664] ss:$16 sps:$4 sm:$0xff]  }
 0xbb5   :  { %10975 = vmatprep.subr.bf16.mxu1 %v12858_v34  ;;  %v12949_v34 = vld [vmem:[#allocation17 + $0x660] ss:$16 sps:$4 sm:$0xff]  }
 0xbb6   :  { %10935 = vmatpush2.bf16.msra.mxu0 %v12853_v54  ;;  %v12957_v54 = vld [vmem:[#allocation17 + $0x644] ss:$16 sps:$4 sm:$0xff]  }
 0xbb7   :  { %10936 = vmatprep.subr.bf16.mxu0 %v12861_v6  ;;  %v12955_v6 = vld [vmem:[#allocation17 + $0x640] ss:$16 sps:$4 sm:$0xff]  }
 0xbb8   :  { %10976 = vmatpush2.bf16.msra.mxu1 %v12856_v35  ;;  %v12885_v35 = vld [vmem:[#allocation17 + $0x424] ss:$16 sps:$4 sm:$0xff]  }
 0xbb9   :  { %10977 = vmatprep.subr.bf16.mxu1 %v12864_v57  ;;  %v12883_v57 = vld [vmem:[#allocation17 + $0x420] ss:$16 sps:$4 sm:$0xff]  }
 0xbba   :  { %10937 = vmatpush2.bf16.msra.mxu0 %v12859_v50  ;;  %v12888_v50 = vld [vmem:[#allocation17 + $0x404] ss:$16 sps:$4 sm:$0xff]  }
 0xbbb   :  { %10988 = vmatprep.subr.bf16.mxu0 %v12867_v56  ;;  %v12886_v56 = vld [vmem:[#allocation17 + $0x400] ss:$16 sps:$4 sm:$0xff]  }
 0xbbc   :  { %10978 = vmatpush2.bf16.msra.mxu1 %v12862_v39  ;;  %v12969_v39 = vld [vmem:[#allocation17 + $0x604] ss:$16 sps:$4 sm:$0xff]  }
 0xbbd   :  { %11029 = vmatprep.subr.bf16.mxu1 %v12927_v31  ;;  %v14022_v59 = vpop.f32.mrf.mxu0  ;;  %10939 = vmatmul.mubr.bf16.vlgmr.msra.gmra.mxu0 %v14016_v14  ;;  %v12967_v31 = vld [vmem:[#allocation17 + $0x600] ss:$16 sps:$4 sm:$0xff]  }
 0xbbe   :  { %10989 = vmatpush1.bf16.msra.mxu0 %v12865_v46  ;;  %v12889_v46 = vld [vmem:[#allocation17 + $0x5e0] ss:$16 sps:$4 sm:$0xff]  }
 0xbbf   :  { %v14026_v49 = vpop.f32.mrf.mxu1  ;;  %10980 = vmatmul.mubr.bf16.vlgmr.msra.gmra.mxu1 %v14018_v48  ;;  %v9026_v62 = vpop.f32.mrf.mxu0  ;;  %10990 = vmatprep.subr.bf16.mxu0 %v12870_v25  ;;  %v12894_v25 = vld [vmem:[#allocation17 + $0x5c4] ss:$16 sps:$4 sm:$0xff]  }
 0xbc0   :  { %11030 = vmatpush1.bf16.msra.mxu1 %v12925_v27  ;;  %v9027_v20 = vadd.f32 %v9026_v62, %v8986_v43  ;;  %v12973_v27 = vld [vmem:[#allocation17 + $0x7e0] ss:$16 sps:$4 sm:$0xff]   ;;  %v12897_v43 = vld [vmem:[#allocation17 + $0x5a4] ss:$16 sps:$4 sm:$0xff]  }
 0xbc1   :  { %v9067_v37 = vpop.f32.mrf.mxu1  ;;  %11031 = vmatprep.subr.bf16.mxu1 %v12933_v53  ;;  %v9028_v40 = vpop.f32.mrf.mxu0  ;;  %v12892_v53 = vld [vmem:[#allocation17 + $0x5c0] ss:$16 sps:$4 sm:$0xff]   ;;  %v12987_v62 = vld [vmem:[#allocation17 + $0x7a4] ss:$16 sps:$4 sm:$0xff]  }
 0xbc2   :  { %v9068_v2 = vadd.f32 %v9067_v37, %v9027_v20  ;;  %10991 = vmatpush1.bf16.msra.mxu0 %v12868_v45  ;;  %v12979_v45 = vld [vmem:[#allocation17 + $0x7c0] ss:$16 sps:$4 sm:$0xff]   ;;  %v12993_v37 = vld [vmem:[#allocation17 + $0x784] ss:$16 sps:$4 sm:$0xff]  }
 0xbc3   :  { %v9069_v4 = vpop.f32.mrf.mxu1  ;;  %v9029_v9 = vpop.f32.mrf.mxu0  ;;  %10992 = vmatprep.subr.bf16.mxu0 %v12873_v44  ;;  %v12895_v44 = vld [vmem:[#allocation17 + $0x5a0] ss:$16 sps:$4 sm:$0xff]  }
 0xbc4   :  { %11032 = vmatpush1.bf16.msra.mxu1 %v12931_v15  ;;  %v9313_v7 = vadd.f32 %v9299_v3, %v9068_v2  ;;  %v12900_v15 = vld [vmem:[#allocation17 + $0x584] ss:$16 sps:$4 sm:$0xff]   ;;  %v12985_v20 = vld [vmem:[#allocation17 + $0x7a0] ss:$16 sps:$4 sm:$0xff]   ;;  %v9255_v9 = vrot.slane %v13682_v41, %v13985_v61 }
 0xbc5   :  { %v9070_v0 = vpop.f32.mrf.mxu1  ;;  %11033 = vmatprep.subr.bf16.mxu1 %v12939_v58  ;;  %v12898_v3 = vld [vmem:[#allocation17 + $0x580] ss:$16 sps:$4 sm:$0xff]   ;;  %v12903_v58 = vld [vmem:[#allocation17 + $0x564] ss:$16 sps:$4 sm:$0xff]  }
 0xbc6   :  { %v9321_v16 = vmax.f32 %v9313_v7, 0.0  ;;  %10993 = vmatpush1.bf16.msra.mxu0 %v12871_v29  ;;  %v12991_v40 = vld [vmem:[#allocation17 + $0x780] ss:$16 sps:$4 sm:$0xff]   ;;  %v12999_v2 = vld [vmem:[#allocation17 + $0x764] ss:$16 sps:$4 sm:$0xff]   ;;  %v9025_v29 = vadd.f32 %v14022_v59, %v14001_v8 }
 0xbc7   :  { %10994 = vmatprep.subr.bf16.mxu0 %v12876_v38  ;;  %v12901_v4 = vld [vmem:[#allocation17 + $0x560] ss:$16 sps:$4 sm:$0xff]   ;;  %v12906_v38 = vld [vmem:[#allocation17 + $0x544] ss:$16 sps:$4 sm:$0xff]  }
 0xbc8   :  { %11034 = vmatpush1.bf16.msra.mxu1 %v12937_v19  ;;  %v14030_v18 = vpack.c.bf16 %v9321_v16, %v9321_v16  ;;  %v12997_v19 = vld [vmem:[#allocation17 + $0x760] ss:$16 sps:$4 sm:$0xff]   ;;  %v13005_v7 = vld [vmem:[#allocation17 + $0x744] ss:$16 sps:$4 sm:$0xff]   ;;  %v9295_v16 = vrot.slane %v9255_v9, %v13985_v61  ;;  %v12964_v9 = vld [vmem:[#allocation17 + $0x1a8] ss:$16 sps:$4 sm:$0xff]  }
 0xbc9   :  { %11035 = vmatprep.subr.bf16.mxu1 %v12945_v23  ;;  %v12904_v0 = vld [vmem:[#allocation17 + $0x540] ss:$16 sps:$4 sm:$0xff]   ;;  %v9066_v23 = vadd.f32 %v14026_v49, %v9025_v29  ;;  %v13011_v8 = vld [vmem:[#allocation17 + $0x724] ss:$16 sps:$4 sm:$0xff]   ;;  %v12966_v29 = vld [vmem:[#allocation17 + $0x1ac] ss:$16 sps:$4 sm:$0xff]  }
 0xbca   :  { %10995 = vmatpush1.bf16.msra.mxu0 %v12874_v28  ;;  %11020 = vmatprep.mubr.bf16.mxu0 %v14030_v18  ;;  %v12909_v28 = vld [vmem:[#allocation17 + $0x524] ss:$16 sps:$4 sm:$0xff]   ;;  %v12907_v41 = vld [vmem:[#allocation17 + $0x520] ss:$16 sps:$4 sm:$0xff]  }
 0xbcb   :  { %10996 = vmatprep.subr.bf16.mxu0 %v12879_v11  ;;  %v13003_v11 = vld [vmem:[#allocation17 + $0x740] ss:$16 sps:$4 sm:$0xff]   ;;  %v9312_v59 = vadd.f32 %v9295_v16, %v9066_v23  ;;  %v12984_v23 = vld [vmem:[#allocation17 + $0x14c] ss:$16 sps:$4 sm:$0xff]   ;;  %v12982_v16 = vld [vmem:[#allocation17 + $0x148] ss:$16 sps:$4 sm:$0xff]  }
 0xbcc   :  { %11036 = vmatpush1.bf16.msra.mxu1 %v12943_v13  ;;  %v12912_v13 = vld [vmem:[#allocation17 + $0x504] ss:$16 sps:$4 sm:$0xff]  }
 0xbcd   :  { %11037 = vmatprep.subr.bf16.mxu1 %v12951_v17  ;;  %v13009_v17 = vld [vmem:[#allocation17 + $0x720] ss:$16 sps:$4 sm:$0xff]   ;;  %v9320_v49 = vmax.f32 %v9312_v59, 0.0  ;;  %v13002_v59 = vld [vmem:[#allocation17 + $0x4ec] ss:$16 sps:$4 sm:$0xff]  }
 0xbce   :  { %10997 = vmatpush1.bf16.msra.mxu0 %v12877_v26  ;;  %v13017_v26 = vld [vmem:[#allocation17 + $0x704] ss:$16 sps:$4 sm:$0xff]  }
 0xbcf   :  { %10998 = vmatprep.subr.bf16.mxu0 %v12882_v1  ;;  %v12910_v1 = vld [vmem:[#allocation17 + $0x500] ss:$16 sps:$4 sm:$0xff]  }
 0xbd0   :  { %11038 = vmatpush1.bf16.msra.mxu1 %v12949_v34  ;;  %v12915_v34 = vld [vmem:[#allocation17 + $0xec] ss:$16 sps:$4 sm:$0xff]  }
 0xbd1   :  { %11039 = vmatprep.subr.bf16.mxu1 %v12957_v54  ;;  %v13015_v54 = vld [vmem:[#allocation17 + $0x700] ss:$16 sps:$4 sm:$0xff]  }
 0xbd2   :  { %10999 = vmatpush1.bf16.msra.mxu0 %v12880_v12  ;;  %v13023_v12 = vld [vmem:[#allocation17 + $0x2ec] ss:$16 sps:$4 sm:$0xff]  }
 0xbd3   :  { %11000 = vmatprep.subr.bf16.mxu0 %v12885_v35  ;;  %v12913_v35 = vld [vmem:[#allocation17 + $0xe8] ss:$16 sps:$4 sm:$0xff]  }
 0xbd4   :  { %11040 = vmatpush1.bf16.msra.mxu1 %v12955_v6  ;;  %v14039_v6 = vpack.c.bf16 %v9320_v49, %v9320_v49  ;;  %v9267_v49 = vrot.slane %v13684_v42, %v13976_v63 }
 0xbd5   :  { %11041 = vmatprep.subr.bf16.mxu1 %v12963_v30  ;;  %v12918_v30 = vld [vmem:[#allocation17 + $0xcc] ss:$16 sps:$4 sm:$0xff]  }
 0xbd6   :  { %11001 = vmatpush1.bf16.msra.mxu0 %v12883_v57 }
 0xbd7   :  { %11002 = vmatprep.subr.bf16.mxu0 %v12888_v50 }
 0xbd8   :  { %11042 = vmatpush1.bf16.msra.mxu1 %v12961_v10 }
 0xbd9   :  { %11043 = vmatprep.subr.bf16.mxu1 %v12969_v39  ;;  %v12916_v39 = vld [vmem:[#allocation17 + $0xc8] ss:$16 sps:$4 sm:$0xff]  }
 0xbda   :  { %11003 = vmatpush1.bf16.msra.mxu0 %v12886_v56 }
 0xbdb   :  { %11004 = vmatprep.subr.bf16.mxu0 %v12891_v47  ;;  %v12921_v47 = vld [vmem:[#allocation17 + $0xac] ss:$16 sps:$4 sm:$0xff]  }
 0xbdc   :  { %11044 = vmatpush1.bf16.msra.mxu1 %v12967_v31 }
 0xbdd   :  { %11045 = vmatprep.subr.bf16.mxu1 %v12975_v22 }
 0xbde   :  { %11005 = vmatpush2.bf16.msra.mxu0 %v12889_v46 }
 0xbdf   :  { %11006 = vmatprep.subr.bf16.mxu0 %v12894_v25 }
 0xbe0   :  { %11046 = vmatpush2.bf16.msra.mxu1 %v12973_v27  ;;  %v12919_v27 = vld [vmem:[#allocation17 + $0xa8] ss:$16 sps:$4 sm:$0xff]  }
 0xbe1   :  { %11047 = vmatprep.subr.bf16.mxu1 %v12981_v52 }
 0xbe2   :  { %11007 = vmatpush2.bf16.msra.mxu0 %v12892_v53 }
 0xbe3   :  { %11008 = vmatprep.subr.bf16.mxu0 %v12897_v43  ;;  %v12922_v43 = vld [vmem:[#allocation17 + $0x88] ss:$16 sps:$4 sm:$0xff]  }
 0xbe4   :  { %11048 = vmatpush2.bf16.msra.mxu1 %v12979_v45  ;;  %v12928_v45 = vld [vmem:[#allocation17 + $0x68] ss:$16 sps:$4 sm:$0xff]  }
 0xbe5   :  { %11049 = vmatprep.subr.bf16.mxu1 %v12987_v62  ;;  %v12936_v62 = vld [vmem:[#allocation17 + $0x4c] ss:$16 sps:$4 sm:$0xff]  }
 0xbe6   :  { %11009 = vmatpush2.bf16.msra.mxu0 %v12895_v44  ;;  %v12934_v44 = vld [vmem:[#allocation17 + $0x48] ss:$16 sps:$4 sm:$0xff]  }
 0xbe7   :  { %11010 = vmatprep.subr.bf16.mxu0 %v12900_v15  ;;  %v12942_v15 = vld [vmem:[#allocation17 + $0x2c] ss:$16 sps:$4 sm:$0xff]  }
 0xbe8   :  { %11050 = vmatpush2.bf16.msra.mxu1 %v12985_v20  ;;  %v12940_v20 = vld [vmem:[#allocation17 + $0x28] ss:$16 sps:$4 sm:$0xff]  }
 0xbe9   :  { %11051 = vmatprep.subr.bf16.mxu1 %v12993_v37  ;;  %v12948_v37 = vld [vmem:[#allocation17 + $0xc] ss:$16 sps:$4 sm:$0xff]  }
 0xbea   :  { %11011 = vmatpush2.bf16.msra.mxu0 %v12898_v3  ;;  %v12946_v3 = vld [vmem:[#allocation17 + $0x8] ss:$16 sps:$4 sm:$0xff]  }
 0xbeb   :  { %11012 = vmatprep.subr.bf16.mxu0 %v12903_v58  ;;  %v12954_v58 = vld [vmem:[#allocation17 + $0x1ec] ss:$16 sps:$4 sm:$0xff]  }
 0xbec   :  { %11052 = vmatpush2.bf16.msra.mxu1 %v12991_v40  ;;  %v12952_v40 = vld [vmem:[#allocation17 + $0x1e8] ss:$16 sps:$4 sm:$0xff]  }
 0xbed   :  { %11053 = vmatprep.subr.bf16.mxu1 %v12999_v2  ;;  %v12960_v2 = vld [vmem:[#allocation17 + $0x1cc] ss:$16 sps:$4 sm:$0xff]  }
 0xbee   :  { %11013 = vmatpush2.bf16.msra.mxu0 %v12901_v4  ;;  %v12958_v4 = vld [vmem:[#allocation17 + $0x1c8] ss:$16 sps:$4 sm:$0xff]  }
 0xbef   :  { %11014 = vmatprep.subr.bf16.mxu0 %v12906_v38  ;;  %v12972_v38 = vld [vmem:[#allocation17 + $0x18c] ss:$16 sps:$4 sm:$0xff]  }
 0xbf0   :  { %11054 = vmatpush2.bf16.msra.mxu1 %v12997_v19  ;;  %v12970_v19 = vld [vmem:[#allocation17 + $0x188] ss:$16 sps:$4 sm:$0xff]  }
 0xbf1   :  { %11055 = vmatprep.subr.bf16.mxu1 %v13005_v7  ;;  %v12978_v7 = vld [vmem:[#allocation17 + $0x16c] ss:$16 sps:$4 sm:$0xff]  }
 0xbf2   :  { %11015 = vmatpush2.bf16.msra.mxu0 %v12904_v0  ;;  %v12976_v0 = vld [vmem:[#allocation17 + $0x168] ss:$16 sps:$4 sm:$0xff]  }
 0xbf3   :  { %11016 = vmatprep.subr.bf16.mxu0 %v12909_v28  ;;  %v12990_v28 = vld [vmem:[#allocation17 + $0x12c] ss:$16 sps:$4 sm:$0xff]  }
 0xbf4   :  { %11056 = vmatpush2.bf16.msra.mxu1 %v13003_v11  ;;  %v12988_v11 = vld [vmem:[#allocation17 + $0x128] ss:$16 sps:$4 sm:$0xff]  }
 0xbf5   :  { %11057 = vmatprep.subr.bf16.mxu1 %v13011_v8  ;;  %v12996_v8 = vld [vmem:[#allocation17 + $0x10c] ss:$16 sps:$4 sm:$0xff]  }
 0xbf6   :  { %11017 = vmatpush2.bf16.msra.mxu0 %v12907_v41  ;;  %v12994_v41 = vld [vmem:[#allocation17 + $0x108] ss:$16 sps:$4 sm:$0xff]  }
 0xbf7   :  { %11018 = vmatprep.subr.bf16.mxu0 %v12912_v13 }
 0xbf8   :  { %11058 = vmatpush2.bf16.msra.mxu1 %v13009_v17  ;;  %v9263_v17 = vrot.slane %v13684_v42, %v13985_v61 }
 0xbf9   :  { %11059 = vmatprep.subr.bf16.mxu1 %v13017_v26  ;;  %v13000_v26 = vld [vmem:[#allocation17 + $0x4e8] ss:$16 sps:$4 sm:$0xff]  }
 0xbfa   :  { %11019 = vmatpush2.bf16.msra.mxu0 %v12910_v1  ;;  %v13008_v1 = vld [vmem:[#allocation17 + $0x4cc] ss:$16 sps:$4 sm:$0xff]  }
 0xbfb   :  { %11070 = vmatprep.subr.bf16.mxu0 %v12915_v34 }
 0xbfc   :  { %11060 = vmatpush2.bf16.msra.mxu1 %v13015_v54 }
 0xbfd   :  { %11111 = vmatprep.subr.bf16.mxu1 %v13023_v12  ;;  %v9106_v57 = vpop.f32.mrf.mxu0  ;;  %11021 = vmatmul.mubr.bf16.vlgmr.msra.gmra.mxu0 %v14039_v6 }
 0xbfe   :  { %v9107_v50 = vadd.f32 %v9106_v57, %v13927_v21  ;;  %11071 = vmatpush1.bf16.msra.mxu0 %v12913_v35  ;;  %11102 = vmatprep.mubr.bf16.mxu0 %v13991_v24  ;;  %v12924_v21 = vld [vmem:[#allocation17 + $0x8c] ss:$16 sps:$4 sm:$0xff]  }
 0xbff   :  { %v9147_v10 = vpop.f32.mrf.mxu1  ;;  %v14044_v56 = vpop.f32.mrf.mxu0  ;;  %11072 = vmatprep.subr.bf16.mxu0 %v12918_v30  ;;  %v12930_v24 = vld [vmem:[#allocation17 + $0x6c] ss:$16 sps:$4 sm:$0xff]   ;;  %v13006_v30 = vld [vmem:[#allocation17 + $0x4c8] ss:$16 sps:$4 sm:$0xff]  }
 0xc00   :  { %v14046_v31 = vadd.f32 %v9147_v10, %v9107_v50  ;;  %v9109_v13 = vadd.f32 %v14044_v56, %v13932_v5  ;;  %v9303_v5 = vrot.slane %v9263_v17, %v13985_v61  ;;  %v13014_v50 = vld [vmem:[#allocation17 + $0x4ac] ss:$16 sps:$4 sm:$0xff]   ;;  %v9307_v56 = vrot.slane %v9267_v49, %v13985_v61  ;;  %v13057_v17 = vld [vmem:[#allocation17 + $0x228] ss:$16 sps:$4 sm:$0xff]  }
 0xc01   :  { %v14048_v22 = vpop.f32.mrf.mxu1  ;;  %v9110_v46 = vpop.f32.mrf.mxu0  ;;  %v13068_v49 = vld [vmem:[#allocation17 + $0x58c] ss:$16 sps:$4 sm:$0xff]  }
 0xc02   :  { %11073 = vmatpush1.bf16.msra.mxu0 %v12916_v39  ;;  %v9150_v54 = vadd.f32 %v14048_v22, %v9109_v13  ;;  %v13062_v13 = vld [vmem:[#allocation17 + $0x5ac] ss:$16 sps:$4 sm:$0xff]  }
 0xc03   :  { %v9151_v25 = vpop.f32.mrf.mxu1  ;;  %v9111_v52 = vpop.f32.mrf.mxu0  ;;  %11074 = vmatprep.subr.bf16.mxu0 %v12921_v47 }
 0xc05   :  { %v9152_v53 = vpop.f32.mrf.mxu1 }
 0xc06   :  { %11075 = vmatpush1.bf16.msra.mxu0 %v12919_v27  ;;  %v13020_v27 = vld [vmem:[#allocation17 + $0x48c] ss:$16 sps:$4 sm:$0xff]  }
 0xc07   :  { %11076 = vmatprep.subr.bf16.mxu0 %v12924_v21 }
 0xc0a   :  { %11077 = vmatpush1.bf16.msra.mxu0 %v12922_v43  ;;  %v13018_v43 = vld [vmem:[#allocation17 + $0x488] ss:$16 sps:$4 sm:$0xff]  }
 0xc0b   :  { %11078 = vmatprep.subr.bf16.mxu0 %v12930_v24  ;;  %v13026_v24 = vld [vmem:[#allocation17 + $0x46c] ss:$16 sps:$4 sm:$0xff]  }
 0xc0e   :  { %11079 = vmatpush1.bf16.msra.mxu0 %v12928_v45 }
 0xc0f   :  { %11080 = vmatprep.subr.bf16.mxu0 %v12936_v62  ;;  %v13021_v62 = vld [vmem:[#allocation17 + $0x2e8] ss:$16 sps:$4 sm:$0xff]  }
 0xc12   :  { %11081 = vmatpush1.bf16.msra.mxu0 %v12934_v44 }
 0xc13   :  { %11082 = vmatprep.subr.bf16.mxu0 %v12942_v15  ;;  %v13029_v15 = vld [vmem:[#allocation17 + $0x2cc] ss:$16 sps:$4 sm:$0xff]  }
 0xc16   :  { %11083 = vmatpush1.bf16.msra.mxu0 %v12940_v20  ;;  %v13024_v20 = vld [vmem:[#allocation17 + $0x468] ss:$16 sps:$4 sm:$0xff]  }
 0xc17   :  { %11084 = vmatprep.subr.bf16.mxu0 %v12948_v37  ;;  %v13032_v37 = vld [vmem:[#allocation17 + $0x44c] ss:$16 sps:$4 sm:$0xff]  }
 0xc1a   :  { %11085 = vmatpush1.bf16.msra.mxu0 %v12946_v3  ;;  %v13027_v3 = vld [vmem:[#allocation17 + $0x2c8] ss:$16 sps:$4 sm:$0xff]  }
 0xc1b   :  { %11086 = vmatprep.subr.bf16.mxu0 %v12954_v58  ;;  %v13035_v58 = vld [vmem:[#allocation17 + $0x2ac] ss:$16 sps:$4 sm:$0xff]  }
 0xc1e   :  { %11087 = vmatpush2.bf16.msra.mxu0 %v12952_v40  ;;  %v13030_v40 = vld [vmem:[#allocation17 + $0x448] ss:$16 sps:$4 sm:$0xff]  }
 0xc1f   :  { %11088 = vmatprep.subr.bf16.mxu0 %v12960_v2  ;;  %v13038_v2 = vld [vmem:[#allocation17 + $0x42c] ss:$16 sps:$4 sm:$0xff]  }
 0xc22   :  { %11089 = vmatpush2.bf16.msra.mxu0 %v12958_v4  ;;  %v13033_v4 = vld [vmem:[#allocation17 + $0x2a8] ss:$16 sps:$4 sm:$0xff]  }
 0xc23   :  { %11090 = vmatprep.subr.bf16.mxu0 %v12966_v29  ;;  %v13041_v29 = vld [vmem:[#allocation17 + $0x28c] ss:$16 sps:$4 sm:$0xff]  }
 0xc26   :  { %11091 = vmatpush2.bf16.msra.mxu0 %v12964_v9  ;;  %v13036_v9 = vld [vmem:[#allocation17 + $0x428] ss:$16 sps:$4 sm:$0xff]  }
 0xc27   :  { %11092 = vmatprep.subr.bf16.mxu0 %v12972_v38  ;;  %v13044_v38 = vld [vmem:[#allocation17 + $0x40c] ss:$16 sps:$4 sm:$0xff]  }
 0xc2a   :  { %11093 = vmatpush2.bf16.msra.mxu0 %v12970_v19  ;;  %v13039_v19 = vld [vmem:[#allocation17 + $0x288] ss:$16 sps:$4 sm:$0xff]  }
 0xc2b   :  { %11094 = vmatprep.subr.bf16.mxu0 %v12978_v7  ;;  %v13047_v7 = vld [vmem:[#allocation17 + $0x26c] ss:$16 sps:$4 sm:$0xff]  }
 0xc2e   :  { %11095 = vmatpush2.bf16.msra.mxu0 %v12976_v0  ;;  %v13050_v0 = vld [vmem:[#allocation17 + $0x5ec] ss:$16 sps:$4 sm:$0xff]  }
 0xc2f   :  { %11096 = vmatprep.subr.bf16.mxu0 %v12984_v23  ;;  %v13045_v23 = vld [vmem:[#allocation17 + $0x268] ss:$16 sps:$4 sm:$0xff]  }
 0xc32   :  { %11097 = vmatpush2.bf16.msra.mxu0 %v12982_v16  ;;  %v13053_v16 = vld [vmem:[#allocation17 + $0x24c] ss:$16 sps:$4 sm:$0xff]  }
 0xc33   :  { %11098 = vmatprep.subr.bf16.mxu0 %v12990_v28  ;;  %v13048_v28 = vld [vmem:[#allocation17 + $0x5e8] ss:$16 sps:$4 sm:$0xff]  }
 0xc36   :  { %11099 = vmatpush2.bf16.msra.mxu0 %v12988_v11  ;;  %v13056_v11 = vld [vmem:[#allocation17 + $0x5cc] ss:$16 sps:$4 sm:$0xff]  }
 0xc37   :  { %11100 = vmatprep.subr.bf16.mxu0 %v12996_v8  ;;  %v13051_v8 = vld [vmem:[#allocation17 + $0x248] ss:$16 sps:$4 sm:$0xff]  }
 0xc3a   :  { %11101 = vmatpush2.bf16.msra.mxu0 %v12994_v41  ;;  %v13059_v41 = vld [vmem:[#allocation17 + $0x22c] ss:$16 sps:$4 sm:$0xff]  }
 0xc3b   :  { %11152 = vmatprep.subr.bf16.mxu0 %v13002_v59  ;;  %v13054_v59 = vld [vmem:[#allocation17 + $0x5c8] ss:$16 sps:$4 sm:$0xff]  }
 0xc3d   :  { %v9188_v34 = vpop.f32.mrf.mxu0  ;;  %11103 = vmatmul.mubr.bf16.vlgmr.msra.gmra.mxu0 %v14016_v14 }
 0xc3e   :  { %v9189_v12 = vadd.f32 %v9188_v34, %v14046_v31  ;;  %11153 = vmatpush1.bf16.msra.mxu0 %v13000_v26  ;;  %11184 = vmatprep.mubr.bf16.mxu0 %v14030_v18  ;;  %v13012_v31 = vld [vmem:[#allocation17 + $0x4a8] ss:$16 sps:$4 sm:$0xff]   ;;  %v13065_v26 = vld [vmem:[#allocation17 + $0x20c] ss:$16 sps:$4 sm:$0xff]  }
 0xc3f   :  { %v9229_v35 = vpop.f32.mrf.mxu1  ;;  %v9190_v57 = vpop.f32.mrf.mxu0  ;;  %11154 = vmatprep.subr.bf16.mxu0 %v13008_v1  ;;  %v13060_v1 = vld [vmem:[#allocation17 + $0x5a8] ss:$16 sps:$4 sm:$0xff]  }
 0xc40   :  { %v9230_v10 = vadd.f32 %v9229_v35, %v9189_v12  ;;  %v9191_v39 = vadd.f32 %v9190_v57, %v9150_v54  ;;  %v13063_v34 = vld [vmem:[#allocation17 + $0x208] ss:$16 sps:$4 sm:$0xff]   ;;  %v13071_v54 = vld [vmem:[#allocation17 + $0x3ec] ss:$16 sps:$4 sm:$0xff]  }
 0xc41   :  { %v9231_v42 = vpop.f32.mrf.mxu1  ;;  %v9192_v14 = vpop.f32.mrf.mxu0  ;;  %v13066_v12 = vld [vmem:[#allocation17 + $0x588] ss:$16 sps:$4 sm:$0xff]   ;;  %v13074_v35 = vld [vmem:[#allocation17 + $0x56c] ss:$16 sps:$4 sm:$0xff]  }
 0xc42   :  { %v9314_v47 = vadd.f32 %v9303_v5, %v9230_v10  ;;  %v9232_v22 = vadd.f32 %v9231_v42, %v9191_v39  ;;  %11155 = vmatpush1.bf16.msra.mxu0 %v13006_v30  ;;  %v13069_v5 = vld [vmem:[#allocation17 + $0x3e8] ss:$16 sps:$4 sm:$0xff]   ;;  %v13077_v30 = vld [vmem:[#allocation17 + $0x3cc] ss:$16 sps:$4 sm:$0xff]  }
 0xc43   :  { %v9233_v46 = vpop.f32.mrf.mxu1  ;;  %v9193_v25 = vpop.f32.mrf.mxu0  ;;  %11156 = vmatprep.subr.bf16.mxu0 %v13014_v50  ;;  %v13072_v57 = vld [vmem:[#allocation17 + $0x568] ss:$16 sps:$4 sm:$0xff]   ;;  %v13080_v50 = vld [vmem:[#allocation17 + $0x54c] ss:$16 sps:$4 sm:$0xff]  }
 0xc44   :  { %v9315_v52 = vadd.f32 %v9307_v56, %v9232_v22  ;;  %v9322_v21 = vmax.f32 %v9314_v47, 0.0  ;;  %v13075_v10 = vld [vmem:[#allocation17 + $0x3c8] ss:$16 sps:$4 sm:$0xff]   ;;  %v13083_v39 = vld [vmem:[#allocation17 + $0x3ac] ss:$16 sps:$4 sm:$0xff]  }
 0xc45   :  { %v9234_v18 = vpop.f32.mrf.mxu1  ;;  %v13078_v42 = vld [vmem:[#allocation17 + $0x548] ss:$16 sps:$4 sm:$0xff]   ;;  %v13086_v56 = vld [vmem:[#allocation17 + $0x52c] ss:$16 sps:$4 sm:$0xff]  }
 0xc46   :  { %v9323_v53 = vmax.f32 %v9315_v52, 0.0  ;;  %11157 = vmatpush1.bf16.msra.mxu0 %v13012_v31  ;;  %v14064_v44 = vpack.c.bf16 %v9322_v21, %v9322_v21  ;;  %v13081_v14 = vld [vmem:[#allocation17 + $0x3a8] ss:$16 sps:$4 sm:$0xff]   ;;  %v13089_v47 = vld [vmem:[#allocation17 + $0x38c] ss:$16 sps:$4 sm:$0xff]   ;;  %v14069_v31 = vld [vmem:[#allocation19] sm:$0xff] }
 0xc47   :  { %11158 = vmatprep.subr.bf16.mxu0 %v13020_v27  ;;  %v13084_v22 = vld [vmem:[#allocation17 + $0x528] ss:$16 sps:$4 sm:$0xff]   ;;  %v13092_v46 = vld [vmem:[#allocation17 + $0x50c] ss:$16 sps:$4 sm:$0xff]   ;;  %v9593_v18 = vrot.slane %v14069_v31, %v13665_v33 }
 0xc48   :  { %v14062_v45 = vpack.c.bf16 %v9323_v53, %v9323_v53  ;;  %v13087_v25 = vld [vmem:[#allocation17 + $0x388] ss:$16 sps:$4 sm:$0xff]   ;;  %v13095_v27 = vld [vmem:[#allocation17 + $0x36c] ss:$16 sps:$4 sm:$0xff]   ;;  %v9597_v53 = vrot.slane %v14069_v31, %v13985_v61 }
 0xc49   :  { %v13090_v52 = vld [vmem:[#allocation17 + $0x508] ss:$16 sps:$4 sm:$0xff]  }
 0xc4a   :  { %11061 = vmatprep.mubr.bf16.mxu1 %v14062_v45  ;;  %11159 = vmatpush1.bf16.msra.mxu0 %v13018_v43  ;;  %v13093_v21 = vld [vmem:[#allocation17 + $0x368] ss:$16 sps:$4 sm:$0xff]   ;;  %v13098_v43 = vld [vmem:[#allocation17 + $0x34c] ss:$16 sps:$4 sm:$0xff]  }
 0xc4b   :  { %11062 = vmatmul.mubr.bf16.vlgmr.msra.gmra.mxu1 %v14064_v44  ;;  %11160 = vmatprep.subr.bf16.mxu0 %v13026_v24  ;;  %v9613_v24 = vrot.slane %v9593_v18, %v13665_v33  ;;  %v13147_v18 = vld [vmem:[#allocation17 + $0x728] ss:$16 sps:$4 sm:$0xff]  }
 0xc4c   :  { %11112 = vmatpush1.bf16.msra.mxu1 %v13021_v62  ;;  %11143 = vmatprep.mubr.bf16.mxu1 %v13994_v55  ;;  %v13042_v55 = vld [vmem:[#allocation17 + $0x408] ss:$16 sps:$4 sm:$0xff]  }
 0xc4d   :  { %11113 = vmatprep.subr.bf16.mxu1 %v13029_v15  ;;  %v13096_v62 = vld [vmem:[#allocation17 + $0x348] ss:$16 sps:$4 sm:$0xff]   ;;  %v9617_v15 = vrot.slane %v9597_v53, %v13665_v33  ;;  %v13152_v53 = vld [vmem:[#allocation17 + $0x70c] ss:$16 sps:$4 sm:$0xff]  }
 0xc4e   :  { %11161 = vmatpush1.bf16.msra.mxu0 %v13024_v20 }
 0xc4f   :  { %11162 = vmatprep.subr.bf16.mxu0 %v13032_v37  ;;  %v13101_v37 = vld [vmem:[#allocation17 + $0x32c] ss:$16 sps:$4 sm:$0xff]  }
 0xc50   :  { %11114 = vmatpush1.bf16.msra.mxu1 %v13027_v3 }
 0xc51   :  { %11115 = vmatprep.subr.bf16.mxu1 %v13035_v58 }
 0xc52   :  { %11163 = vmatpush1.bf16.msra.mxu0 %v13030_v40 }
 0xc53   :  { %11164 = vmatprep.subr.bf16.mxu0 %v13038_v2 }
 0xc54   :  { %11116 = vmatpush1.bf16.msra.mxu1 %v13033_v4 }
 0xc55   :  { %11117 = vmatprep.subr.bf16.mxu1 %v13041_v29  ;;  %v13099_v29 = vld [vmem:[#allocation17 + $0x328] ss:$16 sps:$4 sm:$0xff]  }
 0xc56   :  { %11165 = vmatpush1.bf16.msra.mxu0 %v13036_v9 }
 0xc57   :  { %11166 = vmatprep.subr.bf16.mxu0 %v13044_v38  ;;  %v13104_v38 = vld [vmem:[#allocation17 + $0x30c] ss:$16 sps:$4 sm:$0xff]  }
 0xc58   :  { %11118 = vmatpush1.bf16.msra.mxu1 %v13039_v19 }
 0xc59   :  { %11119 = vmatprep.subr.bf16.mxu1 %v13047_v7 }
 0xc5a   :  { %11167 = vmatpush1.bf16.msra.mxu0 %v13042_v55 }
 0xc5b   :  { %11168 = vmatprep.subr.bf16.mxu0 %v13050_v0 }
 0xc5c   :  { %11120 = vmatpush1.bf16.msra.mxu1 %v13045_v23  ;;  %v13107_v23 = vld [vmem:[#allocation17 + $0x6ec] ss:$16 sps:$4 sm:$0xff]  }
 0xc5d   :  { %11121 = vmatprep.subr.bf16.mxu1 %v13053_v16  ;;  %v13105_v16 = vld [vmem:[#allocation17 + $0x6e8] ss:$16 sps:$4 sm:$0xff]  }
 0xc5e   :  { %11169 = vmatpush2.bf16.msra.mxu0 %v13048_v28  ;;  %v13110_v28 = vld [vmem:[#allocation17 + $0x6cc] ss:$16 sps:$4 sm:$0xff]  }
 0xc5f   :  { %11170 = vmatprep.subr.bf16.mxu0 %v13056_v11  ;;  %v13108_v11 = vld [vmem:[#allocation17 + $0x6c8] ss:$16 sps:$4 sm:$0xff]  }
 0xc60   :  { %11122 = vmatpush1.bf16.msra.mxu1 %v13051_v8  ;;  %v13113_v8 = vld [vmem:[#allocation17 + $0x6ac] ss:$16 sps:$4 sm:$0xff]  }
 0xc61   :  { %11123 = vmatprep.subr.bf16.mxu1 %v13059_v41  ;;  %v13111_v41 = vld [vmem:[#allocation17 + $0x6a8] ss:$16 sps:$4 sm:$0xff]  }
 0xc62   :  { %11171 = vmatpush2.bf16.msra.mxu0 %v13054_v59  ;;  %v13116_v59 = vld [vmem:[#allocation17 + $0x68c] ss:$16 sps:$4 sm:$0xff]  }
 0xc63   :  { %11172 = vmatprep.subr.bf16.mxu0 %v13062_v13  ;;  %v13114_v13 = vld [vmem:[#allocation17 + $0x688] ss:$16 sps:$4 sm:$0xff]  }
 0xc64   :  { %11124 = vmatpush1.bf16.msra.mxu1 %v13057_v17  ;;  %v13119_v17 = vld [vmem:[#allocation17 + $0x66c] ss:$16 sps:$4 sm:$0xff]  }
 0xc65   :  { %11125 = vmatprep.subr.bf16.mxu1 %v13065_v26  ;;  %v13117_v26 = vld [vmem:[#allocation17 + $0x668] ss:$16 sps:$4 sm:$0xff]  }
 0xc66   :  { %11173 = vmatpush2.bf16.msra.mxu0 %v13060_v1  ;;  %v13122_v1 = vld [vmem:[#allocation17 + $0x64c] ss:$16 sps:$4 sm:$0xff]  }
 0xc67   :  { %11174 = vmatprep.subr.bf16.mxu0 %v13068_v49  ;;  %v13125_v49 = vld [vmem:[#allocation17 + $0x62c] ss:$16 sps:$4 sm:$0xff]  }
 0xc68   :  { %11126 = vmatpush1.bf16.msra.mxu1 %v13063_v34  ;;  %v13128_v34 = vld [vmem:[#allocation17 + $0x60c] ss:$16 sps:$4 sm:$0xff]  }
 0xc69   :  { %11127 = vmatprep.subr.bf16.mxu1 %v13071_v54  ;;  %v13126_v54 = vld [vmem:[#allocation17 + $0x608] ss:$16 sps:$4 sm:$0xff]  }
 0xc6a   :  { %11175 = vmatpush2.bf16.msra.mxu0 %v13066_v12  ;;  %v13131_v12 = vld [vmem:[#allocation17 + $0x7ec] ss:$16 sps:$4 sm:$0xff]  }
 0xc6b   :  { %11176 = vmatprep.subr.bf16.mxu0 %v13074_v35  ;;  %v13129_v35 = vld [vmem:[#allocation17 + $0x7e8] ss:$16 sps:$4 sm:$0xff]  }
 0xc6c   :  { %11128 = vmatpush2.bf16.msra.mxu1 %v13069_v5  ;;  %v13134_v5 = vld [vmem:[#allocation17 + $0x7cc] ss:$16 sps:$4 sm:$0xff]  }
 0xc6d   :  { %11129 = vmatprep.subr.bf16.mxu1 %v13077_v30  ;;  %v13132_v30 = vld [vmem:[#allocation17 + $0x7c8] ss:$16 sps:$4 sm:$0xff]  }
 0xc6e   :  { %11177 = vmatpush2.bf16.msra.mxu0 %v13072_v57  ;;  %v13137_v57 = vld [vmem:[#allocation17 + $0x7ac] ss:$16 sps:$4 sm:$0xff]  }
 0xc6f   :  { %11178 = vmatprep.subr.bf16.mxu0 %v13080_v50  ;;  %v13135_v50 = vld [vmem:[#allocation17 + $0x7a8] ss:$16 sps:$4 sm:$0xff]  }
 0xc70   :  { %11130 = vmatpush2.bf16.msra.mxu1 %v13075_v10  ;;  %v13140_v10 = vld [vmem:[#allocation17 + $0x78c] ss:$16 sps:$4 sm:$0xff]  }
 0xc71   :  { %11131 = vmatprep.subr.bf16.mxu1 %v13083_v39  ;;  %v13138_v39 = vld [vmem:[#allocation17 + $0x788] ss:$16 sps:$4 sm:$0xff]  }
 0xc72   :  { %11179 = vmatpush2.bf16.msra.mxu0 %v13078_v42  ;;  %v13143_v42 = vld [vmem:[#allocation17 + $0x76c] ss:$16 sps:$4 sm:$0xff]  }
 0xc73   :  { %11180 = vmatprep.subr.bf16.mxu0 %v13086_v56  ;;  %v13141_v56 = vld [vmem:[#allocation17 + $0x768] ss:$16 sps:$4 sm:$0xff]  }
 0xc74   :  { %11132 = vmatpush2.bf16.msra.mxu1 %v13081_v14  ;;  %v13146_v14 = vld [vmem:[#allocation17 + $0x74c] ss:$16 sps:$4 sm:$0xff]  }
 0xc75   :  { %11133 = vmatprep.subr.bf16.mxu1 %v13089_v47  ;;  %v13144_v47 = vld [vmem:[#allocation17 + $0x748] ss:$16 sps:$4 sm:$0xff]  }
 0xc76   :  { %11181 = vmatpush2.bf16.msra.mxu0 %v13084_v22 }
 0xc77   :  { %11182 = vmatprep.subr.bf16.mxu0 %v13092_v46  ;;  %v13149_v46 = vld [vmem:[#allocation17 + $0x72c] ss:$16 sps:$4 sm:$0xff]  }
 0xc78   :  { %11134 = vmatpush2.bf16.msra.mxu1 %v13087_v25 }
 0xc79   :  { %11135 = vmatprep.subr.bf16.mxu1 %v13095_v27 }
 0xc7a   :  { %11183 = vmatpush2.bf16.msra.mxu0 %v13090_v52 }
 0xc7c   :  { %11136 = vmatpush2.bf16.msra.mxu1 %v13093_v21 }
 0xc7d   :  { %v10940_v20 = vpop.f32.mrf.mxu0  ;;  %11185 = vmatmul.mubr.bf16.vlgmr.msra.gmra.mxu0 %v14039_v6  ;;  %11137 = vmatprep.subr.bf16.mxu1 %v13098_v43  ;;  %v13102_v6 = vld [vmem:[#allocation17 + $0x308] ss:$16 sps:$4 sm:$0xff]  }
 0xc7e   :  { %v10941_v3 = vadd.f32 %v10940_v20, %v9613_v24  ;;  %v13150_v24 = vld [vmem:[#allocation17 + $0x708] ss:$16 sps:$4 sm:$0xff]  }
 0xc7f   :  { %v10981_v58 = vpop.f32.mrf.mxu1  ;;  %v10942_v40 = vpop.f32.mrf.mxu0 }
 0xc80   :  { %v14078_v2 = vadd.f32 %v10981_v58, %v10941_v3  ;;  %v10943_v61 = vadd.f32 %v10942_v40, %v9617_v15  ;;  %11138 = vmatpush2.bf16.msra.mxu1 %v13096_v62  ;;  %v11244_v3 = vsub.s32 3, %v13662_v32  ;;  %v11241_v58 = vrot.slane %v14069_v31, %v13695_v51 }
 0xc81   :  { %v10983_v4 = vpop.f32.mrf.mxu1  ;;  %v10944_v9 = vpop.f32.mrf.mxu0  ;;  %11139 = vmatprep.subr.bf16.mxu1 %v13101_v37 }
 0xc82   :  { %v14080_v19 = vadd.f32 %v10983_v4, %v10943_v61  ;;  %v11245_v40 = vrot.slane %v14069_v31, %v11244_v3  ;;  %v11261_v9 = vrot.slane %v11241_v58, %v13695_v51 }
 0xc83   :  { %v10985_v7 = vpop.f32.mrf.mxu1  ;;  %v10945_v55 = vpop.f32.mrf.mxu0 }
 0xc84   :  { %11140 = vmatpush2.bf16.msra.mxu1 %v13099_v29 }
 0xc85   :  { %v10986_v0 = vpop.f32.mrf.mxu1  ;;  %11141 = vmatprep.subr.bf16.mxu1 %v13104_v38 }
 0xc88   :  { %11142 = vmatpush2.bf16.msra.mxu1 %v13102_v6 }
 0xc89   :  { %11193 = vmatprep.subr.bf16.mxu1 %v13107_v23 }
 0xc8b   :  { %11144 = vmatmul.mubr.bf16.vlgmr.msra.gmra.mxu1 %v14018_v48  ;;  %v13120_v48 = vld [vmem:[#allocation17 + $0x648] ss:$16 sps:$4 sm:$0xff]  }
 0xc8c   :  { %11194 = vmatpush1.bf16.msra.mxu1 %v13105_v16  ;;  %11225 = vmatprep.mubr.bf16.mxu1 %v14062_v45  ;;  %v13123_v45 = vld [vmem:[#allocation17 + $0x628] ss:$16 sps:$4 sm:$0xff]  }
 0xc8d   :  { %11195 = vmatprep.subr.bf16.mxu1 %v13110_v28 }
 0xc90   :  { %11196 = vmatpush1.bf16.msra.mxu1 %v13108_v11 }
 0xc91   :  { %11197 = vmatprep.subr.bf16.mxu1 %v13113_v8  ;;  %v9601_v8 = vrot.slane %v14069_v31, %v13672_v36  ;;  %v11252_v36 = vsub.s32 7, %v13662_v32 }
 0xc94   :  { %11198 = vmatpush1.bf16.msra.mxu1 %v13111_v41 }
 0xc95   :  { %11199 = vmatprep.subr.bf16.mxu1 %v13116_v59  ;;  %v9605_v59 = vrot.slane %v14069_v31, %v13976_v63  ;;  %v11253_v63 = vrot.slane %v14069_v31, %v11252_v36 }
 0xc98   :  { %11200 = vmatpush1.bf16.msra.mxu1 %v13114_v13  ;;  %v9621_v13 = vrot.slane %v9601_v8, %v13665_v33 }
 0xc99   :  { %11201 = vmatprep.subr.bf16.mxu1 %v13119_v17  ;;  %v9625_v17 = vrot.slane %v9605_v59, %v13665_v33 }
 0xc9c   :  { %11202 = vmatpush1.bf16.msra.mxu1 %v13117_v26 }
 0xc9d   :  { %11203 = vmatprep.subr.bf16.mxu1 %v13122_v1 }
 0xca0   :  { %11204 = vmatpush1.bf16.msra.mxu1 %v13120_v48 }
 0xca1   :  { %11205 = vmatprep.subr.bf16.mxu1 %v13125_v49 }
 0xca4   :  { %11206 = vmatpush1.bf16.msra.mxu1 %v13123_v45 }
 0xca5   :  { %11207 = vmatprep.subr.bf16.mxu1 %v13128_v34 }
 0xca8   :  { %11208 = vmatpush1.bf16.msra.mxu1 %v13126_v54 }
 0xca9   :  { %11209 = vmatprep.subr.bf16.mxu1 %v13131_v12 }
 0xcac   :  { %11210 = vmatpush2.bf16.msra.mxu1 %v13129_v35 }
 0xcad   :  { %11211 = vmatprep.subr.bf16.mxu1 %v13134_v5 }
 0xcb0   :  { %11212 = vmatpush2.bf16.msra.mxu1 %v13132_v30  ;;  %v11249_v30 = vrot.slane %v14069_v31, %v13708_v60  ;;  %v12644_v60 = vld [vmem:[#allocation5] ss:$0 sm:$0xff] }
 0xcb1   :  { %11213 = vmatprep.subr.bf16.mxu1 %v13137_v57 }
 0xcb2   :  { %v11269_v33 = vrot.slane %v11249_v30, %v13695_v51 }
 0xcb4   :  { %11214 = vmatpush2.bf16.msra.mxu1 %v13135_v50 }
 0xcb5   :  { %11215 = vmatprep.subr.bf16.mxu1 %v13140_v10 }
 0xcb8   :  { %11216 = vmatpush2.bf16.msra.mxu1 %v13138_v39 }
 0xcb9   :  { %11217 = vmatprep.subr.bf16.mxu1 %v13143_v42 }
 0xcbc   :  { %11218 = vmatpush2.bf16.msra.mxu1 %v13141_v56  ;;  %v11273_v56 = vrot.slane %v11253_v63, %v13695_v51 }
 0xcbd   :  { %v11022_v22 = vpop.f32.mrf.mxu0  ;;  %11219 = vmatprep.subr.bf16.mxu1 %v13146_v14 }
 0xcbe   :  { %v11023_v25 = vadd.f32 %v11022_v22, %v14078_v2 }
 0xcbf   :  { %v11024_v27 = vpop.f32.mrf.mxu0 }
 0xcc0   :  { %v11025_v52 = vadd.f32 %v11024_v27, %v14080_v19  ;;  %11220 = vmatpush2.bf16.msra.mxu1 %v13144_v47 }
 0xcc1   :  { %v11026_v21 = vpop.f32.mrf.mxu0  ;;  %11221 = vmatprep.subr.bf16.mxu1 %v13149_v46 }
 0xcc3   :  { %v11027_v43 = vpop.f32.mrf.mxu0 }
 0xcc4   :  { %11222 = vmatpush2.bf16.msra.mxu1 %v13147_v18 }
 0xcc5   :  { %11223 = vmatprep.subr.bf16.mxu1 %v13152_v53 }
 0xcc8   :  { %11224 = vmatpush2.bf16.msra.mxu1 %v13150_v24 }
 0xccb   :  { %11226 = vmatmul.mubr.bf16.vlgmr.msra.gmra.mxu1 %v14064_v44  ;;  %v11265_v44 = vrot.slane %v11245_v40, %v13695_v51 }
 0xcfd   :  { %v11104_v62 = vpop.f32.mrf.mxu0 }
 0xcfe   :  { %v11105_v26 = vadd.f32 %v11104_v62, %v9621_v13 }
 0xcff   :  { %v11106_v15 = vpop.f32.mrf.mxu0 }
 0xd00   :  { %v11107_v48 = vadd.f32 %v11106_v15, %v9625_v17 }
 0xd01   :  { %v11108_v20 = vpop.f32.mrf.mxu0 }
 0xd03   :  { %v11109_v37 = vpop.f32.mrf.mxu0 }
 0xd0b   :  { %v11063_v2 = vpop.f32.mrf.mxu1 }
 0xd0c   :  { %v11064_v61 = vadd.f32 %v11063_v2, %v11023_v25 }
 0xd0d   :  { %v11065_v4 = vpop.f32.mrf.mxu1 }
 0xd0e   :  { %v11234_v29 = vmax.f32 %v11064_v61, 0.0  ;;  %v11066_v38 = vadd.f32 %v11065_v4, %v11025_v52 }
 0xd0f   :  { %v11067_v19 = vpop.f32.mrf.mxu1 }
 0xd10   :  { %v11235_v7 = vmax.f32 %v11066_v38, 0.0  ;;  %v11274_v0 = vmul.f32 %v11261_v9, %v11234_v29 }
 0xd11   :  { %v11068_v55 = vpop.f32.mrf.mxu1 }
 0xd12   :  { %v11275_v6 = vmul.f32 %v11265_v44, %v11235_v7 }
 0xd14   :  { %v11278_v23 = vadd.f32 %v11275_v6, %v11274_v0 }
 0xd3d   :  { %v11186_v16 = vpop.f32.mrf.mxu0 }
 0xd3f   :  { %v11188_v28 = vpop.f32.mrf.mxu0 }
 0xd41   :  { %v11190_v11 = vpop.f32.mrf.mxu0 }
 0xd43   :  { %v11191_v41 = vpop.f32.mrf.mxu0 }
 0xd4b   :  { %v11145_v1 = vpop.f32.mrf.mxu1 }
 0xd4c   :  { %v11146_v49 = vadd.f32 %v11145_v1, %v11105_v26 }
 0xd4d   :  { %v11147_v45 = vpop.f32.mrf.mxu1 }
 0xd4e   :  { %v11148_v34 = vadd.f32 %v11147_v45, %v11107_v48  ;;  %v11187_v54 = vadd.f32 %v11186_v16, %v11146_v49 }
 0xd4f   :  { %v11149_v12 = vpop.f32.mrf.mxu1 }
 0xd50   :  { %v11189_v35 = vadd.f32 %v11188_v28, %v11148_v34 }
 0xd51   :  { %v11150_v5 = vpop.f32.mrf.mxu1 }
 0xd8b   :  { %v11227_v57 = vpop.f32.mrf.mxu1 }
 0xd8c   :  { %v11228_v50 = vadd.f32 %v11227_v57, %v11187_v54 }
 0xd8d   :  { %v11229_v10 = vpop.f32.mrf.mxu1 }
 0xd8e   :  { %v11236_v39 = vmax.f32 %v11228_v50, 0.0  ;;  %v11230_v42 = vadd.f32 %v11229_v10, %v11189_v35 }
 0xd8f   :  { %v11231_v14 = vpop.f32.mrf.mxu1 }
 0xd90   :  { %v11276_v47 = vmul.f32 %v11269_v33, %v11236_v39  ;;  %v11237_v22 = vmax.f32 %v11230_v42, 0.0 }
 0xd91   :  { %v11232_v46 = vpop.f32.mrf.mxu1 }
 0xd92   :  { %v11277_v25 = vmul.f32 %v11273_v56, %v11237_v22  ;;  %v11279_v32 = vadd.f32 %v11278_v23, %v11276_v47 }
 0xd94   :  { %v11280_v27 = vadd.f32 %v11279_v32, %v11277_v25 }
 0xd96   :  { %11281 = vadd.xlane.f32.xlu0 %v11280_v27 }
 0xe1f   :  { %v11282_v52 = vpop.xlane.xlu0 %11281 }
 0xe20   :  { %v11290_v31 = vadd.f32 %v12644_v60, %v11282_v52 }
 0xe22   :  { %11292 = vst.msk [vmem:[%s14121_s13] sm:$0xff] %vm11291_vm6, %v11290_v31 }
 0xe23   :  { %11297 = vsyncpa [#allocation7], 1 }
 0xe24   :  { %11298 = vsyncpa [#allocation9], 1 }
 0xe25   :  { %11299 = vsyncpa [#allocation12], 1 }
 0xe26   :  { %11300 = vsyncpa [#allocation15], 1 }
 0xe27   :  { %11301 = vsyncpa [#allocation18], 1 }
 0xe28   :  { %11302 = vsyncmov [#allocation4] }
 0xe2b   :  { %s11303_s5 = vpop.sfrf %11302 }
 0xe2c   :  { %p12645_p13 = scmp.ne.s32.totalorder %s11303_s5, 0 }
 0xe2e   :  { %11307 = shalt.err (%p12645_p13)  }
 0xe2f   :  { %11309 = vsyncmov [#allocation4 + $0x1] }
 0xe32   :  { %s11310_s2 = vpop.sfrf %11309 }
 0xe33   :  { %p12646_p0 = scmp.ne.s32.totalorder %s11310_s2, 0 }
 0xe35   :  { %11314 = shalt.err (%p12646_p0)  }

</bundles_post_ra>
